<compile_context>
chip_gen: v7x
topology: tpu7x:2x2x1
jax: 0.10.0
libtpu: 0.0.40
codegen_flags: <defaults>
</compile_context>

<pallas_src>
import functools

import jax
import jax.numpy as jnp
import numpy as np
from jax.experimental import pallas as pl
from jax.experimental.pallas import tpu as pltpu


# ---------------------------------------------------------------------------
# Pallas kernel: one-shot GEMM + bias + optional ReLU.
#   out[tm, N] = act( x[tm, K] @ w[K, N] + b[1, N] )
# No reduction grid, no scratch accumulator: K already contains all conv taps.
# ---------------------------------------------------------------------------
def _gemm_bias_act_kernel(x_ref, w_ref, b_ref, o_ref, *, relu):
    y = jnp.dot(x_ref[...], w_ref[...], preferred_element_type=jnp.float32)
    y = y + b_ref[...]
    if relu:
        y = jnp.maximum(y, 0.0)
    o_ref[...] = y.astype(o_ref.dtype)


def _pick_tm(M):
    """M tile: split large M so v7x's two cores get a 'parallel' axis."""
    for tm in (1024, 512, 256):
        if M > tm and M % tm == 0:
            return tm
    return M


def _gemm_bias_act(x, w, b, *, relu):
    """x: (M, K), w: (K, N), b: (1, N) -> (M, N) in float32."""
    M, K = x.shape
    N = w.shape[1]
    tm = _pick_tm(M)
    kernel = functools.partial(_gemm_bias_act_kernel, relu=relu)
    return pl.pallas_call(
        kernel,
        out_shape=jax.ShapeDtypeStruct((M, N), jnp.float32),
        grid_spec=pltpu.PrefetchScalarGridSpec(
            num_scalar_prefetch=0,
            grid=(M // tm,),
            in_specs=[
                pl.BlockSpec((tm, K), lambda i: (i, 0)),
                pl.BlockSpec((K, N), lambda i: (0, 0)),
                pl.BlockSpec((1, N), lambda i: (0, 0)),
            ],
            out_specs=pl.BlockSpec((tm, N), lambda i: (i, 0)),
        ),
        compiler_params=pltpu.CompilerParams(
            dimension_semantics=("parallel",)),
    )(x, w, b)


# ---------------------------------------------------------------------------
# Wrapper-side glue (im2col over a 3x3 window, phase de-interleave).  These are
# tiny slice/concat/transpose ops that XLA fuses; all FLOPs run in the kernel.
# ---------------------------------------------------------------------------
def _im2col_3x3(x_pad):
    """3x3 VALID-window im2col of an already padded NHWC tensor.

    Returns (N*OH*OW, 9*C) with columns ordered (dy, dx, c)."""
    N, Hp, Wp, C = x_pad.shape
    OH, OW = Hp - 2, Wp - 2
    cols = jnp.concatenate(
        [x_pad[:, dy:dy + OH, dx:dx + OW, :]
         for dy in range(3) for dx in range(3)],
        axis=-1)                                   # (N, OH, OW, 9*C)
    return cols.reshape(N * OH * OW, 9 * C)


def _tconv_phase(x_nhwc, w9, b4, cout):
    """ConvTranspose2d(k=4, s=2, p=1) + ReLU via phase-folded single GEMM."""
    N, H, W, _ = x_nhwc.shape
    xp = jnp.pad(x_nhwc, ((0, 0), (1, 1), (1, 1), (0, 0)))
    mat = _im2col_3x3(xp)                          # (N*H*W, 9*Cin)
    y = _gemm_bias_act(mat, w9, b4, relu=True)     # (N*H*W, 4*Cout)
    y = y.reshape(N, H, W, 2, 2, cout)             # (n, q, p, rh, rw, c)
    y = y.transpose(0, 1, 3, 2, 4, 5)              # (n, q, rh, p, rw, c)
    return y.reshape(N, 2 * H, 2 * W, cout)        # out[n, 2q+rh, 2p+rw, c]


def _conv3x3(x_nhwc, wmat, bvec, cout_real):
    """Conv2d(3, stride=1, pad=1), Cout zero-padded to 128 inside the GEMM."""
    N, H, W, _ = x_nhwc.shape
    xp = jnp.pad(x_nhwc, ((0, 0), (1, 1), (1, 1), (0, 0)))
    mat = _im2col_3x3(xp)                          # (N*H*W, 9*Cin)
    y = _gemm_bias_act(mat, wmat, bvec, relu=False)  # (N*H*W, 128) lane-dense
    return y[:, :cout_real].reshape(N, H, W, cout_real)


# ---------------------------------------------------------------------------
# One-time weight re-layout (outside the jitted forward).
# ---------------------------------------------------------------------------
# Phase tap mapping for ConvTranspose2d(4, 2, 1) on a symmetrically 1-padded
# input:  output row 2q+rh uses padded rows q+dy with kernel row kh:
#   rh=0: (dy=0 -> kh=3), (dy=1 -> kh=1)      rh=1: (dy=1 -> kh=2), (dy=2 -> kh=0)
_PHASE_TAPS = {0: ((0, 3), (1, 1)), 1: ((1, 2), (2, 0))}


def _tconv_weight_9tap(w, b):
    """w: (Cin, Cout, 4, 4) torch ConvTranspose2d layout -> (9*Cin, 4*Cout)."""
    w = np.asarray(w, np.float32)
    b = np.asarray(b, np.float32)
    cin, cout = w.shape[0], w.shape[1]
    w9 = np.zeros((3, 3, cin, 2, 2, cout), np.float32)
    for rh, taps_h in _PHASE_TAPS.items():
        for rw, taps_w in _PHASE_TAPS.items():
            for dy, kh in taps_h:
                for dx, kw in taps_w:
                    w9[dy, dx, :, rh, rw, :] = w[:, :, kh, kw]
    w9 = w9.reshape(9 * cin, 4 * cout)             # rows (dy,dx,ci), cols (rh,rw,co)
    b4 = np.tile(b, 4).reshape(1, 4 * cout)
    return jnp.asarray(w9), jnp.asarray(b4)


def _conv_weight_mat(w, b, pad_to=128):
    """w: (Cout, Cin, 3, 3) torch Conv2d layout -> (9*Cin, pad_to)."""
    w = np.asarray(w, np.float32)
    b = np.asarray(b, np.float32)
    cout, cin = w.shape[0], w.shape[1]
    wm = w.transpose(2, 3, 1, 0).reshape(9 * cin, cout)   # rows (dy,dx,ci)
    wp = np.zeros((9 * cin, pad_to), np.float32)
    wp[:, :cout] = wm
    bp = np.zeros((1, pad_to), np.float32)
    bp[0, :cout] = b
    return jnp.asarray(wp), jnp.asarray(bp)


def prepare_params(p):
    gp = {}
    gp["lin_w"] = jnp.asarray(np.asarray(p["linear_w"], np.float32).T)   # (16, 2048)
    gp["lin_b"] = jnp.asarray(np.asarray(p["linear_b"], np.float32).reshape(1, -1))
    gp["t1_w"], gp["t1_b"] = _tconv_weight_9tap(p["tconv1_w"], p["tconv1_b"])
    gp["t2_w"], gp["t2_b"] = _tconv_weight_9tap(p["tconv2_w"], p["tconv2_b"])
    gp["t3_w"], gp["t3_b"] = _tconv_weight_9tap(p["tconv3_w"], p["tconv3_b"])
    gp["c_w"], gp["c_b"] = _conv_weight_mat(p["conv_w"], p["conv_b"])
    return gp


# ---------------------------------------------------------------------------
# Parameters (deterministic, PyTorch-style shapes & fan-in scaled uniform).
# ---------------------------------------------------------------------------
def init_params(key, in_ch=3, latent_dim=16):
    def u(k, shape, fan_in):
        bound = 1.0 / np.sqrt(fan_in)
        return jax.random.uniform(k, shape, jnp.float32, -bound, bound)

    ks = jax.random.split(key, 10)
    p = {}
    p["linear_w"] = u(ks[0], (4 * 4 * 128, latent_dim), latent_dim)
    p["linear_b"] = u(ks[1], (4 * 4 * 128,), latent_dim)
    p["tconv1_w"] = u(ks[2], (128, 128, 4, 4), 128 * 16)   # (Cin, Cout, K, K)
    p["tconv1_b"] = u(ks[3], (128,), 128 * 16)
    p["tconv2_w"] = u(ks[4], (128, 64, 4, 4), 128 * 16)
    p["tconv2_b"] = u(ks[5], (64,), 128 * 16)
    p["tconv3_w"] = u(ks[6], (64, 32, 4, 4), 64 * 16)
    p["tconv3_b"] = u(ks[7], (32,), 64 * 16)
    p["conv_w"] = u(ks[8], (2 * in_ch, 32, 3, 3), 32 * 9)  # (Cout, Cin, K, K)
    p["conv_b"] = u(ks[9], (2 * in_ch,), 32 * 9)
    return p


# ---------------------------------------------------------------------------
# Decoder forward (Pallas path).  Activations stay NHWC through the pipeline
# (the torch view(bs,4,4,128) IS the NHWC tensor before its permute to NCHW).
# ---------------------------------------------------------------------------
def decoder_forward(x, gp):
    bs = x.shape[0]
    h = _gemm_bias_act(x, gp["lin_w"], gp["lin_b"], relu=True)     # (bs, 2048)
    h = h.reshape(bs, 4, 4, 128)                                   # NHWC
    h = _tconv_phase(h, gp["t1_w"], gp["t1_b"], 128)               # (bs, 8, 8, 128)
    h = _tconv_phase(h, gp["t2_w"], gp["t2_b"], 64)                # (bs, 16, 16, 64)
    h = _tconv_phase(h, gp["t3_w"], gp["t3_b"], 32)                # (bs, 32, 32, 32)
    h = _conv3x3(h, gp["c_w"], gp["c_b"], 6)                       # (bs, 32, 32, 6)
    return h.transpose(0, 3, 1, 2)                                 # NCHW like PyTorch


# ---------------------------------------------------------------------------
# Pure-JAX reference (mirrors PyTorch semantics).  Uses the same (default)
# TPU matmul precision as the kernel so the check isolates lowering errors.
# ---------------------------------------------------------------------------
def decoder_reference(x, params):
    h = jnp.maximum(x @ params["linear_w"].T + params["linear_b"], 0.0)
    h = h.reshape(x.shape[0], 4, 4, 128).transpose(0, 3, 1, 2)     # NCHW

    def tconv(h, w, b):
        wf = jnp.flip(w, (2, 3)).transpose(1, 0, 2, 3)             # -> OIHW
        y = jax.lax.conv_general_dilated(
            h, wf, window_strides=(1, 1), padding=((2, 2), (2, 2)),
            lhs_dilation=(2, 2),
            dimension_numbers=("NCHW", "OIHW", "NCHW"))
        return y + b.reshape(1, -1, 1, 1)

    h = jnp.maximum(tconv(h, params["tconv1_w"], params["tconv1_b"]), 0.0)
    h = jnp.maximum(tconv(h, params["tconv2_w"], params["tconv2_b"]), 0.0)
    h = jnp.maximum(tconv(h, params["tconv3_w"], params["tconv3_b"]), 0.0)
    h = jax.lax.conv_general_dilated(
        h, params["conv_w"], (1, 1), ((1, 1), (1, 1)),
        dimension_numbers=("NCHW", "OIHW", "NCHW"))
    return h + params["conv_b"].reshape(1, -1, 1, 1)


if __name__ == "__main__":
    key = jax.random.PRNGKey(0)
    pkey, xkey = jax.random.split(key)
    params = init_params(pkey, in_ch=3, latent_dim=16)
    gparams = prepare_params(params)                 # one-time weight re-layout
    x = jax.random.normal(xkey, (2, 16), jnp.float32)   # (batch, latent_dim)

    out = jax.jit(decoder_forward)(x, gparams)
    out = jax.block_until_ready(out)
    assert out.shape == (2, 6, 32, 32), out.shape

    ref = jax.block_until_ready(jax.jit(decoder_reference)(x, params))
    np.testing.assert_allclose(np.asarray(out), np.asarray(ref),
                               rtol=2e-3, atol=2e-3)
    print("KERNEL_OK")
</pallas_src>

<mosaic_0001>
module attributes {stable_mosaic.version = 11 : i64} {
  func.func @_gemm_bias_act_kernel(%arg0: i32, %arg1: memref<2x16xf32, #tpu.memory_space<vmem>>, %arg2: memref<16x2048xf32, #tpu.memory_space<vmem>>, %arg3: memref<1x2048xf32, #tpu.memory_space<vmem>>, %arg4: memref<2x2048xf32, #tpu.memory_space<vmem>>) attributes {dimension_semantics = [#tpu.dimension_semantics<parallel>], iteration_bounds = array<i64: 1>, scalar_prefetch = 0 : i64, scratch_operands = 0 : i64, tpu.core_type = #tpu.core_type<tc>, window_params = [{transform_indices = @transform_0, window_bounds = array<i64: 2, 16>}, {pipeline_mode = #tpu.pipeline_mode<synchronous>, transform_indices = @transform_1, window_bounds = array<i64: 16, 2048>}, {pipeline_mode = #tpu.pipeline_mode<synchronous>, transform_indices = @transform_2, window_bounds = array<i64: 1, 2048>}, {transform_indices = @transform_3, window_bounds = array<i64: 2, 2048>}]} {
    %c0 = arith.constant 0 : index
    %c0_0 = arith.constant 0 : index
    %0 = vector.load %arg1[%c0, %c0_0] : memref<2x16xf32, #tpu.memory_space<vmem>>, vector<2x16xf32>
    %c0_1 = arith.constant 0 : index
    %c0_2 = arith.constant 0 : index
    %1 = vector.load %arg2[%c0_1, %c0_2] : memref<16x2048xf32, #tpu.memory_space<vmem>>, vector<16x2048xf32>
    %cst = arith.constant dense<0.000000e+00> : vector<2x2048xf32>
    %2 = tpu.matmul %0, %1, %cst {dimension_numbers = #tpu.dot_dimension_numbers<[1], [0], [0], [1], [0, 0, 1, 1], [], []>} : vector<2x16xf32>, vector<16x2048xf32>, vector<2x2048xf32> -> vector<2x2048xf32>
    %c0_3 = arith.constant 0 : index
    %c0_4 = arith.constant 0 : index
    %3 = vector.load %arg3[%c0_3, %c0_4] : memref<1x2048xf32, #tpu.memory_space<vmem>>, vector<1x2048xf32>
    %4 = vector.broadcast %3 : vector<1x2048xf32> to vector<2x2048xf32>
    %5 = arith.addf %2, %4 : vector<2x2048xf32>
    %cst_5 = arith.constant 0.000000e+00 : f32
    %6 = vector.broadcast %cst_5 : f32 to vector<2x2048xf32>
    %7 = arith.maximumf %5, %6 : vector<2x2048xf32>
    %c0_6 = arith.constant 0 : index
    %c0_7 = arith.constant 0 : index
    %8 = vector.load %arg4[%c0_6, %c0_7] : memref<2x2048xf32, #tpu.memory_space<vmem>>, vector<2x2048xf32>
    tpu.vector_store %arg4[%c0_6, %c0_7], %7 {strides = array<i32>} : memref<2x2048xf32, #tpu.memory_space<vmem>>, vector<2x2048xf32>,
    return
  }
  func.func @transform_0(%arg0: i32) -> (i32, i32) {
    %c0_i32 = arith.constant 0 : i32
    %c0_i32_0 = arith.constant 0 : i32
    return %arg0, %c0_i32 : i32, i32
  }
  func.func @transform_1(%arg0: i32) -> (i32, i32) {
    %c0_i32 = arith.constant 0 : i32
    %c0_i32_0 = arith.constant 0 : i32
    %c0_i32_1 = arith.constant 0 : i32
    return %c0_i32, %c0_i32_0 : i32, i32
  }
  func.func @transform_2(%arg0: i32) -> (i32, i32) {
    %c0_i32 = arith.constant 0 : i32
    %c0_i32_0 = arith.constant 0 : i32
    %c0_i32_1 = arith.constant 0 : i32
    return %c0_i32, %c0_i32_0 : i32, i32
  }
  func.func @transform_3(%arg0: i32) -> (i32, i32) {
    %c0_i32 = arith.constant 0 : i32
    %c0_i32_0 = arith.constant 0 : i32
    return %arg0, %c0_i32 : i32, i32
  }
}

module attributes {stable_mosaic.version = 11 : i64} {
  func.func @_gemm_bias_act_kernel(%arg0: i32, %arg1: memref<32x1152xf32, #tpu.memory_space<vmem>>, %arg2: memref<1152x512xf32, #tpu.memory_space<vmem>>, %arg3: memref<1x512xf32, #tpu.memory_space<vmem>>, %arg4: memref<32x512xf32, #tpu.memory_space<vmem>>) attributes {dimension_semantics = [#tpu.dimension_semantics<parallel>], iteration_bounds = array<i64: 1>, scalar_prefetch = 0 : i64, scratch_operands = 0 : i64, tpu.core_type = #tpu.core_type<tc>, window_params = [{transform_indices = @transform_0, window_bounds = array<i64: 32, 1152>}, {pipeline_mode = #tpu.pipeline_mode<synchronous>, transform_indices = @transform_1, window_bounds = array<i64: 1152, 512>}, {pipeline_mode = #tpu.pipeline_mode<synchronous>, transform_indices = @transform_2, window_bounds = array<i64: 1, 512>}, {transform_indices = @transform_3, window_bounds = array<i64: 32, 512>}]} {
    %c0 = arith.constant 0 : index
    %c0_0 = arith.constant 0 : index
    %0 = vector.load %arg1[%c0, %c0_0] : memref<32x1152xf32, #tpu.memory_space<vmem>>, vector<32x1152xf32>
    %c0_1 = arith.constant 0 : index
    %c0_2 = arith.constant 0 : index
    %1 = vector.load %arg2[%c0_1, %c0_2] : memref<1152x512xf32, #tpu.memory_space<vmem>>, vector<1152x512xf32>
    %cst = arith.constant dense<0.000000e+00> : vector<32x512xf32>
    %2 = tpu.matmul %0, %1, %cst {dimension_numbers = #tpu.dot_dimension_numbers<[1], [0], [0], [1], [0, 0, 1, 1], [], []>} : vector<32x1152xf32>, vector<1152x512xf32>, vector<32x512xf32> -> vector<32x512xf32>
    %c0_3 = arith.constant 0 : index
    %c0_4 = arith.constant 0 : index
    %3 = vector.load %arg3[%c0_3, %c0_4] : memref<1x512xf32, #tpu.memory_space<vmem>>, vector<1x512xf32>
    %4 = vector.broadcast %3 : vector<1x512xf32> to vector<32x512xf32>
    %5 = arith.addf %2, %4 : vector<32x512xf32>
    %cst_5 = arith.constant 0.000000e+00 : f32
    %6 = vector.broadcast %cst_5 : f32 to vector<32x512xf32>
    %7 = arith.maximumf %5, %6 : vector<32x512xf32>
    %c0_6 = arith.constant 0 : index
    %c0_7 = arith.constant 0 : index
    %8 = vector.load %arg4[%c0_6, %c0_7] : memref<32x512xf32, #tpu.memory_space<vmem>>, vector<32x512xf32>
    tpu.vector_store %arg4[%c0_6, %c0_7], %7 {strides = array<i32>} : memref<32x512xf32, #tpu.memory_space<vmem>>, vector<32x512xf32>,
    return
  }
  func.func @transform_0(%arg0: i32) -> (i32, i32) {
    %c0_i32 = arith.constant 0 : i32
    %c0_i32_0 = arith.constant 0 : i32
    return %arg0, %c0_i32 : i32, i32
  }
  func.func @transform_1(%arg0: i32) -> (i32, i32) {
    %c0_i32 = arith.constant 0 : i32
    %c0_i32_0 = arith.constant 0 : i32
    %c0_i32_1 = arith.constant 0 : i32
    return %c0_i32, %c0_i32_0 : i32, i32
  }
  func.func @transform_2(%arg0: i32) -> (i32, i32) {
    %c0_i32 = arith.constant 0 : i32
    %c0_i32_0 = arith.constant 0 : i32
    %c0_i32_1 = arith.constant 0 : i32
    return %c0_i32, %c0_i32_0 : i32, i32
  }
  func.func @transform_3(%arg0: i32) -> (i32, i32) {
    %c0_i32 = arith.constant 0 : i32
    %c0_i32_0 = arith.constant 0 : i32
    return %arg0, %c0_i32 : i32, i32
  }
}

module attributes {stable_mosaic.version = 11 : i64} {
  func.func @_gemm_bias_act_kernel(%arg0: i32, %arg1: memref<128x1152xf32, #tpu.memory_space<vmem>>, %arg2: memref<1152x256xf32, #tpu.memory_space<vmem>>, %arg3: memref<1x256xf32, #tpu.memory_space<vmem>>, %arg4: memref<128x256xf32, #tpu.memory_space<vmem>>) attributes {dimension_semantics = [#tpu.dimension_semantics<parallel>], iteration_bounds = array<i64: 1>, scalar_prefetch = 0 : i64, scratch_operands = 0 : i64, tpu.core_type = #tpu.core_type<tc>, window_params = [{transform_indices = @transform_0, window_bounds = array<i64: 128, 1152>}, {pipeline_mode = #tpu.pipeline_mode<synchronous>, transform_indices = @transform_1, window_bounds = array<i64: 1152, 256>}, {pipeline_mode = #tpu.pipeline_mode<synchronous>, transform_indices = @transform_2, window_bounds = array<i64: 1, 256>}, {transform_indices = @transform_3, window_bounds = array<i64: 128, 256>}]} {
    %c0 = arith.constant 0 : index
    %c0_0 = arith.constant 0 : index
    %0 = vector.load %arg1[%c0, %c0_0] : memref<128x1152xf32, #tpu.memory_space<vmem>>, vector<128x1152xf32>
    %c0_1 = arith.constant 0 : index
    %c0_2 = arith.constant 0 : index
    %1 = vector.load %arg2[%c0_1, %c0_2] : memref<1152x256xf32, #tpu.memory_space<vmem>>, vector<1152x256xf32>
    %cst = arith.constant dense<0.000000e+00> : vector<128x256xf32>
    %2 = tpu.matmul %0, %1, %cst {dimension_numbers = #tpu.dot_dimension_numbers<[1], [0], [0], [1], [0, 0, 1, 1], [], []>} : vector<128x1152xf32>, vector<1152x256xf32>, vector<128x256xf32> -> vector<128x256xf32>
    %c0_3 = arith.constant 0 : index
    %c0_4 = arith.constant 0 : index
    %3 = vector.load %arg3[%c0_3, %c0_4] : memref<1x256xf32, #tpu.memory_space<vmem>>, vector<1x256xf32>
    %4 = vector.broadcast %3 : vector<1x256xf32> to vector<128x256xf32>
    %5 = arith.addf %2, %4 : vector<128x256xf32>
    %cst_5 = arith.constant 0.000000e+00 : f32
    %6 = vector.broadcast %cst_5 : f32 to vector<128x256xf32>
    %7 = arith.maximumf %5, %6 : vector<128x256xf32>
    %c0_6 = arith.constant 0 : index
    %c0_7 = arith.constant 0 : index
    %8 = vector.load %arg4[%c0_6, %c0_7] : memref<128x256xf32, #tpu.memory_space<vmem>>, vector<128x256xf32>
    tpu.vector_store %arg4[%c0_6, %c0_7], %7 {strides = array<i32>} : memref<128x256xf32, #tpu.memory_space<vmem>>, vector<128x256xf32>,
    return
  }
  func.func @transform_0(%arg0: i32) -> (i32, i32) {
    %c0_i32 = arith.constant 0 : i32
    %c0_i32_0 = arith.constant 0 : i32
    return %arg0, %c0_i32 : i32, i32
  }
  func.func @transform_1(%arg0: i32) -> (i32, i32) {
    %c0_i32 = arith.constant 0 : i32
    %c0_i32_0 = arith.constant 0 : i32
    %c0_i32_1 = arith.constant 0 : i32
    return %c0_i32, %c0_i32_0 : i32, i32
  }
  func.func @transform_2(%arg0: i32) -> (i32, i32) {
    %c0_i32 = arith.constant 0 : i32
    %c0_i32_0 = arith.constant 0 : i32
    %c0_i32_1 = arith.constant 0 : i32
    return %c0_i32, %c0_i32_0 : i32, i32
  }
  func.func @transform_3(%arg0: i32) -> (i32, i32) {
    %c0_i32 = arith.constant 0 : i32
    %c0_i32_0 = arith.constant 0 : i32
    return %arg0, %c0_i32 : i32, i32
  }
}

module attributes {stable_mosaic.version = 11 : i64} {
  func.func @_gemm_bias_act_kernel(%arg0: i32, %arg1: memref<256x576xf32, #tpu.memory_space<vmem>>, %arg2: memref<576x128xf32, #tpu.memory_space<vmem>>, %arg3: memref<1x128xf32, #tpu.memory_space<vmem>>, %arg4: memref<256x128xf32, #tpu.memory_space<vmem>>) attributes {dimension_semantics = [#tpu.dimension_semantics<parallel>], iteration_bounds = array<i64: 2>, scalar_prefetch = 0 : i64, scratch_operands = 0 : i64, tpu.core_type = #tpu.core_type<tc>, window_params = [{transform_indices = @transform_0, window_bounds = array<i64: 256, 576>}, {pipeline_mode = #tpu.pipeline_mode<synchronous>, transform_indices = @transform_1, window_bounds = array<i64: 576, 128>}, {pipeline_mode = #tpu.pipeline_mode<synchronous>, transform_indices = @transform_2, window_bounds = array<i64: 1, 128>}, {transform_indices = @transform_3, window_bounds = array<i64: 256, 128>}]} {
    %c0 = arith.constant 0 : index
    %c0_0 = arith.constant 0 : index
    %0 = vector.load %arg1[%c0, %c0_0] : memref<256x576xf32, #tpu.memory_space<vmem>>, vector<256x576xf32>
    %c0_1 = arith.constant 0 : index
    %c0_2 = arith.constant 0 : index
    %1 = vector.load %arg2[%c0_1, %c0_2] : memref<576x128xf32, #tpu.memory_space<vmem>>, vector<576x128xf32>
    %cst = arith.constant dense<0.000000e+00> : vector<256x128xf32>
    %2 = tpu.matmul %0, %1, %cst {dimension_numbers = #tpu.dot_dimension_numbers<[1], [0], [0], [1], [0, 0, 1, 1], [], []>} : vector<256x576xf32>, vector<576x128xf32>, vector<256x128xf32> -> vector<256x128xf32>
    %c0_3 = arith.constant 0 : index
    %c0_4 = arith.constant 0 : index
    %3 = vector.load %arg3[%c0_3, %c0_4] : memref<1x128xf32, #tpu.memory_space<vmem>>, vector<1x128xf32>
    %4 = vector.broadcast %3 : vector<1x128xf32> to vector<256x128xf32>
    %5 = arith.addf %2, %4 : vector<256x128xf32>
    %cst_5 = arith.constant 0.000000e+00 : f32
    %6 = vector.broadcast %cst_5 : f32 to vector<256x128xf32>
    %7 = arith.maximumf %5, %6 : vector<256x128xf32>
    %c0_6 = arith.constant 0 : index
    %c0_7 = arith.constant 0 : index
    %8 = vector.load %arg4[%c0_6, %c0_7] : memref<256x128xf32, #tpu.memory_space<vmem>>, vector<256x128xf32>
    tpu.vector_store %arg4[%c0_6, %c0_7], %7 {strides = array<i32>} : memref<256x128xf32, #tpu.memory_space<vmem>>, vector<256x128xf32>,
    return
  }
  func.func @transform_0(%arg0: i32) -> (i32, i32) {
    %c0_i32 = arith.constant 0 : i32
    %c0_i32_0 = arith.constant 0 : i32
    return %arg0, %c0_i32 : i32, i32
  }
  func.func @transform_1(%arg0: i32) -> (i32, i32) {
    %c0_i32 = arith.constant 0 : i32
    %c0_i32_0 = arith.constant 0 : i32
    %c0_i32_1 = arith.constant 0 : i32
    return %c0_i32, %c0_i32_0 : i32, i32
  }
  func.func @transform_2(%arg0: i32) -> (i32, i32) {
    %c0_i32 = arith.constant 0 : i32
    %c0_i32_0 = arith.constant 0 : i32
    %c0_i32_1 = arith.constant 0 : i32
    return %c0_i32, %c0_i32_0 : i32, i32
  }
  func.func @transform_3(%arg0: i32) -> (i32, i32) {
    %c0_i32 = arith.constant 0 : i32
    %c0_i32_0 = arith.constant 0 : i32
    return %arg0, %c0_i32 : i32, i32
  }
}

module attributes {stable_mosaic.version = 11 : i64} {
  func.func @_gemm_bias_act_kernel(%arg0: i32, %arg1: memref<1024x288xf32, #tpu.memory_space<vmem>>, %arg2: memref<288x128xf32, #tpu.memory_space<vmem>>, %arg3: memref<1x128xf32, #tpu.memory_space<vmem>>, %arg4: memref<1024x128xf32, #tpu.memory_space<vmem>>) attributes {dimension_semantics = [#tpu.dimension_semantics<parallel>], iteration_bounds = array<i64: 2>, scalar_prefetch = 0 : i64, scratch_operands = 0 : i64, tpu.core_type = #tpu.core_type<tc>, window_params = [{transform_indices = @transform_0, window_bounds = array<i64: 1024, 288>}, {pipeline_mode = #tpu.pipeline_mode<synchronous>, transform_indices = @transform_1, window_bounds = array<i64: 288, 128>}, {pipeline_mode = #tpu.pipeline_mode<synchronous>, transform_indices = @transform_2, window_bounds = array<i64: 1, 128>}, {transform_indices = @transform_3, window_bounds = array<i64: 1024, 128>}]} {
    %c0 = arith.constant 0 : index
    %c0_0 = arith.constant 0 : index
    %0 = vector.load %arg1[%c0, %c0_0] : memref<1024x288xf32, #tpu.memory_space<vmem>>, vector<1024x288xf32>
    %c0_1 = arith.constant 0 : index
    %c0_2 = arith.constant 0 : index
    %1 = vector.load %arg2[%c0_1, %c0_2] : memref<288x128xf32, #tpu.memory_space<vmem>>, vector<288x128xf32>
    %cst = arith.constant dense<0.000000e+00> : vector<1024x128xf32>
    %2 = tpu.matmul %0, %1, %cst {dimension_numbers = #tpu.dot_dimension_numbers<[1], [0], [0], [1], [0, 0, 1, 1], [], []>} : vector<1024x288xf32>, vector<288x128xf32>, vector<1024x128xf32> -> vector<1024x128xf32>
    %c0_3 = arith.constant 0 : index
    %c0_4 = arith.constant 0 : index
    %3 = vector.load %arg3[%c0_3, %c0_4] : memref<1x128xf32, #tpu.memory_space<vmem>>, vector<1x128xf32>
    %4 = vector.broadcast %3 : vector<1x128xf32> to vector<1024x128xf32>
    %5 = arith.addf %2, %4 : vector<1024x128xf32>
    %c0_5 = arith.constant 0 : index
    %c0_6 = arith.constant 0 : index
    %6 = vector.load %arg4[%c0_5, %c0_6] : memref<1024x128xf32, #tpu.memory_space<vmem>>, vector<1024x128xf32>
    tpu.vector_store %arg4[%c0_5, %c0_6], %5 {strides = array<i32>} : memref<1024x128xf32, #tpu.memory_space<vmem>>, vector<1024x128xf32>,
    return
  }
  func.func @transform_0(%arg0: i32) -> (i32, i32) {
    %c0_i32 = arith.constant 0 : i32
    %c0_i32_0 = arith.constant 0 : i32
    return %arg0, %c0_i32 : i32, i32
  }
  func.func @transform_1(%arg0: i32) -> (i32, i32) {
    %c0_i32 = arith.constant 0 : i32
    %c0_i32_0 = arith.constant 0 : i32
    %c0_i32_1 = arith.constant 0 : i32
    return %c0_i32, %c0_i32_0 : i32, i32
  }
  func.func @transform_2(%arg0: i32) -> (i32, i32) {
    %c0_i32 = arith.constant 0 : i32
    %c0_i32_0 = arith.constant 0 : i32
    %c0_i32_1 = arith.constant 0 : i32
    return %c0_i32, %c0_i32_0 : i32, i32
  }
  func.func @transform_3(%arg0: i32) -> (i32, i32) {
    %c0_i32 = arith.constant 0 : i32
    %c0_i32_0 = arith.constant 0 : i32
    return %arg0, %c0_i32 : i32, i32
  }
}

</mosaic_0001>

<bundles_post_ra>
// kernel: decoder_forward.5
= control target key start
LH: loop header
LB: loop body
LE: loop exit
PB: predicated region body
PF: predicated region fallthrough
CT: control target
= control target key end

     0   :  { %8 = vsyncpa [#allocation3], 0  ;;  %s1093_s0 = inlined_call_operand.hbm [shape: f32[2,16], index: 0, kind: input, shape index: {}]   ;;  %s1094_s1 = inlined_call_operand.hbm [shape: f32[16,2048], index: 1, kind: input, shape index: {}]   ;;  %s1095_s2 = inlined_call_operand.hbm [shape: f32[1,2048], index: 2, kind: input, shape index: {}]   ;;  %s1096_s3 = inlined_call_operand.vmem [shape: f32[2,2048], index: 3, kind: output, shape index: {}]  }
   0x1   :  { %9 = vsyncpa [#allocation5], 0  ;;  %s971_s12 = smov [#allocation4]   ;;  %s901_s16 = scalar_lea.hbm %s1094_s1, 4096 }
   0x2   :  { %s25_s13 = sshll.u32 %s971_s12, 4  ;;  %p902_p0 = scmp.ne.s32.totalorder %s1094_s1, %s901_s16  ;;  %s26_s13 = int_to_ptr.vmem [resolvable:$true] %s25_s13 }
   0x3   :  { %p905_p1 = scmp.lt.u32.totalorder %s901_s16, %s1094_s1 }
   0x5   :  { %p907_p2 = pnand %p905_p1, %p902_p0 }
   0x7   :  { %910 = shalt.err (!%p907_p2)
}
   0x8   :  { %s911_s21 = scalar_lea.vmem %s26_s13, 4096  ;;  %p916_p4 = scmp.lt.s32.totalorder %s26_s13, %s26_s13 }
   0x9   :  { %p912_p3 = scmp.ne.s32.totalorder %s26_s13, %s911_s21  ;;  %p917_p5 = scmp.lt.s32.totalorder %s911_s21, %s911_s21 }
   0xb   :  { %p918_p6 = por %p917_p5, %p916_p4 }
   0xd   :  { %p919_p7 = pnand %p918_p6, %p912_p3 }
   0xf   :  { %922 = shalt.err (!%p919_p7)
}
  0x10   :  { %s972_s22 = smov 2048   ;;  %s973_s23 = smov 128  }
  0x11   :  { %31 = dma.hbm_to_vmem [thread:$0]  %s1094_s1, 4096, %s26_s13, [#allocation5], %s972_s22, %s972_s22, %s973_s23  }
  0x12   :  { %s974_s26 = smov [#allocation2]   ;;  %s975_s28 = smov [#allocation6]  }
  0x13   :  { %s16_s27 = sshll.u32 %s974_s26, 4  ;;  %s38_s29 = sshll.u32 %s975_s28, 4  ;;  %s17_s27 = int_to_ptr.vmem [resolvable:$true] %s16_s27  ;;  %s39_s29 = int_to_ptr.vmem [resolvable:$true] %s38_s29 }
  0x14   :  { %s923_s5 = scalar_lea.hbm %s1093_s0, 32 }
  0x15   :  { %p924_p8 = scmp.ne.s32.totalorder %s1093_s0, %s923_s5  ;;  %p927_p9 = scmp.lt.u32.totalorder %s923_s5, %s1093_s0 }
  0x17   :  { %p929_p10 = pnand %p927_p9, %p924_p8 }
  0x19   :  { %932 = shalt.err (!%p929_p10)
}
  0x1a   :  { %s933_s1 = scalar_lea.vmem %s17_s27, 32  ;;  %p938_p12 = scmp.lt.s32.totalorder %s17_s27, %s17_s27 }
  0x1b   :  { %p934_p11 = scmp.ne.s32.totalorder %s17_s27, %s933_s1  ;;  %p939_p13 = scmp.lt.s32.totalorder %s933_s1, %s933_s1 }
  0x1d   :  { %p940_p0 = por %p939_p13, %p938_p12 }
  0x1f   :  { %p941_p1 = pnand %p940_p0, %p934_p11 }
  0x21   :  { %944 = shalt.err (!%p941_p1)
}
  0x22   :  { %19 = dma.hbm_to_vmem [thread:$0]  %s1093_s0, 32, %s17_s27, [#allocation3]  }
  0x23   :  { %s945_s14 = scalar_lea.hbm %s1095_s2, 256 }
  0x24   :  { %p946_p2 = scmp.ne.s32.totalorder %s1095_s2, %s945_s14  ;;  %p949_p3 = scmp.lt.u32.totalorder %s945_s14, %s1095_s2 }
  0x26   :  { %p951_p4 = pnand %p949_p3, %p946_p2 }
  0x28   :  { %954 = shalt.err (!%p951_p4)
}
  0x29   :  { %s955_s19 = scalar_lea.vmem %s39_s29, 256  ;;  %p960_p6 = scmp.lt.s32.totalorder %s39_s29, %s39_s29 }
  0x2a   :  { %p956_p5 = scmp.ne.s32.totalorder %s39_s29, %s955_s19  ;;  %p961_p7 = scmp.lt.s32.totalorder %s955_s19, %s955_s19 }
  0x2c   :  { %p962_p8 = por %p961_p7, %p960_p6 }
  0x2e   :  { %p963_p9 = pnand %p962_p8, %p956_p5 }
  0x30   :  { %966 = shalt.err (!%p963_p9)
}
  0x31   :  { %41 = dma.hbm_to_vmem [thread:$0]  %s1095_s2, 256, %s39_s29, [#allocation5]  }
  0x32   :  { %967 = dma.done.wait [#allocation3], 32  }
  0x33   :  { %968 = vsyncadd [#allocation3], 4294967264 }
  0x34   :  { %969 = dma.done.wait [#allocation5], 4352  }
  0x35   :  { %970 = vsyncadd [#allocation5], 4294962944  ;;  %v976_v0 = vmov 0.0   ;;  %v53_v1 = vld [vmem:[#allocation4 + $0x8] sm:$0xff]  ;;  %v55_v3 = vld [vmem:[#allocation4 + $0x18] sm:$0xff]  ;;  %vm168_vm0 = vcmask 130048   ;;  %v88_v50 = vlaneseq }
  0x36   :  { %236 = vmatprep.mubr.f32.mxu0 %v976_v0  ;;  %307 = vmatprep.mubr.f32.mxu1 %v976_v0  ;;  %v69_v2 = vld [vmem:[#allocation4 + $0x88] sm:$0xff]  ;;  %v71_v5 = vld [vmem:[#allocation4 + $0x98] sm:$0xff]  ;;  %v52_v6 = vld [vmem:[#allocation4] sm:$0xff]  ;;  %v977_v57 = vmov 1983009808  }
  0x37   :  { %v862_v4 = vpack.c.bf16 %v69_v2, %v53_v1  ;;  %v68_v7 = vld [vmem:[#allocation4 + $0x80] sm:$0xff]  ;;  %v866_v8 = vpack.c.bf16 %v71_v5, %v55_v3  ;;  %v54_v10 = vld [vmem:[#allocation4 + $0x10] sm:$0xff]  ;;  %v1036_v12 = vld [vmem:[#allocation2] sm:$0x3]  ;;  %v1060_v51 = vshrl.u32 %v88_v50, 7  ;;  %v775_v58 = vunpack.c.l.s4 %v977_v57 }
  0x38   :  { %v864_v9 = vpack.c.bf16 %v68_v7, %v52_v6  ;;  %v70_v11 = vld [vmem:[#allocation4 + $0x90] sm:$0xff]  ;;  %v57_v14 = vld [vmem:[#allocation4 + $0x28] sm:$0xff]  ;;  %v59_v16 = vld [vmem:[#allocation4 + $0x38] sm:$0xff] }
  0x39   :  { %863 = vmatprep.subr.bf16.mxu0 %v862_v4  ;;  %v868_v13 = vpack.c.bf16 %v70_v11, %v54_v10  ;;  %v73_v15 = vld [vmem:[#allocation4 + $0xa8] sm:$0xff]  ;;  %867 = vmatprep.subr.bf16.mxu1 %v866_v8  ;;  %v75_v18 = vld [vmem:[#allocation4 + $0xb8] sm:$0xff]  ;;  %v56_v19 = vld [vmem:[#allocation4 + $0x20] sm:$0xff]  ;;  %v90_v52 = vsub.s32 0, %v1060_v51  ;;  %v98_v54 = vsub.s32 2, %v1060_v51  ;;  %v94_v55 = vsub.s32 1, %v1060_v51 }
  0x3a   :  { %865 = vmatpush1.bf16.msra.mxu0 %v864_v9  ;;  %v870_v17 = vpack.c.bf16 %v73_v15, %v57_v14  ;;  %v72_v20 = vld [vmem:[#allocation4 + $0xa0] sm:$0xff]  ;;  %v874_v21 = vpack.c.bf16 %v75_v18, %v59_v16  ;;  %v58_v23 = vld [vmem:[#allocation4 + $0x30] sm:$0xff]  ;;  %v61_v25 = vld [vmem:[#allocation4 + $0x48] sm:$0xff]  ;;  %v102_v56 = vsub.s32 3, %v1060_v51  ;;  %v106_v60 = vsub.s32 4, %v1060_v51 }
  0x3b   :  { %869 = vmatpush1.bf16.msra.mxu1 %v868_v13  ;;  %v872_v22 = vpack.c.bf16 %v72_v20, %v56_v19  ;;  %v74_v24 = vld [vmem:[#allocation4 + $0xb0] sm:$0xff]  ;;  %v77_v27 = vld [vmem:[#allocation4 + $0xc8] sm:$0xff]  ;;  %v63_v28 = vld [vmem:[#allocation4 + $0x58] sm:$0xff]  ;;  %v114_v63 = vsub.s32 6, %v1060_v51  ;;  %v118_v2 = vsub.s32 7, %v1060_v51  ;;  %v776_v4 = vunpack.c.0.s8 %v775_v58 }
  0x3c   :  { %871 = vmatprep.subr.bf16.mxu0 %v870_v17  ;;  %v876_v26 = vpack.c.bf16 %v74_v24, %v58_v23  ;;  %v79_v29 = vld [vmem:[#allocation4 + $0xd8] sm:$0xff]  ;;  %875 = vmatprep.subr.bf16.mxu1 %v874_v21  ;;  %v878_v30 = vpack.c.bf16 %v77_v27, %v61_v25  ;;  %v60_v32 = vld [vmem:[#allocation4 + $0x40] sm:$0xff]  ;;  %v62_v34 = vld [vmem:[#allocation4 + $0x50] sm:$0xff] }
  0x3d   :  { %854 = vmatmul.mubr.msk.f32.vlgmr.msra.gmra.mrb[0].mxu0 %vm168_vm0, %v1036_v12  ;;  %v882_v31 = vpack.c.bf16 %v79_v29, %v63_v28  ;;  %v76_v33 = vld [vmem:[#allocation4 + $0xc0] sm:$0xff]  ;;  %v78_v36 = vld [vmem:[#allocation4 + $0xd0] sm:$0xff]  ;;  %v65_v37 = vld [vmem:[#allocation4 + $0x68] sm:$0xff]  ;;  %v1071_v20 = vsub.s32 %v776_v4, %v1060_v51 }
  0x3e   :  { %855 = vmatmul.mubr.msk.f32.vlgmr.msra.gmra.mrb[0].mxu1 %vm168_vm0, %v1036_v12  ;;  %873 = vmatpush1.bf16.msra.mxu0 %v872_v22  ;;  %v880_v35 = vpack.c.bf16 %v76_v33, %v60_v32  ;;  %v81_v38 = vld [vmem:[#allocation4 + $0xe8] sm:$0xff]  ;;  %v884_v39 = vpack.c.bf16 %v78_v36, %v62_v34  ;;  %v67_v40 = vld [vmem:[#allocation4 + $0x78] sm:$0xff]  ;;  %v64_v42 = vld [vmem:[#allocation4 + $0x60] sm:$0xff] }
  0x3f   :  { %877 = vmatpush1.bf16.msra.mxu1 %v876_v26  ;;  %378 = vmatprep.mubr.f32.mxu0 %v976_v0  ;;  %v83_v41 = vld [vmem:[#allocation4 + $0xf8] sm:$0xff]  ;;  %v886_v43 = vpack.c.bf16 %v81_v38, %v65_v37  ;;  %v80_v44 = vld [vmem:[#allocation4 + $0xe0] sm:$0xff]  ;;  %v66_v45 = vld [vmem:[#allocation4 + $0x70] sm:$0xff] }
  0x40   :  { %449 = vmatprep.mubr.f32.mxu1 %v976_v0  ;;  %879 = vmatprep.subr.bf16.mxu0 %v878_v30  ;;  %v82_v46 = vld [vmem:[#allocation4 + $0xf0] sm:$0xff]  ;;  %v890_v47 = vpack.c.bf16 %v83_v41, %v67_v40  ;;  %v888_v48 = vpack.c.bf16 %v80_v44, %v64_v42  ;;  %v84_v53 = vld [vmem:[#allocation6] sm:$0xff]  ;;  %v85_v9 = vld [vmem:[#allocation6 + $0x8] sm:$0xff] }
  0x41   :  { %856 = vmatmul.mubr.msk.f32.vlgmr.msra.gmra.mrb[2].mxu0 %vm168_vm0, %v1036_v12  ;;  %883 = vmatprep.subr.bf16.mxu1 %v882_v31  ;;  %v892_v49 = vpack.c.bf16 %v82_v46, %v66_v45  ;;  %v91_v59 = vrot.slane %v84_v53, %v90_v52  ;;  %v99_v61 = vrot.slane %v84_v53, %v98_v54 }
  0x42   :  { %857 = vmatmul.mubr.msk.f32.vlgmr.msra.gmra.mrb[2].mxu1 %vm168_vm0, %v1036_v12  ;;  %881 = vmatpush1.bf16.msra.mxu0 %v880_v35  ;;  %v95_v62 = vrot.slane %v84_v53, %v94_v55  ;;  %v103_v1 = vrot.slane %v84_v53, %v102_v56  ;;  %v107_v8 = vrot.slane %v84_v53, %v106_v60 }
  0x43   :  { %885 = vmatpush1.bf16.msra.mxu1 %v884_v39  ;;  %520 = vmatprep.mubr.f32.mxu0 %v976_v0  ;;  %v115_v13 = vrot.slane %v84_v53, %v114_v63  ;;  %v119_v17 = vrot.slane %v84_v53, %v118_v2  ;;  %v123_v22 = vrot.slane %v85_v9, %v90_v52 }
  0x44   :  { %591 = vmatprep.mubr.f32.mxu1 %v976_v0  ;;  %887 = vmatprep.subr.bf16.mxu0 %v886_v43  ;;  %v131_v27 = vrot.slane %v85_v9, %v98_v54  ;;  %v127_v28 = vrot.slane %v85_v9, %v94_v55  ;;  %v135_v33 = vrot.slane %v85_v9, %v102_v56 }
  0x45   :  { %858 = vmatmul.mubr.msk.f32.vlgmr.msra.gmra.mrb[4].mxu0 %vm168_vm0, %v1036_v12  ;;  %891 = vmatprep.subr.bf16.mxu1 %v890_v47  ;;  %v139_v37 = vrot.slane %v85_v9, %v106_v60  ;;  %v147_v42 = vrot.slane %v85_v9, %v114_v63 }
  0x46   :  { %859 = vmatmul.mubr.msk.f32.vlgmr.msra.gmra.mrb[4].mxu1 %vm168_vm0, %v1036_v12  ;;  %889 = vmatpush1.bf16.msra.mxu0 %v888_v48 }
  0x47   :  { %893 = vmatpush1.bf16.msra.mxu1 %v892_v49  ;;  %662 = vmatprep.mubr.f32.mxu0 %v976_v0 }
  0x48   :  { %733 = vmatprep.mubr.f32.mxu1 %v976_v0  ;;  %v110_v0 = vsub.s32 5, %v1060_v51 }
  0x49   :  { %860 = vmatmul.mubr.msk.f32.vlgmr.msra.gmra.mrb[6].mxu0 %vm168_vm0, %v1036_v12 }
  0x4a   :  { %861 = vmatmul.mubr.msk.f32.vlgmr.msra.gmra.mrb[6].mxu1 %vm168_vm0, %v1036_v12  ;;  %v111_v14 = vrot.slane %v84_v53, %v110_v0  ;;  %v143_v48 = vrot.slane %v85_v9, %v110_v0  ;;  %v151_v53 = vrot.slane %v85_v9, %v118_v2 }
 0x110   :  { %v238_v3 = vpop.f32.mrb[0].mxu0 }
 0x111   :  { %v239_v5 = vadd.f32 %v238_v3, %v91_v59  ;;  %v309_v6 = vpop.f32.mrb[0].mxu1  ;;  %v240_v7 = vpop.f32.mrb[1].mxu0 }
 0x112   :  { %v310_v10 = vadd.f32 %v309_v6, %v99_v61  ;;  %v241_v11 = vadd.f32 %v240_v7, %v95_v62  ;;  %v311_v12 = vpop.f32.mrb[1].mxu1 }
 0x113   :  { %v740_v15 = vmax.f32 %v239_v5, 0.0  ;;  %v312_v16 = vadd.f32 %v311_v12, %v103_v1 }
 0x114   :  { %v742_v18 = vmax.f32 %v310_v10, 0.0  ;;  %v741_v19 = vmax.f32 %v241_v11, 0.0  ;;  %v380_v21 = vpop.f32.mrb[2].mxu0 }
 0x115   :  { %v743_v23 = vmax.f32 %v312_v16, 0.0  ;;  %v381_v24 = vadd.f32 %v380_v21, %v107_v8  ;;  %v451_v25 = vpop.f32.mrb[2].mxu1  ;;  %v382_v26 = vpop.f32.mrb[3].mxu0 }
 0x116   :  { %v772_v29 = vcombine.low %v740_v15, %v741_v19  ;;  %v452_v30 = vadd.f32 %v451_v25, %v115_v13  ;;  %v383_v31 = vadd.f32 %v382_v26, %v111_v14  ;;  %v453_v32 = vpop.f32.mrb[3].mxu1 }
 0x117   :  { %v773_v34 = vcombine.low %v742_v18, %v743_v23  ;;  %v744_v35 = vmax.f32 %v381_v24, 0.0  ;;  %v454_v36 = vadd.f32 %v453_v32, %v119_v17 }
 0x118   :  { %v780_v38 = vrot.slane %v772_v29, %v1071_v20  ;;  %v746_v39 = vmax.f32 %v452_v30, 0.0  ;;  %v745_v40 = vmax.f32 %v383_v31, 0.0  ;;  %v522_v41 = vpop.f32.mrb[4].mxu0 }
 0x119   :  { %v787_v43 = vrot.slane %v773_v34, %v1071_v20  ;;  %v747_v44 = vmax.f32 %v454_v36, 0.0  ;;  %v523_v45 = vadd.f32 %v522_v41, %v123_v22  ;;  %v593_v46 = vpop.f32.mrb[4].mxu1  ;;  %v524_v47 = vpop.f32.mrb[5].mxu0 }
 0x11a   :  { %v789_v49 = vcombine.low %v744_v35, %v745_v40  ;;  %v594_v50 = vadd.f32 %v593_v46, %v131_v27  ;;  %v525_v51 = vadd.f32 %v524_v47, %v127_v28  ;;  %v595_v52 = vpop.f32.mrb[5].mxu1 }
 0x11b   :  { %v788_v54 = vcombine.low %v780_v38, %v787_v43  ;;  %v790_v55 = vcombine.low %v746_v39, %v747_v44  ;;  %v748_v56 = vmax.f32 %v523_v45, 0.0  ;;  %v596_v57 = vadd.f32 %v595_v52, %v135_v33 }
 0x11c   :  { %v797_v58 = vrot.slane %v789_v49, %v1071_v20  ;;  %v750_v59 = vmax.f32 %v594_v50, 0.0  ;;  %v749_v60 = vmax.f32 %v525_v51, 0.0  ;;  %v664_v61 = vpop.f32.mrb[6].mxu0 }
 0x11d   :  { %844 = vst [vmem:[%s1096_s3] sm:$0xff] %v788_v54  ;;  %v804_v62 = vrot.slane %v790_v55, %v1071_v20  ;;  %v751_v63 = vmax.f32 %v596_v57, 0.0  ;;  %v665_v0 = vadd.f32 %v664_v61, %v139_v37  ;;  %v735_v1 = vpop.f32.mrb[6].mxu1  ;;  %v666_v3 = vpop.f32.mrb[7].mxu0 }
 0x11e   :  { %v806_v2 = vcombine.low %v748_v56, %v749_v60  ;;  %v736_v4 = vadd.f32 %v735_v1, %v147_v42  ;;  %v667_v5 = vadd.f32 %v666_v3, %v143_v48  ;;  %v737_v6 = vpop.f32.mrb[7].mxu1 }
 0x11f   :  { %v805_v7 = vcombine.low %v797_v58, %v804_v62  ;;  %v807_v8 = vcombine.low %v750_v59, %v751_v63  ;;  %v752_v9 = vmax.f32 %v665_v0, 0.0  ;;  %v738_v10 = vadd.f32 %v737_v6, %v151_v53 }
 0x120   :  { %v814_v11 = vrot.slane %v806_v2, %v1071_v20  ;;  %v754_v12 = vmax.f32 %v736_v4, 0.0  ;;  %v753_v13 = vmax.f32 %v667_v5, 0.0 }
 0x121   :  { %845 = vst [vmem:[%s1096_s3 + $0x8] sm:$0xff] %v805_v7  ;;  %v821_v14 = vrot.slane %v807_v8, %v1071_v20  ;;  %v755_v15 = vmax.f32 %v738_v10, 0.0 }
 0x122   :  { %v823_v16 = vcombine.low %v752_v9, %v753_v13 }
 0x123   :  { %v822_v17 = vcombine.low %v814_v11, %v821_v14  ;;  %v824_v18 = vcombine.low %v754_v12, %v755_v15 }
 0x124   :  { %v831_v19 = vrot.slane %v823_v16, %v1071_v20 }
 0x125   :  { %846 = vst [vmem:[%s1096_s3 + $0x10] sm:$0xff] %v822_v17  ;;  %v838_v21 = vrot.slane %v824_v18, %v1071_v20 }
 0x127   :  { %v839_v22 = vcombine.low %v831_v19, %v838_v21 }
 0x129   :  { %847 = vst [vmem:[%s1096_s3 + $0x18] sm:$0xff] %v839_v22 }
 0x12a   :  { %852 = vsyncpa [#allocation3], 1 }
 0x12b   :  { %853 = vsyncpa [#allocation5], 1 }

// kernel: decoder_forward.6
= control target key start
LH: loop header
LB: loop body
LE: loop exit
PB: predicated region body
PF: predicated region fallthrough
CT: control target
= control target key end

     0   :  { %8 = vsyncpa [#allocation3], 0  ;;  %s2516_s0 = inlined_call_operand.vmem [shape: f32[32,1152], index: 0, kind: input, shape index: {}]   ;;  %s2517_s1 = inlined_call_operand.hbm [shape: f32[1152,512], index: 1, kind: input, shape index: {}]   ;;  %s2518_s2 = inlined_call_operand.hbm [shape: f32[1,512], index: 2, kind: input, shape index: {}]   ;;  %s2519_s3 = inlined_call_operand.vmem [shape: f32[32,512], index: 3, kind: output, shape index: {}]  }
   0x1   :  { %9 = vsyncpa [#allocation5], 0  ;;  %s2311_s12 = smov [#allocation2]   ;;  %s2263_s16 = scalar_lea.hbm %s2517_s1, 73728 }
   0x2   :  { %s17_s13 = sshll.u32 %s2311_s12, 4  ;;  %p2264_p0 = scmp.ne.s32.totalorder %s2517_s1, %s2263_s16  ;;  %s18_s13 = int_to_ptr.vmem [resolvable:$true] %s17_s13 }
   0x3   :  { %p2267_p1 = scmp.lt.u32.totalorder %s2263_s16, %s2517_s1 }
   0x5   :  { %p2269_p2 = pnand %p2267_p1, %p2264_p0 }
   0x7   :  { %2272 = shalt.err (!%p2269_p2)
}
   0x8   :  { %s2273_s21 = scalar_lea.vmem %s18_s13, 73728  ;;  %p2278_p4 = scmp.lt.s32.totalorder %s18_s13, %s18_s13 }
   0x9   :  { %p2274_p3 = scmp.ne.s32.totalorder %s18_s13, %s2273_s21  ;;  %p2279_p5 = scmp.lt.s32.totalorder %s2273_s21, %s2273_s21 }
   0xb   :  { %p2280_p6 = por %p2279_p5, %p2278_p4 }
   0xd   :  { %p2281_p7 = pnand %p2280_p6, %p2274_p3 }
   0xf   :  { %2284 = shalt.err (!%p2281_p7)
}
  0x10   :  { %s2312_s22 = smov 512   ;;  %s2313_s23 = smov 32  }
  0x11   :  { %23 = dma.hbm_to_vmem [thread:$0]  %s2517_s1, 73728, %s18_s13, [#allocation3], %s2312_s22, %s2312_s22, %s2313_s23  }
  0x12   :  { %s2314_s26 = smov [#allocation4]   ;;  %s2285_s30 = scalar_lea.hbm %s2518_s2, 64 }
  0x13   :  { %s30_s27 = sshll.u32 %s2314_s26, 4  ;;  %p2286_p8 = scmp.ne.s32.totalorder %s2518_s2, %s2285_s30  ;;  %s31_s27 = int_to_ptr.vmem [resolvable:$true] %s30_s27 }
  0x14   :  { %p2289_p9 = scmp.lt.u32.totalorder %s2285_s30, %s2518_s2 }
  0x16   :  { %p2291_p10 = pnand %p2289_p9, %p2286_p8 }
  0x18   :  { %2294 = shalt.err (!%p2291_p10)
}
  0x19   :  { %s2295_s8 = scalar_lea.vmem %s31_s27, 64  ;;  %p2300_p12 = scmp.lt.s32.totalorder %s31_s27, %s31_s27 }
  0x1a   :  { %p2296_p11 = scmp.ne.s32.totalorder %s31_s27, %s2295_s8  ;;  %p2301_p13 = scmp.lt.s32.totalorder %s2295_s8, %s2295_s8 }
  0x1c   :  { %p2302_p0 = por %p2301_p13, %p2300_p12 }
  0x1e   :  { %p2303_p1 = pnand %p2302_p0, %p2296_p11 }
  0x20   :  { %2306 = shalt.err (!%p2303_p1)
}
  0x21   :  { %33 = dma.hbm_to_vmem [thread:$0]  %s2518_s2, 64, %s31_s27, [#allocation5]  }
  0x22   :  { %2307 = dma.done.wait [#allocation3], 73728  }
  0x23   :  { %2308 = vsyncadd [#allocation3], 4294893568 }
  0x24   :  { %2309 = dma.done.wait [#allocation5], 64  }
  0x25   :  { %2310 = vsyncadd [#allocation5], 4294967232  ;;  %v77_v0 = vld [vmem:[#allocation2 + $0x8] sm:$0xff]  ;;  %v79_v2 = vld [vmem:[#allocation2 + $0x18] sm:$0xff] }
  0x26   :  { %v81_v1 = vld [vmem:[#allocation2 + $0x28] sm:$0xff]  ;;  %v83_v4 = vld [vmem:[#allocation2 + $0x38] sm:$0xff]  ;;  %v76_v5 = vld [vmem:[#allocation2] sm:$0xff] }
  0x27   :  { %v1602_v3 = vpack.c.bf16 %v81_v1, %v77_v0  ;;  %v80_v6 = vld [vmem:[#allocation2 + $0x20] sm:$0xff]  ;;  %v1890_v7 = vpack.c.bf16 %v83_v4, %v79_v2  ;;  %v78_v9 = vld [vmem:[#allocation2 + $0x10] sm:$0xff]  ;;  %v85_v11 = vld [vmem:[#allocation2 + $0x48] sm:$0xff] }
  0x28   :  { %v1604_v8 = vpack.c.bf16 %v80_v6, %v76_v5  ;;  %v82_v10 = vld [vmem:[#allocation2 + $0x30] sm:$0xff]  ;;  %v89_v13 = vld [vmem:[#allocation2 + $0x68] sm:$0xff]  ;;  %v87_v14 = vld [vmem:[#allocation2 + $0x58] sm:$0xff] }
  0x29   :  { %1603 = vmatprep.subr.bf16.mxu0 %v1602_v3  ;;  %v1892_v12 = vpack.c.bf16 %v82_v10, %v78_v9  ;;  %v91_v15 = vld [vmem:[#allocation2 + $0x78] sm:$0xff]  ;;  %1891 = vmatprep.subr.bf16.mxu1 %v1890_v7  ;;  %v1606_v16 = vpack.c.bf16 %v89_v13, %v85_v11  ;;  %v84_v18 = vld [vmem:[#allocation2 + $0x40] sm:$0xff]  ;;  %v86_v20 = vld [vmem:[#allocation2 + $0x50] sm:$0xff] }
  0x2a   :  { %1605 = vmatpush1.bf16.msra.mxu0 %v1604_v8  ;;  %v1894_v17 = vpack.c.bf16 %v91_v15, %v87_v14  ;;  %v88_v19 = vld [vmem:[#allocation2 + $0x60] sm:$0xff]  ;;  %v90_v22 = vld [vmem:[#allocation2 + $0x70] sm:$0xff]  ;;  %v93_v23 = vld [vmem:[#allocation2 + $0x88] sm:$0xff] }
  0x2b   :  { %1893 = vmatpush1.bf16.msra.mxu1 %v1892_v12  ;;  %v1608_v21 = vpack.c.bf16 %v88_v19, %v84_v18  ;;  %v97_v24 = vld [vmem:[#allocation2 + $0xa8] sm:$0xff]  ;;  %1607 = vmatprep.subr.bf16.mxu0 %v1606_v16  ;;  %v1896_v25 = vpack.c.bf16 %v90_v22, %v86_v20  ;;  %v95_v27 = vld [vmem:[#allocation2 + $0x98] sm:$0xff]  ;;  %v92_v29 = vld [vmem:[#allocation2 + $0x80] sm:$0xff] }
  0x2c   :  { %1895 = vmatprep.subr.bf16.mxu1 %v1894_v17  ;;  %v1610_v26 = vpack.c.bf16 %v97_v24, %v93_v23  ;;  %v99_v28 = vld [vmem:[#allocation2 + $0xb8] sm:$0xff]  ;;  %v96_v31 = vld [vmem:[#allocation2 + $0xa0] sm:$0xff]  ;;  %v94_v32 = vld [vmem:[#allocation2 + $0x90] sm:$0xff] }
  0x2d   :  { %v1898_v30 = vpack.c.bf16 %v99_v28, %v95_v27  ;;  %v98_v33 = vld [vmem:[#allocation2 + $0xb0] sm:$0xff]  ;;  %v1612_v34 = vpack.c.bf16 %v96_v31, %v92_v29  ;;  %v101_v35 = vld [vmem:[#allocation2 + $0xc8] sm:$0xff]  ;;  %v103_v37 = vld [vmem:[#allocation2 + $0xd8] sm:$0xff] }
  0x2e   :  { %1609 = vmatpush1.bf16.msra.mxu0 %v1608_v21  ;;  %v105_v36 = vld [vmem:[#allocation2 + $0xe8] sm:$0xff]  ;;  %v1900_v38 = vpack.c.bf16 %v98_v33, %v94_v32  ;;  %v107_v40 = vld [vmem:[#allocation2 + $0xf8] sm:$0xff]  ;;  %v100_v41 = vld [vmem:[#allocation2 + $0xc0] sm:$0xff] }
  0x2f   :  { %1897 = vmatpush1.bf16.msra.mxu1 %v1896_v25  ;;  %1611 = vmatprep.subr.bf16.mxu0 %v1610_v26  ;;  %v1614_v39 = vpack.c.bf16 %v105_v36, %v101_v35  ;;  %v104_v42 = vld [vmem:[#allocation2 + $0xe0] sm:$0xff]  ;;  %v1902_v43 = vpack.c.bf16 %v107_v40, %v103_v37  ;;  %v102_v44 = vld [vmem:[#allocation2 + $0xd0] sm:$0xff]  ;;  %v109_v46 = vld [vmem:[#allocation2 + $0x108] sm:$0xff] }
  0x30   :  { %1899 = vmatprep.subr.bf16.mxu1 %v1898_v30  ;;  %v106_v45 = vld [vmem:[#allocation2 + $0xf0] sm:$0xff]  ;;  %v113_v47 = vld [vmem:[#allocation2 + $0x128] sm:$0xff]  ;;  %v111_v48 = vld [vmem:[#allocation2 + $0x118] sm:$0xff]  ;;  %v1616_v50 = vpack.c.bf16 %v104_v42, %v100_v41 }
  0x31   :  { %v115_v49 = vld [vmem:[#allocation2 + $0x138] sm:$0xff]  ;;  %v1904_v51 = vpack.c.bf16 %v106_v45, %v102_v44  ;;  %v1618_v52 = vpack.c.bf16 %v113_v47, %v109_v46  ;;  %v108_v53 = vld [vmem:[#allocation2 + $0x100] sm:$0xff]  ;;  %v110_v55 = vld [vmem:[#allocation2 + $0x110] sm:$0xff] }
  0x32   :  { %1613 = vmatpush1.bf16.msra.mxu0 %v1612_v34  ;;  %v112_v54 = vld [vmem:[#allocation2 + $0x120] sm:$0xff]  ;;  %v1906_v56 = vpack.c.bf16 %v115_v49, %v111_v48  ;;  %v114_v57 = vld [vmem:[#allocation2 + $0x130] sm:$0xff]  ;;  %v117_v58 = vld [vmem:[#allocation2 + $0x148] sm:$0xff] }
  0x33   :  { %1901 = vmatpush1.bf16.msra.mxu1 %v1900_v38  ;;  %1615 = vmatprep.subr.bf16.mxu0 %v1614_v39  ;;  %v121_v59 = vld [vmem:[#allocation2 + $0x168] sm:$0xff]  ;;  %v119_v60 = vld [vmem:[#allocation2 + $0x158] sm:$0xff]  ;;  %v1620_v62 = vpack.c.bf16 %v112_v54, %v108_v53  ;;  %v1908_v63 = vpack.c.bf16 %v114_v57, %v110_v55  ;;  %v116_v1 = vld [vmem:[#allocation2 + $0x140] sm:$0xff] }
  0x34   :  { %1903 = vmatprep.subr.bf16.mxu1 %v1902_v43  ;;  %v123_v61 = vld [vmem:[#allocation2 + $0x178] sm:$0xff]  ;;  %v1622_v0 = vpack.c.bf16 %v121_v59, %v117_v58  ;;  %v120_v2 = vld [vmem:[#allocation2 + $0x160] sm:$0xff]  ;;  %v118_v3 = vld [vmem:[#allocation2 + $0x150] sm:$0xff] }
  0x35   :  { %v1910_v4 = vpack.c.bf16 %v123_v61, %v119_v60  ;;  %v122_v5 = vld [vmem:[#allocation2 + $0x170] sm:$0xff]  ;;  %v125_v6 = vld [vmem:[#allocation2 + $0x188] sm:$0xff]  ;;  %v127_v8 = vld [vmem:[#allocation2 + $0x198] sm:$0xff]  ;;  %v1624_v10 = vpack.c.bf16 %v120_v2, %v116_v1 }
  0x36   :  { %1617 = vmatpush1.bf16.msra.mxu0 %v1616_v50  ;;  %v129_v7 = vld [vmem:[#allocation2 + $0x1a8] sm:$0xff]  ;;  %v131_v9 = vld [vmem:[#allocation2 + $0x1b8] sm:$0xff]  ;;  %v1912_v11 = vpack.c.bf16 %v122_v5, %v118_v3  ;;  %v124_v13 = vld [vmem:[#allocation2 + $0x180] sm:$0xff] }
  0x37   :  { %1905 = vmatpush1.bf16.msra.mxu1 %v1904_v51  ;;  %1619 = vmatprep.subr.bf16.mxu0 %v1618_v52  ;;  %v1626_v12 = vpack.c.bf16 %v129_v7, %v125_v6  ;;  %v128_v14 = vld [vmem:[#allocation2 + $0x1a0] sm:$0xff]  ;;  %v126_v15 = vld [vmem:[#allocation2 + $0x190] sm:$0xff]  ;;  %v1914_v16 = vpack.c.bf16 %v131_v9, %v127_v8  ;;  %v133_v18 = vld [vmem:[#allocation2 + $0x1c8] sm:$0xff] }
  0x38   :  { %1907 = vmatprep.subr.bf16.mxu1 %v1906_v56  ;;  %v130_v17 = vld [vmem:[#allocation2 + $0x1b0] sm:$0xff]  ;;  %v137_v19 = vld [vmem:[#allocation2 + $0x1e8] sm:$0xff]  ;;  %v135_v20 = vld [vmem:[#allocation2 + $0x1d8] sm:$0xff]  ;;  %v1628_v22 = vpack.c.bf16 %v128_v14, %v124_v13 }
  0x39   :  { %v139_v21 = vld [vmem:[#allocation2 + $0x1f8] sm:$0xff]  ;;  %v1916_v23 = vpack.c.bf16 %v130_v17, %v126_v15  ;;  %v1630_v24 = vpack.c.bf16 %v137_v19, %v133_v18  ;;  %v132_v25 = vld [vmem:[#allocation2 + $0x1c0] sm:$0xff]  ;;  %v134_v27 = vld [vmem:[#allocation2 + $0x1d0] sm:$0xff] }
  0x3a   :  { %1621 = vmatpush1.bf16.msra.mxu0 %v1620_v62  ;;  %v136_v26 = vld [vmem:[#allocation2 + $0x1e0] sm:$0xff]  ;;  %v1918_v28 = vpack.c.bf16 %v139_v21, %v135_v20  ;;  %v138_v29 = vld [vmem:[#allocation2 + $0x1f0] sm:$0xff]  ;;  %v141_v30 = vld [vmem:[#allocation2 + $0x208] sm:$0xff] }
  0x3b   :  { %1909 = vmatpush1.bf16.msra.mxu1 %v1908_v63  ;;  %1623 = vmatprep.subr.bf16.mxu0 %v1622_v0  ;;  %v145_v31 = vld [vmem:[#allocation2 + $0x228] sm:$0xff]  ;;  %v143_v32 = vld [vmem:[#allocation2 + $0x218] sm:$0xff]  ;;  %v1632_v34 = vpack.c.bf16 %v136_v26, %v132_v25  ;;  %v1920_v35 = vpack.c.bf16 %v138_v29, %v134_v27  ;;  %v140_v37 = vld [vmem:[#allocation2 + $0x200] sm:$0xff] }
  0x3c   :  { %1911 = vmatprep.subr.bf16.mxu1 %v1910_v4  ;;  %v147_v33 = vld [vmem:[#allocation2 + $0x238] sm:$0xff]  ;;  %v1634_v36 = vpack.c.bf16 %v145_v31, %v141_v30  ;;  %v144_v38 = vld [vmem:[#allocation2 + $0x220] sm:$0xff]  ;;  %v142_v39 = vld [vmem:[#allocation2 + $0x210] sm:$0xff] }
  0x3d   :  { %v1922_v40 = vpack.c.bf16 %v147_v33, %v143_v32  ;;  %v146_v41 = vld [vmem:[#allocation2 + $0x230] sm:$0xff]  ;;  %v149_v42 = vld [vmem:[#allocation2 + $0x248] sm:$0xff]  ;;  %v151_v44 = vld [vmem:[#allocation2 + $0x258] sm:$0xff]  ;;  %v1636_v46 = vpack.c.bf16 %v144_v38, %v140_v37 }
  0x3e   :  { %1625 = vmatpush1.bf16.msra.mxu0 %v1624_v10  ;;  %v153_v43 = vld [vmem:[#allocation2 + $0x268] sm:$0xff]  ;;  %v155_v45 = vld [vmem:[#allocation2 + $0x278] sm:$0xff]  ;;  %v1924_v47 = vpack.c.bf16 %v146_v41, %v142_v39  ;;  %v148_v49 = vld [vmem:[#allocation2 + $0x240] sm:$0xff] }
  0x3f   :  { %1913 = vmatpush1.bf16.msra.mxu1 %v1912_v11  ;;  %1627 = vmatprep.subr.bf16.mxu0 %v1626_v12  ;;  %v1638_v48 = vpack.c.bf16 %v153_v43, %v149_v42  ;;  %v152_v50 = vld [vmem:[#allocation2 + $0x260] sm:$0xff]  ;;  %v150_v51 = vld [vmem:[#allocation2 + $0x250] sm:$0xff]  ;;  %v1926_v52 = vpack.c.bf16 %v155_v45, %v151_v44  ;;  %v157_v54 = vld [vmem:[#allocation2 + $0x288] sm:$0xff] }
  0x40   :  { %1915 = vmatprep.subr.bf16.mxu1 %v1914_v16  ;;  %v154_v53 = vld [vmem:[#allocation2 + $0x270] sm:$0xff]  ;;  %v161_v55 = vld [vmem:[#allocation2 + $0x2a8] sm:$0xff]  ;;  %v159_v56 = vld [vmem:[#allocation2 + $0x298] sm:$0xff]  ;;  %v1640_v58 = vpack.c.bf16 %v152_v50, %v148_v49 }
  0x41   :  { %v163_v57 = vld [vmem:[#allocation2 + $0x2b8] sm:$0xff]  ;;  %v1928_v59 = vpack.c.bf16 %v154_v53, %v150_v51  ;;  %v1642_v60 = vpack.c.bf16 %v161_v55, %v157_v54  ;;  %v156_v61 = vld [vmem:[#allocation2 + $0x280] sm:$0xff]  ;;  %v158_v63 = vld [vmem:[#allocation2 + $0x290] sm:$0xff] }
  0x42   :  { %1629 = vmatpush1.bf16.msra.mxu0 %v1628_v22  ;;  %v160_v62 = vld [vmem:[#allocation2 + $0x2a0] sm:$0xff]  ;;  %v1930_v0 = vpack.c.bf16 %v163_v57, %v159_v56  ;;  %v162_v1 = vld [vmem:[#allocation2 + $0x2b0] sm:$0xff]  ;;  %v165_v2 = vld [vmem:[#allocation2 + $0x2c8] sm:$0xff] }
  0x43   :  { %1917 = vmatpush1.bf16.msra.mxu1 %v1916_v23  ;;  %1631 = vmatprep.subr.bf16.mxu0 %v1630_v24  ;;  %v169_v3 = vld [vmem:[#allocation2 + $0x2e8] sm:$0xff]  ;;  %v167_v4 = vld [vmem:[#allocation2 + $0x2d8] sm:$0xff]  ;;  %v1644_v6 = vpack.c.bf16 %v160_v62, %v156_v61  ;;  %v164_v7 = vld [vmem:[#allocation2 + $0x2c0] sm:$0xff]  ;;  %v1932_v8 = vpack.c.bf16 %v162_v1, %v158_v63 }
  0x44   :  { %1919 = vmatprep.subr.bf16.mxu1 %v1918_v28  ;;  %v171_v5 = vld [vmem:[#allocation2 + $0x2f8] sm:$0xff]  ;;  %v1646_v9 = vpack.c.bf16 %v169_v3, %v165_v2  ;;  %v168_v10 = vld [vmem:[#allocation2 + $0x2e0] sm:$0xff]  ;;  %v166_v11 = vld [vmem:[#allocation2 + $0x2d0] sm:$0xff] }
  0x45   :  { %v170_v12 = vld [vmem:[#allocation2 + $0x2f0] sm:$0xff]  ;;  %v1934_v13 = vpack.c.bf16 %v171_v5, %v167_v4  ;;  %v173_v14 = vld [vmem:[#allocation2 + $0x308] sm:$0xff]  ;;  %v175_v17 = vld [vmem:[#allocation2 + $0x318] sm:$0xff]  ;;  %v1648_v19 = vpack.c.bf16 %v168_v10, %v164_v7 }
  0x46   :  { %1633 = vmatpush1.bf16.msra.mxu0 %v1632_v34  ;;  %v177_v15 = vld [vmem:[#allocation2 + $0x328] sm:$0xff]  ;;  %v179_v18 = vld [vmem:[#allocation2 + $0x338] sm:$0xff]  ;;  %v1936_v20 = vpack.c.bf16 %v170_v12, %v166_v11  ;;  %v172_v22 = vld [vmem:[#allocation2 + $0x300] sm:$0xff] }
  0x47   :  { %1921 = vmatpush1.bf16.msra.mxu1 %v1920_v35  ;;  %1635 = vmatprep.subr.bf16.mxu0 %v1634_v36  ;;  %v41_v16 = vld [vmem:[%s2516_s0 + $0x8] sm:$0xff]  ;;  %v1650_v21 = vpack.c.bf16 %v177_v15, %v173_v14  ;;  %v176_v23 = vld [vmem:[#allocation2 + $0x320] sm:$0xff]  ;;  %v174_v24 = vld [vmem:[#allocation2 + $0x310] sm:$0xff]  ;;  %v1938_v25 = vpack.c.bf16 %v179_v18, %v175_v17 }
  0x48   :  { %1923 = vmatprep.subr.bf16.mxu1 %v1922_v40  ;;  %738 = vmatprep.mubr.f32.mxu0 %v41_v16  ;;  %v178_v26 = vld [vmem:[#allocation2 + $0x330] sm:$0xff]  ;;  %v181_v27 = vld [vmem:[#allocation2 + $0x348] sm:$0xff]  ;;  %v183_v29 = vld [vmem:[#allocation2 + $0x358] sm:$0xff]  ;;  %v1652_v31 = vpack.c.bf16 %v176_v23, %v172_v22 }
  0x49   :  { %1183 = vmatprep.mubr.f32.mxu1 %v41_v16  ;;  %v185_v28 = vld [vmem:[#allocation2 + $0x368] sm:$0xff]  ;;  %v187_v30 = vld [vmem:[#allocation2 + $0x378] sm:$0xff]  ;;  %v1940_v32 = vpack.c.bf16 %v178_v26, %v174_v24  ;;  %v180_v34 = vld [vmem:[#allocation2 + $0x340] sm:$0xff] }
  0x4a   :  { %1637 = vmatpush1.bf16.msra.mxu0 %v1636_v46  ;;  %v1654_v33 = vpack.c.bf16 %v185_v28, %v181_v27  ;;  %v184_v35 = vld [vmem:[#allocation2 + $0x360] sm:$0xff]  ;;  %v182_v36 = vld [vmem:[#allocation2 + $0x350] sm:$0xff]  ;;  %v1942_v37 = vpack.c.bf16 %v187_v30, %v183_v29  ;;  %v189_v39 = vld [vmem:[#allocation2 + $0x388] sm:$0xff] }
  0x4b   :  { %1925 = vmatpush1.bf16.msra.mxu1 %v1924_v47  ;;  %1639 = vmatprep.subr.bf16.mxu0 %v1638_v48  ;;  %v186_v38 = vld [vmem:[#allocation2 + $0x370] sm:$0xff]  ;;  %v193_v40 = vld [vmem:[#allocation2 + $0x3a8] sm:$0xff]  ;;  %v191_v41 = vld [vmem:[#allocation2 + $0x398] sm:$0xff]  ;;  %v1656_v43 = vpack.c.bf16 %v184_v35, %v180_v34 }
  0x4c   :  { %1927 = vmatprep.subr.bf16.mxu1 %v1926_v52  ;;  %v195_v42 = vld [vmem:[#allocation2 + $0x3b8] sm:$0xff]  ;;  %v1944_v44 = vpack.c.bf16 %v186_v38, %v182_v36  ;;  %v1658_v45 = vpack.c.bf16 %v193_v40, %v189_v39  ;;  %v188_v46 = vld [vmem:[#allocation2 + $0x380] sm:$0xff]  ;;  %v190_v48 = vld [vmem:[#allocation2 + $0x390] sm:$0xff] }
  0x4d   :  { %v192_v47 = vld [vmem:[#allocation2 + $0x3a0] sm:$0xff]  ;;  %v1946_v49 = vpack.c.bf16 %v195_v42, %v191_v41  ;;  %v194_v50 = vld [vmem:[#allocation2 + $0x3b0] sm:$0xff]  ;;  %v197_v51 = vld [vmem:[#allocation2 + $0x3c8] sm:$0xff] }
  0x4e   :  { %1641 = vmatpush1.bf16.msra.mxu0 %v1640_v58  ;;  %v201_v52 = vld [vmem:[#allocation2 + $0x3e8] sm:$0xff]  ;;  %v199_v53 = vld [vmem:[#allocation2 + $0x3d8] sm:$0xff]  ;;  %v1660_v55 = vpack.c.bf16 %v192_v47, %v188_v46  ;;  %v1948_v56 = vpack.c.bf16 %v194_v50, %v190_v48  ;;  %v196_v58 = vld [vmem:[#allocation2 + $0x3c0] sm:$0xff] }
  0x4f   :  { %1929 = vmatpush1.bf16.msra.mxu1 %v1928_v59  ;;  %1643 = vmatprep.subr.bf16.mxu0 %v1642_v60  ;;  %v203_v54 = vld [vmem:[#allocation2 + $0x3f8] sm:$0xff]  ;;  %v1662_v57 = vpack.c.bf16 %v201_v52, %v197_v51  ;;  %v200_v59 = vld [vmem:[#allocation2 + $0x3e0] sm:$0xff]  ;;  %v198_v60 = vld [vmem:[#allocation2 + $0x3d0] sm:$0xff] }
  0x50   :  { %1931 = vmatprep.subr.bf16.mxu1 %v1930_v0  ;;  %v1950_v61 = vpack.c.bf16 %v203_v54, %v199_v53  ;;  %v202_v62 = vld [vmem:[#allocation2 + $0x3f0] sm:$0xff]  ;;  %v205_v63 = vld [vmem:[#allocation2 + $0x408] sm:$0xff]  ;;  %v207_v1 = vld [vmem:[#allocation2 + $0x418] sm:$0xff]  ;;  %v1664_v3 = vpack.c.bf16 %v200_v59, %v196_v58 }
  0x51   :  { %v209_v0 = vld [vmem:[#allocation2 + $0x428] sm:$0xff]  ;;  %v211_v2 = vld [vmem:[#allocation2 + $0x438] sm:$0xff]  ;;  %v1952_v4 = vpack.c.bf16 %v202_v62, %v198_v60  ;;  %v208_v7 = vld [vmem:[#allocation2 + $0x420] sm:$0xff] }
  0x52   :  { %1645 = vmatpush1.bf16.msra.mxu0 %v1644_v6  ;;  %v1666_v5 = vpack.c.bf16 %v209_v0, %v205_v63  ;;  %v204_v6 = vld [vmem:[#allocation2 + $0x400] sm:$0xff]  ;;  %v210_v10 = vld [vmem:[#allocation2 + $0x430] sm:$0xff]  ;;  %v213_v11 = vld [vmem:[#allocation2 + $0x448] sm:$0xff] }
  0x53   :  { %1933 = vmatpush1.bf16.msra.mxu1 %v1932_v8  ;;  %1647 = vmatprep.subr.bf16.mxu0 %v1646_v9  ;;  %v206_v8 = vld [vmem:[#allocation2 + $0x410] sm:$0xff]  ;;  %v1954_v9 = vpack.c.bf16 %v211_v2, %v207_v1  ;;  %v217_v12 = vld [vmem:[#allocation2 + $0x468] sm:$0xff]  ;;  %v219_v14 = vld [vmem:[#allocation2 + $0x478] sm:$0xff]  ;;  %v1668_v16 = vpack.c.bf16 %v208_v7, %v204_v6 }
  0x54   :  { %1935 = vmatprep.subr.bf16.mxu1 %v1934_v13  ;;  %v215_v13 = vld [vmem:[#allocation2 + $0x458] sm:$0xff]  ;;  %v40_v15 = vld [vmem:[%s2516_s0] sm:$0xff]  ;;  %v1956_v17 = vpack.c.bf16 %v210_v10, %v206_v8  ;;  %v1670_v18 = vpack.c.bf16 %v217_v12, %v213_v11  ;;  %v218_v23 = vld [vmem:[#allocation2 + $0x470] sm:$0xff] }
  0x55   :  { %v1958_v22 = vpack.c.bf16 %v219_v14, %v215_v13  ;;  %v221_v24 = vld [vmem:[#allocation2 + $0x488] sm:$0xff]  ;;  %v223_v26 = vld [vmem:[#allocation2 + $0x498] sm:$0xff]  ;;  %v226_v35 = vld [vmem:[#allocation2 + $0x4b0] sm:$0xff] }
  0x56   :  { %1649 = vmatpush1.bf16.msra.mxu0 %v1648_v19  ;;  %v212_v19 = vld [vmem:[#allocation2 + $0x440] sm:$0xff]  ;;  %v227_v27 = vld [vmem:[#allocation2 + $0x4b8] sm:$0xff]  ;;  %v229_v36 = vld [vmem:[#allocation2 + $0x4c8] sm:$0xff] }
  0x57   :  { %1937 = vmatpush1.bf16.msra.mxu1 %v1936_v20  ;;  %1651 = vmatprep.subr.bf16.mxu0 %v1650_v21  ;;  %v216_v20 = vld [vmem:[#allocation2 + $0x460] sm:$0xff]  ;;  %v214_v21 = vld [vmem:[#allocation2 + $0x450] sm:$0xff]  ;;  %v1962_v34 = vpack.c.bf16 %v227_v27, %v223_v26  ;;  %v231_v38 = vld [vmem:[#allocation2 + $0x4d8] sm:$0xff] }
  0x58   :  { %1939 = vmatprep.subr.bf16.mxu1 %v1938_v25  ;;  %v225_v25 = vld [vmem:[#allocation2 + $0x4a8] sm:$0xff]  ;;  %v1672_v28 = vpack.c.bf16 %v216_v20, %v212_v19  ;;  %v1960_v29 = vpack.c.bf16 %v218_v23, %v214_v21  ;;  %v235_v39 = vld [vmem:[#allocation2 + $0x4f8] sm:$0xff]  ;;  %v234_v47 = vld [vmem:[#allocation2 + $0x4f0] sm:$0xff] }
  0x59   :  { %v1674_v30 = vpack.c.bf16 %v225_v25, %v221_v24  ;;  %v1966_v46 = vpack.c.bf16 %v235_v39, %v231_v38  ;;  %v237_v48 = vld [vmem:[#allocation2 + $0x508] sm:$0xff]  ;;  %v239_v50 = vld [vmem:[#allocation2 + $0x518] sm:$0xff]  ;;  %v236_v53 = vld [vmem:[#allocation2 + $0x500] sm:$0xff] }
  0x5a   :  { %1653 = vmatpush1.bf16.msra.mxu0 %v1652_v31  ;;  %v220_v31 = vld [vmem:[#allocation2 + $0x480] sm:$0xff]  ;;  %v243_v51 = vld [vmem:[#allocation2 + $0x538] sm:$0xff]  ;;  %v242_v58 = vld [vmem:[#allocation2 + $0x530] sm:$0xff] }
  0x5b   :  { %1941 = vmatpush1.bf16.msra.mxu1 %v1940_v32  ;;  %1655 = vmatprep.subr.bf16.mxu0 %v1654_v33  ;;  %v224_v32 = vld [vmem:[#allocation2 + $0x4a0] sm:$0xff]  ;;  %v222_v33 = vld [vmem:[#allocation2 + $0x490] sm:$0xff]  ;;  %v1970_v59 = vpack.c.bf16 %v243_v51, %v239_v50  ;;  %v245_v60 = vld [vmem:[#allocation2 + $0x548] sm:$0xff] }
  0x5c   :  { %1943 = vmatprep.subr.bf16.mxu1 %v1942_v37  ;;  %v233_v37 = vld [vmem:[#allocation2 + $0x4e8] sm:$0xff]  ;;  %v1676_v40 = vpack.c.bf16 %v224_v32, %v220_v31  ;;  %v1964_v41 = vpack.c.bf16 %v226_v35, %v222_v33  ;;  %v50_v62 = vld [vmem:[%s2516_s0 + $0x50] sm:$0xff]  ;;  %v247_v63 = vld [vmem:[#allocation2 + $0x558] sm:$0xff] }
  0x5d   :  { %v1678_v42 = vpack.c.bf16 %v233_v37, %v229_v36  ;;  %v251_v0 = vld [vmem:[#allocation2 + $0x578] sm:$0xff]  ;;  %v49_v1 = vld [vmem:[%s2516_s0 + $0x48] sm:$0xff]  ;;  %v248_v6 = vld [vmem:[#allocation2 + $0x560] sm:$0xff] }
  0x5e   :  { %1657 = vmatpush1.bf16.msra.mxu0 %v1656_v43  ;;  %v228_v43 = vld [vmem:[#allocation2 + $0x4c0] sm:$0xff]  ;;  %v246_v7 = vld [vmem:[#allocation2 + $0x550] sm:$0xff]  ;;  %v59_v8 = vld [vmem:[%s2516_s0 + $0x98] sm:$0xff] }
  0x5f   :  { %1945 = vmatpush1.bf16.msra.mxu1 %v1944_v44  ;;  %1659 = vmatprep.subr.bf16.mxu0 %v1658_v45  ;;  %v232_v44 = vld [vmem:[#allocation2 + $0x4e0] sm:$0xff]  ;;  %v230_v45 = vld [vmem:[#allocation2 + $0x4d0] sm:$0xff]  ;;  %v253_v11 = vld [vmem:[#allocation2 + $0x588] sm:$0xff] }
  0x60   :  { %1947 = vmatprep.subr.bf16.mxu1 %v1946_v49  ;;  %v241_v49 = vld [vmem:[#allocation2 + $0x528] sm:$0xff]  ;;  %v1680_v52 = vpack.c.bf16 %v232_v44, %v228_v43  ;;  %v1968_v54 = vpack.c.bf16 %v234_v47, %v230_v45  ;;  %v250_v10 = vld [vmem:[#allocation2 + $0x570] sm:$0xff]  ;;  %v255_v13 = vld [vmem:[#allocation2 + $0x598] sm:$0xff] }
  0x61   :  { %v257_v12 = vld [vmem:[#allocation2 + $0x5a8] sm:$0xff]  ;;  %v259_v14 = vld [vmem:[#allocation2 + $0x5b8] sm:$0xff]  ;;  %v1976_v19 = vpack.c.bf16 %v250_v10, %v246_v7  ;;  %v256_v21 = vld [vmem:[#allocation2 + $0x5a0] sm:$0xff] }
  0x62   :  { %1661 = vmatpush1.bf16.msra.mxu0 %v1660_v55  ;;  %v1682_v55 = vpack.c.bf16 %v241_v49, %v237_v48  ;;  %v1690_v20 = vpack.c.bf16 %v257_v12, %v253_v11  ;;  %v258_v23 = vld [vmem:[#allocation2 + $0x5b0] sm:$0xff]  ;;  %v1978_v24 = vpack.c.bf16 %v259_v14, %v255_v13  ;;  %v261_v25 = vld [vmem:[#allocation2 + $0x5c8] sm:$0xff]  ;;  %v67_v27 = vld [vmem:[%s2516_s0 + $0xd8] sm:$0xff] }
  0x63   :  { %1949 = vmatpush1.bf16.msra.mxu1 %v1948_v56  ;;  %1663 = vmatprep.subr.bf16.mxu0 %v1662_v57  ;;  %v240_v56 = vld [vmem:[#allocation2 + $0x520] sm:$0xff]  ;;  %v238_v57 = vld [vmem:[#allocation2 + $0x510] sm:$0xff]  ;;  %v265_v26 = vld [vmem:[#allocation2 + $0x5e8] sm:$0xff] }
  0x64   :  { %1951 = vmatprep.subr.bf16.mxu1 %v1950_v61  ;;  %v249_v61 = vld [vmem:[#allocation2 + $0x568] sm:$0xff]  ;;  %v1684_v2 = vpack.c.bf16 %v240_v56, %v236_v53  ;;  %v43_v31 = vld [vmem:[%s2516_s0 + $0x18] sm:$0xff]  ;;  %v1694_v33 = vpack.c.bf16 %v265_v26, %v261_v25  ;;  %v264_v35 = vld [vmem:[#allocation2 + $0x5e0] sm:$0xff] }
  0x65   :  { %v262_v36 = vld [vmem:[#allocation2 + $0x5d0] sm:$0xff]  ;;  %v269_v39 = vld [vmem:[#allocation2 + $0x608] sm:$0xff]  ;;  %v272_v47 = vld [vmem:[#allocation2 + $0x620] sm:$0xff] }
  0x66   :  { %1665 = vmatpush1.bf16.msra.mxu0 %v1664_v3  ;;  %v244_v3 = vld [vmem:[#allocation2 + $0x540] sm:$0xff]  ;;  %v266_v38 = vld [vmem:[#allocation2 + $0x5f0] sm:$0xff]  ;;  %v277_v51 = vld [vmem:[#allocation2 + $0x648] sm:$0xff] }
  0x67   :  { %1953 = vmatpush1.bf16.msra.mxu1 %v1952_v4  ;;  %1667 = vmatprep.subr.bf16.mxu0 %v1666_v5  ;;  %v1972_v4 = vpack.c.bf16 %v242_v58, %v238_v57  ;;  %v1686_v5 = vpack.c.bf16 %v249_v61, %v245_v60  ;;  %v1984_v44 = vpack.c.bf16 %v266_v38, %v262_v36  ;;  %v270_v48 = vld [vmem:[#allocation2 + $0x610] sm:$0xff]  ;;  %v279_v53 = vld [vmem:[#allocation2 + $0x658] sm:$0xff]  ;;  %v276_v58 = vld [vmem:[#allocation2 + $0x640] sm:$0xff] }
  0x68   :  { %1955 = vmatprep.subr.bf16.mxu1 %v1954_v9  ;;  %v1974_v9 = vpack.c.bf16 %v251_v0, %v247_v63  ;;  %v274_v50 = vld [vmem:[#allocation2 + $0x630] sm:$0xff]  ;;  %v285_v63 = vld [vmem:[#allocation2 + $0x688] sm:$0xff]  ;;  %v288_v7 = vld [vmem:[#allocation2 + $0x6a0] sm:$0xff] }
  0x69   :  { %739 = vmatmul.mubr.f32.vlgmr.msra.gmra.mrb[0].mxu0 %v40_v15  ;;  %v1988_v56 = vpack.c.bf16 %v274_v50, %v270_v48  ;;  %v278_v60 = vld [vmem:[#allocation2 + $0x650] sm:$0xff]  ;;  %v289_v0 = vld [vmem:[#allocation2 + $0x6a8] sm:$0xff]  ;;  %v295_v13 = vld [vmem:[#allocation2 + $0x6d8] sm:$0xff] }
  0x6a   :  { %1669 = vmatpush1.bf16.msra.mxu0 %v1668_v16  ;;  %1184 = vmatmul.mubr.f32.vlgmr.msra.gmra.mrb[0].mxu1 %v40_v15  ;;  %v58_v15 = vld [vmem:[%s2516_s0 + $0x90] sm:$0xff]  ;;  %v1688_v16 = vpack.c.bf16 %v248_v6, %v244_v3  ;;  %v284_v6 = vld [vmem:[#allocation2 + $0x680] sm:$0xff]  ;;  %v293_v11 = vld [vmem:[#allocation2 + $0x6c8] sm:$0xff] }
  0x6b   :  { %1957 = vmatpush1.bf16.msra.mxu1 %v1956_v17  ;;  %1671 = vmatprep.subr.bf16.mxu0 %v1670_v18  ;;  %v252_v17 = vld [vmem:[#allocation2 + $0x580] sm:$0xff]  ;;  %v290_v10 = vld [vmem:[#allocation2 + $0x6b0] sm:$0xff]  ;;  %v297_v12 = vld [vmem:[#allocation2 + $0x6e8] sm:$0xff] }
  0x6c   :  { %1959 = vmatprep.subr.bf16.mxu1 %v1958_v22  ;;  %744 = vmatprep.mubr.f32.mxu0 %v50_v62  ;;  %v68_v18 = vld [vmem:[%s2516_s0 + $0xe0] sm:$0xff]  ;;  %v254_v22 = vld [vmem:[#allocation2 + $0x590] sm:$0xff]  ;;  %v299_v14 = vld [vmem:[#allocation2 + $0x6f8] sm:$0xff] }
  0x6d   :  { %1189 = vmatprep.mubr.f32.mxu1 %v50_v62  ;;  %745 = vmatmul.mubr.f32.gmra.mrb[2].mxu0 %v49_v1  ;;  %v1980_v32 = vpack.c.bf16 %v258_v23, %v254_v22  ;;  %v282_v62 = vld [vmem:[#allocation2 + $0x670] sm:$0xff]  ;;  %v301_v23 = vld [vmem:[#allocation2 + $0x708] sm:$0xff]  ;;  %v303_v25 = vld [vmem:[#allocation2 + $0x718] sm:$0xff] }
  0x6e   :  { %1673 = vmatpush1.bf16.msra.mxu0 %v1672_v28  ;;  %1190 = vmatmul.mubr.f32.gmra.mrb[2].mxu1 %v49_v1  ;;  %v263_v28 = vld [vmem:[#allocation2 + $0x5d8] sm:$0xff]  ;;  %v298_v22 = vld [vmem:[#allocation2 + $0x6f0] sm:$0xff]  ;;  %v313_v36 = vld [vmem:[#allocation2 + $0x768] sm:$0xff] }
  0x6f   :  { %1961 = vmatpush1.bf16.msra.mxu1 %v1960_v29  ;;  %1675 = vmatprep.subr.bf16.mxu0 %v1674_v30  ;;  %v267_v29 = vld [vmem:[#allocation2 + $0x5f8] sm:$0xff]  ;;  %v1692_v30 = vpack.c.bf16 %v256_v21, %v252_v17  ;;  %v1710_v17 = vpack.c.bf16 %v297_v12, %v293_v11  ;;  %v1998_v21 = vpack.c.bf16 %v299_v14, %v295_v13  ;;  %v321_v48 = vld [vmem:[#allocation2 + $0x7a8] sm:$0xff]  ;;  %v332_v14 = vld [vmem:[#allocation2 + $0x800] sm:$0xff] }
  0x70   :  { %1963 = vmatprep.subr.bf16.mxu1 %v1962_v34  ;;  %750 = vmatprep.mubr.f32.mxu0 %v59_v8  ;;  %v260_v34 = vld [vmem:[#allocation2 + $0x5c0] sm:$0xff]  ;;  %v1982_v37 = vpack.c.bf16 %v267_v29, %v263_v28  ;;  %v287_v1 = vld [vmem:[#allocation2 + $0x698] sm:$0xff] }
  0x71   :  { %1195 = vmatprep.mubr.f32.mxu1 %v59_v8  ;;  %751 = vmatmul.mubr.f32.gmra.mrb[4].mxu0 %v58_v15  ;;  %v1696_v43 = vpack.c.bf16 %v264_v35, %v260_v34  ;;  %v286_v8 = vld [vmem:[#allocation2 + $0x690] sm:$0xff]  ;;  %v307_v26 = vld [vmem:[#allocation2 + $0x738] sm:$0xff]  ;;  %v309_v35 = vld [vmem:[#allocation2 + $0x748] sm:$0xff] }
  0x72   :  { %1677 = vmatpush1.bf16.msra.mxu0 %v1676_v40  ;;  %1196 = vmatmul.mubr.f32.gmra.mrb[4].mxu1 %v58_v15  ;;  %v273_v40 = vld [vmem:[#allocation2 + $0x628] sm:$0xff]  ;;  %v1708_v15 = vpack.c.bf16 %v288_v7, %v284_v6  ;;  %v306_v34 = vld [vmem:[#allocation2 + $0x730] sm:$0xff]  ;;  %v315_v38 = vld [vmem:[#allocation2 + $0x778] sm:$0xff] }
  0x73   :  { %1965 = vmatpush1.bf16.msra.mxu1 %v1964_v41  ;;  %1679 = vmatprep.subr.bf16.mxu0 %v1678_v42  ;;  %v271_v41 = vld [vmem:[#allocation2 + $0x618] sm:$0xff]  ;;  %v1698_v45 = vpack.c.bf16 %v273_v40, %v269_v39  ;;  %v330_v6 = vld [vmem:[#allocation2 + $0x7f0] sm:$0xff]  ;;  %v333_v7 = vld [vmem:[#allocation2 + $0x808] sm:$0xff] }
  0x74   :  { %1967 = vmatprep.subr.bf16.mxu1 %v1966_v46  ;;  %756 = vmatprep.mubr.f32.mxu0 %v68_v18  ;;  %v275_v42 = vld [vmem:[#allocation2 + $0x638] sm:$0xff]  ;;  %v268_v46 = vld [vmem:[#allocation2 + $0x600] sm:$0xff] }
  0x75   :  { %1201 = vmatprep.mubr.f32.mxu1 %v68_v18  ;;  %757 = vmatmul.mubr.f32.gmra.mrb[6].mxu0 %v67_v27  ;;  %v1986_v49 = vpack.c.bf16 %v275_v42, %v271_v41  ;;  %v292_v18 = vld [vmem:[#allocation2 + $0x6c0] sm:$0xff]  ;;  %v1718_v41 = vpack.c.bf16 %v313_v36, %v309_v35  ;;  %v323_v50 = vld [vmem:[#allocation2 + $0x7b8] sm:$0xff] }
  0x76   :  { %1681 = vmatpush1.bf16.msra.mxu0 %v1680_v52  ;;  %1202 = vmatmul.mubr.f32.gmra.mrb[6].mxu1 %v67_v27  ;;  %v281_v52 = vld [vmem:[#allocation2 + $0x668] sm:$0xff]  ;;  %v308_v42 = vld [vmem:[#allocation2 + $0x740] sm:$0xff]  ;;  %v355_v35 = vld [vmem:[#allocation2 + $0x8b8] sm:$0xff] }
  0x77   :  { %1969 = vmatpush1.bf16.msra.mxu1 %v1968_v54  ;;  %1683 = vmatprep.subr.bf16.mxu0 %v1682_v55  ;;  %v283_v54 = vld [vmem:[#allocation2 + $0x678] sm:$0xff]  ;;  %v1700_v55 = vpack.c.bf16 %v272_v47, %v268_v46  ;;  %v1702_v57 = vpack.c.bf16 %v281_v52, %v277_v51  ;;  %v314_v46 = vld [vmem:[#allocation2 + $0x770] sm:$0xff]  ;;  %v317_v47 = vld [vmem:[#allocation2 + $0x788] sm:$0xff] }
  0x78   :  { %1971 = vmatprep.subr.bf16.mxu1 %v1970_v59  ;;  %827 = vmatprep.mubr.f32.mxu0 %v43_v31  ;;  %v280_v59 = vld [vmem:[#allocation2 + $0x660] sm:$0xff]  ;;  %v1990_v61 = vpack.c.bf16 %v283_v54, %v279_v53  ;;  %v1722_v53 = vpack.c.bf16 %v321_v48, %v317_v47  ;;  %v361_v47 = vld [vmem:[#allocation2 + $0x8e8] sm:$0xff]  ;;  %v359_v48 = vld [vmem:[#allocation2 + $0x8d8] sm:$0xff] }
  0x79   :  { %1272 = vmatprep.mubr.f32.mxu1 %v43_v31  ;;  %v1704_v3 = vpack.c.bf16 %v280_v59, %v276_v58  ;;  %v304_v31 = vld [vmem:[#allocation2 + $0x720] sm:$0xff]  ;;  %v322_v58 = vld [vmem:[#allocation2 + $0x7b0] sm:$0xff]  ;;  %v325_v59 = vld [vmem:[#allocation2 + $0x7c8] sm:$0xff] }
  0x7a   :  { %1685 = vmatpush1.bf16.msra.mxu0 %v1684_v2  ;;  %v291_v2 = vld [vmem:[#allocation2 + $0x6b8] sm:$0xff]  ;;  %v316_v54 = vld [vmem:[#allocation2 + $0x780] sm:$0xff] }
  0x7b   :  { %1973 = vmatpush1.bf16.msra.mxu1 %v1972_v4  ;;  %1687 = vmatprep.subr.bf16.mxu0 %v1686_v5  ;;  %v1992_v4 = vpack.c.bf16 %v282_v62, %v278_v60  ;;  %v1706_v5 = vpack.c.bf16 %v289_v0, %v285_v63  ;;  %v329_v60 = vld [vmem:[#allocation2 + $0x7e8] sm:$0xff]  ;;  %v331_v62 = vld [vmem:[#allocation2 + $0x7f8] sm:$0xff]  ;;  %v52_v36 = vld [vmem:[%s2516_s0 + $0x60] sm:$0xff] }
  0x7c   :  { %1975 = vmatprep.subr.bf16.mxu1 %v1974_v9  ;;  %v1994_v9 = vpack.c.bf16 %v291_v2, %v287_v1  ;;  %v1726_v1 = vpack.c.bf16 %v329_v60, %v325_v59  ;;  %v324_v2 = vld [vmem:[#allocation2 + $0x7c0] sm:$0xff]  ;;  %v362_v59 = vld [vmem:[#allocation2 + $0x8f0] sm:$0xff]  ;;  %v365_v60 = vld [vmem:[#allocation2 + $0x908] sm:$0xff] }
  0x7e   :  { %1689 = vmatpush1.bf16.msra.mxu0 %v1688_v16  ;;  %v1996_v16 = vpack.c.bf16 %v290_v10, %v286_v8  ;;  %v337_v8 = vld [vmem:[#allocation2 + $0x828] sm:$0xff]  ;;  %v339_v10 = vld [vmem:[#allocation2 + $0x838] sm:$0xff] }
  0x7f   :  { %1977 = vmatpush1.bf16.msra.mxu1 %v1976_v19  ;;  %1691 = vmatprep.subr.bf16.mxu0 %v1690_v20  ;;  %v296_v19 = vld [vmem:[#allocation2 + $0x6e0] sm:$0xff]  ;;  %v294_v20 = vld [vmem:[#allocation2 + $0x6d0] sm:$0xff]  ;;  %v1730_v13 = vpack.c.bf16 %v337_v8, %v333_v7 }
  0x80   :  { %1979 = vmatprep.subr.bf16.mxu1 %v1978_v24  ;;  %v305_v24 = vld [vmem:[#allocation2 + $0x728] sm:$0xff]  ;;  %v1712_v27 = vpack.c.bf16 %v296_v19, %v292_v18  ;;  %v2000_v28 = vpack.c.bf16 %v298_v22, %v294_v20  ;;  %v338_v18 = vld [vmem:[#allocation2 + $0x830] sm:$0xff]  ;;  %v347_v22 = vld [vmem:[#allocation2 + $0x878] sm:$0xff] }
  0x81   :  { %v1714_v29 = vpack.c.bf16 %v305_v24, %v301_v23  ;;  %v341_v19 = vld [vmem:[#allocation2 + $0x848] sm:$0xff]  ;;  %v42_v23 = vld [vmem:[%s2516_s0 + $0x10] sm:$0xff] }
  0x82   :  { %1693 = vmatpush1.bf16.msra.mxu0 %v1692_v30  ;;  %v300_v30 = vld [vmem:[#allocation2 + $0x700] sm:$0xff]  ;;  %v345_v20 = vld [vmem:[#allocation2 + $0x868] sm:$0xff]  ;;  %v366_v7 = vld [vmem:[#allocation2 + $0x910] sm:$0xff] }
  0x83   :  { %1981 = vmatpush1.bf16.msra.mxu1 %v1980_v32  ;;  %1695 = vmatprep.subr.bf16.mxu0 %v1694_v33  ;;  %v302_v32 = vld [vmem:[#allocation2 + $0x710] sm:$0xff]  ;;  %v2002_v33 = vpack.c.bf16 %v307_v26, %v303_v25  ;;  %v1716_v39 = vpack.c.bf16 %v304_v31, %v300_v30  ;;  %v1734_v26 = vpack.c.bf16 %v345_v20, %v341_v19  ;;  %v376_v19 = vld [vmem:[#allocation2 + $0x960] sm:$0xff] }
  0x84   :  { %1983 = vmatprep.subr.bf16.mxu1 %v1982_v37  ;;  %v311_v37 = vld [vmem:[#allocation2 + $0x758] sm:$0xff]  ;;  %v2004_v40 = vpack.c.bf16 %v306_v34, %v302_v32  ;;  %v346_v31 = vld [vmem:[#allocation2 + $0x870] sm:$0xff]  ;;  %v349_v32 = vld [vmem:[#allocation2 + $0x888] sm:$0xff] }
  0x85   :  { %v351_v34 = vld [vmem:[#allocation2 + $0x898] sm:$0xff]  ;;  %v374_v20 = vld [vmem:[#allocation2 + $0x950] sm:$0xff] }
  0x86   :  { %1697 = vmatpush1.bf16.msra.mxu0 %v1696_v43  ;;  %v312_v43 = vld [vmem:[#allocation2 + $0x760] sm:$0xff] }
  0x87   :  { %1985 = vmatpush1.bf16.msra.mxu1 %v1984_v44  ;;  %1699 = vmatprep.subr.bf16.mxu0 %v1698_v45  ;;  %v310_v44 = vld [vmem:[#allocation2 + $0x750] sm:$0xff]  ;;  %v2006_v45 = vpack.c.bf16 %v315_v38, %v311_v37  ;;  %v1720_v51 = vpack.c.bf16 %v312_v43, %v308_v42  ;;  %v51_v38 = vld [vmem:[%s2516_s0 + $0x58] sm:$0xff]  ;;  %v352_v42 = vld [vmem:[#allocation2 + $0x8a0] sm:$0xff] }
  0x88   :  { %1987 = vmatprep.subr.bf16.mxu1 %v1986_v49  ;;  %v319_v49 = vld [vmem:[#allocation2 + $0x798] sm:$0xff]  ;;  %v2008_v52 = vpack.c.bf16 %v314_v46, %v310_v44  ;;  %v350_v43 = vld [vmem:[#allocation2 + $0x890] sm:$0xff]  ;;  %v2026_v44 = vpack.c.bf16 %v355_v35, %v351_v34  ;;  %v357_v46 = vld [vmem:[#allocation2 + $0x8c8] sm:$0xff] }
  0x89   :  { %v386_v34 = vld [vmem:[#allocation2 + $0x9b0] sm:$0xff]  ;;  %v389_v35 = vld [vmem:[#allocation2 + $0x9c8] sm:$0xff] }
  0x8a   :  { %1701 = vmatpush1.bf16.msra.mxu0 %v1700_v55  ;;  %v320_v55 = vld [vmem:[#allocation2 + $0x7a0] sm:$0xff] }
  0x8b   :  { %1989 = vmatpush1.bf16.msra.mxu1 %v1988_v56  ;;  %1703 = vmatprep.subr.bf16.mxu0 %v1702_v57  ;;  %v318_v56 = vld [vmem:[#allocation2 + $0x790] sm:$0xff]  ;;  %v2010_v57 = vpack.c.bf16 %v323_v50, %v319_v49  ;;  %v1724_v63 = vpack.c.bf16 %v320_v55, %v316_v54  ;;  %v363_v49 = vld [vmem:[#allocation2 + $0x8f8] sm:$0xff]  ;;  %v61_v50 = vld [vmem:[%s2516_s0 + $0xa8] sm:$0xff]  ;;  %v1742_v54 = vpack.c.bf16 %v361_v47, %v357_v46 }
  0x8c   :  { %1991 = vmatprep.subr.bf16.mxu1 %v1990_v61  ;;  %v327_v61 = vld [vmem:[#allocation2 + $0x7d8] sm:$0xff]  ;;  %v2012_v0 = vpack.c.bf16 %v322_v58, %v318_v56  ;;  %v356_v55 = vld [vmem:[#allocation2 + $0x8c0] sm:$0xff]  ;;  %v2030_v58 = vpack.c.bf16 %v363_v49, %v359_v48  ;;  %v394_v46 = vld [vmem:[#allocation2 + $0x9f0] sm:$0xff] }
  0x8d   :  { %v360_v56 = vld [vmem:[#allocation2 + $0x8e0] sm:$0xff]  ;;  %v397_v47 = vld [vmem:[#allocation2 + $0xa08] sm:$0xff]  ;;  %v399_v49 = vld [vmem:[#allocation2 + $0xa18] sm:$0xff] }
  0x8e   :  { %1705 = vmatpush1.bf16.msra.mxu0 %v1704_v3  ;;  %v328_v3 = vld [vmem:[#allocation2 + $0x7e0] sm:$0xff]  ;;  %v401_v48 = vld [vmem:[#allocation2 + $0xa28] sm:$0xff] }
  0x8f   :  { %1993 = vmatpush1.bf16.msra.mxu1 %v1992_v4  ;;  %1707 = vmatprep.subr.bf16.mxu0 %v1706_v5  ;;  %v326_v4 = vld [vmem:[#allocation2 + $0x7d0] sm:$0xff]  ;;  %v2014_v5 = vpack.c.bf16 %v331_v62, %v327_v61  ;;  %v1728_v11 = vpack.c.bf16 %v328_v3, %v324_v2  ;;  %v369_v61 = vld [vmem:[#allocation2 + $0x928] sm:$0xff]  ;;  %v367_v62 = vld [vmem:[#allocation2 + $0x918] sm:$0xff] }
  0x90   :  { %1995 = vmatprep.subr.bf16.mxu1 %v1994_v9  ;;  %v335_v9 = vld [vmem:[#allocation2 + $0x818] sm:$0xff]  ;;  %v2016_v12 = vpack.c.bf16 %v330_v6, %v326_v4  ;;  %v69_v2 = vld [vmem:[%s2516_s0 + $0xe8] sm:$0xff]  ;;  %v1746_v4 = vpack.c.bf16 %v369_v61, %v365_v60  ;;  %v368_v6 = vld [vmem:[#allocation2 + $0x920] sm:$0xff] }
  0x91   :  { %v409_v60 = vld [vmem:[#allocation2 + $0xa68] sm:$0xff]  ;;  %v407_v61 = vld [vmem:[#allocation2 + $0xa58] sm:$0xff] }
  0x92   :  { %1709 = vmatpush1.bf16.msra.mxu0 %v1708_v15  ;;  %v336_v15 = vld [vmem:[#allocation2 + $0x820] sm:$0xff] }
  0x93   :  { %1997 = vmatpush1.bf16.msra.mxu1 %v1996_v16  ;;  %1711 = vmatprep.subr.bf16.mxu0 %v1710_v17  ;;  %v334_v16 = vld [vmem:[#allocation2 + $0x810] sm:$0xff]  ;;  %v2018_v17 = vpack.c.bf16 %v339_v10, %v335_v9  ;;  %v1732_v24 = vpack.c.bf16 %v336_v15, %v332_v14  ;;  %v373_v10 = vld [vmem:[#allocation2 + $0x948] sm:$0xff] }
  0x94   :  { %1999 = vmatprep.subr.bf16.mxu1 %v1998_v21  ;;  %v343_v21 = vld [vmem:[#allocation2 + $0x858] sm:$0xff]  ;;  %v2020_v25 = vpack.c.bf16 %v338_v18, %v334_v16  ;;  %v370_v9 = vld [vmem:[#allocation2 + $0x930] sm:$0xff]  ;;  %v45_v14 = vld [vmem:[%s2516_s0 + $0x28] sm:$0xff] }
  0x95   :  { %v2022_v30 = vpack.c.bf16 %v347_v22, %v343_v21  ;;  %v2036_v16 = vpack.c.bf16 %v370_v9, %v366_v7  ;;  %v372_v18 = vld [vmem:[#allocation2 + $0x940] sm:$0xff]  ;;  %v378_v22 = vld [vmem:[#allocation2 + $0x970] sm:$0xff]  ;;  %v413_v7 = vld [vmem:[#allocation2 + $0xa88] sm:$0xff] }
  0x96   :  { %1713 = vmatpush1.bf16.msra.mxu0 %v1712_v27  ;;  %v340_v27 = vld [vmem:[#allocation2 + $0x840] sm:$0xff]  ;;  %v415_v9 = vld [vmem:[#allocation2 + $0xa98] sm:$0xff] }
  0x97   :  { %2001 = vmatpush1.bf16.msra.mxu1 %v2000_v28  ;;  %1715 = vmatprep.subr.bf16.mxu0 %v1714_v29  ;;  %v344_v28 = vld [vmem:[#allocation2 + $0x860] sm:$0xff]  ;;  %v342_v29 = vld [vmem:[#allocation2 + $0x850] sm:$0xff] }
  0x98   :  { %2003 = vmatprep.subr.bf16.mxu1 %v2002_v33  ;;  %v353_v33 = vld [vmem:[#allocation2 + $0x8a8] sm:$0xff]  ;;  %v1736_v37 = vpack.c.bf16 %v344_v28, %v340_v27  ;;  %v1752_v27 = vpack.c.bf16 %v376_v19, %v372_v18  ;;  %v2040_v28 = vpack.c.bf16 %v378_v22, %v374_v20  ;;  %v418_v18 = vld [vmem:[#allocation2 + $0xab0] sm:$0xff]  ;;  %v427_v22 = vld [vmem:[#allocation2 + $0xaf8] sm:$0xff] }
  0x99   :  { %v421_v19 = vld [vmem:[#allocation2 + $0xac8] sm:$0xff] }
  0x9a   :  { %1717 = vmatpush1.bf16.msra.mxu0 %v1716_v39  ;;  %v2024_v39 = vpack.c.bf16 %v346_v31, %v342_v29  ;;  %v384_v31 = vld [vmem:[#allocation2 + $0x9a0] sm:$0xff]  ;;  %v425_v20 = vld [vmem:[#allocation2 + $0xae8] sm:$0xff] }
  0x9b   :  { %2005 = vmatpush1.bf16.msra.mxu1 %v2004_v40  ;;  %1719 = vmatprep.subr.bf16.mxu0 %v1718_v41  ;;  %v1738_v40 = vpack.c.bf16 %v353_v33, %v349_v32  ;;  %v348_v41 = vld [vmem:[#allocation2 + $0x880] sm:$0xff]  ;;  %v382_v32 = vld [vmem:[#allocation2 + $0x990] sm:$0xff] }
  0x9c   :  { %2007 = vmatprep.subr.bf16.mxu1 %v2006_v45  ;;  %v354_v45 = vld [vmem:[#allocation2 + $0x8b0] sm:$0xff] }
  0x9e   :  { %1721 = vmatpush1.bf16.msra.mxu0 %v1720_v51  ;;  %v1740_v51 = vpack.c.bf16 %v352_v42, %v348_v41  ;;  %v388_v42 = vld [vmem:[#allocation2 + $0x9c0] sm:$0xff] }
  0x9f   :  { %2009 = vmatpush1.bf16.msra.mxu1 %v2008_v52  ;;  %1723 = vmatprep.subr.bf16.mxu0 %v1722_v53  ;;  %v60_v52 = vld [vmem:[%s2516_s0 + $0xa0] sm:$0xff]  ;;  %v2028_v53 = vpack.c.bf16 %v354_v45, %v350_v43 }
  0xa0   :  { %2011 = vmatprep.subr.bf16.mxu1 %v2010_v57  ;;  %v358_v57 = vld [vmem:[#allocation2 + $0x8d0] sm:$0xff]  ;;  %v392_v43 = vld [vmem:[#allocation2 + $0x9e0] sm:$0xff] }
  0xa1   :  { %v2032_v3 = vpack.c.bf16 %v362_v59, %v358_v57  ;;  %v405_v59 = vld [vmem:[#allocation2 + $0xa48] sm:$0xff] }
  0xa2   :  { %1725 = vmatpush1.bf16.msra.mxu0 %v1724_v63  ;;  %v371_v63 = vld [vmem:[#allocation2 + $0x938] sm:$0xff] }
  0xa3   :  { %2013 = vmatpush1.bf16.msra.mxu1 %v2012_v0  ;;  %1727 = vmatprep.subr.bf16.mxu0 %v1726_v1  ;;  %v70_v0 = vld [vmem:[%s2516_s0 + $0xf0] sm:$0xff]  ;;  %v1744_v1 = vpack.c.bf16 %v360_v56, %v356_v55  ;;  %v2034_v8 = vpack.c.bf16 %v371_v63, %v367_v62  ;;  %v400_v55 = vld [vmem:[#allocation2 + $0xa20] sm:$0xff]  ;;  %v411_v62 = vld [vmem:[#allocation2 + $0xa78] sm:$0xff] }
  0xa4   :  { %2015 = vmatprep.subr.bf16.mxu1 %v2014_v5  ;;  %v364_v5 = vld [vmem:[#allocation2 + $0x900] sm:$0xff]  ;;  %v398_v56 = vld [vmem:[#allocation2 + $0xa10] sm:$0xff] }
  0xa5   :  { %v1748_v15 = vpack.c.bf16 %v368_v6, %v364_v5  ;;  %v2054_v5 = vpack.c.bf16 %v411_v62, %v407_v61  ;;  %v410_v6 = vld [vmem:[#allocation2 + $0xa70] sm:$0xff]  ;;  %v444_v62 = vld [vmem:[#allocation2 + $0xb80] sm:$0xff] }
  0xa6   :  { %1729 = vmatpush1.bf16.msra.mxu0 %v1728_v11  ;;  %v377_v11 = vld [vmem:[#allocation2 + $0x968] sm:$0xff] }
  0xa7   :  { %2017 = vmatpush1.bf16.msra.mxu1 %v2016_v12  ;;  %1731 = vmatprep.subr.bf16.mxu0 %v1730_v13  ;;  %v375_v12 = vld [vmem:[#allocation2 + $0x958] sm:$0xff] }
  0xa8   :  { %2019 = vmatprep.subr.bf16.mxu1 %v2018_v17  ;;  %v379_v13 = vld [vmem:[#allocation2 + $0x978] sm:$0xff]  ;;  %v1750_v17 = vpack.c.bf16 %v377_v11, %v373_v10 }
  0xa9   :  { %828 = vmatmul.mubr.f32.vlgmr.msra.gmra.mrb[0].mxu0 %v42_v23  ;;  %v2038_v21 = vpack.c.bf16 %v379_v13, %v375_v12  ;;  %v419_v10 = vld [vmem:[#allocation2 + $0xab8] sm:$0xff] }
  0xaa   :  { %1733 = vmatpush1.bf16.msra.mxu0 %v1732_v24  ;;  %1273 = vmatmul.mubr.f32.vlgmr.msra.gmra.mrb[0].mxu1 %v42_v23  ;;  %v381_v23 = vld [vmem:[#allocation2 + $0x988] sm:$0xff] }
  0xab   :  { %2021 = vmatpush1.bf16.msra.mxu1 %v2020_v25  ;;  %1735 = vmatprep.subr.bf16.mxu0 %v1734_v26  ;;  %v385_v24 = vld [vmem:[#allocation2 + $0x9a8] sm:$0xff]  ;;  %v383_v25 = vld [vmem:[#allocation2 + $0x998] sm:$0xff] }
  0xac   :  { %2023 = vmatprep.subr.bf16.mxu1 %v2022_v30  ;;  %833 = vmatprep.mubr.f32.mxu0 %v52_v36  ;;  %v387_v26 = vld [vmem:[#allocation2 + $0x9b8] sm:$0xff]  ;;  %v1754_v29 = vpack.c.bf16 %v385_v24, %v381_v23  ;;  %v380_v30 = vld [vmem:[#allocation2 + $0x980] sm:$0xff] }
  0xad   :  { %1278 = vmatprep.mubr.f32.mxu1 %v52_v36  ;;  %834 = vmatmul.mubr.f32.gmra.mrb[2].mxu0 %v51_v38  ;;  %v2042_v33 = vpack.c.bf16 %v387_v26, %v383_v25  ;;  %v393_v36 = vld [vmem:[#allocation2 + $0x9e8] sm:$0xff]  ;;  %v1774_v25 = vpack.c.bf16 %v425_v20, %v421_v19  ;;  %v420_v26 = vld [vmem:[#allocation2 + $0xac0] sm:$0xff] }
  0xae   :  { %1737 = vmatpush1.bf16.msra.mxu0 %v1736_v37  ;;  %1279 = vmatmul.mubr.f32.gmra.mrb[2].mxu1 %v51_v38  ;;  %v391_v37 = vld [vmem:[#allocation2 + $0x9d8] sm:$0xff]  ;;  %v1758_v41 = vpack.c.bf16 %v393_v36, %v389_v35 }
  0xaf   :  { %2025 = vmatpush1.bf16.msra.mxu1 %v2024_v39  ;;  %1739 = vmatprep.subr.bf16.mxu0 %v1738_v40  ;;  %v395_v38 = vld [vmem:[#allocation2 + $0x9f8] sm:$0xff]  ;;  %v1756_v39 = vpack.c.bf16 %v384_v31, %v380_v30  ;;  %v2044_v40 = vpack.c.bf16 %v386_v34, %v382_v32  ;;  %v426_v30 = vld [vmem:[#allocation2 + $0xaf0] sm:$0xff]  ;;  %v429_v31 = vld [vmem:[#allocation2 + $0xb08] sm:$0xff] }
  0xb0   :  { %2027 = vmatprep.subr.bf16.mxu1 %v2026_v44  ;;  %839 = vmatprep.mubr.f32.mxu0 %v61_v50  ;;  %v390_v44 = vld [vmem:[#allocation2 + $0x9d0] sm:$0xff]  ;;  %v2046_v45 = vpack.c.bf16 %v395_v38, %v391_v37  ;;  %v433_v32 = vld [vmem:[#allocation2 + $0xb28] sm:$0xff]  ;;  %v435_v34 = vld [vmem:[#allocation2 + $0xb38] sm:$0xff] }
  0xb1   :  { %1284 = vmatprep.mubr.f32.mxu1 %v61_v50  ;;  %840 = vmatmul.mubr.f32.gmra.mrb[4].mxu0 %v60_v52  ;;  %v403_v50 = vld [vmem:[#allocation2 + $0xa38] sm:$0xff]  ;;  %v1778_v37 = vpack.c.bf16 %v433_v32, %v429_v31  ;;  %v428_v38 = vld [vmem:[#allocation2 + $0xb00] sm:$0xff] }
  0xb2   :  { %1741 = vmatpush1.bf16.msra.mxu0 %v1740_v51  ;;  %1285 = vmatmul.mubr.f32.gmra.mrb[4].mxu1 %v60_v52  ;;  %v1760_v51 = vpack.c.bf16 %v392_v43, %v388_v42  ;;  %v2048_v52 = vpack.c.bf16 %v394_v46, %v390_v44  ;;  %v2050_v57 = vpack.c.bf16 %v403_v50, %v399_v49  ;;  %v434_v42 = vld [vmem:[#allocation2 + $0xb30] sm:$0xff]  ;;  %v437_v43 = vld [vmem:[#allocation2 + $0xb48] sm:$0xff]  ;;  %v443_v46 = vld [vmem:[#allocation2 + $0xb78] sm:$0xff] }
  0xb3   :  { %2029 = vmatpush1.bf16.msra.mxu1 %v2028_v53  ;;  %1743 = vmatprep.subr.bf16.mxu0 %v1742_v54  ;;  %v1762_v53 = vpack.c.bf16 %v401_v48, %v397_v47  ;;  %v396_v54 = vld [vmem:[#allocation2 + $0xa00] sm:$0xff]  ;;  %v441_v44 = vld [vmem:[#allocation2 + $0xb68] sm:$0xff] }
  0xb4   :  { %2031 = vmatprep.subr.bf16.mxu1 %v2030_v58  ;;  %845 = vmatprep.mubr.f32.mxu0 %v70_v0  ;;  %v402_v58 = vld [vmem:[#allocation2 + $0xa30] sm:$0xff]  ;;  %v1764_v63 = vpack.c.bf16 %v400_v55, %v396_v54  ;;  %v1782_v49 = vpack.c.bf16 %v441_v44, %v437_v43  ;;  %v436_v50 = vld [vmem:[#allocation2 + $0xb40] sm:$0xff]  ;;  %v445_v55 = vld [vmem:[#allocation2 + $0xb88] sm:$0xff] }
  0xb5   :  { %1290 = vmatprep.mubr.f32.mxu1 %v70_v0  ;;  %846 = vmatmul.mubr.f32.gmra.mrb[6].mxu0 %v69_v2  ;;  %v2052_v0 = vpack.c.bf16 %v402_v58, %v398_v56  ;;  %v442_v54 = vld [vmem:[#allocation2 + $0xb70] sm:$0xff]  ;;  %v449_v56 = vld [vmem:[#allocation2 + $0xba8] sm:$0xff]  ;;  %v451_v58 = vld [vmem:[#allocation2 + $0xbb8] sm:$0xff] }
  0xb6   :  { %1745 = vmatpush1.bf16.msra.mxu0 %v1744_v1  ;;  %1291 = vmatmul.mubr.f32.gmra.mrb[6].mxu1 %v69_v2  ;;  %v1766_v1 = vpack.c.bf16 %v409_v60, %v405_v59  ;;  %v404_v2 = vld [vmem:[#allocation2 + $0xa40] sm:$0xff]  ;;  %v1786_v61 = vpack.c.bf16 %v449_v56, %v445_v55  ;;  %v483_v43 = vld [vmem:[#allocation2 + $0xcb8] sm:$0xff]  ;;  %v54_v44 = vld [vmem:[%s2516_s0 + $0x70] sm:$0xff] }
  0xb7   :  { %2033 = vmatpush1.bf16.msra.mxu1 %v2032_v3  ;;  %1747 = vmatprep.subr.bf16.mxu0 %v1746_v4  ;;  %v408_v3 = vld [vmem:[#allocation2 + $0xa60] sm:$0xff]  ;;  %v406_v4 = vld [vmem:[#allocation2 + $0xa50] sm:$0xff]  ;;  %v489_v55 = vld [vmem:[#allocation2 + $0xce8] sm:$0xff] }
  0xb8   :  { %2035 = vmatprep.subr.bf16.mxu1 %v2034_v8  ;;  %916 = vmatprep.mubr.f32.mxu0 %v45_v14  ;;  %v417_v8 = vld [vmem:[#allocation2 + $0xaa8] sm:$0xff]  ;;  %v1768_v11 = vpack.c.bf16 %v408_v3, %v404_v2  ;;  %v2056_v12 = vpack.c.bf16 %v410_v6, %v406_v4  ;;  %v450_v2 = vld [vmem:[#allocation2 + $0xbb0] sm:$0xff]  ;;  %v459_v6 = vld [vmem:[#allocation2 + $0xbf8] sm:$0xff] }
  0xb9   :  { %1361 = vmatprep.mubr.f32.mxu1 %v45_v14  ;;  %v1770_v13 = vpack.c.bf16 %v417_v8, %v413_v7  ;;  %v412_v14 = vld [vmem:[#allocation2 + $0xa80] sm:$0xff]  ;;  %v453_v3 = vld [vmem:[#allocation2 + $0xbc8] sm:$0xff]  ;;  %v487_v56 = vld [vmem:[#allocation2 + $0xcd8] sm:$0xff] }
  0xba   :  { %1749 = vmatpush1.bf16.msra.mxu0 %v1748_v15  ;;  %v416_v15 = vld [vmem:[#allocation2 + $0xaa0] sm:$0xff]  ;;  %v457_v4 = vld [vmem:[#allocation2 + $0xbe8] sm:$0xff] }
  0xbb   :  { %2037 = vmatpush1.bf16.msra.mxu1 %v2036_v16  ;;  %1751 = vmatprep.subr.bf16.mxu0 %v1750_v17  ;;  %v414_v16 = vld [vmem:[#allocation2 + $0xa90] sm:$0xff]  ;;  %v2058_v17 = vpack.c.bf16 %v419_v10, %v415_v9  ;;  %v1772_v23 = vpack.c.bf16 %v416_v15, %v412_v14  ;;  %v1790_v9 = vpack.c.bf16 %v457_v4, %v453_v3  ;;  %v452_v10 = vld [vmem:[#allocation2 + $0xbc0] sm:$0xff]  ;;  %v461_v15 = vld [vmem:[#allocation2 + $0xc08] sm:$0xff] }
  0xbc   :  { %2039 = vmatprep.subr.bf16.mxu1 %v2038_v21  ;;  %v423_v21 = vld [vmem:[#allocation2 + $0xad8] sm:$0xff]  ;;  %v2060_v24 = vpack.c.bf16 %v418_v18, %v414_v16  ;;  %v458_v14 = vld [vmem:[#allocation2 + $0xbf0] sm:$0xff]  ;;  %v465_v16 = vld [vmem:[#allocation2 + $0xc28] sm:$0xff] }
  0xbd   :  { %v467_v18 = vld [vmem:[#allocation2 + $0xc38] sm:$0xff]  ;;  %v44_v31 = vld [vmem:[%s2516_s0 + $0x20] sm:$0xff]  ;;  %v490_v3 = vld [vmem:[#allocation2 + $0xcf0] sm:$0xff] }
  0xbe   :  { %1753 = vmatpush1.bf16.msra.mxu0 %v1752_v27  ;;  %v424_v27 = vld [vmem:[#allocation2 + $0xae0] sm:$0xff]  ;;  %v493_v4 = vld [vmem:[#allocation2 + $0xd08] sm:$0xff] }
  0xbf   :  { %2041 = vmatpush1.bf16.msra.mxu1 %v2040_v28  ;;  %1755 = vmatprep.subr.bf16.mxu0 %v1754_v29  ;;  %v422_v28 = vld [vmem:[#allocation2 + $0xad0] sm:$0xff]  ;;  %v2062_v29 = vpack.c.bf16 %v427_v22, %v423_v21  ;;  %v1776_v35 = vpack.c.bf16 %v424_v27, %v420_v26  ;;  %v1794_v21 = vpack.c.bf16 %v465_v16, %v461_v15  ;;  %v460_v22 = vld [vmem:[#allocation2 + $0xc00] sm:$0xff]  ;;  %v469_v27 = vld [vmem:[#allocation2 + $0xc48] sm:$0xff] }
  0xc0   :  { %2043 = vmatprep.subr.bf16.mxu1 %v2042_v33  ;;  %v431_v33 = vld [vmem:[#allocation2 + $0xb18] sm:$0xff]  ;;  %v2064_v36 = vpack.c.bf16 %v426_v30, %v422_v28  ;;  %v466_v26 = vld [vmem:[#allocation2 + $0xc30] sm:$0xff]  ;;  %v473_v28 = vld [vmem:[#allocation2 + $0xc68] sm:$0xff] }
  0xc1   :  { %v475_v30 = vld [vmem:[#allocation2 + $0xc78] sm:$0xff]  ;;  %v494_v15 = vld [vmem:[#allocation2 + $0xd10] sm:$0xff] }
  0xc2   :  { %1757 = vmatpush1.bf16.msra.mxu0 %v1756_v39  ;;  %v432_v39 = vld [vmem:[#allocation2 + $0xb20] sm:$0xff] }
  0xc3   :  { %2045 = vmatpush1.bf16.msra.mxu1 %v2044_v40  ;;  %1759 = vmatprep.subr.bf16.mxu0 %v1758_v41  ;;  %v430_v40 = vld [vmem:[#allocation2 + $0xb10] sm:$0xff]  ;;  %v2066_v41 = vpack.c.bf16 %v435_v34, %v431_v33  ;;  %v1780_v47 = vpack.c.bf16 %v432_v39, %v428_v38  ;;  %v1798_v34 = vpack.c.bf16 %v473_v28, %v469_v27  ;;  %v504_v27 = vld [vmem:[#allocation2 + $0xd60] sm:$0xff] }
  0xc4   :  { %2047 = vmatprep.subr.bf16.mxu1 %v2046_v45  ;;  %v439_v45 = vld [vmem:[#allocation2 + $0xb58] sm:$0xff]  ;;  %v2068_v48 = vpack.c.bf16 %v434_v42, %v430_v40  ;;  %v474_v39 = vld [vmem:[#allocation2 + $0xc70] sm:$0xff]  ;;  %v477_v40 = vld [vmem:[#allocation2 + $0xc88] sm:$0xff] }
  0xc5   :  { %v479_v42 = vld [vmem:[#allocation2 + $0xc98] sm:$0xff]  ;;  %v502_v28 = vld [vmem:[#allocation2 + $0xd50] sm:$0xff] }
  0xc6   :  { %1761 = vmatpush1.bf16.msra.mxu0 %v1760_v51  ;;  %v440_v51 = vld [vmem:[#allocation2 + $0xb60] sm:$0xff] }
  0xc7   :  { %2049 = vmatpush1.bf16.msra.mxu1 %v2048_v52  ;;  %1763 = vmatprep.subr.bf16.mxu0 %v1762_v53  ;;  %v438_v52 = vld [vmem:[#allocation2 + $0xb50] sm:$0xff]  ;;  %v2070_v53 = vpack.c.bf16 %v443_v46, %v439_v45  ;;  %v1784_v59 = vpack.c.bf16 %v440_v51, %v436_v50  ;;  %v53_v46 = vld [vmem:[%s2516_s0 + $0x68] sm:$0xff]  ;;  %v480_v50 = vld [vmem:[#allocation2 + $0xca0] sm:$0xff] }
  0xc8   :  { %2051 = vmatprep.subr.bf16.mxu1 %v2050_v57  ;;  %v447_v57 = vld [vmem:[#allocation2 + $0xb98] sm:$0xff]  ;;  %v2072_v60 = vpack.c.bf16 %v442_v54, %v438_v52  ;;  %v478_v51 = vld [vmem:[#allocation2 + $0xc90] sm:$0xff]  ;;  %v2090_v52 = vpack.c.bf16 %v483_v43, %v479_v42  ;;  %v485_v54 = vld [vmem:[#allocation2 + $0xcc8] sm:$0xff] }
  0xc9   :  { %v514_v42 = vld [vmem:[#allocation2 + $0xdb0] sm:$0xff]  ;;  %v517_v43 = vld [vmem:[#allocation2 + $0xdc8] sm:$0xff] }
  0xca   :  { %1765 = vmatpush1.bf16.msra.mxu0 %v1764_v63  ;;  %v448_v63 = vld [vmem:[#allocation2 + $0xba0] sm:$0xff] }
  0xcb   :  { %2053 = vmatpush1.bf16.msra.mxu1 %v2052_v0  ;;  %1767 = vmatprep.subr.bf16.mxu0 %v1766_v1  ;;  %v446_v0 = vld [vmem:[#allocation2 + $0xb90] sm:$0xff]  ;;  %v2074_v1 = vpack.c.bf16 %v451_v58, %v447_v57  ;;  %v1788_v7 = vpack.c.bf16 %v448_v63, %v444_v62  ;;  %v491_v57 = vld [vmem:[#allocation2 + $0xcf8] sm:$0xff]  ;;  %v1806_v62 = vpack.c.bf16 %v489_v55, %v485_v54  ;;  %v484_v63 = vld [vmem:[#allocation2 + $0xcc0] sm:$0xff] }
  0xcc   :  { %2055 = vmatprep.subr.bf16.mxu1 %v2054_v5  ;;  %v455_v5 = vld [vmem:[#allocation2 + $0xbd8] sm:$0xff]  ;;  %v2076_v8 = vpack.c.bf16 %v450_v2, %v446_v0  ;;  %v488_v0 = vld [vmem:[#allocation2 + $0xce0] sm:$0xff]  ;;  %v2094_v2 = vpack.c.bf16 %v491_v57, %v487_v56  ;;  %v522_v54 = vld [vmem:[#allocation2 + $0xdf0] sm:$0xff] }
  0xcd   :  { %v63_v58 = vld [vmem:[%s2516_s0 + $0xb8] sm:$0xff]  ;;  %v525_v55 = vld [vmem:[#allocation2 + $0xe08] sm:$0xff] }
  0xce   :  { %1769 = vmatpush1.bf16.msra.mxu0 %v1768_v11  ;;  %v456_v11 = vld [vmem:[#allocation2 + $0xbe0] sm:$0xff]  ;;  %v529_v56 = vld [vmem:[#allocation2 + $0xe28] sm:$0xff]  ;;  %v527_v57 = vld [vmem:[#allocation2 + $0xe18] sm:$0xff] }
  0xcf   :  { %2057 = vmatpush1.bf16.msra.mxu1 %v2056_v12  ;;  %1771 = vmatprep.subr.bf16.mxu0 %v1770_v13  ;;  %v454_v12 = vld [vmem:[#allocation2 + $0xbd0] sm:$0xff]  ;;  %v2078_v13 = vpack.c.bf16 %v459_v6, %v455_v5  ;;  %v1792_v19 = vpack.c.bf16 %v456_v11, %v452_v10  ;;  %v497_v5 = vld [vmem:[#allocation2 + $0xd28] sm:$0xff]  ;;  %v495_v6 = vld [vmem:[#allocation2 + $0xd18] sm:$0xff] }
  0xd0   :  { %2059 = vmatprep.subr.bf16.mxu1 %v2058_v17  ;;  %v463_v17 = vld [vmem:[#allocation2 + $0xc18] sm:$0xff]  ;;  %v2080_v20 = vpack.c.bf16 %v458_v14, %v454_v12  ;;  %v1810_v12 = vpack.c.bf16 %v497_v5, %v493_v4  ;;  %v496_v14 = vld [vmem:[#allocation2 + $0xd20] sm:$0xff]  ;;  %v537_v4 = vld [vmem:[#allocation2 + $0xe68] sm:$0xff] }
  0xd1   :  { %v71_v10 = vld [vmem:[%s2516_s0 + $0xf8] sm:$0xff] }
  0xd2   :  { %1773 = vmatpush1.bf16.msra.mxu0 %v1772_v23  ;;  %v464_v23 = vld [vmem:[#allocation2 + $0xc20] sm:$0xff]  ;;  %v535_v5 = vld [vmem:[#allocation2 + $0xe58] sm:$0xff] }
  0xd3   :  { %2061 = vmatpush1.bf16.msra.mxu1 %v2060_v24  ;;  %1775 = vmatprep.subr.bf16.mxu0 %v1774_v25  ;;  %v462_v24 = vld [vmem:[#allocation2 + $0xc10] sm:$0xff]  ;;  %v2082_v25 = vpack.c.bf16 %v467_v18, %v463_v17  ;;  %v1796_v32 = vpack.c.bf16 %v464_v23, %v460_v22  ;;  %v501_v18 = vld [vmem:[#allocation2 + $0xd48] sm:$0xff]  ;;  %v47_v22 = vld [vmem:[%s2516_s0 + $0x38] sm:$0xff] }
  0xd4   :  { %2063 = vmatprep.subr.bf16.mxu1 %v2062_v29  ;;  %v471_v29 = vld [vmem:[#allocation2 + $0xc58] sm:$0xff]  ;;  %v2084_v33 = vpack.c.bf16 %v466_v26, %v462_v24  ;;  %v498_v17 = vld [vmem:[#allocation2 + $0xd30] sm:$0xff]  ;;  %v500_v26 = vld [vmem:[#allocation2 + $0xd40] sm:$0xff] }
  0xd5   :  { %v2086_v38 = vpack.c.bf16 %v475_v30, %v471_v29  ;;  %v2100_v24 = vpack.c.bf16 %v498_v17, %v494_v15  ;;  %v506_v30 = vld [vmem:[#allocation2 + $0xd70] sm:$0xff]  ;;  %v541_v15 = vld [vmem:[#allocation2 + $0xe88] sm:$0xff]  ;;  %v543_v17 = vld [vmem:[#allocation2 + $0xe98] sm:$0xff] }
  0xd6   :  { %1777 = vmatpush1.bf16.msra.mxu0 %v1776_v35  ;;  %v468_v35 = vld [vmem:[#allocation2 + $0xc40] sm:$0xff] }
  0xd7   :  { %2065 = vmatpush1.bf16.msra.mxu1 %v2064_v36  ;;  %1779 = vmatprep.subr.bf16.mxu0 %v1778_v37  ;;  %v472_v36 = vld [vmem:[#allocation2 + $0xc60] sm:$0xff]  ;;  %v470_v37 = vld [vmem:[#allocation2 + $0xc50] sm:$0xff] }
  0xd8   :  { %2067 = vmatprep.subr.bf16.mxu1 %v2066_v41  ;;  %v481_v41 = vld [vmem:[#allocation2 + $0xca8] sm:$0xff]  ;;  %v1800_v45 = vpack.c.bf16 %v472_v36, %v468_v35  ;;  %v1816_v35 = vpack.c.bf16 %v504_v27, %v500_v26  ;;  %v2104_v36 = vpack.c.bf16 %v506_v30, %v502_v28  ;;  %v546_v26 = vld [vmem:[#allocation2 + $0xeb0] sm:$0xff]  ;;  %v555_v30 = vld [vmem:[#allocation2 + $0xef8] sm:$0xff] }
  0xd9   :  { %v549_v27 = vld [vmem:[#allocation2 + $0xec8] sm:$0xff] }
  0xda   :  { %1781 = vmatpush1.bf16.msra.mxu0 %v1780_v47  ;;  %v2088_v47 = vpack.c.bf16 %v474_v39, %v470_v37  ;;  %v512_v39 = vld [vmem:[#allocation2 + $0xda0] sm:$0xff]  ;;  %v553_v28 = vld [vmem:[#allocation2 + $0xee8] sm:$0xff] }
  0xdb   :  { %2069 = vmatpush1.bf16.msra.mxu1 %v2068_v48  ;;  %1783 = vmatprep.subr.bf16.mxu0 %v1782_v49  ;;  %v1802_v48 = vpack.c.bf16 %v481_v41, %v477_v40  ;;  %v476_v49 = vld [vmem:[#allocation2 + $0xc80] sm:$0xff]  ;;  %v510_v40 = vld [vmem:[#allocation2 + $0xd90] sm:$0xff] }
  0xdc   :  { %2071 = vmatprep.subr.bf16.mxu1 %v2070_v53  ;;  %v482_v53 = vld [vmem:[#allocation2 + $0xcb0] sm:$0xff] }
  0xde   :  { %1785 = vmatpush1.bf16.msra.mxu0 %v1784_v59  ;;  %v1804_v59 = vpack.c.bf16 %v480_v50, %v476_v49  ;;  %v516_v50 = vld [vmem:[#allocation2 + $0xdc0] sm:$0xff] }
  0xdf   :  { %2073 = vmatpush1.bf16.msra.mxu1 %v2072_v60  ;;  %1787 = vmatprep.subr.bf16.mxu0 %v1786_v61  ;;  %v62_v60 = vld [vmem:[%s2516_s0 + $0xb0] sm:$0xff]  ;;  %v2092_v61 = vpack.c.bf16 %v482_v53, %v478_v51  ;;  %v520_v51 = vld [vmem:[#allocation2 + $0xde0] sm:$0xff] }
  0xe0   :  { %2075 = vmatprep.subr.bf16.mxu1 %v2074_v1  ;;  %v486_v1 = vld [vmem:[#allocation2 + $0xcd0] sm:$0xff] }
  0xe1   :  { %v2096_v11 = vpack.c.bf16 %v490_v3, %v486_v1  ;;  %v533_v3 = vld [vmem:[#allocation2 + $0xe48] sm:$0xff] }
  0xe2   :  { %1789 = vmatpush1.bf16.msra.mxu0 %v1788_v7  ;;  %v499_v7 = vld [vmem:[#allocation2 + $0xd38] sm:$0xff] }
  0xe3   :  { %2077 = vmatpush1.bf16.msra.mxu1 %v2076_v8  ;;  %1791 = vmatprep.subr.bf16.mxu0 %v1790_v9  ;;  %v72_v8 = vld [vmem:[%s2516_s0 + $0x100] sm:$0xff]  ;;  %v1808_v9 = vpack.c.bf16 %v488_v0, %v484_v63  ;;  %v2098_v16 = vpack.c.bf16 %v499_v7, %v495_v6  ;;  %v526_v0 = vld [vmem:[#allocation2 + $0xe10] sm:$0xff]  ;;  %v539_v6 = vld [vmem:[#allocation2 + $0xe78] sm:$0xff] }
  0xe4   :  { %2079 = vmatprep.subr.bf16.mxu1 %v2078_v13  ;;  %v492_v13 = vld [vmem:[#allocation2 + $0xd00] sm:$0xff] }
  0xe5   :  { %v1812_v23 = vpack.c.bf16 %v496_v14, %v492_v13  ;;  %v528_v63 = vld [vmem:[#allocation2 + $0xe20] sm:$0xff]  ;;  %v2118_v13 = vpack.c.bf16 %v539_v6, %v535_v5  ;;  %v538_v14 = vld [vmem:[#allocation2 + $0xe70] sm:$0xff] }
  0xe6   :  { %1793 = vmatpush1.bf16.msra.mxu0 %v1792_v19  ;;  %v505_v19 = vld [vmem:[#allocation2 + $0xd68] sm:$0xff]  ;;  %v572_v6 = vld [vmem:[#allocation2 + $0xf80] sm:$0xff] }
  0xe7   :  { %2081 = vmatpush1.bf16.msra.mxu1 %v2080_v20  ;;  %1795 = vmatprep.subr.bf16.mxu0 %v1794_v21  ;;  %v503_v20 = vld [vmem:[#allocation2 + $0xd58] sm:$0xff] }
  0xe8   :  { %2083 = vmatprep.subr.bf16.mxu1 %v2082_v25  ;;  %v507_v21 = vld [vmem:[#allocation2 + $0xd78] sm:$0xff]  ;;  %v1814_v25 = vpack.c.bf16 %v505_v19, %v501_v18 }
  0xe9   :  { %917 = vmatmul.mubr.f32.vlgmr.msra.gmra.mrb[0].mxu0 %v44_v31  ;;  %v2102_v29 = vpack.c.bf16 %v507_v21, %v503_v20  ;;  %v547_v18 = vld [vmem:[#allocation2 + $0xeb8] sm:$0xff] }
  0xea   :  { %1797 = vmatpush1.bf16.msra.mxu0 %v1796_v32  ;;  %1362 = vmatmul.mubr.f32.vlgmr.msra.gmra.mrb[0].mxu1 %v44_v31  ;;  %v509_v31 = vld [vmem:[#allocation2 + $0xd88] sm:$0xff] }
  0xeb   :  { %2085 = vmatpush1.bf16.msra.mxu1 %v2084_v33  ;;  %1799 = vmatprep.subr.bf16.mxu0 %v1798_v34  ;;  %v513_v32 = vld [vmem:[#allocation2 + $0xda8] sm:$0xff]  ;;  %v511_v33 = vld [vmem:[#allocation2 + $0xd98] sm:$0xff] }
  0xec   :  { %2087 = vmatprep.subr.bf16.mxu1 %v2086_v38  ;;  %922 = vmatprep.mubr.f32.mxu0 %v54_v44  ;;  %v515_v34 = vld [vmem:[#allocation2 + $0xdb8] sm:$0xff]  ;;  %v1818_v37 = vpack.c.bf16 %v513_v32, %v509_v31  ;;  %v508_v38 = vld [vmem:[#allocation2 + $0xd80] sm:$0xff] }
  0xed   :  { %1367 = vmatprep.mubr.f32.mxu1 %v54_v44  ;;  %923 = vmatmul.mubr.f32.gmra.mrb[2].mxu0 %v53_v46  ;;  %v2106_v41 = vpack.c.bf16 %v515_v34, %v511_v33  ;;  %v521_v44 = vld [vmem:[#allocation2 + $0xde8] sm:$0xff]  ;;  %v1838_v33 = vpack.c.bf16 %v553_v28, %v549_v27  ;;  %v548_v34 = vld [vmem:[#allocation2 + $0xec0] sm:$0xff] }
  0xee   :  { %1801 = vmatpush1.bf16.msra.mxu0 %v1800_v45  ;;  %1368 = vmatmul.mubr.f32.gmra.mrb[2].mxu1 %v53_v46  ;;  %v519_v45 = vld [vmem:[#allocation2 + $0xdd8] sm:$0xff]  ;;  %v1822_v49 = vpack.c.bf16 %v521_v44, %v517_v43 }
  0xef   :  { %2089 = vmatpush1.bf16.msra.mxu1 %v2088_v47  ;;  %1803 = vmatprep.subr.bf16.mxu0 %v1802_v48  ;;  %v523_v46 = vld [vmem:[#allocation2 + $0xdf8] sm:$0xff]  ;;  %v1820_v47 = vpack.c.bf16 %v512_v39, %v508_v38  ;;  %v2108_v48 = vpack.c.bf16 %v514_v42, %v510_v40  ;;  %v554_v38 = vld [vmem:[#allocation2 + $0xef0] sm:$0xff]  ;;  %v557_v39 = vld [vmem:[#allocation2 + $0xf08] sm:$0xff] }
  0xf0   :  { %2091 = vmatprep.subr.bf16.mxu1 %v2090_v52  ;;  %928 = vmatprep.mubr.f32.mxu0 %v63_v58  ;;  %v518_v52 = vld [vmem:[#allocation2 + $0xdd0] sm:$0xff]  ;;  %v2110_v53 = vpack.c.bf16 %v523_v46, %v519_v45  ;;  %v561_v40 = vld [vmem:[#allocation2 + $0xf28] sm:$0xff]  ;;  %v563_v42 = vld [vmem:[#allocation2 + $0xf38] sm:$0xff] }
  0xf1   :  { %1373 = vmatprep.mubr.f32.mxu1 %v63_v58  ;;  %929 = vmatmul.mubr.f32.gmra.mrb[4].mxu0 %v62_v60  ;;  %v531_v58 = vld [vmem:[#allocation2 + $0xe38] sm:$0xff]  ;;  %v1842_v45 = vpack.c.bf16 %v561_v40, %v557_v39  ;;  %v556_v46 = vld [vmem:[#allocation2 + $0xf00] sm:$0xff]  ;;  %v46_v39 = vld [vmem:[%s2516_s0 + $0x30] sm:$0xff] }
  0xf2   :  { %1805 = vmatpush1.bf16.msra.mxu0 %v1804_v59  ;;  %1374 = vmatmul.mubr.f32.gmra.mrb[4].mxu1 %v62_v60  ;;  %v1824_v59 = vpack.c.bf16 %v520_v51, %v516_v50  ;;  %v2112_v60 = vpack.c.bf16 %v522_v54, %v518_v52  ;;  %v2114_v1 = vpack.c.bf16 %v531_v58, %v527_v57  ;;  %v562_v50 = vld [vmem:[#allocation2 + $0xf30] sm:$0xff]  ;;  %v565_v51 = vld [vmem:[#allocation2 + $0xf48] sm:$0xff]  ;;  %v571_v54 = vld [vmem:[#allocation2 + $0xf78] sm:$0xff] }
  0xf3   :  { %2093 = vmatpush1.bf16.msra.mxu1 %v2092_v61  ;;  %1807 = vmatprep.subr.bf16.mxu0 %v1806_v62  ;;  %v1826_v61 = vpack.c.bf16 %v529_v56, %v525_v55  ;;  %v524_v62 = vld [vmem:[#allocation2 + $0xe00] sm:$0xff]  ;;  %v569_v52 = vld [vmem:[#allocation2 + $0xf68] sm:$0xff] }
  0xf4   :  { %2095 = vmatprep.subr.bf16.mxu1 %v2094_v2  ;;  %934 = vmatprep.mubr.f32.mxu0 %v72_v8  ;;  %v530_v2 = vld [vmem:[#allocation2 + $0xe30] sm:$0xff]  ;;  %v1828_v7 = vpack.c.bf16 %v528_v63, %v524_v62  ;;  %v1846_v57 = vpack.c.bf16 %v569_v52, %v565_v51  ;;  %v564_v58 = vld [vmem:[#allocation2 + $0xf40] sm:$0xff]  ;;  %v573_v63 = vld [vmem:[#allocation2 + $0xf88] sm:$0xff] }
  0xf5   :  { %1379 = vmatprep.mubr.f32.mxu1 %v72_v8  ;;  %935 = vmatmul.mubr.f32.gmra.mrb[6].mxu0 %v71_v10  ;;  %v2116_v8 = vpack.c.bf16 %v530_v2, %v526_v0  ;;  %v570_v62 = vld [vmem:[#allocation2 + $0xf70] sm:$0xff]  ;;  %v577_v0 = vld [vmem:[#allocation2 + $0xfa8] sm:$0xff]  ;;  %v579_v2 = vld [vmem:[#allocation2 + $0xfb8] sm:$0xff] }
  0xf6   :  { %1809 = vmatpush1.bf16.msra.mxu0 %v1808_v9  ;;  %1380 = vmatmul.mubr.f32.gmra.mrb[6].mxu1 %v71_v10  ;;  %v1830_v9 = vpack.c.bf16 %v537_v4, %v533_v3  ;;  %v532_v10 = vld [vmem:[#allocation2 + $0xe40] sm:$0xff]  ;;  %v1850_v5 = vpack.c.bf16 %v577_v0, %v573_v63  ;;  %v611_v51 = vld [vmem:[#allocation2 + $0x10b8] sm:$0xff]  ;;  %v617_v63 = vld [vmem:[#allocation2 + $0x10e8] sm:$0xff] }
  0xf7   :  { %2097 = vmatpush1.bf16.msra.mxu1 %v2096_v11  ;;  %1811 = vmatprep.subr.bf16.mxu0 %v1810_v12  ;;  %v536_v11 = vld [vmem:[#allocation2 + $0xe60] sm:$0xff]  ;;  %v534_v12 = vld [vmem:[#allocation2 + $0xe50] sm:$0xff]  ;;  %v615_v0 = vld [vmem:[#allocation2 + $0x10d8] sm:$0xff] }
  0xf8   :  { %2099 = vmatprep.subr.bf16.mxu1 %v2098_v16  ;;  %1005 = vmatprep.mubr.f32.mxu0 %v47_v22  ;;  %v545_v16 = vld [vmem:[#allocation2 + $0xea8] sm:$0xff]  ;;  %v1832_v19 = vpack.c.bf16 %v536_v11, %v532_v10  ;;  %v2120_v20 = vpack.c.bf16 %v538_v14, %v534_v12  ;;  %v578_v10 = vld [vmem:[#allocation2 + $0xfb0] sm:$0xff]  ;;  %v587_v14 = vld [vmem:[#allocation2 + $0xff8] sm:$0xff] }
  0xf9   :  { %1450 = vmatprep.mubr.f32.mxu1 %v47_v22  ;;  %v1834_v21 = vpack.c.bf16 %v545_v16, %v541_v15  ;;  %v540_v22 = vld [vmem:[#allocation2 + $0xe80] sm:$0xff]  ;;  %v581_v11 = vld [vmem:[#allocation2 + $0xfc8] sm:$0xff] }
  0xfa   :  { %1813 = vmatpush1.bf16.msra.mxu0 %v1812_v23  ;;  %v544_v23 = vld [vmem:[#allocation2 + $0xea0] sm:$0xff]  ;;  %v585_v12 = vld [vmem:[#allocation2 + $0xfe8] sm:$0xff] }
  0xfb   :  { %2101 = vmatpush1.bf16.msra.mxu1 %v2100_v24  ;;  %1815 = vmatprep.subr.bf16.mxu0 %v1814_v25  ;;  %v542_v24 = vld [vmem:[#allocation2 + $0xe90] sm:$0xff]  ;;  %v2122_v25 = vpack.c.bf16 %v547_v18, %v543_v17  ;;  %v1836_v31 = vpack.c.bf16 %v544_v23, %v540_v22  ;;  %v1854_v17 = vpack.c.bf16 %v585_v12, %v581_v11  ;;  %v580_v18 = vld [vmem:[#allocation2 + $0xfc0] sm:$0xff]  ;;  %v589_v23 = vld [vmem:[#allocation2 + $0x1008] sm:$0xff] }
  0xfc   :  { %2103 = vmatprep.subr.bf16.mxu1 %v2102_v29  ;;  %v551_v29 = vld [vmem:[#allocation2 + $0xed8] sm:$0xff]  ;;  %v2124_v32 = vpack.c.bf16 %v546_v26, %v542_v24  ;;  %v586_v22 = vld [vmem:[#allocation2 + $0xff0] sm:$0xff]  ;;  %v593_v24 = vld [vmem:[#allocation2 + $0x1028] sm:$0xff] }
  0xfd   :  { %v595_v26 = vld [vmem:[#allocation2 + $0x1038] sm:$0xff]  ;;  %v56_v52 = vld [vmem:[%s2516_s0 + $0x80] sm:$0xff]  ;;  %v618_v11 = vld [vmem:[#allocation2 + $0x10f0] sm:$0xff] }
  0xfe   :  { %1817 = vmatpush1.bf16.msra.mxu0 %v1816_v35  ;;  %v552_v35 = vld [vmem:[#allocation2 + $0xee0] sm:$0xff]  ;;  %v621_v12 = vld [vmem:[#allocation2 + $0x1108] sm:$0xff] }
  0xff   :  { %2105 = vmatpush1.bf16.msra.mxu1 %v2104_v36  ;;  %1819 = vmatprep.subr.bf16.mxu0 %v1818_v37  ;;  %v550_v36 = vld [vmem:[#allocation2 + $0xed0] sm:$0xff]  ;;  %v2126_v37 = vpack.c.bf16 %v555_v30, %v551_v29  ;;  %v1840_v43 = vpack.c.bf16 %v552_v35, %v548_v34  ;;  %v1858_v29 = vpack.c.bf16 %v593_v24, %v589_v23  ;;  %v588_v30 = vld [vmem:[#allocation2 + $0x1000] sm:$0xff]  ;;  %v597_v35 = vld [vmem:[#allocation2 + $0x1048] sm:$0xff] }
 0x100   :  { %2107 = vmatprep.subr.bf16.mxu1 %v2106_v41  ;;  %v559_v41 = vld [vmem:[#allocation2 + $0xf18] sm:$0xff]  ;;  %v2128_v44 = vpack.c.bf16 %v554_v38, %v550_v36  ;;  %v594_v34 = vld [vmem:[#allocation2 + $0x1030] sm:$0xff]  ;;  %v601_v36 = vld [vmem:[#allocation2 + $0x1068] sm:$0xff] }
 0x101   :  { %v603_v38 = vld [vmem:[#allocation2 + $0x1078] sm:$0xff]  ;;  %v622_v23 = vld [vmem:[#allocation2 + $0x1110] sm:$0xff] }
 0x102   :  { %1821 = vmatpush1.bf16.msra.mxu0 %v1820_v47  ;;  %v560_v47 = vld [vmem:[#allocation2 + $0xf20] sm:$0xff] }
 0x103   :  { %2109 = vmatpush1.bf16.msra.mxu1 %v2108_v48  ;;  %1823 = vmatprep.subr.bf16.mxu0 %v1822_v49  ;;  %v558_v48 = vld [vmem:[#allocation2 + $0xf10] sm:$0xff]  ;;  %v2130_v49 = vpack.c.bf16 %v563_v42, %v559_v41  ;;  %v1844_v55 = vpack.c.bf16 %v560_v47, %v556_v46  ;;  %v1862_v42 = vpack.c.bf16 %v601_v36, %v597_v35 }
 0x104   :  { %2111 = vmatprep.subr.bf16.mxu1 %v2110_v53  ;;  %v567_v53 = vld [vmem:[#allocation2 + $0xf58] sm:$0xff]  ;;  %v2132_v56 = vpack.c.bf16 %v562_v50, %v558_v48  ;;  %v602_v47 = vld [vmem:[#allocation2 + $0x1070] sm:$0xff]  ;;  %v605_v48 = vld [vmem:[#allocation2 + $0x1088] sm:$0xff] }
 0x105   :  { %v607_v50 = vld [vmem:[#allocation2 + $0x1098] sm:$0xff]  ;;  %v630_v35 = vld [vmem:[#allocation2 + $0x1150] sm:$0xff] }
 0x106   :  { %1825 = vmatpush1.bf16.msra.mxu0 %v1824_v59  ;;  %v568_v59 = vld [vmem:[#allocation2 + $0xf60] sm:$0xff] }
 0x107   :  { %2113 = vmatpush1.bf16.msra.mxu1 %v2112_v60  ;;  %1827 = vmatprep.subr.bf16.mxu0 %v1826_v61  ;;  %v566_v60 = vld [vmem:[#allocation2 + $0xf50] sm:$0xff]  ;;  %v2134_v61 = vpack.c.bf16 %v571_v54, %v567_v53  ;;  %v1848_v3 = vpack.c.bf16 %v568_v59, %v564_v58  ;;  %v55_v54 = vld [vmem:[%s2516_s0 + $0x78] sm:$0xff]  ;;  %v608_v58 = vld [vmem:[#allocation2 + $0x10a0] sm:$0xff] }
 0x108   :  { %2115 = vmatprep.subr.bf16.mxu1 %v2114_v1  ;;  %v575_v1 = vld [vmem:[#allocation2 + $0xf98] sm:$0xff]  ;;  %v2136_v4 = vpack.c.bf16 %v570_v62, %v566_v60  ;;  %v606_v59 = vld [vmem:[#allocation2 + $0x1090] sm:$0xff]  ;;  %v2154_v60 = vpack.c.bf16 %v611_v51, %v607_v50  ;;  %v613_v62 = vld [vmem:[#allocation2 + $0x10c8] sm:$0xff] }
 0x109   :  { %v642_v50 = vld [vmem:[#allocation2 + $0x11b0] sm:$0xff]  ;;  %v645_v51 = vld [vmem:[#allocation2 + $0x11c8] sm:$0xff] }
 0x10a   :  { %1829 = vmatpush1.bf16.msra.mxu0 %v1828_v7  ;;  %v576_v7 = vld [vmem:[#allocation2 + $0xfa0] sm:$0xff] }
 0x10b   :  { %2117 = vmatpush1.bf16.msra.mxu1 %v2116_v8  ;;  %1831 = vmatprep.subr.bf16.mxu0 %v1830_v9  ;;  %v574_v8 = vld [vmem:[#allocation2 + $0xf90] sm:$0xff]  ;;  %v2138_v9 = vpack.c.bf16 %v579_v2, %v575_v1  ;;  %v1852_v15 = vpack.c.bf16 %v576_v7, %v572_v6  ;;  %v619_v1 = vld [vmem:[#allocation2 + $0x10f8] sm:$0xff]  ;;  %v65_v2 = vld [vmem:[%s2516_s0 + $0xc8] sm:$0xff]  ;;  %v1870_v6 = vpack.c.bf16 %v617_v63, %v613_v62 }
 0x10c   :  { %2119 = vmatprep.subr.bf16.mxu1 %v2118_v13  ;;  %v583_v13 = vld [vmem:[#allocation2 + $0xfd8] sm:$0xff]  ;;  %v2140_v16 = vpack.c.bf16 %v578_v10, %v574_v8  ;;  %v612_v7 = vld [vmem:[#allocation2 + $0x10c0] sm:$0xff]  ;;  %v2158_v10 = vpack.c.bf16 %v619_v1, %v615_v0  ;;  %v650_v62 = vld [vmem:[#allocation2 + $0x11f0] sm:$0xff] }
 0x10d   :  { %v616_v8 = vld [vmem:[#allocation2 + $0x10e0] sm:$0xff] }
 0x10e   :  { %1833 = vmatpush1.bf16.msra.mxu0 %v1832_v19  ;;  %v584_v19 = vld [vmem:[#allocation2 + $0xfe0] sm:$0xff] }
 0x10f   :  { %2121 = vmatpush1.bf16.msra.mxu1 %v2120_v20  ;;  %1835 = vmatprep.subr.bf16.mxu0 %v1834_v21  ;;  %v582_v20 = vld [vmem:[#allocation2 + $0xfd0] sm:$0xff]  ;;  %v2142_v21 = vpack.c.bf16 %v587_v14, %v583_v13  ;;  %v1856_v27 = vpack.c.bf16 %v584_v19, %v580_v18  ;;  %v625_v13 = vld [vmem:[#allocation2 + $0x1128] sm:$0xff]  ;;  %v623_v14 = vld [vmem:[#allocation2 + $0x1118] sm:$0xff] }
 0x110   :  { %2123 = vmatprep.subr.bf16.mxu1 %v2122_v25  ;;  %v591_v25 = vld [vmem:[#allocation2 + $0x1018] sm:$0xff]  ;;  %v2144_v28 = vpack.c.bf16 %v586_v22, %v582_v20  ;;  %v73_v18 = vld [vmem:[%s2516_s0 + $0x108] sm:$0xff]  ;;  %v1874_v20 = vpack.c.bf16 %v625_v13, %v621_v12  ;;  %v624_v22 = vld [vmem:[#allocation2 + $0x1120] sm:$0xff] }
 0x111   :  { %v48_v1 = vld [vmem:[%s2516_s0 + $0x40] sm:$0xff] }
 0x112   :  { %1837 = vmatpush1.bf16.msra.mxu0 %v1836_v31  ;;  %v592_v31 = vld [vmem:[#allocation2 + $0x1020] sm:$0xff] }
 0x113   :  { %2125 = vmatpush1.bf16.msra.mxu1 %v2124_v32  ;;  %1839 = vmatprep.subr.bf16.mxu0 %v1838_v33  ;;  %v590_v32 = vld [vmem:[#allocation2 + $0x1010] sm:$0xff]  ;;  %v2146_v33 = vpack.c.bf16 %v595_v26, %v591_v25  ;;  %v1860_v40 = vpack.c.bf16 %v592_v31, %v588_v30  ;;  %v629_v26 = vld [vmem:[#allocation2 + $0x1148] sm:$0xff] }
 0x114   :  { %2127 = vmatprep.subr.bf16.mxu1 %v2126_v37  ;;  %v599_v37 = vld [vmem:[#allocation2 + $0x1058] sm:$0xff]  ;;  %v2148_v41 = vpack.c.bf16 %v594_v34, %v590_v32  ;;  %v626_v25 = vld [vmem:[#allocation2 + $0x1130] sm:$0xff]  ;;  %v632_v34 = vld [vmem:[#allocation2 + $0x1160] sm:$0xff] }
 0x115   :  { %v2150_v46 = vpack.c.bf16 %v603_v38, %v599_v37  ;;  %v2164_v31 = vpack.c.bf16 %v626_v25, %v622_v23  ;;  %v634_v37 = vld [vmem:[#allocation2 + $0x1170] sm:$0xff]  ;;  %v637_v38 = vld [vmem:[#allocation2 + $0x1188] sm:$0xff] }
 0x116   :  { %1841 = vmatpush1.bf16.msra.mxu0 %v1840_v43  ;;  %v596_v43 = vld [vmem:[#allocation2 + $0x1040] sm:$0xff] }
 0x117   :  { %2129 = vmatpush1.bf16.msra.mxu1 %v2128_v44  ;;  %1843 = vmatprep.subr.bf16.mxu0 %v1842_v45  ;;  %v600_v44 = vld [vmem:[#allocation2 + $0x1060] sm:$0xff]  ;;  %v598_v45 = vld [vmem:[#allocation2 + $0x1050] sm:$0xff] }
 0x118   :  { %2131 = vmatprep.subr.bf16.mxu1 %v2130_v49  ;;  %v609_v49 = vld [vmem:[#allocation2 + $0x10a8] sm:$0xff]  ;;  %v1864_v53 = vpack.c.bf16 %v600_v44, %v596_v43  ;;  %v2168_v44 = vpack.c.bf16 %v634_v37, %v630_v35 }
 0x11a   :  { %1845 = vmatpush1.bf16.msra.mxu0 %v1844_v55  ;;  %v2152_v55 = vpack.c.bf16 %v602_v47, %v598_v45  ;;  %v640_v47 = vld [vmem:[#allocation2 + $0x11a0] sm:$0xff] }
 0x11b   :  { %2133 = vmatpush1.bf16.msra.mxu1 %v2132_v56  ;;  %1847 = vmatprep.subr.bf16.mxu0 %v1846_v57  ;;  %v1866_v56 = vpack.c.bf16 %v609_v49, %v605_v48  ;;  %v604_v57 = vld [vmem:[#allocation2 + $0x1080] sm:$0xff]  ;;  %v638_v48 = vld [vmem:[#allocation2 + $0x1190] sm:$0xff] }
 0x11c   :  { %2135 = vmatprep.subr.bf16.mxu1 %v2134_v61  ;;  %v610_v61 = vld [vmem:[#allocation2 + $0x10b0] sm:$0xff] }
 0x11e   :  { %1849 = vmatpush1.bf16.msra.mxu0 %v1848_v3  ;;  %v1868_v3 = vpack.c.bf16 %v608_v58, %v604_v57  ;;  %v644_v58 = vld [vmem:[#allocation2 + $0x11c0] sm:$0xff] }
 0x11f   :  { %2137 = vmatpush1.bf16.msra.mxu1 %v2136_v4  ;;  %1851 = vmatprep.subr.bf16.mxu0 %v1850_v5  ;;  %v64_v4 = vld [vmem:[%s2516_s0 + $0xc0] sm:$0xff]  ;;  %v2156_v5 = vpack.c.bf16 %v610_v61, %v606_v59  ;;  %v646_v61 = vld [vmem:[#allocation2 + $0x11d0] sm:$0xff] }
 0x120   :  { %2139 = vmatprep.subr.bf16.mxu1 %v2138_v9  ;;  %v614_v9 = vld [vmem:[#allocation2 + $0x10d0] sm:$0xff]  ;;  %v648_v59 = vld [vmem:[#allocation2 + $0x11e0] sm:$0xff]  ;;  %v2176_v0 = vpack.c.bf16 %v650_v62, %v646_v61 }
 0x121   :  { %v2160_v19 = vpack.c.bf16 %v618_v11, %v614_v9  ;;  %v1888_v63 = vpack.c.bf16 %v648_v59, %v644_v58 }
 0x122   :  { %1853 = vmatpush1.bf16.msra.mxu0 %v1852_v15  ;;  %v627_v15 = vld [vmem:[#allocation2 + $0x1138] sm:$0xff] }
 0x123   :  { %2141 = vmatpush1.bf16.msra.mxu1 %v2140_v16  ;;  %1855 = vmatprep.subr.bf16.mxu0 %v1854_v17  ;;  %v74_v16 = vld [vmem:[%s2516_s0 + $0x110] sm:$0xff]  ;;  %v1872_v17 = vpack.c.bf16 %v616_v8, %v612_v7  ;;  %v2162_v24 = vpack.c.bf16 %v627_v15, %v623_v14  ;;  %v652_v8 = vld [vmem:[#allocation4] sm:$0xf] }
 0x124   :  { %2143 = vmatprep.subr.bf16.mxu1 %v2142_v21  ;;  %v620_v21 = vld [vmem:[#allocation2 + $0x1100] sm:$0xff] }
 0x125   :  { %v1876_v30 = vpack.c.bf16 %v624_v22, %v620_v21 }
 0x126   :  { %1857 = vmatpush1.bf16.msra.mxu0 %v1856_v27  ;;  %v633_v27 = vld [vmem:[#allocation2 + $0x1168] sm:$0xff] }
 0x127   :  { %2145 = vmatpush1.bf16.msra.mxu1 %v2144_v28  ;;  %1859 = vmatprep.subr.bf16.mxu0 %v1858_v29  ;;  %v631_v28 = vld [vmem:[#allocation2 + $0x1158] sm:$0xff]  ;;  %v1878_v32 = vpack.c.bf16 %v633_v27, %v629_v26 }
 0x128   :  { %2147 = vmatprep.subr.bf16.mxu1 %v2146_v33  ;;  %v635_v29 = vld [vmem:[#allocation2 + $0x1178] sm:$0xff]  ;;  %v628_v33 = vld [vmem:[#allocation2 + $0x1140] sm:$0xff] }
 0x129   :  { %1006 = vmatmul.mubr.f32.vlgmr.msra.gmra.mrb[0].mxu0 %v46_v39  ;;  %v2166_v36 = vpack.c.bf16 %v635_v29, %v631_v28  ;;  %v1880_v43 = vpack.c.bf16 %v632_v34, %v628_v33 }
 0x12a   :  { %1861 = vmatpush1.bf16.msra.mxu0 %v1860_v40  ;;  %1451 = vmatmul.mubr.f32.vlgmr.msra.gmra.mrb[0].mxu1 %v46_v39  ;;  %v641_v39 = vld [vmem:[#allocation2 + $0x11a8] sm:$0xff]  ;;  %v2315_v40 = vmov 0.0  }
 0x12b   :  { %2149 = vmatpush1.bf16.msra.mxu1 %v2148_v41  ;;  %1863 = vmatprep.subr.bf16.mxu0 %v1862_v42  ;;  %v639_v41 = vld [vmem:[#allocation2 + $0x1198] sm:$0xff]  ;;  %v1882_v45 = vpack.c.bf16 %v641_v39, %v637_v38 }
 0x12c   :  { %2151 = vmatprep.subr.bf16.mxu1 %v2150_v46  ;;  %1011 = vmatprep.mubr.f32.mxu0 %v56_v52  ;;  %v643_v42 = vld [vmem:[#allocation2 + $0x11b8] sm:$0xff]  ;;  %v636_v46 = vld [vmem:[#allocation2 + $0x1180] sm:$0xff] }
 0x12d   :  { %1456 = vmatprep.mubr.f32.mxu1 %v56_v52  ;;  %1012 = vmatmul.mubr.f32.gmra.mrb[2].mxu0 %v55_v54  ;;  %v2170_v49 = vpack.c.bf16 %v643_v42, %v639_v41  ;;  %v649_v52 = vld [vmem:[#allocation2 + $0x11e8] sm:$0xff] }
 0x12e   :  { %1865 = vmatpush1.bf16.msra.mxu0 %v1864_v53  ;;  %1457 = vmatmul.mubr.f32.gmra.mrb[2].mxu1 %v55_v54  ;;  %v647_v53 = vld [vmem:[#allocation2 + $0x11d8] sm:$0xff]  ;;  %v1886_v57 = vpack.c.bf16 %v649_v52, %v645_v51 }
 0x12f   :  { %2153 = vmatpush1.bf16.msra.mxu1 %v2152_v55  ;;  %1867 = vmatprep.subr.bf16.mxu0 %v1866_v56  ;;  %v651_v54 = vld [vmem:[#allocation2 + $0x11f8] sm:$0xff]  ;;  %v1884_v55 = vpack.c.bf16 %v640_v47, %v636_v46  ;;  %v2172_v56 = vpack.c.bf16 %v642_v50, %v638_v48 }
 0x130   :  { %2155 = vmatprep.subr.bf16.mxu1 %v2154_v60  ;;  %1017 = vmatprep.mubr.f32.mxu0 %v65_v2  ;;  %v2174_v60 = vpack.c.bf16 %v651_v54, %v647_v53 }
 0x131   :  { %1462 = vmatprep.mubr.f32.mxu1 %v65_v2  ;;  %1018 = vmatmul.mubr.f32.gmra.mrb[4].mxu0 %v64_v4  ;;  %v57_v2 = vld [vmem:[%s2516_s0 + $0x88] sm:$0xff] }
 0x132   :  { %1869 = vmatpush1.bf16.msra.mxu0 %v1868_v3  ;;  %1463 = vmatmul.mubr.f32.gmra.mrb[4].mxu1 %v64_v4  ;;  %v66_v3 = vld [vmem:[%s2516_s0 + $0xd0] sm:$0xff]  ;;  %v75_v4 = vld [vmem:[%s2516_s0 + $0x118] sm:$0xff] }
 0x133   :  { %2157 = vmatpush1.bf16.msra.mxu1 %v2156_v5  ;;  %1871 = vmatprep.subr.bf16.mxu0 %v1870_v6  ;;  %v654_v5 = vlaneseq }
 0x134   :  { %2159 = vmatprep.subr.bf16.mxu1 %v2158_v10  ;;  %1023 = vmatprep.mubr.f32.mxu0 %v74_v16 }
 0x135   :  { %1468 = vmatprep.mubr.f32.mxu1 %v74_v16  ;;  %1024 = vmatmul.mubr.f32.gmra.mrb[6].mxu0 %v73_v18  ;;  %v655_v6 = vshrl.u32 %v654_v5, 7 }
 0x136   :  { %1873 = vmatpush1.bf16.msra.mxu0 %v1872_v17  ;;  %1469 = vmatmul.mubr.f32.gmra.mrb[6].mxu1 %v73_v18 }
 0x137   :  { %2161 = vmatpush1.bf16.msra.mxu1 %v2160_v19  ;;  %1875 = vmatprep.subr.bf16.mxu0 %v1874_v20  ;;  %v656_v7 = vsub.s32 0, %v655_v6  ;;  %v664_v9 = vsub.s32 2, %v655_v6  ;;  %v660_v10 = vsub.s32 1, %v655_v6  ;;  %v668_v11 = vsub.s32 3, %v655_v6 }
 0x138   :  { %2163 = vmatprep.subr.bf16.mxu1 %v2162_v24  ;;  %1094 = vmatprep.mubr.f32.mxu0 %v2315_v40 }
 0x139   :  { %1539 = vmatprep.mubr.f32.mxu1 %v2315_v40  ;;  %v657_v12 = vrot.slane %v652_v8, %v656_v7  ;;  %v665_v13 = vrot.slane %v652_v8, %v664_v9  ;;  %v661_v14 = vrot.slane %v652_v8, %v660_v10  ;;  %v669_v15 = vrot.slane %v652_v8, %v668_v11 }
 0x13a   :  { %1877 = vmatpush1.bf16.msra.mxu0 %v1876_v30 }
 0x13b   :  { %2165 = vmatpush1.bf16.msra.mxu1 %v2164_v31  ;;  %1879 = vmatprep.subr.bf16.mxu0 %v1878_v32 }
 0x13c   :  { %2167 = vmatprep.subr.bf16.mxu1 %v2166_v36 }
 0x13e   :  { %1881 = vmatpush1.bf16.msra.mxu0 %v1880_v43 }
 0x13f   :  { %2169 = vmatpush1.bf16.msra.mxu1 %v2168_v44  ;;  %1883 = vmatprep.subr.bf16.mxu0 %v1882_v45 }
 0x140   :  { %2171 = vmatprep.subr.bf16.mxu1 %v2170_v49 }
 0x142   :  { %1885 = vmatpush1.bf16.msra.mxu0 %v1884_v55 }
 0x143   :  { %2173 = vmatpush1.bf16.msra.mxu1 %v2172_v56  ;;  %1887 = vmatprep.subr.bf16.mxu0 %v1886_v57 }
 0x144   :  { %2175 = vmatprep.subr.bf16.mxu1 %v2174_v60 }
 0x146   :  { %1889 = vmatpush1.bf16.msra.mxu0 %v1888_v63 }
 0x147   :  { %2177 = vmatpush1.bf16.msra.mxu1 %v2176_v0 }
 0x149   :  { %1095 = vmatmul.mubr.f32.vlgmr.msra.gmra.mrb[0].mxu0 %v48_v1 }
 0x14a   :  { %1540 = vmatmul.mubr.f32.vlgmr.msra.gmra.mrb[0].mxu1 %v48_v1  ;;  %1100 = vmatprep.mubr.f32.mxu0 %v2315_v40 }
 0x14b   :  { %1545 = vmatprep.mubr.f32.mxu1 %v2315_v40 }
 0x14d   :  { %1101 = vmatmul.mubr.f32.gmra.mrb[2].mxu0 %v57_v2 }
 0x14e   :  { %1546 = vmatmul.mubr.f32.gmra.mrb[2].mxu1 %v57_v2  ;;  %1106 = vmatprep.mubr.f32.mxu0 %v2315_v40 }
 0x14f   :  { %1551 = vmatprep.mubr.f32.mxu1 %v2315_v40 }
 0x151   :  { %1107 = vmatmul.mubr.f32.gmra.mrb[4].mxu0 %v66_v3 }
 0x152   :  { %1552 = vmatmul.mubr.f32.gmra.mrb[4].mxu1 %v66_v3  ;;  %1112 = vmatprep.mubr.f32.mxu0 %v2315_v40 }
 0x153   :  { %1557 = vmatprep.mubr.f32.mxu1 %v2315_v40 }
 0x155   :  { %1113 = vmatmul.mubr.f32.gmra.mrb[6].mxu0 %v75_v4 }
 0x156   :  { %1558 = vmatmul.mubr.f32.gmra.mrb[6].mxu1 %v75_v4 }
 0x21c   :  { %v1096_v16 = vpop.f32.mrb[0].mxu0 }
 0x21d   :  { %v2178_v17 = vadd.f32 %v1096_v16, %v657_v12  ;;  %v1541_v18 = vpop.f32.mrb[0].mxu1  ;;  %v1098_v19 = vpop.f32.mrb[1].mxu0 }
 0x21e   :  { %v2186_v20 = vadd.f32 %v1541_v18, %v665_v13  ;;  %v2179_v21 = vadd.f32 %v1098_v19, %v661_v14  ;;  %v1543_v22 = vpop.f32.mrb[1].mxu1 }
 0x21f   :  { %v1564_v23 = vmax.f32 %v2178_v17, 0.0  ;;  %v2187_v24 = vadd.f32 %v1543_v22, %v669_v15 }
 0x220   :  { %v1566_v25 = vmax.f32 %v2186_v20, 0.0  ;;  %v1565_v26 = vmax.f32 %v2179_v21, 0.0  ;;  %v1102_v27 = vpop.f32.mrb[2].mxu0 }
 0x221   :  { %1580 = vst [vmem:[%s2519_s3] sm:$0xff] %v1564_v23  ;;  %v1567_v28 = vmax.f32 %v2187_v24, 0.0  ;;  %v2180_v29 = vadd.f32 %v1102_v27, %v657_v12  ;;  %v1547_v30 = vpop.f32.mrb[2].mxu1  ;;  %v1104_v31 = vpop.f32.mrb[3].mxu0 }
 0x222   :  { %1582 = vst [vmem:[%s2519_s3 + $0x10] sm:$0xff] %v1566_v25  ;;  %1581 = vst [vmem:[%s2519_s3 + $0x8] sm:$0xff] %v1565_v26  ;;  %v2188_v32 = vadd.f32 %v1547_v30, %v665_v13  ;;  %v2181_v33 = vadd.f32 %v1104_v31, %v661_v14  ;;  %v1549_v34 = vpop.f32.mrb[3].mxu1 }
 0x223   :  { %1583 = vst [vmem:[%s2519_s3 + $0x18] sm:$0xff] %v1567_v28  ;;  %v1568_v35 = vmax.f32 %v2180_v29, 0.0  ;;  %v2189_v36 = vadd.f32 %v1549_v34, %v669_v15 }
 0x224   :  { %v1570_v37 = vmax.f32 %v2188_v32, 0.0  ;;  %v1569_v38 = vmax.f32 %v2181_v33, 0.0  ;;  %v1108_v39 = vpop.f32.mrb[4].mxu0 }
 0x225   :  { %1584 = vst [vmem:[%s2519_s3 + $0x20] sm:$0xff] %v1568_v35  ;;  %v1571_v40 = vmax.f32 %v2189_v36, 0.0  ;;  %v2182_v41 = vadd.f32 %v1108_v39, %v657_v12  ;;  %v1553_v42 = vpop.f32.mrb[4].mxu1  ;;  %v1110_v43 = vpop.f32.mrb[5].mxu0 }
 0x226   :  { %1586 = vst [vmem:[%s2519_s3 + $0x30] sm:$0xff] %v1570_v37  ;;  %1585 = vst [vmem:[%s2519_s3 + $0x28] sm:$0xff] %v1569_v38  ;;  %v2190_v44 = vadd.f32 %v1553_v42, %v665_v13  ;;  %v2183_v45 = vadd.f32 %v1110_v43, %v661_v14  ;;  %v1555_v46 = vpop.f32.mrb[5].mxu1 }
 0x227   :  { %1587 = vst [vmem:[%s2519_s3 + $0x38] sm:$0xff] %v1571_v40  ;;  %v1572_v47 = vmax.f32 %v2182_v41, 0.0  ;;  %v2191_v48 = vadd.f32 %v1555_v46, %v669_v15 }
 0x228   :  { %v1574_v49 = vmax.f32 %v2190_v44, 0.0  ;;  %v1573_v50 = vmax.f32 %v2183_v45, 0.0  ;;  %v1114_v51 = vpop.f32.mrb[6].mxu0 }
 0x229   :  { %1588 = vst [vmem:[%s2519_s3 + $0x40] sm:$0xff] %v1572_v47  ;;  %v1575_v52 = vmax.f32 %v2191_v48, 0.0  ;;  %v2184_v53 = vadd.f32 %v1114_v51, %v657_v12  ;;  %v1559_v54 = vpop.f32.mrb[6].mxu1  ;;  %v1116_v55 = vpop.f32.mrb[7].mxu0 }
 0x22a   :  { %1590 = vst [vmem:[%s2519_s3 + $0x50] sm:$0xff] %v1574_v49  ;;  %1589 = vst [vmem:[%s2519_s3 + $0x48] sm:$0xff] %v1573_v50  ;;  %v2192_v56 = vadd.f32 %v1559_v54, %v665_v13  ;;  %v2185_v57 = vadd.f32 %v1116_v55, %v661_v14  ;;  %v1561_v58 = vpop.f32.mrb[7].mxu1 }
 0x22b   :  { %1591 = vst [vmem:[%s2519_s3 + $0x58] sm:$0xff] %v1575_v52  ;;  %v1576_v59 = vmax.f32 %v2184_v53, 0.0  ;;  %v2193_v60 = vadd.f32 %v1561_v58, %v669_v15 }
 0x22c   :  { %v1578_v61 = vmax.f32 %v2192_v56, 0.0  ;;  %v1577_v62 = vmax.f32 %v2185_v57, 0.0 }
 0x22d   :  { %1592 = vst [vmem:[%s2519_s3 + $0x60] sm:$0xff] %v1576_v59  ;;  %v1579_v63 = vmax.f32 %v2193_v60, 0.0 }
 0x22e   :  { %1594 = vst [vmem:[%s2519_s3 + $0x70] sm:$0xff] %v1578_v61  ;;  %1593 = vst [vmem:[%s2519_s3 + $0x68] sm:$0xff] %v1577_v62 }
 0x22f   :  { %1595 = vst [vmem:[%s2519_s3 + $0x78] sm:$0xff] %v1579_v63 }
 0x230   :  { %1600 = vsyncpa [#allocation3], 1 }
 0x231   :  { %1601 = vsyncpa [#allocation5], 1 }

// kernel: decoder_forward.7
= control target key start
LH: loop header
LB: loop body
LE: loop exit
PB: predicated region body
PF: predicated region fallthrough
CT: control target
= control target key end

     0   :  { %s3525_s1 = inlined_call_operand.vmem [shape: f32[1152,256], index: 1, kind: input, shape index: {}]   ;;  %s3526_s0 = inlined_call_operand.vmem [shape: f32[128,1152], index: 0, kind: input, shape index: {}]   ;;  %s3527_s2 = inlined_call_operand.vmem [shape: f32[1,256], index: 2, kind: input, shape index: {}]   ;;  %s3528_s3 = inlined_call_operand.vmem [shape: f32[128,256], index: 3, kind: output, shape index: {}]  }
   0x1   :  { %v159_v0 = vld [vmem:[%s3525_s1 + $0x8] sm:$0xff]  ;;  %v161_v1 = vld [vmem:[%s3525_s1 + $0x18] sm:$0xff]  ;;  %v158_v5 = vld [vmem:[%s3525_s1] sm:$0xff] }
   0x2   :  { %v287_v2 = vld [vmem:[%s3525_s1 + $0x408] sm:$0xff]  ;;  %v1331_v3 = vpack.c.bf16 %v161_v1, %v159_v0  ;;  %v289_v4 = vld [vmem:[%s3525_s1 + $0x418] sm:$0xff]  ;;  %v160_v6 = vld [vmem:[%s3525_s1 + $0x10] sm:$0xff] }
   0x3   :  { %v1459_v7 = vpack.c.bf16 %v289_v4, %v287_v2  ;;  %v1333_v8 = vpack.c.bf16 %v160_v6, %v158_v5  ;;  %v286_v9 = vld [vmem:[%s3525_s1 + $0x400] sm:$0xff]  ;;  %v288_v10 = vld [vmem:[%s3525_s1 + $0x410] sm:$0xff]  ;;  %v163_v11 = vld [vmem:[%s3525_s1 + $0x28] sm:$0xff] }
   0x4   :  { %1332 = vmatprep.subr.bf16.mxu1 %v1331_v3  ;;  %v1461_v12 = vpack.c.bf16 %v288_v10, %v286_v9  ;;  %v165_v13 = vld [vmem:[%s3525_s1 + $0x38] sm:$0xff]  ;;  %v291_v14 = vld [vmem:[%s3525_s1 + $0x428] sm:$0xff]  ;;  %v162_v18 = vld [vmem:[%s3525_s1 + $0x20] sm:$0xff] }
   0x5   :  { %v293_v15 = vld [vmem:[%s3525_s1 + $0x438] sm:$0xff]  ;;  %1460 = vmatprep.subr.bf16.mxu0 %v1459_v7  ;;  %1334 = vmatpush1.bf16.msra.mxu1 %v1333_v8  ;;  %v1335_v16 = vpack.c.bf16 %v165_v13, %v163_v11  ;;  %v164_v19 = vld [vmem:[%s3525_s1 + $0x30] sm:$0xff]  ;;  %v290_v20 = vld [vmem:[%s3525_s1 + $0x420] sm:$0xff] }
   0x6   :  { %v1463_v17 = vpack.c.bf16 %v293_v15, %v291_v14  ;;  %1462 = vmatpush1.bf16.msra.mxu0 %v1461_v12  ;;  %v1337_v21 = vpack.c.bf16 %v164_v19, %v162_v18  ;;  %v292_v22 = vld [vmem:[%s3525_s1 + $0x430] sm:$0xff]  ;;  %v167_v23 = vld [vmem:[%s3525_s1 + $0x48] sm:$0xff]  ;;  %v169_v24 = vld [vmem:[%s3525_s1 + $0x58] sm:$0xff] }
   0x7   :  { %1336 = vmatprep.subr.bf16.mxu1 %v1335_v16  ;;  %v1465_v25 = vpack.c.bf16 %v292_v22, %v290_v20  ;;  %v1339_v26 = vpack.c.bf16 %v169_v24, %v167_v23  ;;  %v295_v27 = vld [vmem:[%s3525_s1 + $0x448] sm:$0xff]  ;;  %v297_v28 = vld [vmem:[%s3525_s1 + $0x458] sm:$0xff]  ;;  %v166_v29 = vld [vmem:[%s3525_s1 + $0x40] sm:$0xff] }
   0x8   :  { %1464 = vmatprep.subr.bf16.mxu0 %v1463_v17  ;;  %v1467_v30 = vpack.c.bf16 %v297_v28, %v295_v27  ;;  %v168_v31 = vld [vmem:[%s3525_s1 + $0x50] sm:$0xff]  ;;  %v294_v32 = vld [vmem:[%s3525_s1 + $0x440] sm:$0xff]  ;;  %v171_v35 = vld [vmem:[%s3525_s1 + $0x68] sm:$0xff] }
   0x9   :  { %v296_v33 = vld [vmem:[%s3525_s1 + $0x450] sm:$0xff]  ;;  %1338 = vmatpush1.bf16.msra.mxu1 %v1337_v21  ;;  %v1341_v34 = vpack.c.bf16 %v168_v31, %v166_v29  ;;  %v173_v36 = vld [vmem:[%s3525_s1 + $0x78] sm:$0xff]  ;;  %v299_v37 = vld [vmem:[%s3525_s1 + $0x468] sm:$0xff] }
   0xa   :  { %1466 = vmatpush1.bf16.msra.mxu0 %v1465_v25  ;;  %1340 = vmatprep.subr.bf16.mxu1 %v1339_v26  ;;  %v1469_v38 = vpack.c.bf16 %v296_v33, %v294_v32  ;;  %v1343_v39 = vpack.c.bf16 %v173_v36, %v171_v35  ;;  %v301_v40 = vld [vmem:[%s3525_s1 + $0x478] sm:$0xff]  ;;  %v170_v41 = vld [vmem:[%s3525_s1 + $0x60] sm:$0xff]  ;;  %v172_v42 = vld [vmem:[%s3525_s1 + $0x70] sm:$0xff] }
   0xb   :  { %1468 = vmatprep.subr.bf16.mxu0 %v1467_v30  ;;  %v1471_v43 = vpack.c.bf16 %v301_v40, %v299_v37  ;;  %v298_v44 = vld [vmem:[%s3525_s1 + $0x460] sm:$0xff]  ;;  %v300_v45 = vld [vmem:[%s3525_s1 + $0x470] sm:$0xff]  ;;  %v175_v46 = vld [vmem:[%s3525_s1 + $0x88] sm:$0xff]  ;;  %v1345_v50 = vpack.c.bf16 %v172_v42, %v170_v41 }
   0xc   :  { %v177_v47 = vld [vmem:[%s3525_s1 + $0x98] sm:$0xff]  ;;  %v303_v48 = vld [vmem:[%s3525_s1 + $0x488] sm:$0xff]  ;;  %v1473_v51 = vpack.c.bf16 %v300_v45, %v298_v44  ;;  %v174_v53 = vld [vmem:[%s3525_s1 + $0x80] sm:$0xff] }
   0xd   :  { %v305_v49 = vld [vmem:[%s3525_s1 + $0x498] sm:$0xff]  ;;  %1342 = vmatpush1.bf16.msra.mxu1 %v1341_v34  ;;  %v1347_v52 = vpack.c.bf16 %v177_v47, %v175_v46  ;;  %v176_v54 = vld [vmem:[%s3525_s1 + $0x90] sm:$0xff]  ;;  %v302_v55 = vld [vmem:[%s3525_s1 + $0x480] sm:$0xff] }
   0xe   :  { %1470 = vmatpush1.bf16.msra.mxu0 %v1469_v38  ;;  %1344 = vmatprep.subr.bf16.mxu1 %v1343_v39  ;;  %v1475_v56 = vpack.c.bf16 %v305_v49, %v303_v48  ;;  %v304_v57 = vld [vmem:[%s3525_s1 + $0x490] sm:$0xff]  ;;  %v179_v58 = vld [vmem:[%s3525_s1 + $0xa8] sm:$0xff]  ;;  %v181_v59 = vld [vmem:[%s3525_s1 + $0xb8] sm:$0xff]  ;;  %v1349_v62 = vpack.c.bf16 %v176_v54, %v174_v53 }
   0xf   :  { %1472 = vmatprep.subr.bf16.mxu0 %v1471_v43  ;;  %v307_v60 = vld [vmem:[%s3525_s1 + $0x4a8] sm:$0xff]  ;;  %v309_v61 = vld [vmem:[%s3525_s1 + $0x4b8] sm:$0xff]  ;;  %v1477_v63 = vpack.c.bf16 %v304_v57, %v302_v55  ;;  %v1351_v0 = vpack.c.bf16 %v181_v59, %v179_v58  ;;  %v178_v1 = vld [vmem:[%s3525_s1 + $0xa0] sm:$0xff] }
  0x10   :  { %v180_v2 = vld [vmem:[%s3525_s1 + $0xb0] sm:$0xff]  ;;  %v306_v3 = vld [vmem:[%s3525_s1 + $0x4a0] sm:$0xff]  ;;  %v1479_v4 = vpack.c.bf16 %v309_v61, %v307_v60  ;;  %v183_v6 = vld [vmem:[%s3525_s1 + $0xc8] sm:$0xff] }
  0x11   :  { %1346 = vmatpush1.bf16.msra.mxu1 %v1345_v50  ;;  %v308_v5 = vld [vmem:[%s3525_s1 + $0x4b0] sm:$0xff]  ;;  %v185_v7 = vld [vmem:[%s3525_s1 + $0xd8] sm:$0xff]  ;;  %v311_v8 = vld [vmem:[%s3525_s1 + $0x4c8] sm:$0xff]  ;;  %v1353_v10 = vpack.c.bf16 %v180_v2, %v178_v1 }
  0x12   :  { %1474 = vmatpush1.bf16.msra.mxu0 %v1473_v51  ;;  %1348 = vmatprep.subr.bf16.mxu1 %v1347_v52  ;;  %v313_v9 = vld [vmem:[%s3525_s1 + $0x4d8] sm:$0xff]  ;;  %v1481_v11 = vpack.c.bf16 %v308_v5, %v306_v3  ;;  %v1355_v12 = vpack.c.bf16 %v185_v7, %v183_v6  ;;  %v182_v13 = vld [vmem:[%s3525_s1 + $0xc0] sm:$0xff]  ;;  %v184_v14 = vld [vmem:[%s3525_s1 + $0xd0] sm:$0xff] }
  0x13   :  { %1476 = vmatprep.subr.bf16.mxu0 %v1475_v56  ;;  %v310_v15 = vld [vmem:[%s3525_s1 + $0x4c0] sm:$0xff]  ;;  %v1483_v16 = vpack.c.bf16 %v313_v9, %v311_v8  ;;  %v312_v17 = vld [vmem:[%s3525_s1 + $0x4d0] sm:$0xff]  ;;  %v187_v18 = vld [vmem:[%s3525_s1 + $0xe8] sm:$0xff]  ;;  %v1357_v22 = vpack.c.bf16 %v184_v14, %v182_v13 }
  0x14   :  { %v189_v19 = vld [vmem:[%s3525_s1 + $0xf8] sm:$0xff]  ;;  %v315_v20 = vld [vmem:[%s3525_s1 + $0x4e8] sm:$0xff]  ;;  %v1485_v23 = vpack.c.bf16 %v312_v17, %v310_v15  ;;  %v186_v25 = vld [vmem:[%s3525_s1 + $0xe0] sm:$0xff] }
  0x15   :  { %1350 = vmatpush1.bf16.msra.mxu1 %v1349_v62  ;;  %v317_v21 = vld [vmem:[%s3525_s1 + $0x4f8] sm:$0xff]  ;;  %v1359_v24 = vpack.c.bf16 %v189_v19, %v187_v18  ;;  %v188_v26 = vld [vmem:[%s3525_s1 + $0xf0] sm:$0xff]  ;;  %v314_v27 = vld [vmem:[%s3525_s1 + $0x4e0] sm:$0xff] }
  0x16   :  { %1478 = vmatpush1.bf16.msra.mxu0 %v1477_v63  ;;  %1352 = vmatprep.subr.bf16.mxu1 %v1351_v0  ;;  %v1487_v28 = vpack.c.bf16 %v317_v21, %v315_v20  ;;  %v316_v29 = vld [vmem:[%s3525_s1 + $0x4f0] sm:$0xff]  ;;  %v191_v30 = vld [vmem:[%s3525_s1 + $0x108] sm:$0xff]  ;;  %v193_v31 = vld [vmem:[%s3525_s1 + $0x118] sm:$0xff]  ;;  %v1361_v34 = vpack.c.bf16 %v188_v26, %v186_v25 }
  0x17   :  { %1480 = vmatprep.subr.bf16.mxu0 %v1479_v4  ;;  %v319_v32 = vld [vmem:[%s3525_s1 + $0x508] sm:$0xff]  ;;  %v321_v33 = vld [vmem:[%s3525_s1 + $0x518] sm:$0xff]  ;;  %v1489_v35 = vpack.c.bf16 %v316_v29, %v314_v27  ;;  %v1363_v36 = vpack.c.bf16 %v193_v31, %v191_v30  ;;  %v190_v37 = vld [vmem:[%s3525_s1 + $0x100] sm:$0xff] }
  0x18   :  { %v192_v38 = vld [vmem:[%s3525_s1 + $0x110] sm:$0xff]  ;;  %v318_v39 = vld [vmem:[%s3525_s1 + $0x500] sm:$0xff]  ;;  %v1491_v40 = vpack.c.bf16 %v321_v33, %v319_v32  ;;  %v195_v42 = vld [vmem:[%s3525_s1 + $0x128] sm:$0xff] }
  0x19   :  { %1354 = vmatpush1.bf16.msra.mxu1 %v1353_v10  ;;  %v320_v41 = vld [vmem:[%s3525_s1 + $0x510] sm:$0xff]  ;;  %v197_v43 = vld [vmem:[%s3525_s1 + $0x138] sm:$0xff]  ;;  %v323_v44 = vld [vmem:[%s3525_s1 + $0x528] sm:$0xff]  ;;  %v1365_v46 = vpack.c.bf16 %v192_v38, %v190_v37 }
  0x1a   :  { %1482 = vmatpush1.bf16.msra.mxu0 %v1481_v11  ;;  %1356 = vmatprep.subr.bf16.mxu1 %v1355_v12  ;;  %v325_v45 = vld [vmem:[%s3525_s1 + $0x538] sm:$0xff]  ;;  %v1493_v47 = vpack.c.bf16 %v320_v41, %v318_v39  ;;  %v1367_v48 = vpack.c.bf16 %v197_v43, %v195_v42  ;;  %v194_v49 = vld [vmem:[%s3525_s1 + $0x120] sm:$0xff]  ;;  %v196_v50 = vld [vmem:[%s3525_s1 + $0x130] sm:$0xff] }
  0x1b   :  { %1484 = vmatprep.subr.bf16.mxu0 %v1483_v16  ;;  %v322_v51 = vld [vmem:[%s3525_s1 + $0x520] sm:$0xff]  ;;  %v1495_v52 = vpack.c.bf16 %v325_v45, %v323_v44  ;;  %v324_v53 = vld [vmem:[%s3525_s1 + $0x530] sm:$0xff]  ;;  %v199_v54 = vld [vmem:[%s3525_s1 + $0x148] sm:$0xff]  ;;  %v1369_v58 = vpack.c.bf16 %v196_v50, %v194_v49 }
  0x1c   :  { %v201_v55 = vld [vmem:[%s3525_s1 + $0x158] sm:$0xff]  ;;  %v327_v56 = vld [vmem:[%s3525_s1 + $0x548] sm:$0xff]  ;;  %v1497_v59 = vpack.c.bf16 %v324_v53, %v322_v51  ;;  %v198_v61 = vld [vmem:[%s3525_s1 + $0x140] sm:$0xff] }
  0x1d   :  { %1358 = vmatpush1.bf16.msra.mxu1 %v1357_v22  ;;  %v329_v57 = vld [vmem:[%s3525_s1 + $0x558] sm:$0xff]  ;;  %v1371_v60 = vpack.c.bf16 %v201_v55, %v199_v54  ;;  %v200_v62 = vld [vmem:[%s3525_s1 + $0x150] sm:$0xff]  ;;  %v326_v63 = vld [vmem:[%s3525_s1 + $0x540] sm:$0xff] }
  0x1e   :  { %1486 = vmatpush1.bf16.msra.mxu0 %v1485_v23  ;;  %1360 = vmatprep.subr.bf16.mxu1 %v1359_v24  ;;  %v1499_v0 = vpack.c.bf16 %v329_v57, %v327_v56  ;;  %v328_v1 = vld [vmem:[%s3525_s1 + $0x550] sm:$0xff]  ;;  %v203_v2 = vld [vmem:[%s3525_s1 + $0x168] sm:$0xff]  ;;  %v205_v3 = vld [vmem:[%s3525_s1 + $0x178] sm:$0xff]  ;;  %v1373_v6 = vpack.c.bf16 %v200_v62, %v198_v61 }
  0x1f   :  { %1488 = vmatprep.subr.bf16.mxu0 %v1487_v28  ;;  %v331_v4 = vld [vmem:[%s3525_s1 + $0x568] sm:$0xff]  ;;  %v333_v5 = vld [vmem:[%s3525_s1 + $0x578] sm:$0xff]  ;;  %v202_v7 = vld [vmem:[%s3525_s1 + $0x160] sm:$0xff]  ;;  %v1501_v8 = vpack.c.bf16 %v328_v1, %v326_v63  ;;  %v1375_v9 = vpack.c.bf16 %v205_v3, %v203_v2 }
  0x20   :  { %v204_v10 = vld [vmem:[%s3525_s1 + $0x170] sm:$0xff]  ;;  %v330_v11 = vld [vmem:[%s3525_s1 + $0x560] sm:$0xff]  ;;  %v1503_v13 = vpack.c.bf16 %v333_v5, %v331_v4  ;;  %v207_v14 = vld [vmem:[%s3525_s1 + $0x188] sm:$0xff] }
  0x21   :  { %1362 = vmatpush1.bf16.msra.mxu1 %v1361_v34  ;;  %v332_v12 = vld [vmem:[%s3525_s1 + $0x570] sm:$0xff]  ;;  %v209_v15 = vld [vmem:[%s3525_s1 + $0x198] sm:$0xff]  ;;  %v15_v16 = vld [vmem:[%s3526_s0 + $0x8] sm:$0xff]  ;;  %v1377_v20 = vpack.c.bf16 %v204_v10, %v202_v7 }
  0x22   :  { %1490 = vmatpush1.bf16.msra.mxu0 %v1489_v35  ;;  %1364 = vmatprep.subr.bf16.mxu1 %v1363_v36  ;;  %v335_v17 = vld [vmem:[%s3525_s1 + $0x588] sm:$0xff]  ;;  %v337_v18 = vld [vmem:[%s3525_s1 + $0x598] sm:$0xff]  ;;  %v1505_v21 = vpack.c.bf16 %v332_v12, %v330_v11  ;;  %v1379_v22 = vpack.c.bf16 %v209_v15, %v207_v14  ;;  %v206_v23 = vld [vmem:[%s3525_s1 + $0x180] sm:$0xff] }
  0x23   :  { %1492 = vmatprep.subr.bf16.mxu0 %v1491_v40  ;;  %522 = vmatprep.mubr.f32.mxu1 %v15_v16  ;;  %v19_v19 = vld [vmem:[%s3526_s0 + $0x28] sm:$0xff]  ;;  %v208_v24 = vld [vmem:[%s3525_s1 + $0x190] sm:$0xff]  ;;  %v334_v25 = vld [vmem:[%s3525_s1 + $0x580] sm:$0xff]  ;;  %v1507_v26 = vpack.c.bf16 %v337_v18, %v335_v17 }
  0x24   :  { %844 = vmatprep.mubr.f32.mxu0 %v19_v19  ;;  %v336_v27 = vld [vmem:[%s3525_s1 + $0x590] sm:$0xff]  ;;  %v211_v28 = vld [vmem:[%s3525_s1 + $0x1a8] sm:$0xff]  ;;  %v213_v29 = vld [vmem:[%s3525_s1 + $0x1b8] sm:$0xff]  ;;  %v1381_v32 = vpack.c.bf16 %v208_v24, %v206_v23 }
  0x25   :  { %1366 = vmatpush1.bf16.msra.mxu1 %v1365_v46  ;;  %v339_v30 = vld [vmem:[%s3525_s1 + $0x5a8] sm:$0xff]  ;;  %v341_v31 = vld [vmem:[%s3525_s1 + $0x5b8] sm:$0xff]  ;;  %v1509_v33 = vpack.c.bf16 %v336_v27, %v334_v25  ;;  %v1383_v34 = vpack.c.bf16 %v213_v29, %v211_v28  ;;  %v210_v35 = vld [vmem:[%s3525_s1 + $0x1a0] sm:$0xff] }
  0x26   :  { %1494 = vmatpush1.bf16.msra.mxu0 %v1493_v47  ;;  %1368 = vmatprep.subr.bf16.mxu1 %v1367_v48  ;;  %v212_v36 = vld [vmem:[%s3525_s1 + $0x1b0] sm:$0xff]  ;;  %v338_v37 = vld [vmem:[%s3525_s1 + $0x5a0] sm:$0xff]  ;;  %v1511_v38 = vpack.c.bf16 %v341_v31, %v339_v30  ;;  %v215_v40 = vld [vmem:[%s3525_s1 + $0x1c8] sm:$0xff] }
  0x27   :  { %1496 = vmatprep.subr.bf16.mxu0 %v1495_v52  ;;  %v340_v39 = vld [vmem:[%s3525_s1 + $0x5b0] sm:$0xff]  ;;  %v217_v41 = vld [vmem:[%s3525_s1 + $0x1d8] sm:$0xff]  ;;  %v343_v42 = vld [vmem:[%s3525_s1 + $0x5c8] sm:$0xff]  ;;  %v1385_v44 = vpack.c.bf16 %v212_v36, %v210_v35 }
  0x28   :  { %v345_v43 = vld [vmem:[%s3525_s1 + $0x5d8] sm:$0xff]  ;;  %v1513_v45 = vpack.c.bf16 %v340_v39, %v338_v37  ;;  %v1387_v46 = vpack.c.bf16 %v217_v41, %v215_v40  ;;  %v214_v47 = vld [vmem:[%s3525_s1 + $0x1c0] sm:$0xff]  ;;  %v216_v48 = vld [vmem:[%s3525_s1 + $0x1d0] sm:$0xff] }
  0x29   :  { %1370 = vmatpush1.bf16.msra.mxu1 %v1369_v58  ;;  %v342_v49 = vld [vmem:[%s3525_s1 + $0x5c0] sm:$0xff]  ;;  %v1515_v50 = vpack.c.bf16 %v345_v43, %v343_v42  ;;  %v344_v51 = vld [vmem:[%s3525_s1 + $0x5d0] sm:$0xff]  ;;  %v219_v52 = vld [vmem:[%s3525_s1 + $0x1e8] sm:$0xff]  ;;  %v1389_v56 = vpack.c.bf16 %v216_v48, %v214_v47 }
  0x2a   :  { %1498 = vmatpush1.bf16.msra.mxu0 %v1497_v59  ;;  %1372 = vmatprep.subr.bf16.mxu1 %v1371_v60  ;;  %v221_v53 = vld [vmem:[%s3525_s1 + $0x1f8] sm:$0xff]  ;;  %v347_v54 = vld [vmem:[%s3525_s1 + $0x5e8] sm:$0xff]  ;;  %v1517_v57 = vpack.c.bf16 %v344_v51, %v342_v49  ;;  %v218_v59 = vld [vmem:[%s3525_s1 + $0x1e0] sm:$0xff] }
  0x2b   :  { %1500 = vmatprep.subr.bf16.mxu0 %v1499_v0  ;;  %v349_v55 = vld [vmem:[%s3525_s1 + $0x5f8] sm:$0xff]  ;;  %v1391_v58 = vpack.c.bf16 %v221_v53, %v219_v52  ;;  %v220_v60 = vld [vmem:[%s3525_s1 + $0x1f0] sm:$0xff]  ;;  %v346_v61 = vld [vmem:[%s3525_s1 + $0x5e0] sm:$0xff] }
  0x2c   :  { %v1519_v62 = vpack.c.bf16 %v349_v55, %v347_v54  ;;  %v348_v63 = vld [vmem:[%s3525_s1 + $0x5f0] sm:$0xff]  ;;  %v223_v0 = vld [vmem:[%s3525_s1 + $0x208] sm:$0xff]  ;;  %v225_v1 = vld [vmem:[%s3525_s1 + $0x218] sm:$0xff]  ;;  %v1393_v4 = vpack.c.bf16 %v220_v60, %v218_v59 }
  0x2d   :  { %1374 = vmatpush1.bf16.msra.mxu1 %v1373_v6  ;;  %v351_v2 = vld [vmem:[%s3525_s1 + $0x608] sm:$0xff]  ;;  %v353_v3 = vld [vmem:[%s3525_s1 + $0x618] sm:$0xff]  ;;  %v1521_v5 = vpack.c.bf16 %v348_v63, %v346_v61  ;;  %v1395_v6 = vpack.c.bf16 %v225_v1, %v223_v0  ;;  %v222_v7 = vld [vmem:[%s3525_s1 + $0x200] sm:$0xff] }
  0x2e   :  { %1502 = vmatpush1.bf16.msra.mxu0 %v1501_v8  ;;  %1376 = vmatprep.subr.bf16.mxu1 %v1375_v9  ;;  %v224_v8 = vld [vmem:[%s3525_s1 + $0x210] sm:$0xff]  ;;  %v2241_v9 = vpack.c.bf16 %v353_v3, %v351_v2  ;;  %v350_v10 = vld [vmem:[%s3525_s1 + $0x600] sm:$0xff]  ;;  %v227_v12 = vld [vmem:[%s3525_s1 + $0x228] sm:$0xff] }
  0x2f   :  { %1504 = vmatprep.subr.bf16.mxu0 %v1503_v13  ;;  %v352_v11 = vld [vmem:[%s3525_s1 + $0x610] sm:$0xff]  ;;  %v229_v13 = vld [vmem:[%s3525_s1 + $0x238] sm:$0xff]  ;;  %v14_v14 = vld [vmem:[%s3526_s0] sm:$0xff]  ;;  %v1397_v15 = vpack.c.bf16 %v224_v8, %v222_v7 }
  0x30   :  { %v355_v16 = vld [vmem:[%s3525_s1 + $0x628] sm:$0xff]  ;;  %v357_v17 = vld [vmem:[%s3525_s1 + $0x638] sm:$0xff]  ;;  %v18_v18 = vld [vmem:[%s3526_s0 + $0x20] sm:$0xff]  ;;  %v2267_v19 = vpack.c.bf16 %v352_v11, %v350_v10  ;;  %v1399_v23 = vpack.c.bf16 %v229_v13, %v227_v12 }
  0x31   :  { %1378 = vmatpush1.bf16.msra.mxu1 %v1377_v20  ;;  %v226_v20 = vld [vmem:[%s3525_s1 + $0x220] sm:$0xff]  ;;  %v356_v25 = vld [vmem:[%s3525_s1 + $0x630] sm:$0xff]  ;;  %v2288_v27 = vpack.c.bf16 %v357_v17, %v355_v16  ;;  %v231_v28 = vld [vmem:[%s3525_s1 + $0x248] sm:$0xff] }
  0x32   :  { %1506 = vmatpush1.bf16.msra.mxu0 %v1505_v21  ;;  %1380 = vmatprep.subr.bf16.mxu1 %v1379_v22  ;;  %v228_v21 = vld [vmem:[%s3525_s1 + $0x230] sm:$0xff]  ;;  %v354_v24 = vld [vmem:[%s3525_s1 + $0x620] sm:$0xff]  ;;  %v233_v29 = vld [vmem:[%s3525_s1 + $0x258] sm:$0xff] }
  0x33   :  { %1508 = vmatprep.subr.bf16.mxu0 %v1507_v26  ;;  %v24_v22 = vld [vmem:[%s3526_s0 + $0x50] sm:$0xff]  ;;  %v23_v30 = vld [vmem:[%s3526_s0 + $0x48] sm:$0xff]  ;;  %v1401_v31 = vpack.c.bf16 %v228_v21, %v226_v20  ;;  %v2309_v35 = vpack.c.bf16 %v356_v25, %v354_v24  ;;  %v230_v36 = vld [vmem:[%s3525_s1 + $0x240] sm:$0xff]  ;;  %v1403_v39 = vpack.c.bf16 %v233_v29, %v231_v28 }
  0x34   :  { %v28_v26 = vld [vmem:[%s3526_s0 + $0x70] sm:$0xff]  ;;  %v358_v40 = vld [vmem:[%s3525_s1 + $0x640] sm:$0xff]  ;;  %v37_v42 = vld [vmem:[%s3526_s0 + $0xb8] sm:$0xff] }
  0x35   :  { %1382 = vmatpush1.bf16.msra.mxu1 %v1381_v32  ;;  %v359_v32 = vld [vmem:[%s3525_s1 + $0x648] sm:$0xff]  ;;  %v232_v37 = vld [vmem:[%s3525_s1 + $0x250] sm:$0xff]  ;;  %v365_v49 = vld [vmem:[%s3525_s1 + $0x678] sm:$0xff] }
  0x36   :  { %1510 = vmatpush1.bf16.msra.mxu0 %v1509_v33  ;;  %1384 = vmatprep.subr.bf16.mxu1 %v1383_v34  ;;  %v361_v33 = vld [vmem:[%s3525_s1 + $0x658] sm:$0xff]  ;;  %v27_v34 = vld [vmem:[%s3526_s0 + $0x68] sm:$0xff]  ;;  %v360_v41 = vld [vmem:[%s3525_s1 + $0x650] sm:$0xff]  ;;  %v1405_v47 = vpack.c.bf16 %v232_v37, %v230_v36 }
  0x37   :  { %1512 = vmatprep.subr.bf16.mxu0 %v1511_v38  ;;  %v33_v38 = vld [vmem:[%s3526_s0 + $0x98] sm:$0xff]  ;;  %v2330_v43 = vpack.c.bf16 %v361_v33, %v359_v32  ;;  %v363_v48 = vld [vmem:[%s3525_s1 + $0x668] sm:$0xff]  ;;  %v2351_v51 = vpack.c.bf16 %v360_v41, %v358_v40  ;;  %v234_v52 = vld [vmem:[%s3525_s1 + $0x260] sm:$0xff] }
  0x38   :  { %v236_v53 = vld [vmem:[%s3525_s1 + $0x270] sm:$0xff]  ;;  %v42_v54 = vld [vmem:[%s3526_s0 + $0xe0] sm:$0xff]  ;;  %v2372_v59 = vpack.c.bf16 %v365_v49, %v363_v48  ;;  %v239_v60 = vld [vmem:[%s3525_s1 + $0x288] sm:$0xff] }
  0x39   :  { %1386 = vmatpush1.bf16.msra.mxu1 %v1385_v44  ;;  %v235_v44 = vld [vmem:[%s3525_s1 + $0x268] sm:$0xff]  ;;  %v241_v61 = vld [vmem:[%s3525_s1 + $0x298] sm:$0xff]  ;;  %v1409_v63 = vpack.c.bf16 %v236_v53, %v234_v52  ;;  %v366_v8 = vld [vmem:[%s3525_s1 + $0x680] sm:$0xff] }
  0x3a   :  { %1514 = vmatpush1.bf16.msra.mxu0 %v1513_v45  ;;  %1388 = vmatprep.subr.bf16.mxu1 %v1387_v46  ;;  %v237_v45 = vld [vmem:[%s3525_s1 + $0x278] sm:$0xff]  ;;  %v32_v46 = vld [vmem:[%s3526_s0 + $0x90] sm:$0xff]  ;;  %v367_v0 = vld [vmem:[%s3525_s1 + $0x688] sm:$0xff]  ;;  %v1411_v7 = vpack.c.bf16 %v241_v61, %v239_v60 }
  0x3b   :  { %1516 = vmatprep.subr.bf16.mxu0 %v1515_v50  ;;  %v36_v50 = vld [vmem:[%s3526_s0 + $0xb0] sm:$0xff]  ;;  %v1407_v55 = vpack.c.bf16 %v237_v45, %v235_v44  ;;  %v369_v1 = vld [vmem:[%s3525_s1 + $0x698] sm:$0xff]  ;;  %v55_v11 = vld [vmem:[%s3526_s0 + $0x148] sm:$0xff] }
  0x3c   :  { %v45_v2 = vld [vmem:[%s3526_s0 + $0xf8] sm:$0xff]  ;;  %v368_v10 = vld [vmem:[%s3525_s1 + $0x690] sm:$0xff]  ;;  %v2414_v12 = vpack.c.bf16 %v369_v1, %v367_v0  ;;  %v243_v13 = vld [vmem:[%s3525_s1 + $0x2a8] sm:$0xff] }
  0x3d   :  { %1390 = vmatpush1.bf16.msra.mxu1 %v1389_v56  ;;  %v362_v56 = vld [vmem:[%s3525_s1 + $0x660] sm:$0xff]  ;;  %v371_v17 = vld [vmem:[%s3525_s1 + $0x6a8] sm:$0xff]  ;;  %v2435_v21 = vpack.c.bf16 %v368_v10, %v366_v8  ;;  %v60_v24 = vld [vmem:[%s3526_s0 + $0x170] sm:$0xff] }
  0x3e   :  { %1518 = vmatpush1.bf16.msra.mxu0 %v1517_v57  ;;  %1392 = vmatprep.subr.bf16.mxu1 %v1391_v58  ;;  %v364_v57 = vld [vmem:[%s3525_s1 + $0x670] sm:$0xff]  ;;  %v46_v58 = vld [vmem:[%s3526_s0 + $0x100] sm:$0xff]  ;;  %v249_v32 = vld [vmem:[%s3525_s1 + $0x2d8] sm:$0xff] }
  0x3f   :  { %1520 = vmatprep.subr.bf16.mxu0 %v1519_v62  ;;  %v41_v62 = vld [vmem:[%s3526_s0 + $0xd8] sm:$0xff]  ;;  %v2393_v3 = vpack.c.bf16 %v364_v57, %v362_v56  ;;  %v54_v20 = vld [vmem:[%s3526_s0 + $0x140] sm:$0xff]  ;;  %v372_v28 = vld [vmem:[%s3525_s1 + $0x6b0] sm:$0xff] }
  0x40   :  { %v64_v29 = vld [vmem:[%s3526_s0 + $0x190] sm:$0xff]  ;;  %v59_v33 = vld [vmem:[%s3526_s0 + $0x168] sm:$0xff]  ;;  %v377_v37 = vld [vmem:[%s3525_s1 + $0x6d8] sm:$0xff] }
  0x41   :  { %1394 = vmatpush1.bf16.msra.mxu1 %v1393_v4  ;;  %v238_v4 = vld [vmem:[%s3525_s1 + $0x280] sm:$0xff]  ;;  %v375_v36 = vld [vmem:[%s3525_s1 + $0x6c8] sm:$0xff]  ;;  %v248_v41 = vld [vmem:[%s3525_s1 + $0x2d0] sm:$0xff] }
  0x42   :  { %1522 = vmatpush1.bf16.msra.mxu0 %v1521_v5  ;;  %1396 = vmatprep.subr.bf16.mxu1 %v1395_v6  ;;  %v240_v5 = vld [vmem:[%s3525_s1 + $0x290] sm:$0xff]  ;;  %v51_v6 = vld [vmem:[%s3526_s0 + $0x128] sm:$0xff]  ;;  %v246_v40 = vld [vmem:[%s3525_s1 + $0x2c0] sm:$0xff]  ;;  %v2498_v48 = vpack.c.bf16 %v377_v37, %v375_v36 }
  0x43   :  { %1524 = vmatprep.subr.bf16.mxu0 %v2241_v9  ;;  %v1413_v16 = vpack.c.bf16 %v240_v5, %v238_v4  ;;  %v374_v45 = vld [vmem:[%s3525_s1 + $0x6c0] sm:$0xff]  ;;  %v251_v49 = vld [vmem:[%s3525_s1 + $0x2e8] sm:$0xff]  ;;  %v68_v52 = vld [vmem:[%s3526_s0 + $0x1b0] sm:$0xff]  ;;  %v1421_v53 = vpack.c.bf16 %v248_v41, %v246_v40 }
  0x44   :  { %523 = vmatmul.mubr.f32.vlgmr.msra.gmra.mrb[0].mxu1 %v14_v14  ;;  %v245_v14 = vld [vmem:[%s3525_s1 + $0x2b8] sm:$0xff]  ;;  %v72_v56 = vld [vmem:[%s3526_s0 + $0x1d0] sm:$0xff]  ;;  %v78_v61 = vld [vmem:[%s3526_s0 + $0x200] sm:$0xff] }
  0x45   :  { %845 = vmatmul.mubr.f32.vlgmr.msra.gmra.mrb[0].mxu0 %v18_v18  ;;  %1398 = vmatpush1.bf16.msra.mxu1 %v1397_v15  ;;  %v50_v15 = vld [vmem:[%s3526_s0 + $0x120] sm:$0xff]  ;;  %v373_v18 = vld [vmem:[%s3525_s1 + $0x6b8] sm:$0xff]  ;;  %v1415_v25 = vpack.c.bf16 %v245_v14, %v243_v13  ;;  %v252_v60 = vld [vmem:[%s3525_s1 + $0x2f0] sm:$0xff] }
  0x46   :  { %1526 = vmatpush1.bf16.msra.mxu0 %v2267_v19  ;;  %528 = vmatprep.mubr.f32.mxu1 %v24_v22  ;;  %v242_v22 = vld [vmem:[%s3525_s1 + $0x2a0] sm:$0xff]  ;;  %v380_v0 = vld [vmem:[%s3525_s1 + $0x6f0] sm:$0xff]  ;;  %v255_v4 = vld [vmem:[%s3525_s1 + $0x308] sm:$0xff] }
  0x47   :  { %850 = vmatprep.mubr.f32.mxu0 %v28_v26  ;;  %1400 = vmatprep.subr.bf16.mxu1 %v1399_v23  ;;  %v244_v23 = vld [vmem:[%s3525_s1 + $0x2b0] sm:$0xff]  ;;  %v370_v26 = vld [vmem:[%s3525_s1 + $0x6a0] sm:$0xff]  ;;  %v257_v5 = vld [vmem:[%s3525_s1 + $0x318] sm:$0xff] }
  0x48   :  { %529 = vmatmul.mubr.f32.gmra.mrb[2].mxu1 %v23_v30  ;;  %1528 = vmatprep.subr.bf16.mxu0 %v2288_v27  ;;  %v2456_v30 = vpack.c.bf16 %v373_v18, %v371_v17  ;;  %v82_v1 = vld [vmem:[%s3526_s0 + $0x220] sm:$0xff]  ;;  %v383_v8 = vld [vmem:[%s3525_s1 + $0x708] sm:$0xff]  ;;  %v385_v10 = vld [vmem:[%s3525_s1 + $0x718] sm:$0xff]  ;;  %v1427_v17 = vpack.c.bf16 %v257_v5, %v255_v4 }
  0x49   :  { %851 = vmatmul.mubr.f32.gmra.mrb[2].mxu0 %v27_v34  ;;  %1402 = vmatpush1.bf16.msra.mxu1 %v1401_v31  ;;  %v247_v31 = vld [vmem:[%s3525_s1 + $0x2c8] sm:$0xff]  ;;  %v1417_v34 = vpack.c.bf16 %v244_v23, %v242_v22  ;;  %v254_v14 = vld [vmem:[%s3525_s1 + $0x300] sm:$0xff]  ;;  %v2582_v23 = vpack.c.bf16 %v385_v10, %v383_v8  ;;  %v260_v36 = vld [vmem:[%s3525_s1 + $0x330] sm:$0xff] }
  0x4a   :  { %1530 = vmatpush1.bf16.msra.mxu0 %v2309_v35  ;;  %534 = vmatprep.mubr.f32.mxu1 %v33_v38  ;;  %v63_v38 = vld [vmem:[%s3526_s0 + $0x188] sm:$0xff]  ;;  %v1419_v44 = vpack.c.bf16 %v249_v32, %v247_v31  ;;  %v382_v18 = vld [vmem:[%s3525_s1 + $0x700] sm:$0xff]  ;;  %v389_v31 = vld [vmem:[%s3525_s1 + $0x738] sm:$0xff] }
  0x4b   :  { %856 = vmatprep.mubr.f32.mxu0 %v37_v42  ;;  %1404 = vmatprep.subr.bf16.mxu1 %v1403_v39  ;;  %v2477_v39 = vpack.c.bf16 %v372_v28, %v370_v26  ;;  %v69_v42 = vld [vmem:[%s3526_s0 + $0x1b8] sm:$0xff]  ;;  %v91_v22 = vld [vmem:[%s3526_s0 + $0x268] sm:$0xff]  ;;  %v86_v26 = vld [vmem:[%s3526_s0 + $0x240] sm:$0xff] }
  0x4c   :  { %535 = vmatmul.mubr.f32.gmra.mrb[4].mxu1 %v32_v46  ;;  %1532 = vmatprep.subr.bf16.mxu0 %v2330_v43  ;;  %v376_v46 = vld [vmem:[%s3525_s1 + $0x6d0] sm:$0xff]  ;;  %v90_v32 = vld [vmem:[%s3526_s0 + $0x260] sm:$0xff]  ;;  %v269_v4 = vld [vmem:[%s3525_s1 + $0x378] sm:$0xff] }
  0x4d   :  { %857 = vmatmul.mubr.f32.gmra.mrb[4].mxu0 %v36_v50  ;;  %1406 = vmatpush1.bf16.msra.mxu1 %v1405_v47  ;;  %v73_v47 = vld [vmem:[%s3526_s0 + $0x1d8] sm:$0xff]  ;;  %v2519_v57 = vpack.c.bf16 %v376_v46, %v374_v45  ;;  %v96_v37 = vld [vmem:[%s3526_s0 + $0x290] sm:$0xff]  ;;  %v386_v40 = vld [vmem:[%s3525_s1 + $0x720] sm:$0xff] }
  0x4e   :  { %1534 = vmatpush1.bf16.msra.mxu0 %v2351_v51  ;;  %540 = vmatprep.mubr.f32.mxu1 %v42_v54  ;;  %v253_v50 = vld [vmem:[%s3525_s1 + $0x2f8] sm:$0xff]  ;;  %v379_v54 = vld [vmem:[%s3525_s1 + $0x6e8] sm:$0xff]  ;;  %v388_v41 = vld [vmem:[%s3525_s1 + $0x730] sm:$0xff] }
  0x4f   :  { %862 = vmatprep.mubr.f32.mxu0 %v46_v58  ;;  %1408 = vmatprep.subr.bf16.mxu1 %v1407_v55  ;;  %v381_v55 = vld [vmem:[%s3525_s1 + $0x6f8] sm:$0xff]  ;;  %v250_v58 = vld [vmem:[%s3525_s1 + $0x2e0] sm:$0xff]  ;;  %v263_v45 = vld [vmem:[%s3525_s1 + $0x348] sm:$0xff] }
  0x50   :  { %541 = vmatmul.mubr.f32.gmra.mrb[6].mxu1 %v41_v62  ;;  %1536 = vmatprep.subr.bf16.mxu0 %v2372_v59  ;;  %v1423_v62 = vpack.c.bf16 %v253_v50, %v251_v49  ;;  %v265_v46 = vld [vmem:[%s3525_s1 + $0x358] sm:$0xff]  ;;  %v391_v50 = vld [vmem:[%s3525_s1 + $0x748] sm:$0xff]  ;;  %v104_v5 = vld [vmem:[%s3526_s0 + $0x2d0] sm:$0xff] }
  0x51   :  { %863 = vmatmul.mubr.f32.gmra.mrb[6].mxu0 %v45_v2  ;;  %1410 = vmatpush1.bf16.msra.mxu1 %v1409_v63  ;;  %v378_v63 = vld [vmem:[%s3525_s1 + $0x6e0] sm:$0xff]  ;;  %v2540_v2 = vpack.c.bf16 %v381_v55, %v379_v54  ;;  %v2645_v54 = vpack.c.bf16 %v388_v41, %v386_v40  ;;  %v397_v8 = vld [vmem:[%s3525_s1 + $0x778] sm:$0xff]  ;;  %v108_v10 = vld [vmem:[%s3526_s0 + $0x2f0] sm:$0xff] }
  0x52   :  { %1538 = vmatpush1.bf16.msra.mxu0 %v2393_v3  ;;  %546 = vmatprep.mubr.f32.mxu1 %v51_v6  ;;  %v77_v6 = vld [vmem:[%s3526_s0 + $0x1f8] sm:$0xff]  ;;  %v2561_v13 = vpack.c.bf16 %v380_v0, %v378_v63  ;;  %v262_v55 = vld [vmem:[%s3525_s1 + $0x340] sm:$0xff]  ;;  %v123_v40 = vld [vmem:[%s3526_s0 + $0x368] sm:$0xff] }
  0x53   :  { %868 = vmatprep.mubr.f32.mxu0 %v55_v11  ;;  %1412 = vmatprep.subr.bf16.mxu1 %v1411_v7  ;;  %v1425_v7 = vpack.c.bf16 %v252_v60, %v250_v58  ;;  %v81_v11 = vld [vmem:[%s3526_s0 + $0x218] sm:$0xff]  ;;  %v1435_v60 = vpack.c.bf16 %v265_v46, %v263_v45  ;;  %v400_v45 = vld [vmem:[%s3525_s1 + $0x790] sm:$0xff]  ;;  %v127_v46 = vld [vmem:[%s3526_s0 + $0x388] sm:$0xff] }
  0x54   :  { %547 = vmatmul.mubr.f32.gmra.mrb[8].mxu1 %v50_v15  ;;  %1540 = vmatprep.subr.bf16.mxu0 %v2414_v12  ;;  %v256_v15 = vld [vmem:[%s3525_s1 + $0x310] sm:$0xff]  ;;  %v105_v58 = vld [vmem:[%s3526_s0 + $0x2d8] sm:$0xff] }
  0x55   :  { %869 = vmatmul.mubr.f32.gmra.mrb[8].mxu0 %v54_v20  ;;  %1414 = vmatpush1.bf16.msra.mxu1 %v1413_v16  ;;  %v87_v16 = vld [vmem:[%s3526_s0 + $0x248] sm:$0xff]  ;;  %v384_v20 = vld [vmem:[%s3525_s1 + $0x710] sm:$0xff]  ;;  %v1429_v28 = vpack.c.bf16 %v256_v15, %v254_v14  ;;  %v109_v63 = vld [vmem:[%s3526_s0 + $0x2f8] sm:$0xff] }
  0x56   :  { %1542 = vmatpush1.bf16.msra.mxu0 %v2435_v21  ;;  %552 = vmatprep.mubr.f32.mxu1 %v60_v24  ;;  %v259_v24 = vld [vmem:[%s3525_s1 + $0x328] sm:$0xff]  ;;  %v266_v14 = vld [vmem:[%s3525_s1 + $0x360] sm:$0xff]  ;;  %v268_v15 = vld [vmem:[%s3525_s1 + $0x370] sm:$0xff] }
  0x57   :  { %874 = vmatprep.mubr.f32.mxu0 %v64_v29  ;;  %1416 = vmatprep.subr.bf16.mxu1 %v1415_v25  ;;  %v261_v25 = vld [vmem:[%s3525_s1 + $0x338] sm:$0xff]  ;;  %v387_v29 = vld [vmem:[%s3525_s1 + $0x728] sm:$0xff] }
  0x58   :  { %553 = vmatmul.mubr.f32.gmra.mrb[10].mxu1 %v59_v33  ;;  %1544 = vmatprep.subr.bf16.mxu0 %v2456_v30  ;;  %v2603_v33 = vpack.c.bf16 %v384_v20, %v382_v18  ;;  %v394_v18 = vld [vmem:[%s3525_s1 + $0x760] sm:$0xff]  ;;  %v396_v20 = vld [vmem:[%s3525_s1 + $0x770] sm:$0xff] }
  0x59   :  { %875 = vmatmul.mubr.f32.gmra.mrb[10].mxu0 %v63_v38  ;;  %1418 = vmatpush1.bf16.msra.mxu1 %v1417_v34  ;;  %v258_v34 = vld [vmem:[%s3525_s1 + $0x320] sm:$0xff]  ;;  %v1431_v38 = vpack.c.bf16 %v261_v25, %v259_v24  ;;  %v271_v25 = vld [vmem:[%s3525_s1 + $0x388] sm:$0xff] }
  0x5a   :  { %1546 = vmatpush1.bf16.msra.mxu0 %v2477_v39  ;;  %558 = vmatprep.mubr.f32.mxu1 %v69_v42  ;;  %v100_v42 = vld [vmem:[%s3526_s0 + $0x2b0] sm:$0xff]  ;;  %v1433_v49 = vpack.c.bf16 %v260_v36, %v258_v34  ;;  %v117_v34 = vld [vmem:[%s3526_s0 + $0x338] sm:$0xff]  ;;  %v2729_v36 = vpack.c.bf16 %v396_v20, %v394_v18  ;;  %v135_v18 = vld [vmem:[%s3526_s0 + $0x3c8] sm:$0xff] }
  0x5b   :  { %880 = vmatprep.mubr.f32.mxu0 %v73_v47  ;;  %1420 = vmatprep.subr.bf16.mxu1 %v1419_v44  ;;  %v2624_v44 = vpack.c.bf16 %v389_v31, %v387_v29  ;;  %v95_v47 = vld [vmem:[%s3526_s0 + $0x288] sm:$0xff]  ;;  %v1441_v29 = vpack.c.bf16 %v268_v15, %v266_v14 }
  0x5c   :  { %559 = vmatmul.mubr.f32.gmra.mrb[12].mxu1 %v68_v52  ;;  %1548 = vmatprep.subr.bf16.mxu0 %v2498_v48  ;;  %v393_v52 = vld [vmem:[%s3525_s1 + $0x758] sm:$0xff]  ;;  %v399_v31 = vld [vmem:[%s3525_s1 + $0x788] sm:$0xff] }
  0x5d   :  { %881 = vmatmul.mubr.f32.gmra.mrb[12].mxu0 %v72_v56  ;;  %1422 = vmatpush1.bf16.msra.mxu1 %v1421_v53  ;;  %v99_v53 = vld [vmem:[%s3526_s0 + $0x2a8] sm:$0xff]  ;;  %v264_v56 = vld [vmem:[%s3525_s1 + $0x350] sm:$0xff]  ;;  %v2666_v0 = vpack.c.bf16 %v393_v52, %v391_v50  ;;  %v277_v50 = vld [vmem:[%s3525_s1 + $0x3b8] sm:$0xff] }
  0x5e   :  { %1550 = vmatpush1.bf16.msra.mxu0 %v2519_v57  ;;  %564 = vmatprep.mubr.f32.mxu1 %v78_v61  ;;  %v390_v61 = vld [vmem:[%s3525_s1 + $0x740] sm:$0xff]  ;;  %v131_v14 = vld [vmem:[%s3526_s0 + $0x3a8] sm:$0xff] }
  0x5f   :  { %886 = vmatprep.mubr.f32.mxu0 %v82_v1  ;;  %1424 = vmatprep.subr.bf16.mxu1 %v1423_v62  ;;  %v392_v62 = vld [vmem:[%s3525_s1 + $0x750] sm:$0xff]  ;;  %v267_v1 = vld [vmem:[%s3525_s1 + $0x368] sm:$0xff]  ;;  %v122_v52 = vld [vmem:[%s3526_s0 + $0x360] sm:$0xff] }
  0x60   :  { %565 = vmatmul.mubr.f32.gmra.mrb[14].mxu1 %v77_v6  ;;  %1552 = vmatprep.subr.bf16.mxu0 %v2540_v2  ;;  %v1437_v6 = vpack.c.bf16 %v264_v56, %v262_v55  ;;  %v403_v55 = vld [vmem:[%s3525_s1 + $0x7a8] sm:$0xff]  ;;  %v405_v56 = vld [vmem:[%s3525_s1 + $0x7b8] sm:$0xff] }
  0x61   :  { %887 = vmatmul.mubr.f32.gmra.mrb[14].mxu0 %v81_v11  ;;  %1426 = vmatpush1.bf16.msra.mxu1 %v1425_v7  ;;  %v395_v7 = vld [vmem:[%s3525_s1 + $0x768] sm:$0xff]  ;;  %v2687_v11 = vpack.c.bf16 %v392_v62, %v390_v61  ;;  %v274_v61 = vld [vmem:[%s3525_s1 + $0x3a0] sm:$0xff]  ;;  %v276_v62 = vld [vmem:[%s3525_s1 + $0x3b0] sm:$0xff] }
  0x62   :  { %1554 = vmatpush1.bf16.msra.mxu0 %v2561_v13  ;;  %570 = vmatprep.mubr.f32.mxu1 %v87_v16  ;;  %v114_v16 = vld [vmem:[%s3526_s0 + $0x320] sm:$0xff]  ;;  %v2708_v24 = vpack.c.bf16 %v397_v8, %v395_v7  ;;  %v2792_v7 = vpack.c.bf16 %v405_v56, %v403_v55  ;;  %v279_v8 = vld [vmem:[%s3525_s1 + $0x3c8] sm:$0xff]  ;;  %v1449_v15 = vpack.c.bf16 %v276_v62, %v274_v61 }
  0x63   :  { %892 = vmatprep.mubr.f32.mxu0 %v91_v22  ;;  %1428 = vmatprep.subr.bf16.mxu1 %v1427_v17  ;;  %v1439_v17 = vpack.c.bf16 %v269_v4, %v267_v1  ;;  %v118_v22 = vld [vmem:[%s3526_s0 + $0x340] sm:$0xff] }
  0x64   :  { %571 = vmatmul.mubr.f32.gmra.mrb[16].mxu1 %v86_v26  ;;  %1556 = vmatprep.subr.bf16.mxu0 %v2582_v23  ;;  %v273_v26 = vld [vmem:[%s3525_s1 + $0x398] sm:$0xff]  ;;  %v402_v4 = vld [vmem:[%s3525_s1 + $0x7a0] sm:$0xff] }
  0x65   :  { %893 = vmatmul.mubr.f32.gmra.mrb[16].mxu0 %v90_v32  ;;  %1430 = vmatpush1.bf16.msra.mxu1 %v1429_v28  ;;  %v113_v28 = vld [vmem:[%s3526_s0 + $0x318] sm:$0xff]  ;;  %v1443_v41 = vpack.c.bf16 %v273_v26, %v271_v25  ;;  %v280_v25 = vld [vmem:[%s3525_s1 + $0x3d0] sm:$0xff]  ;;  %v410_v56 = vld [vmem:[%s3525_s1 + $0x7e0] sm:$0xff] }
  0x66   :  { %1558 = vmatpush1.bf16.msra.mxu0 %v2603_v33  ;;  %576 = vmatprep.mubr.f32.mxu1 %v96_v37  ;;  %v401_v32 = vld [vmem:[%s3525_s1 + $0x798] sm:$0xff]  ;;  %v270_v37 = vld [vmem:[%s3525_s1 + $0x380] sm:$0xff] }
  0x67   :  { %898 = vmatprep.mubr.f32.mxu0 %v100_v42  ;;  %1432 = vmatprep.subr.bf16.mxu1 %v1431_v38  ;;  %v272_v38 = vld [vmem:[%s3525_s1 + $0x390] sm:$0xff]  ;;  %v398_v42 = vld [vmem:[%s3525_s1 + $0x780] sm:$0xff]  ;;  %v141_v26 = vld [vmem:[%s3526_s0 + $0x3f8] sm:$0xff] }
  0x68   :  { %577 = vmatmul.mubr.f32.gmra.mrb[18].mxu1 %v95_v47  ;;  %1560 = vmatprep.subr.bf16.mxu0 %v2624_v44  ;;  %v2750_v47 = vpack.c.bf16 %v401_v32, %v399_v31  ;;  %v408_v31 = vld [vmem:[%s3525_s1 + $0x7d0] sm:$0xff]  ;;  %v145_v32 = vld [vmem:[%s3526_s0 + $0x418] sm:$0xff]  ;;  %v154_v61 = vld [vmem:[%s3526_s0 + $0x460] sm:$0xff] }
  0x69   :  { %899 = vmatmul.mubr.f32.gmra.mrb[18].mxu0 %v99_v53  ;;  %1434 = vmatpush1.bf16.msra.mxu1 %v1433_v49  ;;  %v275_v49 = vld [vmem:[%s3525_s1 + $0x3a8] sm:$0xff]  ;;  %v1445_v53 = vpack.c.bf16 %v272_v38, %v270_v37  ;;  %v285_v38 = vld [vmem:[%s3525_s1 + $0x3f8] sm:$0xff] }
  0x6a   :  { %1562 = vmatpush1.bf16.msra.mxu0 %v2645_v54  ;;  %582 = vmatprep.mubr.f32.mxu1 %v105_v58  ;;  %v126_v58 = vld [vmem:[%s3526_s0 + $0x380] sm:$0xff]  ;;  %v1447_v1 = vpack.c.bf16 %v277_v50, %v275_v49  ;;  %v283_v37 = vld [vmem:[%s3525_s1 + $0x3e8] sm:$0xff] }
  0x6b   :  { %904 = vmatprep.mubr.f32.mxu0 %v109_v63  ;;  %1436 = vmatprep.subr.bf16.mxu1 %v1435_v60  ;;  %v2771_v60 = vpack.c.bf16 %v400_v45, %v398_v42  ;;  %v132_v63 = vld [vmem:[%s3526_s0 + $0x3b0] sm:$0xff]  ;;  %v411_v42 = vld [vmem:[%s3525_s1 + $0x7e8] sm:$0xff]  ;;  %v413_v45 = vld [vmem:[%s3525_s1 + $0x7f8] sm:$0xff]  ;;  %v1455_v55 = vpack.c.bf16 %v285_v38, %v283_v37 }
  0x6c   :  { %583 = vmatmul.mubr.f32.gmra.mrb[20].mxu1 %v104_v5  ;;  %1564 = vmatprep.subr.bf16.mxu0 %v2666_v0  ;;  %v404_v5 = vld [vmem:[%s3525_s1 + $0x7b0] sm:$0xff]  ;;  %v282_v50 = vld [vmem:[%s3525_s1 + $0x3e0] sm:$0xff]  ;;  %v2876_v62 = vpack.c.bf16 %v413_v45, %v411_v42  ;;  %v29_v42 = vld [vmem:[%s3526_s0 + $0x78] sm:$0xff] }
  0x6d   :  { %905 = vmatmul.mubr.f32.gmra.mrb[20].mxu0 %v108_v10  ;;  %1438 = vmatpush1.bf16.msra.mxu1 %v1437_v6  ;;  %v136_v6 = vld [vmem:[%s3526_s0 + $0x3d0] sm:$0xff]  ;;  %v281_v10 = vld [vmem:[%s3525_s1 + $0x3d8] sm:$0xff]  ;;  %v2813_v20 = vpack.c.bf16 %v404_v5, %v402_v4  ;;  %v415_v4 = vld [vmem:[%s3525_s1 + $0x808] sm:$0xff] }
  0x6e   :  { %1566 = vmatpush1.bf16.msra.mxu0 %v2687_v11  ;;  %588 = vmatprep.mubr.f32.mxu1 %v114_v16  ;;  %v407_v16 = vld [vmem:[%s3525_s1 + $0x7c8] sm:$0xff]  ;;  %v417_v5 = vld [vmem:[%s3525_s1 + $0x818] sm:$0xff]  ;;  %v30_v37 = vld [vmem:[%s3526_s0 + $0x80] sm:$0xff] }
  0x6f   :  { %910 = vmatprep.mubr.f32.mxu0 %v118_v22  ;;  %1440 = vmatprep.subr.bf16.mxu1 %v1439_v17  ;;  %v409_v17 = vld [vmem:[%s3525_s1 + $0x7d8] sm:$0xff]  ;;  %v278_v22 = vld [vmem:[%s3525_s1 + $0x3c0] sm:$0xff] }
  0x70   :  { %589 = vmatmul.mubr.f32.gmra.mrb[22].mxu1 %v113_v28  ;;  %1568 = vmatprep.subr.bf16.mxu0 %v2708_v24  ;;  %v1451_v28 = vpack.c.bf16 %v281_v10, %v279_v8  ;;  %v17_v10 = vld [vmem:[%s3526_s0 + $0x18] sm:$0xff] }
  0x71   :  { %911 = vmatmul.mubr.f32.gmra.mrb[22].mxu0 %v117_v34  ;;  %1442 = vmatpush1.bf16.msra.mxu1 %v1441_v29  ;;  %v406_v29 = vld [vmem:[%s3525_s1 + $0x7c0] sm:$0xff]  ;;  %v2834_v34 = vpack.c.bf16 %v409_v17, %v407_v16  ;;  %v21_v16 = vld [vmem:[%s3526_s0 + $0x38] sm:$0xff]  ;;  %v1587_v17 = vpack.c.bf16 %v417_v5, %v415_v4  ;;  %v48_v4 = vld [vmem:[%s3526_s0 + $0x110] sm:$0xff] }
  0x72   :  { %1570 = vmatpush1.bf16.msra.mxu0 %v2729_v36  ;;  %594 = vmatprep.mubr.f32.mxu1 %v123_v40  ;;  %v140_v40 = vld [vmem:[%s3526_s0 + $0x3f0] sm:$0xff]  ;;  %v2855_v49 = vpack.c.bf16 %v408_v31, %v406_v29  ;;  %v26_v29 = vld [vmem:[%s3526_s0 + $0x60] sm:$0xff] }
  0x73   :  { %916 = vmatprep.mubr.f32.mxu0 %v127_v46  ;;  %1444 = vmatprep.subr.bf16.mxu1 %v1443_v41  ;;  %v1453_v41 = vpack.c.bf16 %v280_v25, %v278_v22  ;;  %v144_v46 = vld [vmem:[%s3526_s0 + $0x410] sm:$0xff]  ;;  %v419_v22 = vld [vmem:[%s3525_s1 + $0x828] sm:$0xff]  ;;  %v421_v25 = vld [vmem:[%s3525_s1 + $0x838] sm:$0xff] }
  0x74   :  { %595 = vmatmul.mubr.f32.gmra.mrb[24].mxu1 %v122_v52  ;;  %1572 = vmatprep.subr.bf16.mxu0 %v2750_v47  ;;  %v284_v52 = vld [vmem:[%s3525_s1 + $0x3f0] sm:$0xff]  ;;  %v418_v31 = vld [vmem:[%s3525_s1 + $0x820] sm:$0xff]  ;;  %v1591_v38 = vpack.c.bf16 %v421_v25, %v419_v22  ;;  %v435_v25 = vld [vmem:[%s3525_s1 + $0x8a8] sm:$0xff] }
  0x75   :  { %917 = vmatmul.mubr.f32.gmra.mrb[24].mxu0 %v126_v58  ;;  %1446 = vmatpush1.bf16.msra.mxu1 %v1445_v53  ;;  %v150_v53 = vld [vmem:[%s3526_s0 + $0x440] sm:$0xff]  ;;  %v412_v58 = vld [vmem:[%s3525_s1 + $0x7f0] sm:$0xff] }
  0x76   :  { %1574 = vmatpush1.bf16.msra.mxu0 %v2771_v60  ;;  %600 = vmatprep.mubr.f32.mxu1 %v132_v63  ;;  %v149_v63 = vld [vmem:[%s3526_s0 + $0x438] sm:$0xff]  ;;  %v2891_v8 = vpack.c.bf16 %v412_v58, %v410_v56  ;;  %v38_v58 = vld [vmem:[%s3526_s0 + $0xc0] sm:$0xff] }
  0x77   :  { %922 = vmatprep.mubr.f32.mxu0 %v136_v6  ;;  %1448 = vmatprep.subr.bf16.mxu1 %v1447_v1  ;;  %v1457_v1 = vpack.c.bf16 %v284_v52, %v282_v50  ;;  %v153_v6 = vld [vmem:[%s3526_s0 + $0x458] sm:$0xff]  ;;  %v424_v50 = vld [vmem:[%s3525_s1 + $0x850] sm:$0xff]  ;;  %v39_v52 = vld [vmem:[%s3526_s0 + $0xc8] sm:$0xff] }
  0x78   :  { %601 = vmatmul.mubr.f32.gmra.mrb[26].mxu1 %v131_v14  ;;  %1576 = vmatprep.subr.bf16.mxu0 %v2792_v7  ;;  %v414_v14 = vld [vmem:[%s3525_s1 + $0x800] sm:$0xff]  ;;  %v429_v56 = vld [vmem:[%s3525_s1 + $0x878] sm:$0xff] }
  0x79   :  { %923 = vmatmul.mubr.f32.gmra.mrb[26].mxu0 %v135_v18  ;;  %1450 = vmatpush1.bf16.msra.mxu1 %v1449_v15  ;;  %v416_v15 = vld [vmem:[%s3525_s1 + $0x810] sm:$0xff] }
  0x7a   :  { %1578 = vmatpush1.bf16.msra.mxu0 %v2813_v20  ;;  %606 = vmatprep.mubr.f32.mxu1 %v141_v26  ;;  %v16_v18 = vld [vmem:[%s3526_s0 + $0x10] sm:$0xff] }
  0x7b   :  { %928 = vmatprep.mubr.f32.mxu0 %v145_v32  ;;  %1452 = vmatprep.subr.bf16.mxu1 %v1451_v28  ;;  %v20_v26 = vld [vmem:[%s3526_s0 + $0x30] sm:$0xff]  ;;  %v1589_v28 = vpack.c.bf16 %v416_v15, %v414_v14  ;;  %v47_v14 = vld [vmem:[%s3526_s0 + $0x108] sm:$0xff] }
  0x7c   :  { %607 = vmatmul.mubr.f32.gmra.mrb[28].mxu1 %v140_v40  ;;  %1580 = vmatprep.subr.bf16.mxu0 %v2834_v34  ;;  %v420_v32 = vld [vmem:[%s3525_s1 + $0x830] sm:$0xff]  ;;  %v423_v40 = vld [vmem:[%s3525_s1 + $0x848] sm:$0xff] }
  0x7d   :  { %929 = vmatmul.mubr.f32.gmra.mrb[28].mxu0 %v144_v46  ;;  %1454 = vmatpush1.bf16.msra.mxu1 %v1453_v41  ;;  %v425_v41 = vld [vmem:[%s3525_s1 + $0x858] sm:$0xff]  ;;  %v1593_v45 = vpack.c.bf16 %v420_v32, %v418_v31  ;;  %v422_v46 = vld [vmem:[%s3525_s1 + $0x840] sm:$0xff]  ;;  %v436_v32 = vld [vmem:[%s3525_s1 + $0x8b0] sm:$0xff] }
  0x7e   :  { %1582 = vmatpush1.bf16.msra.mxu0 %v2855_v49  ;;  %612 = vmatprep.mubr.f32.mxu1 %v150_v53  ;;  %v1595_v53 = vpack.c.bf16 %v425_v41, %v423_v40  ;;  %v434_v31 = vld [vmem:[%s3525_s1 + $0x8a0] sm:$0xff]  ;;  %v441_v40 = vld [vmem:[%s3525_s1 + $0x8d8] sm:$0xff] }
  0x7f   :  { %934 = vmatprep.mubr.f32.mxu0 %v154_v61  ;;  %1456 = vmatprep.subr.bf16.mxu1 %v1455_v55  ;;  %v427_v55 = vld [vmem:[%s3525_s1 + $0x868] sm:$0xff]  ;;  %v1597_v61 = vpack.c.bf16 %v424_v50, %v422_v46  ;;  %v65_v41 = vld [vmem:[%s3526_s0 + $0x198] sm:$0xff] }
  0x80   :  { %613 = vmatmul.mubr.f32.gmra.mrb[30].mxu1 %v149_v63  ;;  %1584 = vmatprep.subr.bf16.mxu0 %v2876_v62  ;;  %v426_v63 = vld [vmem:[%s3525_s1 + $0x860] sm:$0xff]  ;;  %v1599_v5 = vpack.c.bf16 %v429_v56, %v427_v55  ;;  %v75_v46 = vld [vmem:[%s3526_s0 + $0x1e8] sm:$0xff] }
  0x81   :  { %935 = vmatmul.mubr.f32.gmra.mrb[30].mxu0 %v153_v6  ;;  %1458 = vmatpush1.bf16.msra.mxu1 %v1457_v1  ;;  %v428_v1 = vld [vmem:[%s3525_s1 + $0x870] sm:$0xff]  ;;  %v431_v6 = vld [vmem:[%s3525_s1 + $0x888] sm:$0xff]  ;;  %v442_v56 = vld [vmem:[%s3525_s1 + $0x8e0] sm:$0xff] }
  0x82   :  { %1586 = vmatpush1.bf16.msra.mxu0 %v2891_v8  ;;  %683 = vmatprep.mubr.f32.mxu1 %v17_v10  ;;  %v433_v10 = vld [vmem:[%s3525_s1 + $0x898] sm:$0xff]  ;;  %v1601_v15 = vpack.c.bf16 %v428_v1, %v426_v63  ;;  %v83_v63 = vld [vmem:[%s3526_s0 + $0x228] sm:$0xff] }
  0x83   :  { %1005 = vmatprep.mubr.f32.mxu0 %v21_v16  ;;  %1619 = vmatprep.subr.bf16.mxu1 %v2241_v9  ;;  %v25_v9 = vld [vmem:[%s3526_s0 + $0x58] sm:$0xff]  ;;  %v430_v16 = vld [vmem:[%s3525_s1 + $0x880] sm:$0xff]  ;;  %v1603_v22 = vpack.c.bf16 %v433_v10, %v431_v6  ;;  %v31_v6 = vld [vmem:[%s3526_s0 + $0x88] sm:$0xff] }
  0x84   :  { %684 = vmatmul.mubr.f32.vlgmr.msra.gmra.mrb[0].mxu1 %v16_v18  ;;  %1588 = vmatprep.subr.bf16.mxu0 %v1587_v17  ;;  %v432_v17 = vld [vmem:[%s3525_s1 + $0x890] sm:$0xff]  ;;  %v57_v18 = vld [vmem:[%s3526_s0 + $0x158] sm:$0xff] }
  0x85   :  { %1006 = vmatmul.mubr.f32.vlgmr.msra.gmra.mrb[0].mxu0 %v20_v26  ;;  %1635 = vmatpush1.bf16.msra.mxu1 %v2267_v19  ;;  %v35_v19 = vld [vmem:[%s3526_s0 + $0xa8] sm:$0xff]  ;;  %v437_v26 = vld [vmem:[%s3525_s1 + $0x8b8] sm:$0xff]  ;;  %v40_v10 = vld [vmem:[%s3526_s0 + $0xd0] sm:$0xff] }
  0x86   :  { %1590 = vmatpush1.bf16.msra.mxu0 %v1589_v28  ;;  %689 = vmatprep.mubr.f32.mxu1 %v26_v29  ;;  %v56_v28 = vld [vmem:[%s3526_s0 + $0x150] sm:$0xff]  ;;  %v1605_v29 = vpack.c.bf16 %v432_v17, %v430_v16  ;;  %v85_v17 = vld [vmem:[%s3526_s0 + $0x238] sm:$0xff] }
  0x87   :  { %1011 = vmatprep.mubr.f32.mxu0 %v30_v37  ;;  %1620 = vmatprep.subr.bf16.mxu1 %v2288_v27  ;;  %v34_v27 = vld [vmem:[%s3526_s0 + $0xa0] sm:$0xff]  ;;  %v76_v16 = vld [vmem:[%s3526_s0 + $0x1f0] sm:$0xff] }
  0x88   :  { %690 = vmatmul.mubr.f32.gmra.mrb[2].mxu1 %v25_v9  ;;  %1592 = vmatprep.subr.bf16.mxu0 %v1591_v38  ;;  %v66_v37 = vld [vmem:[%s3526_s0 + $0x1a0] sm:$0xff]  ;;  %v1607_v38 = vpack.c.bf16 %v437_v26, %v435_v25  ;;  %v439_v9 = vld [vmem:[%s3525_s1 + $0x8c8] sm:$0xff]  ;;  %v112_v26 = vld [vmem:[%s3526_s0 + $0x310] sm:$0xff] }
  0x89   :  { %1012 = vmatmul.mubr.f32.gmra.mrb[2].mxu0 %v29_v42  ;;  %1636 = vmatpush1.bf16.msra.mxu1 %v2309_v35  ;;  %v44_v35 = vld [vmem:[%s3526_s0 + $0xf0] sm:$0xff]  ;;  %v1609_v42 = vpack.c.bf16 %v436_v32, %v434_v31  ;;  %v1611_v50 = vpack.c.bf16 %v441_v40, %v439_v9  ;;  %v110_v25 = vld [vmem:[%s3526_s0 + $0x300] sm:$0xff]  ;;  %v129_v31 = vld [vmem:[%s3526_s0 + $0x398] sm:$0xff] }
  0x8a   :  { %1594 = vmatpush1.bf16.msra.mxu0 %v1593_v45  ;;  %695 = vmatprep.mubr.f32.mxu1 %v35_v19  ;;  %v438_v45 = vld [vmem:[%s3525_s1 + $0x8c0] sm:$0xff]  ;;  %v440_v19 = vld [vmem:[%s3525_s1 + $0x8d0] sm:$0xff]  ;;  %v139_v9 = vld [vmem:[%s3526_s0 + $0x3e8] sm:$0xff] }
  0x8b   :  { %1017 = vmatprep.mubr.f32.mxu0 %v39_v52  ;;  %1621 = vmatprep.subr.bf16.mxu1 %v2330_v43  ;;  %v43_v43 = vld [vmem:[%s3526_s0 + $0xe8] sm:$0xff]  ;;  %v1613_v55 = vpack.c.bf16 %v440_v19, %v438_v45  ;;  %v128_v32 = vld [vmem:[%s3526_s0 + $0x390] sm:$0xff]  ;;  %v157_v19 = vld [vmem:[%s3526_s0 + $0x478] sm:$0xff] }
  0x8c   :  { %696 = vmatmul.mubr.f32.gmra.mrb[4].mxu1 %v34_v27  ;;  %1596 = vmatprep.subr.bf16.mxu0 %v1595_v53  ;;  %v443_v52 = vld [vmem:[%s3525_s1 + $0x8e8] sm:$0xff]  ;;  %v445_v53 = vld [vmem:[%s3525_s1 + $0x8f8] sm:$0xff]  ;;  %v74_v27 = vld [vmem:[%s3526_s0 + $0x1e0] sm:$0xff] }
  0x8d   :  { %1018 = vmatmul.mubr.f32.gmra.mrb[4].mxu0 %v38_v58  ;;  %1637 = vmatpush1.bf16.msra.mxu1 %v2351_v51  ;;  %v53_v51 = vld [vmem:[%s3526_s0 + $0x138] sm:$0xff]  ;;  %v444_v58 = vld [vmem:[%s3525_s1 + $0x8f0] sm:$0xff]  ;;  %v147_v40 = vld [vmem:[%s3526_s0 + $0x428] sm:$0xff] }
  0x8e   :  { %1598 = vmatpush1.bf16.msra.mxu0 %v1597_v61  ;;  %701 = vmatprep.mubr.f32.mxu1 %v44_v35  ;;  %v84_v61 = vld [vmem:[%s3526_s0 + $0x230] sm:$0xff]  ;;  %v1615_v35 = vpack.c.bf16 %v445_v53, %v443_v52  ;;  %v1617_v1 = vpack.c.bf16 %v444_v58, %v442_v56  ;;  %v155_v45 = vld [vmem:[%s3526_s0 + $0x468] sm:$0xff] }
  0x8f   :  { %1023 = vmatprep.mubr.f32.mxu0 %v48_v4  ;;  %1622 = vmatprep.subr.bf16.mxu1 %v2372_v59  ;;  %v52_v59 = vld [vmem:[%s3526_s0 + $0x130] sm:$0xff]  ;;  %v89_v4 = vld [vmem:[%s3526_s0 + $0x258] sm:$0xff] }
  0x90   :  { %702 = vmatmul.mubr.f32.gmra.mrb[6].mxu1 %v43_v43  ;;  %1600 = vmatprep.subr.bf16.mxu0 %v1599_v5  ;;  %v22_v5 = vld [vmem:[%s3526_s0 + $0x40] sm:$0xff] }
  0x91   :  { %1024 = vmatmul.mubr.f32.gmra.mrb[6].mxu0 %v47_v14  ;;  %1638 = vmatpush1.bf16.msra.mxu1 %v2393_v3  ;;  %v62_v3 = vld [vmem:[%s3526_s0 + $0x180] sm:$0xff]  ;;  %v49_v14 = vld [vmem:[%s3526_s0 + $0x118] sm:$0xff] }
  0x92   :  { %1602 = vmatpush1.bf16.msra.mxu0 %v1601_v15  ;;  %707 = vmatprep.mubr.f32.mxu1 %v53_v51  ;;  %v98_v43 = vld [vmem:[%s3526_s0 + $0x2a0] sm:$0xff]  ;;  %v67_v51 = vld [vmem:[%s3526_s0 + $0x1a8] sm:$0xff] }
  0x93   :  { %1029 = vmatprep.mubr.f32.mxu0 %v57_v18  ;;  %1623 = vmatprep.subr.bf16.mxu1 %v2414_v12  ;;  %v61_v12 = vld [vmem:[%s3526_s0 + $0x178] sm:$0xff]  ;;  %v58_v15 = vld [vmem:[%s3526_s0 + $0x160] sm:$0xff] }
  0x94   :  { %708 = vmatmul.mubr.f32.gmra.mrb[8].mxu1 %v52_v59  ;;  %1604 = vmatprep.subr.bf16.mxu0 %v1603_v22  ;;  %v94_v18 = vld [vmem:[%s3526_s0 + $0x280] sm:$0xff]  ;;  %v103_v22 = vld [vmem:[%s3526_s0 + $0x2c8] sm:$0xff] }
  0x95   :  { %1030 = vmatmul.mubr.f32.gmra.mrb[8].mxu0 %v56_v28  ;;  %1639 = vmatpush1.bf16.msra.mxu1 %v2435_v21  ;;  %v71_v21 = vld [vmem:[%s3526_s0 + $0x1c8] sm:$0xff]  ;;  %v120_v28 = vld [vmem:[%s3526_s0 + $0x350] sm:$0xff] }
  0x96   :  { %1606 = vmatpush1.bf16.msra.mxu0 %v1605_v29  ;;  %713 = vmatprep.mubr.f32.mxu1 %v62_v3  ;;  %v111_v59 = vld [vmem:[%s3526_s0 + $0x308] sm:$0xff]  ;;  %v121_v3 = vld [vmem:[%s3526_s0 + $0x358] sm:$0xff] }
  0x97   :  { %1035 = vmatprep.mubr.f32.mxu0 %v66_v37  ;;  %1624 = vmatprep.subr.bf16.mxu1 %v2456_v30  ;;  %v70_v30 = vld [vmem:[%s3526_s0 + $0x1c0] sm:$0xff]  ;;  %v119_v29 = vld [vmem:[%s3526_s0 + $0x348] sm:$0xff] }
  0x98   :  { %714 = vmatmul.mubr.f32.gmra.mrb[10].mxu1 %v61_v12  ;;  %1608 = vmatprep.subr.bf16.mxu0 %v1607_v38  ;;  %v130_v37 = vld [vmem:[%s3526_s0 + $0x3a0] sm:$0xff]  ;;  %v137_v12 = vld [vmem:[%s3526_s0 + $0x3d8] sm:$0xff] }
  0x99   :  { %1036 = vmatmul.mubr.f32.gmra.mrb[10].mxu0 %v65_v41  ;;  %1640 = vmatpush1.bf16.msra.mxu1 %v2477_v39  ;;  %v80_v39 = vld [vmem:[%s3526_s0 + $0x210] sm:$0xff]  ;;  %v138_v38 = vld [vmem:[%s3526_s0 + $0x3e0] sm:$0xff] }
  0x9a   :  { %1610 = vmatpush1.bf16.msra.mxu0 %v1609_v42  ;;  %719 = vmatprep.mubr.f32.mxu1 %v71_v21  ;;  %v146_v41 = vld [vmem:[%s3526_s0 + $0x420] sm:$0xff]  ;;  %v148_v42 = vld [vmem:[%s3526_s0 + $0x430] sm:$0xff] }
  0x9b   :  { %1041 = vmatprep.mubr.f32.mxu0 %v75_v46  ;;  %1625 = vmatprep.subr.bf16.mxu1 %v2498_v48  ;;  %v79_v48 = vld [vmem:[%s3526_s0 + $0x208] sm:$0xff]  ;;  %v156_v21 = vld [vmem:[%s3526_s0 + $0x470] sm:$0xff] }
  0x9c   :  { %720 = vmatmul.mubr.f32.gmra.mrb[12].mxu1 %v70_v30  ;;  %1612 = vmatprep.subr.bf16.mxu0 %v1611_v50 }
  0x9d   :  { %1042 = vmatmul.mubr.f32.gmra.mrb[12].mxu0 %v74_v27  ;;  %1641 = vmatpush1.bf16.msra.mxu1 %v2519_v57  ;;  %v88_v57 = vld [vmem:[%s3526_s0 + $0x250] sm:$0xff] }
  0x9e   :  { %1614 = vmatpush1.bf16.msra.mxu0 %v1613_v55  ;;  %725 = vmatprep.mubr.f32.mxu1 %v80_v39 }
  0x9f   :  { %1047 = vmatprep.mubr.f32.mxu0 %v84_v61  ;;  %1626 = vmatprep.subr.bf16.mxu1 %v2540_v2  ;;  %v1812_v2 = vmov 0.0  }
  0xa0   :  { %726 = vmatmul.mubr.f32.gmra.mrb[14].mxu1 %v79_v48  ;;  %1616 = vmatprep.subr.bf16.mxu0 %v1615_v35 }
  0xa1   :  { %1048 = vmatmul.mubr.f32.gmra.mrb[14].mxu0 %v83_v63  ;;  %1642 = vmatpush1.bf16.msra.mxu1 %v2561_v13  ;;  %v97_v13 = vld [vmem:[%s3526_s0 + $0x298] sm:$0xff] }
  0xa2   :  { %1618 = vmatpush1.bf16.msra.mxu0 %v1617_v1  ;;  %731 = vmatprep.mubr.f32.mxu1 %v89_v4 }
  0xa3   :  { %1166 = vmatprep.mubr.f32.mxu0 %v1812_v2  ;;  %1627 = vmatprep.subr.bf16.mxu1 %v2582_v23  ;;  %v107_v23 = vld [vmem:[%s3526_s0 + $0x2e8] sm:$0xff] }
  0xa4   :  { %732 = vmatmul.mubr.f32.gmra.mrb[16].mxu1 %v88_v57 }
  0xa5   :  { %1167 = vmatmul.mubr.f32.vlgmr.msra.gmra.mrb[0].mxu0 %v22_v5  ;;  %1643 = vmatpush1.bf16.msra.mxu1 %v2603_v33  ;;  %v106_v33 = vld [vmem:[%s3526_s0 + $0x2e0] sm:$0xff] }
  0xa6   :  { %737 = vmatprep.mubr.f32.mxu1 %v98_v43  ;;  %1172 = vmatprep.mubr.f32.mxu0 %v1812_v2 }
  0xa7   :  { %1628 = vmatprep.subr.bf16.mxu1 %v2624_v44  ;;  %v116_v44 = vld [vmem:[%s3526_s0 + $0x330] sm:$0xff] }
  0xa8   :  { %738 = vmatmul.mubr.f32.gmra.mrb[18].mxu1 %v97_v13 }
  0xa9   :  { %1173 = vmatmul.mubr.f32.gmra.mrb[2].mxu0 %v31_v6  ;;  %1644 = vmatpush1.bf16.msra.mxu1 %v2645_v54  ;;  %v115_v54 = vld [vmem:[%s3526_s0 + $0x328] sm:$0xff] }
  0xaa   :  { %743 = vmatprep.mubr.f32.mxu1 %v107_v23  ;;  %1178 = vmatprep.mubr.f32.mxu0 %v1812_v2 }
  0xab   :  { %1629 = vmatprep.subr.bf16.mxu1 %v2666_v0  ;;  %v125_v0 = vld [vmem:[%s3526_s0 + $0x378] sm:$0xff] }
  0xac   :  { %744 = vmatmul.mubr.f32.gmra.mrb[20].mxu1 %v106_v33 }
  0xad   :  { %1179 = vmatmul.mubr.f32.gmra.mrb[4].mxu0 %v40_v10  ;;  %1645 = vmatpush1.bf16.msra.mxu1 %v2687_v11  ;;  %v124_v11 = vld [vmem:[%s3526_s0 + $0x370] sm:$0xff]  ;;  %v448_v10 = vlaneseq }
  0xae   :  { %749 = vmatprep.mubr.f32.mxu1 %v116_v44  ;;  %1184 = vmatprep.mubr.f32.mxu0 %v1812_v2 }
  0xaf   :  { %1630 = vmatprep.subr.bf16.mxu1 %v2708_v24  ;;  %v134_v24 = vld [vmem:[%s3526_s0 + $0x3c0] sm:$0xff] }
  0xb0   :  { %750 = vmatmul.mubr.f32.gmra.mrb[22].mxu1 %v115_v54 }
  0xb1   :  { %1185 = vmatmul.mubr.f32.gmra.mrb[6].mxu0 %v49_v14  ;;  %1646 = vmatpush1.bf16.msra.mxu1 %v2729_v36  ;;  %v133_v36 = vld [vmem:[%s3526_s0 + $0x3b8] sm:$0xff]  ;;  %v449_v14 = vshrl.u32 %v448_v10, 7 }
  0xb2   :  { %755 = vmatprep.mubr.f32.mxu1 %v125_v0  ;;  %1190 = vmatprep.mubr.f32.mxu0 %v1812_v2 }
  0xb3   :  { %1631 = vmatprep.subr.bf16.mxu1 %v2750_v47  ;;  %v143_v47 = vld [vmem:[%s3526_s0 + $0x408] sm:$0xff] }
  0xb4   :  { %756 = vmatmul.mubr.f32.gmra.mrb[24].mxu1 %v124_v11 }
  0xb5   :  { %1191 = vmatmul.mubr.f32.gmra.mrb[8].mxu0 %v58_v15  ;;  %1647 = vmatpush1.bf16.msra.mxu1 %v2771_v60  ;;  %v142_v60 = vld [vmem:[%s3526_s0 + $0x400] sm:$0xff]  ;;  %v450_v15 = vsub.s32 0, %v449_v14 }
  0xb6   :  { %761 = vmatprep.mubr.f32.mxu1 %v134_v24  ;;  %1196 = vmatprep.mubr.f32.mxu0 %v1812_v2 }
  0xb7   :  { %1632 = vmatprep.subr.bf16.mxu1 %v2792_v7  ;;  %v152_v7 = vld [vmem:[%s3526_s0 + $0x450] sm:$0xff] }
  0xb8   :  { %762 = vmatmul.mubr.f32.gmra.mrb[26].mxu1 %v133_v36  ;;  %v446_v36 = vld [vmem:[%s3527_s2] sm:$0x3] }
  0xb9   :  { %1197 = vmatmul.mubr.f32.gmra.mrb[10].mxu0 %v67_v51  ;;  %1648 = vmatpush1.bf16.msra.mxu1 %v2813_v20  ;;  %v151_v20 = vld [vmem:[%s3526_s0 + $0x448] sm:$0xff]  ;;  %v454_v51 = vsub.s32 1, %v449_v14 }
  0xba   :  { %767 = vmatprep.mubr.f32.mxu1 %v143_v47  ;;  %1202 = vmatprep.mubr.f32.mxu0 %v1812_v2 }
  0xbb   :  { %1633 = vmatprep.subr.bf16.mxu1 %v2834_v34  ;;  %v93_v34 = vld [vmem:[%s3526_s0 + $0x278] sm:$0xff] }
  0xbc   :  { %768 = vmatmul.mubr.f32.gmra.mrb[28].mxu1 %v142_v60  ;;  %v3318_v60 = vrot.slane %v446_v36, %v450_v15 }
  0xbd   :  { %1203 = vmatmul.mubr.f32.gmra.mrb[12].mxu0 %v76_v16  ;;  %1649 = vmatpush1.bf16.msra.mxu1 %v2855_v49  ;;  %v92_v49 = vld [vmem:[%s3526_s0 + $0x270] sm:$0xff] }
  0xbe   :  { %773 = vmatprep.mubr.f32.mxu1 %v152_v7  ;;  %1208 = vmatprep.mubr.f32.mxu0 %v1812_v2  ;;  %v3322_v7 = vrot.slane %v446_v36, %v454_v51 }
  0xbf   :  { %1634 = vmatprep.subr.bf16.mxu1 %v2876_v62  ;;  %v102_v62 = vld [vmem:[%s3526_s0 + $0x2c0] sm:$0xff] }
  0xc0   :  { %774 = vmatmul.mubr.f32.gmra.mrb[30].mxu1 %v151_v20 }
  0xc1   :  { %1209 = vmatmul.mubr.f32.gmra.mrb[14].mxu0 %v85_v17  ;;  %1650 = vmatpush1.bf16.msra.mxu1 %v2891_v8  ;;  %v101_v8 = vld [vmem:[%s3526_s0 + $0x2b8] sm:$0xff] }
  0xc2   :  { %1053 = vmatprep.mubr.f32.mxu1 %v93_v34  ;;  %1214 = vmatprep.mubr.f32.mxu0 %v1812_v2 }
  0xc4   :  { %1054 = vmatmul.mubr.f32.vlgmr.msra.gmra.mrb[32].mxu1 %v92_v49 }
  0xc5   :  { %1215 = vmatmul.mubr.f32.gmra.mrb[32].mxu0 %v94_v18  ;;  %1059 = vmatprep.mubr.f32.mxu1 %v102_v62 }
  0xc6   :  { %1220 = vmatprep.mubr.f32.mxu0 %v1812_v2 }
  0xc8   :  { %1060 = vmatmul.mubr.f32.gmra.mrb[34].mxu1 %v101_v8 }
  0xc9   :  { %1221 = vmatmul.mubr.f32.gmra.mrb[34].mxu0 %v103_v22  ;;  %1065 = vmatprep.mubr.f32.mxu1 %v111_v59 }
  0xca   :  { %1226 = vmatprep.mubr.f32.mxu0 %v1812_v2 }
  0xcc   :  { %1066 = vmatmul.mubr.f32.gmra.mrb[36].mxu1 %v110_v25 }
  0xcd   :  { %1227 = vmatmul.mubr.f32.gmra.mrb[36].mxu0 %v112_v26  ;;  %1071 = vmatprep.mubr.f32.mxu1 %v120_v28 }
  0xce   :  { %1232 = vmatprep.mubr.f32.mxu0 %v1812_v2 }
  0xd0   :  { %1072 = vmatmul.mubr.f32.gmra.mrb[38].mxu1 %v119_v29 }
  0xd1   :  { %1233 = vmatmul.mubr.f32.gmra.mrb[38].mxu0 %v121_v3  ;;  %1077 = vmatprep.mubr.f32.mxu1 %v129_v31 }
  0xd2   :  { %1238 = vmatprep.mubr.f32.mxu0 %v1812_v2 }
  0xd4   :  { %1078 = vmatmul.mubr.f32.gmra.mrb[40].mxu1 %v128_v32 }
  0xd5   :  { %1239 = vmatmul.mubr.f32.gmra.mrb[40].mxu0 %v130_v37  ;;  %1083 = vmatprep.mubr.f32.mxu1 %v138_v38 }
  0xd6   :  { %1244 = vmatprep.mubr.f32.mxu0 %v1812_v2 }
  0xd8   :  { %1084 = vmatmul.mubr.f32.gmra.mrb[42].mxu1 %v137_v12 }
  0xd9   :  { %1245 = vmatmul.mubr.f32.gmra.mrb[42].mxu0 %v139_v9  ;;  %1089 = vmatprep.mubr.f32.mxu1 %v147_v40 }
  0xda   :  { %1250 = vmatprep.mubr.f32.mxu0 %v1812_v2 }
  0xdc   :  { %1090 = vmatmul.mubr.f32.gmra.mrb[44].mxu1 %v146_v41 }
  0xdd   :  { %1251 = vmatmul.mubr.f32.gmra.mrb[44].mxu0 %v148_v42  ;;  %1095 = vmatprep.mubr.f32.mxu1 %v156_v21 }
  0xde   :  { %1256 = vmatprep.mubr.f32.mxu0 %v1812_v2 }
  0xe0   :  { %1096 = vmatmul.mubr.f32.gmra.mrb[46].mxu1 %v155_v45 }
  0xe1   :  { %1257 = vmatmul.mubr.f32.gmra.mrb[46].mxu0 %v157_v19 }
 0x138   :  { %v894_v46 = vpop.f32.mrb[16].mxu0 }
 0x139   :  { %v896_v50 = vpop.f32.mrb[17].mxu0 }
 0x13c   :  { %v3273_v30 = vpop.f32.mrb[18].mxu0 }
 0x13d   :  { %v3275_v52 = vpop.f32.mrb[19].mxu0 }
 0x140   :  { %v3277_v53 = vpop.f32.mrb[20].mxu0 }
 0x141   :  { %v3279_v27 = vpop.f32.mrb[21].mxu0 }
 0x144   :  { %v3281_v55 = vpop.f32.mrb[22].mxu0 }
 0x145   :  { %v3283_v39 = vpop.f32.mrb[23].mxu0 }
 0x148   :  { %v3285_v56 = vpop.f32.mrb[24].mxu0 }
 0x149   :  { %v3287_v58 = vpop.f32.mrb[25].mxu0 }
 0x14c   :  { %v3289_v61 = vpop.f32.mrb[26].mxu0 }
 0x14d   :  { %v3291_v35 = vpop.f32.mrb[27].mxu0 }
 0x150   :  { %v3293_v48 = vpop.f32.mrb[28].mxu0 }
 0x151   :  { %v3295_v63 = vpop.f32.mrb[29].mxu0 }
 0x154   :  { %v3297_v1 = vpop.f32.mrb[30].mxu0 }
 0x155   :  { %v3299_v4 = vpop.f32.mrb[31].mxu0 }
 0x157   :  { %v685_v57 = vpop.f32.mrb[0].mxu1 }
 0x158   :  { %v687_v5 = vpop.f32.mrb[1].mxu1  ;;  %v1651_v17 = vadd.f32 %v685_v57, %v3318_v60 }
 0x159   :  { %v1653_v49 = vadd.f32 %v687_v5, %v3322_v7 }
 0x15b   :  { %v691_v2 = vpop.f32.mrb[2].mxu1 }
 0x15c   :  { %v693_v43 = vpop.f32.mrb[3].mxu1  ;;  %v1655_v29 = vadd.f32 %v691_v2, %v3318_v60 }
 0x15d   :  { %v1657_v37 = vadd.f32 %v693_v43, %v3322_v7 }
 0x15f   :  { %v697_v13 = vpop.f32.mrb[4].mxu1 }
 0x160   :  { %v699_v6 = vpop.f32.mrb[5].mxu1 }
 0x161   :  { %v1661_v2 = vadd.f32 %v699_v6, %v3322_v7 }
 0x163   :  { %v703_v23 = vpop.f32.mrb[6].mxu1 }
 0x164   :  { %v3301_v33 = vpop.f32.mrb[7].mxu1  ;;  %v1663_v51 = vadd.f32 %v703_v23, %v3318_v60 }
 0x167   :  { %v3303_v44 = vpop.f32.mrb[8].mxu1 }
 0x168   :  { %v3305_v54 = vpop.f32.mrb[9].mxu1 }
 0x16b   :  { %v3307_v0 = vpop.f32.mrb[10].mxu1 }
 0x16c   :  { %v3309_v11 = vpop.f32.mrb[11].mxu1 }
 0x16f   :  { %v3311_v24 = vpop.f32.mrb[12].mxu1 }
 0x170   :  { %v3316_v47 = vpop.f32.mrb[13].mxu1 }
 0x173   :  { %v3320_v16 = vpop.f32.mrb[14].mxu1 }
 0x174   :  { %v3324_v20 = vpop.f32.mrb[15].mxu1 }
 0x177   :  { %v733_v34 = vpop.f32.mrb[16].mxu1 }
 0x178   :  { %v1683_v18 = vadd.f32 %v733_v34, %v3318_v60  ;;  %v1168_v62 = vpop.f32.mrb[0].mxu0  ;;  %v735_v8 = vpop.f32.mrb[17].mxu1 }
 0x179   :  { %v1652_v22 = vadd.f32 %v1651_v17, %v1168_v62  ;;  %v1687_v59 = vadd.f32 %v735_v8, %v3322_v7  ;;  %v1170_v25 = vpop.f32.mrb[1].mxu0 }
 0x17a   :  { %v1654_v26 = vadd.f32 %v1653_v49, %v1170_v25  ;;  %v3330_v28 = vadd.f32 %v1683_v18, %v894_v46  ;;  %v1659_v46 = vadd.f32 %v697_v13, %v3318_v60  ;;  %v1665_v18 = vadd.f32 %v3301_v33, %v3322_v7 }
 0x17b   :  { %v1263_v3 = vmax.f32 %v1652_v22, 0.0  ;;  %v739_v31 = vpop.f32.mrb[18].mxu1  ;;  %v3333_v32 = vadd.f32 %v1687_v59, %v896_v50 }
 0x17c   :  { %v1264_v38 = vmax.f32 %v1654_v26, 0.0  ;;  %v1691_v12 = vadd.f32 %v739_v31, %v3318_v60  ;;  %v1174_v9 = vpop.f32.mrb[2].mxu0  ;;  %v741_v40 = vpop.f32.mrb[19].mxu1  ;;  %v1667_v26 = vadd.f32 %v3303_v44, %v3318_v60 }
 0x17d   :  { %1295 = vst [vmem:[%s3528_s3] sm:$0xff] %v1263_v3  ;;  %v1656_v41 = vadd.f32 %v1655_v29, %v1174_v9  ;;  %v1695_v42 = vadd.f32 %v741_v40, %v3322_v7  ;;  %v1176_v21 = vpop.f32.mrb[3].mxu0 }
 0x17e   :  { %1296 = vst [vmem:[%s3528_s3 + $0x8] sm:$0xff] %v1264_v38  ;;  %v1658_v45 = vadd.f32 %v1657_v37, %v1176_v21  ;;  %v3345_v19 = vadd.f32 %v1691_v12, %v3273_v30  ;;  %v1669_v37 = vadd.f32 %v3305_v54, %v3322_v7 }
 0x17f   :  { %v1265_v50 = vmax.f32 %v1656_v41, 0.0  ;;  %v745_v57 = vpop.f32.mrb[20].mxu1  ;;  %v3349_v5 = vadd.f32 %v1695_v42, %v3275_v52  ;;  %v1671_v42 = vadd.f32 %v3307_v0, %v3318_v60 }
 0x180   :  { %v1266_v43 = vmax.f32 %v1658_v45, 0.0  ;;  %v1699_v10 = vadd.f32 %v745_v57, %v3318_v60  ;;  %v1180_v14 = vpop.f32.mrb[4].mxu0  ;;  %v747_v15 = vpop.f32.mrb[21].mxu1 }
 0x181   :  { %1297 = vst [vmem:[%s3528_s3 + $0x10] sm:$0xff] %v1265_v50  ;;  %v1660_v30 = vadd.f32 %v1659_v46, %v1180_v14  ;;  %v1703_v36 = vadd.f32 %v747_v15, %v3322_v7  ;;  %v1182_v13 = vpop.f32.mrb[5].mxu0  ;;  %v1673_v50 = vadd.f32 %v3309_v11, %v3322_v7  ;;  %v1675_v15 = vadd.f32 %v3311_v24, %v3318_v60 }
 0x182   :  { %1298 = vst [vmem:[%s3528_s3 + $0x18] sm:$0xff] %v1266_v43  ;;  %v1662_v52 = vadd.f32 %v1661_v2, %v1182_v13  ;;  %v3361_v6 = vadd.f32 %v1699_v10, %v3277_v53 }
 0x183   :  { %v1267_v17 = vmax.f32 %v1660_v30, 0.0  ;;  %v751_v34 = vpop.f32.mrb[22].mxu1  ;;  %v3365_v49 = vadd.f32 %v1703_v36, %v3279_v27 }
 0x184   :  { %v1268_v62 = vmax.f32 %v1662_v52, 0.0  ;;  %v1707_v8 = vadd.f32 %v751_v34, %v3318_v60  ;;  %v1186_v22 = vpop.f32.mrb[6].mxu0  ;;  %v753_v59 = vpop.f32.mrb[23].mxu1  ;;  %v1677_v52 = vadd.f32 %v3316_v47, %v3322_v7 }
 0x185   :  { %1299 = vst [vmem:[%s3528_s3 + $0x20] sm:$0xff] %v1267_v17  ;;  %v1664_v53 = vadd.f32 %v1663_v51, %v1186_v22  ;;  %v1711_v23 = vadd.f32 %v753_v59, %v3322_v7  ;;  %v1188_v25 = vpop.f32.mrb[7].mxu0 }
 0x186   :  { %1300 = vst [vmem:[%s3528_s3 + $0x28] sm:$0xff] %v1268_v62  ;;  %v1666_v27 = vadd.f32 %v1665_v18, %v1188_v25  ;;  %v3378_v33 = vadd.f32 %v1707_v8, %v3281_v55  ;;  %v1679_v8 = vadd.f32 %v3320_v16, %v3318_v60 }
 0x187   :  { %v1269_v29 = vmax.f32 %v1664_v53, 0.0  ;;  %v757_v3 = vpop.f32.mrb[24].mxu1  ;;  %v3383_v31 = vadd.f32 %v1711_v23, %v3283_v39  ;;  %v1681_v23 = vadd.f32 %v3324_v20, %v3322_v7 }
 0x188   :  { %v1270_v38 = vmax.f32 %v1666_v27, 0.0  ;;  %v1715_v12 = vadd.f32 %v757_v3, %v3318_v60  ;;  %v1192_v9 = vpop.f32.mrb[8].mxu0  ;;  %v759_v40 = vpop.f32.mrb[25].mxu1 }
 0x189   :  { %1301 = vst [vmem:[%s3528_s3 + $0x30] sm:$0xff] %v1269_v29  ;;  %v1668_v55 = vadd.f32 %v1667_v26, %v1192_v9  ;;  %v1719_v44 = vadd.f32 %v759_v40, %v3322_v7  ;;  %v1194_v41 = vpop.f32.mrb[9].mxu0 }
 0x18a   :  { %1302 = vst [vmem:[%s3528_s3 + $0x38] sm:$0xff] %v1270_v38  ;;  %v1670_v39 = vadd.f32 %v1669_v37, %v1194_v41  ;;  %v3396_v54 = vadd.f32 %v1715_v12, %v3285_v56 }
 0x18b   :  { %v1271_v21 = vmax.f32 %v1668_v55, 0.0  ;;  %v763_v45 = vpop.f32.mrb[26].mxu1  ;;  %v3401_v46 = vadd.f32 %v1719_v44, %v3287_v58 }
 0x18c   :  { %v1272_v57 = vmax.f32 %v1670_v39, 0.0  ;;  %v1723_v2 = vadd.f32 %v763_v45, %v3318_v60  ;;  %v1198_v43 = vpop.f32.mrb[10].mxu0  ;;  %v765_v10 = vpop.f32.mrb[27].mxu1 }
 0x18d   :  { %1303 = vst [vmem:[%s3528_s3 + $0x40] sm:$0xff] %v1271_v21  ;;  %v1672_v56 = vadd.f32 %v1671_v42, %v1198_v43  ;;  %v1727_v0 = vadd.f32 %v765_v10, %v3322_v7  ;;  %v1200_v14 = vpop.f32.mrb[11].mxu0 }
 0x18e   :  { %1304 = vst [vmem:[%s3528_s3 + $0x48] sm:$0xff] %v1272_v57  ;;  %v1674_v58 = vadd.f32 %v1673_v50, %v1200_v14  ;;  %v3414_v11 = vadd.f32 %v1723_v2, %v3289_v61 }
 0x18f   :  { %v1273_v30 = vmax.f32 %v1672_v56, 0.0  ;;  %v769_v36 = vpop.f32.mrb[28].mxu1  ;;  %v3419_v13 = vadd.f32 %v1727_v0, %v3291_v35 }
 0x190   :  { %v1274_v51 = vmax.f32 %v1674_v58, 0.0  ;;  %v1731_v17 = vadd.f32 %v769_v36, %v3318_v60  ;;  %v1204_v34 = vpop.f32.mrb[12].mxu0  ;;  %v771_v18 = vpop.f32.mrb[29].mxu1 }
 0x191   :  { %1305 = vst [vmem:[%s3528_s3 + $0x50] sm:$0xff] %v1273_v30  ;;  %v1676_v61 = vadd.f32 %v1675_v15, %v1204_v34  ;;  %v1735_v24 = vadd.f32 %v771_v18, %v3322_v7  ;;  %v1206_v62 = vpop.f32.mrb[13].mxu0 }
 0x192   :  { %1306 = vst [vmem:[%s3528_s3 + $0x58] sm:$0xff] %v1274_v51  ;;  %v1678_v35 = vadd.f32 %v1677_v52, %v1206_v62  ;;  %v3432_v47 = vadd.f32 %v1731_v17, %v3293_v48 }
 0x193   :  { %v1275_v22 = vmax.f32 %v1676_v61, 0.0  ;;  %v775_v59 = vpop.f32.mrb[30].mxu1  ;;  %v3437_v53 = vadd.f32 %v1735_v24, %v3295_v63 }
 0x194   :  { %v1276_v25 = vmax.f32 %v1678_v35, 0.0  ;;  %v1739_v27 = vadd.f32 %v775_v59, %v3318_v60  ;;  %v1210_v26 = vpop.f32.mrb[14].mxu0  ;;  %v777_v29 = vpop.f32.mrb[31].mxu1 }
 0x195   :  { %1307 = vst [vmem:[%s3528_s3 + $0x60] sm:$0xff] %v1275_v22  ;;  %v1680_v48 = vadd.f32 %v1679_v8, %v1210_v26  ;;  %v1743_v16 = vadd.f32 %v777_v29, %v3322_v7  ;;  %v1212_v3 = vpop.f32.mrb[15].mxu0 }
 0x196   :  { %1308 = vst [vmem:[%s3528_s3 + $0x68] sm:$0xff] %v1276_v25  ;;  %v1682_v63 = vadd.f32 %v1681_v23, %v1212_v3  ;;  %v3450_v20 = vadd.f32 %v1739_v27, %v3297_v1 }
 0x197   :  { %v1277_v37 = vmax.f32 %v1680_v48, 0.0  ;;  %v1055_v60 = vpop.f32.mrb[32].mxu1  ;;  %v3453_v38 = vadd.f32 %v1743_v16, %v3299_v4 }
 0x198   :  { %v1278_v12 = vmax.f32 %v1682_v63, 0.0  ;;  %v1685_v9 = vadd.f32 %v3330_v28, %v1055_v60  ;;  %v1057_v40 = vpop.f32.mrb[33].mxu1  ;;  %v1216_v55 = vpop.f32.mrb[32].mxu0 }
 0x199   :  { %1309 = vst [vmem:[%s3528_s3 + $0x70] sm:$0xff] %v1277_v37  ;;  %v1689_v7 = vadd.f32 %v3333_v32, %v1057_v40  ;;  %v1218_v44 = vpop.f32.mrb[33].mxu0 }
 0x19a   :  { %1310 = vst [vmem:[%s3528_s3 + $0x78] sm:$0xff] %v1278_v12  ;;  %v1686_v1 = vadd.f32 %v1685_v9, %v1216_v55 }
 0x19b   :  { %v1690_v41 = vadd.f32 %v1689_v7, %v1218_v44  ;;  %v1061_v4 = vpop.f32.mrb[34].mxu1 }
 0x19c   :  { %v1279_v39 = vmax.f32 %v1686_v1, 0.0  ;;  %v1693_v42 = vadd.f32 %v3345_v19, %v1061_v4  ;;  %v1063_v28 = vpop.f32.mrb[35].mxu1  ;;  %v1222_v21 = vpop.f32.mrb[34].mxu0 }
 0x19d   :  { %v1280_v45 = vmax.f32 %v1690_v41, 0.0  ;;  %v1697_v50 = vadd.f32 %v3349_v5, %v1063_v28  ;;  %v1224_v57 = vpop.f32.mrb[35].mxu0 }
 0x19e   :  { %1311 = vst [vmem:[%s3528_s3 + $0x80] sm:$0xff] %v1279_v39  ;;  %v1694_v32 = vadd.f32 %v1693_v42, %v1222_v21 }
 0x19f   :  { %1312 = vst [vmem:[%s3528_s3 + $0x88] sm:$0xff] %v1280_v45  ;;  %v1698_v2 = vadd.f32 %v1697_v50, %v1224_v57  ;;  %v1067_v43 = vpop.f32.mrb[36].mxu1 }
 0x1a0   :  { %v1281_v10 = vmax.f32 %v1694_v32, 0.0  ;;  %v1701_v19 = vadd.f32 %v3361_v6, %v1067_v43  ;;  %v1069_v56 = vpop.f32.mrb[37].mxu1  ;;  %v1228_v0 = vpop.f32.mrb[36].mxu0 }
 0x1a1   :  { %v1282_v14 = vmax.f32 %v1698_v2, 0.0  ;;  %v1705_v5 = vadd.f32 %v3365_v49, %v1069_v56  ;;  %v1230_v58 = vpop.f32.mrb[37].mxu0 }
 0x1a2   :  { %1313 = vst [vmem:[%s3528_s3 + $0x90] sm:$0xff] %v1281_v10  ;;  %v1702_v15 = vadd.f32 %v1701_v19, %v1228_v0 }
 0x1a3   :  { %1314 = vst [vmem:[%s3528_s3 + $0x98] sm:$0xff] %v1282_v14  ;;  %v1706_v30 = vadd.f32 %v1705_v5, %v1230_v58  ;;  %v1073_v36 = vpop.f32.mrb[38].mxu1 }
 0x1a4   :  { %v1283_v52 = vmax.f32 %v1702_v15, 0.0  ;;  %v1709_v6 = vadd.f32 %v3378_v33, %v1073_v36  ;;  %v1075_v51 = vpop.f32.mrb[39].mxu1  ;;  %v1234_v17 = vpop.f32.mrb[38].mxu0 }
 0x1a5   :  { %v1284_v34 = vmax.f32 %v1706_v30, 0.0  ;;  %v1713_v49 = vadd.f32 %v3383_v31, %v1075_v51  ;;  %v1236_v18 = vpop.f32.mrb[39].mxu0 }
 0x1a6   :  { %1315 = vst [vmem:[%s3528_s3 + $0xa0] sm:$0xff] %v1283_v52  ;;  %v1710_v61 = vadd.f32 %v1709_v6, %v1234_v17 }
 0x1a7   :  { %1316 = vst [vmem:[%s3528_s3 + $0xa8] sm:$0xff] %v1284_v34  ;;  %v1714_v24 = vadd.f32 %v1713_v49, %v1236_v18  ;;  %v1079_v62 = vpop.f32.mrb[40].mxu1 }
 0x1a8   :  { %v1285_v35 = vmax.f32 %v1710_v61, 0.0  ;;  %v1717_v33 = vadd.f32 %v3396_v54, %v1079_v62  ;;  %v1081_v8 = vpop.f32.mrb[41].mxu1  ;;  %v1240_v22 = vpop.f32.mrb[40].mxu0 }
 0x1a9   :  { %v1286_v59 = vmax.f32 %v1714_v24, 0.0  ;;  %v1721_v31 = vadd.f32 %v3401_v46, %v1081_v8  ;;  %v1242_v23 = vpop.f32.mrb[41].mxu0 }
 0x1aa   :  { %1317 = vst [vmem:[%s3528_s3 + $0xb0] sm:$0xff] %v1285_v35  ;;  %v1718_v25 = vadd.f32 %v1717_v33, %v1240_v22 }
 0x1ab   :  { %1318 = vst [vmem:[%s3528_s3 + $0xb8] sm:$0xff] %v1286_v59  ;;  %v1722_v27 = vadd.f32 %v1721_v31, %v1242_v23  ;;  %v1085_v26 = vpop.f32.mrb[42].mxu1 }
 0x1ac   :  { %v1287_v29 = vmax.f32 %v1718_v25, 0.0  ;;  %v1725_v54 = vadd.f32 %v3414_v11, %v1085_v26  ;;  %v1087_v48 = vpop.f32.mrb[43].mxu1  ;;  %v1246_v16 = vpop.f32.mrb[42].mxu0 }
 0x1ad   :  { %v1288_v3 = vmax.f32 %v1722_v27, 0.0  ;;  %v1729_v46 = vadd.f32 %v3419_v13, %v1087_v48  ;;  %v1248_v63 = vpop.f32.mrb[43].mxu0 }
 0x1ae   :  { %1319 = vst [vmem:[%s3528_s3 + $0xc0] sm:$0xff] %v1287_v29  ;;  %v1726_v37 = vadd.f32 %v1725_v54, %v1246_v16 }
 0x1af   :  { %1320 = vst [vmem:[%s3528_s3 + $0xc8] sm:$0xff] %v1288_v3  ;;  %v1730_v60 = vadd.f32 %v1729_v46, %v1248_v63  ;;  %v1091_v12 = vpop.f32.mrb[44].mxu1 }
 0x1b0   :  { %v1289_v9 = vmax.f32 %v1726_v37, 0.0  ;;  %v1733_v11 = vadd.f32 %v3432_v47, %v1091_v12  ;;  %v1093_v40 = vpop.f32.mrb[45].mxu1  ;;  %v1252_v55 = vpop.f32.mrb[44].mxu0 }
 0x1b1   :  { %v1290_v7 = vmax.f32 %v1730_v60, 0.0  ;;  %v1737_v13 = vadd.f32 %v3437_v53, %v1093_v40  ;;  %v1254_v44 = vpop.f32.mrb[45].mxu0 }
 0x1b2   :  { %1321 = vst [vmem:[%s3528_s3 + $0xd0] sm:$0xff] %v1289_v9  ;;  %v1734_v1 = vadd.f32 %v1733_v11, %v1252_v55 }
 0x1b3   :  { %1322 = vst [vmem:[%s3528_s3 + $0xd8] sm:$0xff] %v1290_v7  ;;  %v1738_v41 = vadd.f32 %v1737_v13, %v1254_v44  ;;  %v1097_v4 = vpop.f32.mrb[46].mxu1 }
 0x1b4   :  { %v1291_v39 = vmax.f32 %v1734_v1, 0.0  ;;  %v1741_v47 = vadd.f32 %v3450_v20, %v1097_v4  ;;  %v1099_v42 = vpop.f32.mrb[47].mxu1  ;;  %v1258_v28 = vpop.f32.mrb[46].mxu0 }
 0x1b5   :  { %v1292_v21 = vmax.f32 %v1738_v41, 0.0  ;;  %v1745_v53 = vadd.f32 %v3453_v38, %v1099_v42  ;;  %v1260_v45 = vpop.f32.mrb[47].mxu0 }
 0x1b6   :  { %1323 = vst [vmem:[%s3528_s3 + $0xe0] sm:$0xff] %v1291_v39  ;;  %v1742_v50 = vadd.f32 %v1741_v47, %v1258_v28 }
 0x1b7   :  { %1324 = vst [vmem:[%s3528_s3 + $0xe8] sm:$0xff] %v1292_v21  ;;  %v1746_v57 = vadd.f32 %v1745_v53, %v1260_v45 }
 0x1b8   :  { %v1293_v32 = vmax.f32 %v1742_v50, 0.0 }
 0x1b9   :  { %v1294_v2 = vmax.f32 %v1746_v57, 0.0 }
 0x1ba   :  { %1325 = vst [vmem:[%s3528_s3 + $0xf0] sm:$0xff] %v1293_v32 }
 0x1bb   :  { %1326 = vst [vmem:[%s3528_s3 + $0xf8] sm:$0xff] %v1294_v2 }

// kernel: decoder_forward.8
= control target key start
LH: loop header
LB: loop body
LE: loop exit
PB: predicated region body
PF: predicated region fallthrough
CT: control target
= control target key end

     0   :  { %s1711_s12 = smov 0   ;;  %s2427_s0 = inlined_call_operand.vmem [shape: f32[512,576], index: 0, kind: input, shape index: {}]   ;;  %s2428_s1 = inlined_call_operand.vmem [shape: f32[576,128], index: 1, kind: input, shape index: {}]   ;;  %s2429_s2 = inlined_call_operand.vmem [shape: f32[1,128], index: 2, kind: input, shape index: {}]   ;;  %s2430_s3 = inlined_call_operand.vmem [shape: f32[512,128], index: 3, kind: output, shape index: {}]  }
   0x1 LB: > { %s1308_s13 = sadd.s32 4294967295, %s1688_s12   ;;  %p1312_p0 = scmp.ge.s32.totalorder %s1688_s12, 1  ;;  %s1688_s12 = sphi %s1711_s12, %s13_s12  }
   0x2   : > { %p139_p1 = scmp.lt.s32.totalorder %s1688_s12, 3 }
   0x4   : > { %p140_p2 = pnand %p1312_p0, %p139_p1 }
   0x5   : > { %v337_v0 = vld [vmem:[%s2428_s1] sm:$0xff] (!%p140_p2)  ;;  %v338_v1 = vld [vmem:[%s2428_s1 + $0x8] sm:$0xff] (!%p140_p2)  ;;  %v1690_v3 = vmov (!%p140_p2), 0.0|0.0   ;;  %v339_v6 = vld [vmem:[%s2428_s1 + $0x10] sm:$0xff] (!%p140_p2)  ;;  %s1313_s30 = sshll.u32 (!%p140_p2), %s1308_s13, 5  ;;  %vm416_vm0 = vcmask (!%p140_p2), 523264  }
   0x6   : > { %143 = sbr.rel (%p140_p2) target bundleno = 446 (0x1be), region = 32  ;;  %v369_v2 = vld [vmem:[%s2428_s1 + $0x100] sm:$0xff] (!%p140_p2)  ;;  %1456 = vmatprep.subr.bf16.mxu0 (!%p140_p2), %v1690_v3  ;;  %1568 = vmatprep.subr.bf16.mxu1 (!%p140_p2), %v1690_v3  ;;  %v1457_v4 = vpack.c.bf16 (!%p140_p2), %v338_v1, %v337_v0  ;;  %v370_v5 = vld [vmem:[%s2428_s1 + $0x108] sm:$0xff] (!%p140_p2)  ;;  %v340_v7 = vld [vmem:[%s2428_s1 + $0x18] sm:$0xff] (!%p140_p2)  ;;  %p165_p3 = scmp.lt.s32.totalorder (!%p140_p2), %s1313_s30, 63 }
   0x7   : > { %v1739_v8 = vpack.c.bf16 (!%p140_p2), %v370_v5, %v369_v2  ;;  %v371_v9 = vld [vmem:[%s2428_s1 + $0x110] sm:$0xff] (!%p140_p2)  ;;  %v372_v10 = vld [vmem:[%s2428_s1 + $0x118] sm:$0xff] (!%p140_p2)  ;;  %v1460_v11 = vpack.c.bf16 (!%p140_p2), %v340_v7, %v339_v6  ;;  %v341_v13 = vld [vmem:[%s2428_s1 + $0x20] sm:$0xff] (!%p140_p2) }
   0x8   : > { %1458 = vmatpush1.bf16.msra.mxu0 (!%p140_p2), %v1457_v4  ;;  %v1749_v12 = vpack.c.bf16 (!%p140_p2), %v372_v10, %v371_v9  ;;  %v342_v14 = vld [vmem:[%s2428_s1 + $0x28] sm:$0xff] (!%p140_p2)  ;;  %v373_v15 = vld [vmem:[%s2428_s1 + $0x120] sm:$0xff] (!%p140_p2)  ;;  %v343_v19 = vld [vmem:[%s2428_s1 + $0x30] sm:$0xff] (!%p140_p2) }
   0x9   : > { %1584 = vmatpush1.bf16.msra.mxu1 (!%p140_p2), %v1739_v8  ;;  %1459 = vmatprep.subr.bf16.mxu0 (!%p140_p2), %v1690_v3  ;;  %v374_v16 = vld [vmem:[%s2428_s1 + $0x128] sm:$0xff] (!%p140_p2)  ;;  %v1463_v17 = vpack.c.bf16 (!%p140_p2), %v342_v14, %v341_v13  ;;  %v344_v20 = vld [vmem:[%s2428_s1 + $0x38] sm:$0xff] (!%p140_p2)  ;;  %v375_v21 = vld [vmem:[%s2428_s1 + $0x130] sm:$0xff] (!%p140_p2) }
   0xa   : > { %1569 = vmatprep.subr.bf16.mxu1 (!%p140_p2), %v1690_v3  ;;  %v1766_v18 = vpack.c.bf16 (!%p140_p2), %v374_v16, %v373_v15  ;;  %v376_v22 = vld [vmem:[%s2428_s1 + $0x138] sm:$0xff] (!%p140_p2)  ;;  %v1466_v23 = vpack.c.bf16 (!%p140_p2), %v344_v20, %v343_v19  ;;  %v345_v25 = vld [vmem:[%s2428_s1 + $0x40] sm:$0xff] (!%p140_p2)  ;;  %v346_v26 = vld [vmem:[%s2428_s1 + $0x48] sm:$0xff] (!%p140_p2) }
   0xb   : > { %v1785_v24 = vpack.c.bf16 (!%p140_p2), %v376_v22, %v375_v21  ;;  %v377_v27 = vld [vmem:[%s2428_s1 + $0x140] sm:$0xff] (!%p140_p2)  ;;  %v378_v28 = vld [vmem:[%s2428_s1 + $0x148] sm:$0xff] (!%p140_p2)  ;;  %v1469_v29 = vpack.c.bf16 (!%p140_p2), %v346_v26, %v345_v25  ;;  %v347_v31 = vld [vmem:[%s2428_s1 + $0x50] sm:$0xff] (!%p140_p2) }
   0xc   : > { %1461 = vmatpush1.bf16.msra.mxu0 (!%p140_p2), %v1460_v11  ;;  %v1803_v30 = vpack.c.bf16 (!%p140_p2), %v378_v28, %v377_v27  ;;  %v348_v32 = vld [vmem:[%s2428_s1 + $0x58] sm:$0xff] (!%p140_p2)  ;;  %v379_v33 = vld [vmem:[%s2428_s1 + $0x150] sm:$0xff] (!%p140_p2)  ;;  %v349_v37 = vld [vmem:[%s2428_s1 + $0x60] sm:$0xff] (!%p140_p2) }
   0xd   : > { %1585 = vmatpush1.bf16.msra.mxu1 %v1749_v12  ;;  %1462 = vmatprep.subr.bf16.mxu0 %v1690_v3  ;;  %s2432_s30 = smov (!%p165_p3, %s1313_s30), 63  ;;  %v380_v34 = vld [vmem:[%s2428_s1 + $0x158] sm:$0xff]  ;;  %v1472_v35 = vpack.c.bf16 %v348_v32, %v347_v31  ;;  %v350_v38 = vld [vmem:[%s2428_s1 + $0x68] sm:$0xff]  ;;  %v381_v39 = vld [vmem:[%s2428_s1 + $0x160] sm:$0xff] }
   0xe   : > { %1570 = vmatprep.subr.bf16.mxu1 %v1690_v3  ;;  %s1672_s29 = smul.u32 40, %s2432_s30  ;;  %v1825_v36 = vpack.c.bf16 %v380_v34, %v379_v33  ;;  %v382_v40 = vld [vmem:[%s2428_s1 + $0x168] sm:$0xff]  ;;  %v1475_v43 = vpack.c.bf16 %v350_v38, %v349_v37  ;;  %v351_v45 = vld [vmem:[%s2428_s1 + $0x70] sm:$0xff]  ;;  %v352_v46 = vld [vmem:[%s2428_s1 + $0x78] sm:$0xff]  ;;  %s1316_s17 = sshll.u32 %s2432_s30, 3 }
   0xf   : > { %v1844_v44 = vpack.c.bf16 %v382_v40, %v381_v39  ;;  %v383_v47 = vld [vmem:[%s2428_s1 + $0x170] sm:$0xff]  ;;  %v384_v48 = vld [vmem:[%s2428_s1 + $0x178] sm:$0xff]  ;;  %v1478_v49 = vpack.c.bf16 %v352_v46, %v351_v45  ;;  %v353_v51 = vld [vmem:[%s2428_s1 + $0x80] sm:$0xff]  ;;  %s2338_s20 = scalar_lea.vmem %s2430_s3, %s1316_s17 }
  0x10   : > { %1464 = vmatpush1.bf16.msra.mxu0 %v1463_v17  ;;  %s1821_s15 = scalar_lea.vmem %s2427_s0, %s1672_s29  ;;  %v1861_v50 = vpack.c.bf16 %v384_v48, %v383_v47  ;;  %v354_v52 = vld [vmem:[%s2428_s1 + $0x88] sm:$0xff]  ;;  %v385_v53 = vld [vmem:[%s2428_s1 + $0x180] sm:$0xff]  ;;  %v355_v57 = vld [vmem:[%s2428_s1 + $0x90] sm:$0xff] }
  0x11   : > { %1586 = vmatpush1.bf16.msra.mxu1 %v1766_v18  ;;  %1465 = vmatprep.subr.bf16.mxu0 %v1690_v3  ;;  %v178_v41 = vld [vmem:[%s1821_s15 + $0x8] sm:$0xff]  ;;  %v220_v42 = vld [vmem:[%s1821_s15 + $0x158] sm:$0xff]  ;;  %v1481_v55 = vpack.c.bf16 %v354_v52, %v353_v51  ;;  %v387_v59 = vld [vmem:[%s2428_s1 + $0x190] sm:$0xff] }
  0x12   : > { %1571 = vmatprep.subr.bf16.mxu1 %v1690_v3  ;;  %577 = vmatprep.mubr.f32.mxu0 %v178_v41  ;;  %v386_v54 = vld [vmem:[%s2428_s1 + $0x188] sm:$0xff]  ;;  %v356_v58 = vld [vmem:[%s2428_s1 + $0x98] sm:$0xff]  ;;  %v357_v63 = vld [vmem:[%s2428_s1 + $0xa0] sm:$0xff] }
  0x13   : > { %842 = vmatprep.mubr.f32.mxu1 %v220_v42  ;;  %v1878_v56 = vpack.c.bf16 %v386_v54, %v385_v53  ;;  %v388_v60 = vld [vmem:[%s2428_s1 + $0x198] sm:$0xff]  ;;  %v1484_v61 = vpack.c.bf16 %v356_v58, %v355_v57  ;;  %v358_v0 = vld [vmem:[%s2428_s1 + $0xa8] sm:$0xff]  ;;  %v389_v1 = vld [vmem:[%s2428_s1 + $0x1a0] sm:$0xff] }
  0x14   : > { %1467 = vmatpush1.bf16.msra.mxu0 %v1466_v23  ;;  %v1895_v62 = vpack.c.bf16 %v388_v60, %v387_v59  ;;  %v390_v2 = vld [vmem:[%s2428_s1 + $0x1a8] sm:$0xff]  ;;  %v1487_v4 = vpack.c.bf16 %v358_v0, %v357_v63  ;;  %v359_v6 = vld [vmem:[%s2428_s1 + $0xb0] sm:$0xff]  ;;  %v360_v7 = vld [vmem:[%s2428_s1 + $0xb8] sm:$0xff] }
  0x15   : > { %1587 = vmatpush1.bf16.msra.mxu1 %v1785_v24  ;;  %1468 = vmatprep.subr.bf16.mxu0 %v1690_v3  ;;  %v1912_v5 = vpack.c.bf16 %v390_v2, %v389_v1  ;;  %v391_v9 = vld [vmem:[%s2428_s1 + $0x1b0] sm:$0xff]  ;;  %v392_v10 = vld [vmem:[%s2428_s1 + $0x1b8] sm:$0xff]  ;;  %v1490_v11 = vpack.c.bf16 %v360_v7, %v359_v6  ;;  %v361_v14 = vld [vmem:[%s2428_s1 + $0xc0] sm:$0xff] }
  0x16   : > { %1572 = vmatprep.subr.bf16.mxu1 %v1690_v3  ;;  %v1929_v13 = vpack.c.bf16 %v392_v10, %v391_v9  ;;  %v362_v15 = vld [vmem:[%s2428_s1 + $0xc8] sm:$0xff]  ;;  %v393_v16 = vld [vmem:[%s2428_s1 + $0x1c0] sm:$0xff]  ;;  %v363_v21 = vld [vmem:[%s2428_s1 + $0xd0] sm:$0xff] }
  0x17   : > { %v394_v17 = vld [vmem:[%s2428_s1 + $0x1c8] sm:$0xff]  ;;  %v1493_v19 = vpack.c.bf16 %v362_v15, %v361_v14  ;;  %v364_v22 = vld [vmem:[%s2428_s1 + $0xd8] sm:$0xff]  ;;  %v395_v23 = vld [vmem:[%s2428_s1 + $0x1d0] sm:$0xff] }
  0x18   : > { %1470 = vmatpush1.bf16.msra.mxu0 %v1469_v29  ;;  %v1946_v20 = vpack.c.bf16 %v394_v17, %v393_v16  ;;  %v396_v25 = vld [vmem:[%s2428_s1 + $0x1d8] sm:$0xff]  ;;  %v1496_v26 = vpack.c.bf16 %v364_v22, %v363_v21  ;;  %v365_v28 = vld [vmem:[%s2428_s1 + $0xe0] sm:$0xff]  ;;  %v366_v29 = vld [vmem:[%s2428_s1 + $0xe8] sm:$0xff] }
  0x19   : > { %1588 = vmatpush1.bf16.msra.mxu1 %v1803_v30  ;;  %1471 = vmatprep.subr.bf16.mxu0 %v1690_v3  ;;  %v1963_v27 = vpack.c.bf16 %v396_v25, %v395_v23  ;;  %v397_v31 = vld [vmem:[%s2428_s1 + $0x1e0] sm:$0xff]  ;;  %v398_v32 = vld [vmem:[%s2428_s1 + $0x1e8] sm:$0xff]  ;;  %v1499_v33 = vpack.c.bf16 %v366_v29, %v365_v28  ;;  %v368_v37 = vld [vmem:[%s2428_s1 + $0xf8] sm:$0xff] }
  0x1a   : > { %1573 = vmatprep.subr.bf16.mxu1 %v1690_v3  ;;  %v1980_v34 = vpack.c.bf16 %v398_v32, %v397_v31  ;;  %v399_v38 = vld [vmem:[%s2428_s1 + $0x1f0] sm:$0xff]  ;;  %v400_v39 = vld [vmem:[%s2428_s1 + $0x1f8] sm:$0xff]  ;;  %v401_v40 = vld [vmem:[%s2428_s1 + $0x200] sm:$0xff] }
  0x1b   : > { %v402_v41 = vld [vmem:[%s2428_s1 + $0x208] sm:$0xff]  ;;  %v177_v46 = vld [vmem:[%s1821_s15] sm:$0xff]  ;;  %v403_v47 = vld [vmem:[%s2428_s1 + $0x210] sm:$0xff] }
  0x1c   : > { %1473 = vmatpush1.bf16.msra.mxu0 %v1472_v35  ;;  %v367_v35 = vld [vmem:[%s2428_s1 + $0xf0] sm:$0xff]  ;;  %v1552_v45 = vpack.c.bf16 %v402_v41, %v401_v40  ;;  %v404_v48 = vld [vmem:[%s2428_s1 + $0x218] sm:$0xff]  ;;  %v225_v52 = vld [vmem:[%s1821_s15 + $0x180] sm:$0xff] }
  0x1d   : > { %1589 = vmatpush1.bf16.msra.mxu1 %v1825_v36  ;;  %1474 = vmatprep.subr.bf16.mxu0 %v1690_v3  ;;  %v1502_v42 = vpack.c.bf16 %v368_v37, %v367_v35  ;;  %v183_v51 = vld [vmem:[%s1821_s15 + $0x30] sm:$0xff]  ;;  %v1556_v53 = vpack.c.bf16 %v404_v48, %v403_v47  ;;  %v182_v54 = vld [vmem:[%s1821_s15 + $0x28] sm:$0xff]  ;;  %v224_v58 = vld [vmem:[%s1821_s15 + $0x178] sm:$0xff] }
  0x1e   : > { %1574 = vmatprep.subr.bf16.mxu1 %v1690_v3  ;;  %v406_v57 = vld [vmem:[%s2428_s1 + $0x228] sm:$0xff]  ;;  %v188_v59 = vld [vmem:[%s1821_s15 + $0x58] sm:$0xff]  ;;  %v407_v63 = vld [vmem:[%s2428_s1 + $0x230] sm:$0xff] }
  0x1f   : > { %v230_v60 = vld [vmem:[%s1821_s15 + $0x1a8] sm:$0xff]  ;;  %v408_v0 = vld [vmem:[%s2428_s1 + $0x238] sm:$0xff]  ;;  %v229_v1 = vld [vmem:[%s1821_s15 + $0x1a0] sm:$0xff] }
  0x20   : > { %1476 = vmatpush1.bf16.msra.mxu0 %v1475_v43  ;;  %v2003_v43 = vpack.c.bf16 %v400_v39, %v399_v38  ;;  %v193_v2 = vld [vmem:[%s1821_s15 + $0x80] sm:$0xff]  ;;  %v1564_v6 = vpack.c.bf16 %v408_v0, %v407_v63  ;;  %v192_v7 = vld [vmem:[%s1821_s15 + $0x78] sm:$0xff]  ;;  %v234_v9 = vld [vmem:[%s1821_s15 + $0x1c8] sm:$0xff] }
  0x21   : > { %1590 = vmatpush1.bf16.msra.mxu1 %v1844_v44  ;;  %1477 = vmatprep.subr.bf16.mxu0 %v1690_v3  ;;  %v198_v10 = vld [vmem:[%s1821_s15 + $0xa8] sm:$0xff]  ;;  %v239_v14 = vld [vmem:[%s1821_s15 + $0x1f0] sm:$0xff]  ;;  %v245_v16 = vld [vmem:[%s1821_s15 + $0x220] sm:$0xff] }
  0x22   : > { %1575 = vmatprep.subr.bf16.mxu1 %v1690_v3  ;;  %v203_v15 = vld [vmem:[%s1821_s15 + $0xd0] sm:$0xff]  ;;  %v244_v17 = vld [vmem:[%s1821_s15 + $0x218] sm:$0xff]  ;;  %v250_v21 = vld [vmem:[%s1821_s15 + $0x248] sm:$0xff] }
  0x23   : > { %v249_v22 = vld [vmem:[%s1821_s15 + $0x240] sm:$0xff]  ;;  %v255_v25 = vld [vmem:[%s1821_s15 + $0x270] sm:$0xff]  ;;  %v218_v28 = vld [vmem:[%s1821_s15 + $0x148] sm:$0xff] }
  0x24   : > { %1479 = vmatpush1.bf16.msra.mxu0 %v1478_v49  ;;  %v219_v49 = vld [vmem:[%s1821_s15 + $0x150] sm:$0xff]  ;;  %v213_v23 = vld [vmem:[%s1821_s15 + $0x120] sm:$0xff]  ;;  %v260_v29 = vld [vmem:[%s1821_s15 + $0x298] sm:$0xff] }
  0x25   : > { %1591 = vmatpush1.bf16.msra.mxu1 %v1861_v50  ;;  %1480 = vmatprep.subr.bf16.mxu0 %v1690_v3  ;;  %v259_v31 = vld [vmem:[%s1821_s15 + $0x290] sm:$0xff]  ;;  %v264_v35 = vld [vmem:[%s1821_s15 + $0x2b8] sm:$0xff]  ;;  %v270_v38 = vld [vmem:[%s1821_s15 + $0x2e8] sm:$0xff] }
  0x26   : > { %1576 = vmatprep.subr.bf16.mxu1 %v1690_v3  ;;  %v223_v32 = vld [vmem:[%s1821_s15 + $0x170] sm:$0xff]  ;;  %v228_v37 = vld [vmem:[%s1821_s15 + $0x198] sm:$0xff]  ;;  %v269_v39 = vld [vmem:[%s1821_s15 + $0x2e0] sm:$0xff] }
  0x27   : > { %v233_v40 = vld [vmem:[%s1821_s15 + $0x1c0] sm:$0xff]  ;;  %v275_v41 = vld [vmem:[%s1821_s15 + $0x310] sm:$0xff]  ;;  %v268_v0 = vld [vmem:[%s1821_s15 + $0x2d8] sm:$0xff] }
  0x28   : > { %1482 = vmatpush1.bf16.msra.mxu0 %v1481_v55  ;;  %v405_v55 = vld [vmem:[%s2428_s1 + $0x220] sm:$0xff]  ;;  %v279_v47 = vld [vmem:[%s1821_s15 + $0x330] sm:$0xff] }
  0x29   : > { %1592 = vmatpush1.bf16.msra.mxu1 %v1878_v56  ;;  %1483 = vmatprep.subr.bf16.mxu0 %v1690_v3  ;;  %v243_v48 = vld [vmem:[%s1821_s15 + $0x210] sm:$0xff]  ;;  %v305_v63 = vld [vmem:[%s1821_s15 + $0x400] sm:$0xff] }
  0x2a   : > { %1577 = vmatprep.subr.bf16.mxu1 %v1690_v3 }
  0x2c   : > { %1485 = vmatpush1.bf16.msra.mxu0 %v1484_v61  ;;  %v187_v61 = vld [vmem:[%s1821_s15 + $0x50] sm:$0xff] }
  0x2d   : > { %1593 = vmatpush1.bf16.msra.mxu1 %v1895_v62  ;;  %1486 = vmatprep.subr.bf16.mxu0 %v1690_v3 }
  0x2e   : > { %1578 = vmatprep.subr.bf16.mxu1 %v1690_v3 }
  0x30   : > { %1488 = vmatpush1.bf16.msra.mxu0 %v1487_v4  ;;  %v235_v4 = vld [vmem:[%s1821_s15 + $0x1d0] sm:$0xff] }
  0x31   : > { %1594 = vmatpush1.bf16.msra.mxu1 %v1912_v5  ;;  %1489 = vmatprep.subr.bf16.mxu0 %v1690_v3 }
  0x32   : > { %1579 = vmatprep.subr.bf16.mxu1 %v1690_v3 }
  0x34   : > { %1491 = vmatpush1.bf16.msra.mxu0 %v1490_v11  ;;  %v197_v11 = vld [vmem:[%s1821_s15 + $0xa0] sm:$0xff] }
  0x35   : > { %1595 = vmatpush1.bf16.msra.mxu1 %v1929_v13  ;;  %1492 = vmatprep.subr.bf16.mxu0 %v1690_v3 }
  0x36   : > { %1580 = vmatprep.subr.bf16.mxu1 %v1690_v3 }
  0x38   : > { %1494 = vmatpush1.bf16.msra.mxu0 %v1493_v19  ;;  %v208_v19 = vld [vmem:[%s1821_s15 + $0xf8] sm:$0xff] }
  0x39   : > { %1596 = vmatpush1.bf16.msra.mxu1 %v1946_v20  ;;  %1495 = vmatprep.subr.bf16.mxu0 %v1690_v3 }
  0x3a   : > { %1581 = vmatprep.subr.bf16.mxu1 %v1690_v3 }
  0x3c   : > { %1497 = vmatpush1.bf16.msra.mxu0 %v1496_v26  ;;  %v254_v26 = vld [vmem:[%s1821_s15 + $0x268] sm:$0xff] }
  0x3d   : > { %1597 = vmatpush1.bf16.msra.mxu1 %v1963_v27  ;;  %1498 = vmatprep.subr.bf16.mxu0 %v1690_v3 }
  0x3e   : > { %1582 = vmatprep.subr.bf16.mxu1 %v1690_v3 }
  0x40   : > { %1500 = vmatpush1.bf16.msra.mxu0 %v1499_v33  ;;  %v265_v33 = vld [vmem:[%s1821_s15 + $0x2c0] sm:$0xff] }
  0x41   : > { %1598 = vmatpush1.bf16.msra.mxu1 %v1980_v34  ;;  %1501 = vmatprep.subr.bf16.mxu0 %v1690_v3 }
  0x42   : > { %1583 = vmatprep.subr.bf16.mxu1 %v1690_v3 }
  0x44   : > { %1503 = vmatpush1.bf16.msra.mxu0 %v1502_v42  ;;  %v274_v42 = vld [vmem:[%s1821_s15 + $0x308] sm:$0xff] }
  0x45   : > { %1599 = vmatpush1.bf16.msra.mxu1 %v2003_v43  ;;  %1504 = vmatprep.subr.bf16.mxu0 %v1690_v3 }
  0x46   : > { %1553 = vmatprep.subr.bf16.mxu1 %v1552_v45 }
  0x47   : > { %578 = vmatmul.mubr.f32.vlgmr.msra.gmra.mrb[0].mxu0 %v177_v46  ;;  %v280_v46 = vld [vmem:[%s1821_s15 + $0x338] sm:$0xff] }
  0x48   : > { %843 = vmatmul.mubr.f32.vlgmr.msra.gmra.mrb[0].mxu1 %v219_v49  ;;  %1506 = vmatpush1.bf16.msra.mxu0 %v1739_v8  ;;  %v1560_v8 = vpack.c.bf16 %v406_v57, %v405_v55  ;;  %v285_v49 = vld [vmem:[%s1821_s15 + $0x360] sm:$0xff]  ;;  %v295_v57 = vld [vmem:[%s1821_s15 + $0x3b0] sm:$0xff] }
  0x49   : > { %1555 = vmatpush3.bf16.msra.mxu1 %v1552_v45  ;;  %582 = vmatprep.mubr.f32.mxu0 %v183_v51  ;;  %v238_v45 = vld [vmem:[%s1821_s15 + $0x1e8] sm:$0xff]  ;;  %v284_v51 = vld [vmem:[%s1821_s15 + $0x358] sm:$0xff]  ;;  %v253_v55 = vld [vmem:[%s1821_s15 + $0x260] sm:$0xff] }
  0x4a   : > { %847 = vmatprep.mubr.f32.mxu1 %v225_v52  ;;  %1507 = vmatprep.subr.bf16.mxu0 %v1690_v3  ;;  %v248_v52 = vld [vmem:[%s1821_s15 + $0x238] sm:$0xff] }
  0x4b   : > { %583 = vmatmul.mubr.f32.gmra.mrb[2].mxu0 %v182_v54  ;;  %1557 = vmatprep.subr.bf16.mxu1 %v1556_v53  ;;  %v289_v54 = vld [vmem:[%s1821_s15 + $0x380] sm:$0xff] }
  0x4c   : > { %848 = vmatmul.mubr.f32.gmra.mrb[2].mxu1 %v224_v58  ;;  %587 = vmatprep.mubr.f32.mxu0 %v188_v59  ;;  %v294_v58 = vld [vmem:[%s1821_s15 + $0x3a8] sm:$0xff] }
  0x4d   : > { %852 = vmatprep.mubr.f32.mxu1 %v230_v60  ;;  %1509 = vmatpush1.bf16.msra.mxu0 %v1749_v12  ;;  %v240_v12 = vld [vmem:[%s1821_s15 + $0x1f8] sm:$0xff]  ;;  %v258_v59 = vld [vmem:[%s1821_s15 + $0x288] sm:$0xff] }
  0x4e   : > { %1510 = vmatprep.subr.bf16.mxu0 %v1690_v3  ;;  %1559 = vmatpush3.bf16.msra.mxu1 %v1556_v53  ;;  %v290_v53 = vld [vmem:[%s1821_s15 + $0x388] sm:$0xff]  ;;  %v300_v60 = vld [vmem:[%s1821_s15 + $0x3d8] sm:$0xff] }
  0x4f   : > { %588 = vmatmul.mubr.f32.gmra.mrb[4].mxu0 %v187_v61  ;;  %1561 = vmatprep.subr.bf16.mxu1 %v1560_v8  ;;  %v263_v61 = vld [vmem:[%s1821_s15 + $0x2b0] sm:$0xff] }
  0x50   : > { %853 = vmatmul.mubr.f32.gmra.mrb[4].mxu1 %v229_v1  ;;  %592 = vmatprep.mubr.f32.mxu0 %v193_v2  ;;  %v310_v1 = vld [vmem:[%s1821_s15 + $0x428] sm:$0xff]  ;;  %v267_v2 = vld [vmem:[%s1821_s15 + $0x2d0] sm:$0xff] }
  0x51   : > { %857 = vmatprep.mubr.f32.mxu1 %v235_v4  ;;  %1512 = vmatpush1.bf16.msra.mxu0 %v1766_v18  ;;  %v202_v18 = vld [vmem:[%s1821_s15 + $0xc8] sm:$0xff]  ;;  %v273_v4 = vld [vmem:[%s1821_s15 + $0x300] sm:$0xff] }
  0x52   : > { %1513 = vmatprep.subr.bf16.mxu0 %v1690_v3  ;;  %1563 = vmatpush3.bf16.msra.mxu1 %v1560_v8  ;;  %v299_v8 = vld [vmem:[%s1821_s15 + $0x3d0] sm:$0xff] }
  0x53   : > { %593 = vmatmul.mubr.f32.gmra.mrb[6].mxu0 %v192_v7  ;;  %1565 = vmatprep.subr.bf16.mxu1 %v1564_v6  ;;  %v272_v7 = vld [vmem:[%s1821_s15 + $0x2f8] sm:$0xff] }
  0x54   : > { %858 = vmatmul.mubr.f32.gmra.mrb[6].mxu1 %v234_v9  ;;  %597 = vmatprep.mubr.f32.mxu0 %v198_v10  ;;  %v314_v9 = vld [vmem:[%s1821_s15 + $0x448] sm:$0xff] }
  0x55   : > { %862 = vmatprep.mubr.f32.mxu1 %v240_v12  ;;  %1515 = vmatpush1.bf16.msra.mxu0 %v1785_v24  ;;  %v207_v24 = vld [vmem:[%s1821_s15 + $0xf0] sm:$0xff]  ;;  %v278_v10 = vld [vmem:[%s1821_s15 + $0x328] sm:$0xff]  ;;  %v320_v12 = vld [vmem:[%s1821_s15 + $0x478] sm:$0xff] }
  0x56   : > { %1516 = vmatprep.subr.bf16.mxu0 %v1690_v3  ;;  %1567 = vmatpush3.bf16.msra.mxu1 %v1564_v6  ;;  %v315_v6 = vld [vmem:[%s1821_s15 + $0x450] sm:$0xff] }
  0x57   : > { %598 = vmatmul.mubr.f32.gmra.mrb[8].mxu0 %v197_v11  ;;  %v277_v11 = vld [vmem:[%s1821_s15 + $0x320] sm:$0xff] }
  0x58   : > { %863 = vmatmul.mubr.f32.gmra.mrb[8].mxu1 %v239_v14  ;;  %602 = vmatprep.mubr.f32.mxu0 %v203_v15  ;;  %v319_v14 = vld [vmem:[%s1821_s15 + $0x470] sm:$0xff] }
  0x59   : > { %867 = vmatprep.mubr.f32.mxu1 %v245_v16  ;;  %1518 = vmatpush1.bf16.msra.mxu0 %v1803_v30  ;;  %v212_v30 = vld [vmem:[%s1821_s15 + $0x118] sm:$0xff]  ;;  %v283_v15 = vld [vmem:[%s1821_s15 + $0x350] sm:$0xff]  ;;  %v325_v16 = vld [vmem:[%s1821_s15 + $0x4a0] sm:$0xff] }
  0x5a   : > { %1519 = vmatprep.subr.bf16.mxu0 %v1690_v3 }
  0x5b   : > { %603 = vmatmul.mubr.f32.gmra.mrb[10].mxu0 %v202_v18  ;;  %v282_v18 = vld [vmem:[%s1821_s15 + $0x348] sm:$0xff] }
  0x5c   : > { %868 = vmatmul.mubr.f32.gmra.mrb[10].mxu1 %v244_v17  ;;  %607 = vmatprep.mubr.f32.mxu0 %v208_v19  ;;  %v324_v17 = vld [vmem:[%s1821_s15 + $0x498] sm:$0xff] }
  0x5d   : > { %872 = vmatprep.mubr.f32.mxu1 %v250_v21  ;;  %1521 = vmatpush1.bf16.msra.mxu0 %v1825_v36  ;;  %v217_v36 = vld [vmem:[%s1821_s15 + $0x140] sm:$0xff]  ;;  %v288_v19 = vld [vmem:[%s1821_s15 + $0x378] sm:$0xff]  ;;  %v330_v21 = vld [vmem:[%s1821_s15 + $0x4c8] sm:$0xff] }
  0x5e   : > { %1522 = vmatprep.subr.bf16.mxu0 %v1690_v3 }
  0x5f   : > { %608 = vmatmul.mubr.f32.gmra.mrb[12].mxu0 %v207_v24  ;;  %v287_v24 = vld [vmem:[%s1821_s15 + $0x370] sm:$0xff] }
  0x60   : > { %873 = vmatmul.mubr.f32.gmra.mrb[12].mxu1 %v249_v22  ;;  %612 = vmatprep.mubr.f32.mxu0 %v213_v23  ;;  %v329_v22 = vld [vmem:[%s1821_s15 + $0x4c0] sm:$0xff] }
  0x61   : > { %877 = vmatprep.mubr.f32.mxu1 %v255_v25  ;;  %1524 = vmatpush1.bf16.msra.mxu0 %v1844_v44  ;;  %v222_v44 = vld [vmem:[%s1821_s15 + $0x168] sm:$0xff]  ;;  %v293_v23 = vld [vmem:[%s1821_s15 + $0x3a0] sm:$0xff]  ;;  %v335_v25 = vld [vmem:[%s1821_s15 + $0x4f0] sm:$0xff] }
  0x62   : > { %1525 = vmatprep.subr.bf16.mxu0 %v1690_v3 }
  0x63   : > { %613 = vmatmul.mubr.f32.gmra.mrb[14].mxu0 %v212_v30  ;;  %v292_v30 = vld [vmem:[%s1821_s15 + $0x398] sm:$0xff] }
  0x64   : > { %878 = vmatmul.mubr.f32.gmra.mrb[14].mxu1 %v254_v26  ;;  %617 = vmatprep.mubr.f32.mxu0 %v218_v28  ;;  %v334_v26 = vld [vmem:[%s1821_s15 + $0x4e8] sm:$0xff] }
  0x65   : > { %882 = vmatprep.mubr.f32.mxu1 %v260_v29  ;;  %1527 = vmatpush1.bf16.msra.mxu0 %v1861_v50  ;;  %v227_v50 = vld [vmem:[%s1821_s15 + $0x190] sm:$0xff]  ;;  %v298_v28 = vld [vmem:[%s1821_s15 + $0x3c8] sm:$0xff]  ;;  %v181_v29 = vld [vmem:[%s1821_s15 + $0x20] sm:$0xff] }
  0x66   : > { %1528 = vmatprep.subr.bf16.mxu0 %v1690_v3 }
  0x67   : > { %618 = vmatmul.mubr.f32.gmra.mrb[16].mxu0 %v217_v36  ;;  %v297_v36 = vld [vmem:[%s1821_s15 + $0x3c0] sm:$0xff] }
  0x68   : > { %883 = vmatmul.mubr.f32.gmra.mrb[16].mxu1 %v259_v31  ;;  %622 = vmatprep.mubr.f32.mxu0 %v223_v32  ;;  %v186_v31 = vld [vmem:[%s1821_s15 + $0x48] sm:$0xff]  ;;  %v303_v32 = vld [vmem:[%s1821_s15 + $0x3f0] sm:$0xff] }
  0x69   : > { %887 = vmatprep.mubr.f32.mxu1 %v265_v33  ;;  %1530 = vmatpush1.bf16.msra.mxu0 %v1878_v56  ;;  %v232_v56 = vld [vmem:[%s1821_s15 + $0x1b8] sm:$0xff]  ;;  %v191_v33 = vld [vmem:[%s1821_s15 + $0x70] sm:$0xff] }
  0x6a   : > { %1531 = vmatprep.subr.bf16.mxu0 %v1690_v3 }
  0x6b   : > { %623 = vmatmul.mubr.f32.gmra.mrb[18].mxu0 %v222_v44  ;;  %v302_v44 = vld [vmem:[%s1821_s15 + $0x3e8] sm:$0xff] }
  0x6c   : > { %888 = vmatmul.mubr.f32.gmra.mrb[18].mxu1 %v264_v35  ;;  %627 = vmatprep.mubr.f32.mxu0 %v228_v37  ;;  %v196_v35 = vld [vmem:[%s1821_s15 + $0x98] sm:$0xff] }
  0x6d   : > { %892 = vmatprep.mubr.f32.mxu1 %v270_v38  ;;  %1533 = vmatpush1.bf16.msra.mxu0 %v1895_v62  ;;  %v237_v62 = vld [vmem:[%s1821_s15 + $0x1e0] sm:$0xff]  ;;  %v308_v37 = vld [vmem:[%s1821_s15 + $0x418] sm:$0xff] }
  0x6e   : > { %1534 = vmatprep.subr.bf16.mxu0 %v1690_v3  ;;  %v201_v38 = vld [vmem:[%s1821_s15 + $0xc0] sm:$0xff] }
  0x6f   : > { %628 = vmatmul.mubr.f32.gmra.mrb[20].mxu0 %v227_v50  ;;  %v307_v50 = vld [vmem:[%s1821_s15 + $0x410] sm:$0xff] }
  0x70   : > { %893 = vmatmul.mubr.f32.gmra.mrb[20].mxu1 %v269_v39  ;;  %632 = vmatprep.mubr.f32.mxu0 %v233_v40  ;;  %v206_v39 = vld [vmem:[%s1821_s15 + $0xe8] sm:$0xff]  ;;  %v313_v40 = vld [vmem:[%s1821_s15 + $0x440] sm:$0xff] }
  0x71   : > { %897 = vmatprep.mubr.f32.mxu1 %v275_v41  ;;  %1536 = vmatpush1.bf16.msra.mxu0 %v1912_v5  ;;  %v242_v5 = vld [vmem:[%s1821_s15 + $0x208] sm:$0xff]  ;;  %v211_v41 = vld [vmem:[%s1821_s15 + $0x110] sm:$0xff] }
  0x72   : > { %1537 = vmatprep.subr.bf16.mxu0 %v1690_v3 }
  0x73   : > { %633 = vmatmul.mubr.f32.gmra.mrb[22].mxu0 %v232_v56  ;;  %v312_v56 = vld [vmem:[%s1821_s15 + $0x438] sm:$0xff] }
  0x74   : > { %898 = vmatmul.mubr.f32.gmra.mrb[22].mxu1 %v274_v42  ;;  %637 = vmatprep.mubr.f32.mxu0 %v238_v45  ;;  %v216_v42 = vld [vmem:[%s1821_s15 + $0x138] sm:$0xff]  ;;  %v318_v45 = vld [vmem:[%s1821_s15 + $0x468] sm:$0xff] }
  0x75   : > { %902 = vmatprep.mubr.f32.mxu1 %v280_v46  ;;  %1539 = vmatpush1.bf16.msra.mxu0 %v1929_v13  ;;  %v247_v13 = vld [vmem:[%s1821_s15 + $0x230] sm:$0xff]  ;;  %v221_v46 = vld [vmem:[%s1821_s15 + $0x160] sm:$0xff] }
  0x76   : > { %1540 = vmatprep.subr.bf16.mxu0 %v1690_v3 }
  0x77   : > { %638 = vmatmul.mubr.f32.gmra.mrb[24].mxu0 %v237_v62  ;;  %v317_v62 = vld [vmem:[%s1821_s15 + $0x460] sm:$0xff] }
  0x78   : > { %903 = vmatmul.mubr.f32.gmra.mrb[24].mxu1 %v279_v47  ;;  %642 = vmatprep.mubr.f32.mxu0 %v243_v48  ;;  %v226_v47 = vld [vmem:[%s1821_s15 + $0x188] sm:$0xff]  ;;  %v323_v48 = vld [vmem:[%s1821_s15 + $0x490] sm:$0xff] }
  0x79   : > { %907 = vmatprep.mubr.f32.mxu1 %v285_v49  ;;  %1542 = vmatpush1.bf16.msra.mxu0 %v1946_v20  ;;  %v252_v20 = vld [vmem:[%s1821_s15 + $0x258] sm:$0xff]  ;;  %v231_v49 = vld [vmem:[%s1821_s15 + $0x1b0] sm:$0xff] }
  0x7a   : > { %1543 = vmatprep.subr.bf16.mxu0 %v1690_v3 }
  0x7b   : > { %643 = vmatmul.mubr.f32.gmra.mrb[26].mxu0 %v242_v5  ;;  %v322_v5 = vld [vmem:[%s1821_s15 + $0x488] sm:$0xff] }
  0x7c   : > { %908 = vmatmul.mubr.f32.gmra.mrb[26].mxu1 %v284_v51  ;;  %647 = vmatprep.mubr.f32.mxu0 %v248_v52  ;;  %v236_v51 = vld [vmem:[%s1821_s15 + $0x1d8] sm:$0xff] }
  0x7d   : > { %912 = vmatprep.mubr.f32.mxu1 %v290_v53  ;;  %1545 = vmatpush1.bf16.msra.mxu0 %v1963_v27  ;;  %v257_v27 = vld [vmem:[%s1821_s15 + $0x280] sm:$0xff]  ;;  %v328_v52 = vld [vmem:[%s1821_s15 + $0x4b8] sm:$0xff] }
  0x7e   : > { %1546 = vmatprep.subr.bf16.mxu0 %v1690_v3  ;;  %v241_v53 = vld [vmem:[%s1821_s15 + $0x200] sm:$0xff] }
  0x7f   : > { %648 = vmatmul.mubr.f32.gmra.mrb[28].mxu0 %v247_v13  ;;  %v327_v13 = vld [vmem:[%s1821_s15 + $0x4b0] sm:$0xff] }
  0x80   : > { %913 = vmatmul.mubr.f32.gmra.mrb[28].mxu1 %v289_v54  ;;  %652 = vmatprep.mubr.f32.mxu0 %v253_v55  ;;  %v246_v54 = vld [vmem:[%s1821_s15 + $0x228] sm:$0xff]  ;;  %v333_v55 = vld [vmem:[%s1821_s15 + $0x4e0] sm:$0xff] }
  0x81   : > { %917 = vmatprep.mubr.f32.mxu1 %v295_v57  ;;  %1548 = vmatpush1.bf16.msra.mxu0 %v1980_v34  ;;  %v304_v34 = vld [vmem:[%s1821_s15 + $0x3f8] sm:$0xff]  ;;  %v251_v57 = vld [vmem:[%s1821_s15 + $0x250] sm:$0xff] }
  0x82   : > { %1549 = vmatprep.subr.bf16.mxu0 %v1690_v3  ;;  %v262_v3 = vld [vmem:[%s1821_s15 + $0x2a8] sm:$0xff] }
  0x83   : > { %653 = vmatmul.mubr.f32.gmra.mrb[30].mxu0 %v252_v20  ;;  %v332_v20 = vld [vmem:[%s1821_s15 + $0x4d8] sm:$0xff] }
  0x84   : > { %918 = vmatmul.mubr.f32.gmra.mrb[30].mxu1 %v294_v58  ;;  %657 = vmatprep.mubr.f32.mxu0 %v258_v59  ;;  %v256_v58 = vld [vmem:[%s1821_s15 + $0x278] sm:$0xff] }
  0x85   : > { %922 = vmatprep.mubr.f32.mxu1 %v300_v60  ;;  %1551 = vmatpush1.bf16.msra.mxu0 %v2003_v43  ;;  %v309_v43 = vld [vmem:[%s1821_s15 + $0x420] sm:$0xff]  ;;  %v180_v59 = vld [vmem:[%s1821_s15 + $0x18] sm:$0xff] }
  0x86   : > { %v261_v60 = vld [vmem:[%s1821_s15 + $0x2a0] sm:$0xff] }
  0x87   : > { %658 = vmatmul.mubr.f32.gmra.mrb[32].mxu0 %v257_v27  ;;  %v179_v27 = vld [vmem:[%s1821_s15 + $0x10] sm:$0xff] }
  0x88   : > { %923 = vmatmul.mubr.f32.gmra.mrb[32].mxu1 %v299_v8  ;;  %662 = vmatprep.mubr.f32.mxu0 %v263_v61  ;;  %v266_v8 = vld [vmem:[%s1821_s15 + $0x2c8] sm:$0xff]  ;;  %v185_v61 = vld [vmem:[%s1821_s15 + $0x40] sm:$0xff] }
  0x89   : > { %927 = vmatprep.mubr.f32.mxu1 %v305_v63  ;;  %v271_v63 = vld [vmem:[%s1821_s15 + $0x2f0] sm:$0xff] }
  0x8b   : > { %663 = vmatmul.mubr.f32.gmra.mrb[34].mxu0 %v262_v3  ;;  %v184_v3 = vld [vmem:[%s1821_s15 + $0x38] sm:$0xff] }
  0x8c   : > { %928 = vmatmul.mubr.f32.gmra.mrb[34].mxu1 %v304_v34  ;;  %667 = vmatprep.mubr.f32.mxu0 %v268_v0  ;;  %v276_v34 = vld [vmem:[%s1821_s15 + $0x318] sm:$0xff]  ;;  %v190_v0 = vld [vmem:[%s1821_s15 + $0x68] sm:$0xff] }
  0x8d   : > { %932 = vmatprep.mubr.f32.mxu1 %v310_v1  ;;  %v281_v1 = vld [vmem:[%s1821_s15 + $0x340] sm:$0xff] }
  0x8f   : > { %668 = vmatmul.mubr.f32.gmra.mrb[36].mxu0 %v267_v2  ;;  %v189_v2 = vld [vmem:[%s1821_s15 + $0x60] sm:$0xff] }
  0x90   : > { %933 = vmatmul.mubr.f32.gmra.mrb[36].mxu1 %v309_v43  ;;  %672 = vmatprep.mubr.f32.mxu0 %v273_v4  ;;  %v286_v43 = vld [vmem:[%s1821_s15 + $0x368] sm:$0xff]  ;;  %v195_v4 = vld [vmem:[%s1821_s15 + $0x90] sm:$0xff] }
  0x91   : > { %937 = vmatprep.mubr.f32.mxu1 %v315_v6  ;;  %v291_v6 = vld [vmem:[%s1821_s15 + $0x390] sm:$0xff] }
  0x93   : > { %673 = vmatmul.mubr.f32.gmra.mrb[38].mxu0 %v272_v7  ;;  %v194_v7 = vld [vmem:[%s1821_s15 + $0x88] sm:$0xff] }
  0x94   : > { %938 = vmatmul.mubr.f32.gmra.mrb[38].mxu1 %v314_v9  ;;  %677 = vmatprep.mubr.f32.mxu0 %v278_v10  ;;  %v296_v9 = vld [vmem:[%s1821_s15 + $0x3b8] sm:$0xff] }
  0x95   : > { %942 = vmatprep.mubr.f32.mxu1 %v320_v12  ;;  %v200_v10 = vld [vmem:[%s1821_s15 + $0xb8] sm:$0xff]  ;;  %v301_v12 = vld [vmem:[%s1821_s15 + $0x3e0] sm:$0xff] }
  0x97   : > { %678 = vmatmul.mubr.f32.gmra.mrb[40].mxu0 %v277_v11  ;;  %v199_v11 = vld [vmem:[%s1821_s15 + $0xb0] sm:$0xff] }
  0x98   : > { %943 = vmatmul.mubr.f32.gmra.mrb[40].mxu1 %v319_v14  ;;  %682 = vmatprep.mubr.f32.mxu0 %v283_v15  ;;  %v306_v14 = vld [vmem:[%s1821_s15 + $0x408] sm:$0xff]  ;;  %v205_v15 = vld [vmem:[%s1821_s15 + $0xe0] sm:$0xff] }
  0x99   : > { %947 = vmatprep.mubr.f32.mxu1 %v325_v16  ;;  %v311_v16 = vld [vmem:[%s1821_s15 + $0x430] sm:$0xff] }
  0x9b   : > { %683 = vmatmul.mubr.f32.gmra.mrb[42].mxu0 %v282_v18  ;;  %v204_v18 = vld [vmem:[%s1821_s15 + $0xd8] sm:$0xff] }
  0x9c   : > { %948 = vmatmul.mubr.f32.gmra.mrb[42].mxu1 %v324_v17  ;;  %687 = vmatprep.mubr.f32.mxu0 %v288_v19  ;;  %v316_v17 = vld [vmem:[%s1821_s15 + $0x458] sm:$0xff]  ;;  %v210_v19 = vld [vmem:[%s1821_s15 + $0x108] sm:$0xff] }
  0x9d   : > { %952 = vmatprep.mubr.f32.mxu1 %v330_v21  ;;  %v321_v21 = vld [vmem:[%s1821_s15 + $0x480] sm:$0xff] }
  0x9f   : > { %688 = vmatmul.mubr.f32.gmra.mrb[44].mxu0 %v287_v24  ;;  %v209_v24 = vld [vmem:[%s1821_s15 + $0x100] sm:$0xff] }
  0xa0   : > { %953 = vmatmul.mubr.f32.gmra.mrb[44].mxu1 %v329_v22  ;;  %692 = vmatprep.mubr.f32.mxu0 %v293_v23  ;;  %v326_v22 = vld [vmem:[%s1821_s15 + $0x4a8] sm:$0xff]  ;;  %v215_v23 = vld [vmem:[%s1821_s15 + $0x130] sm:$0xff] }
  0xa1   : > { %957 = vmatprep.mubr.f32.mxu1 %v335_v25  ;;  %v331_v25 = vld [vmem:[%s1821_s15 + $0x4d0] sm:$0xff] }
  0xa3   : > { %693 = vmatmul.mubr.f32.gmra.mrb[46].mxu0 %v292_v30  ;;  %v214_v30 = vld [vmem:[%s1821_s15 + $0x128] sm:$0xff] }
  0xa4   : > { %958 = vmatmul.mubr.f32.gmra.mrb[46].mxu1 %v334_v26  ;;  %697 = vmatprep.mubr.f32.mxu0 %v298_v28  ;;  %v336_v26 = vld [vmem:[%s1821_s15 + $0x4f8] sm:$0xff] }
  0xa5   : > { %1408 = vmatprep.mubr.msk.f32.mxu1 %vm416_vm0, %v181_v29 }
  0xa7   : > { %698 = vmatmul.mubr.f32.gmra.mrb[48].mxu0 %v297_v36 }
  0xa8   : > { %1409 = vmatmul.mubr.msk.f32.vlgmr.msra.gmra.mrb[48].mxu1 %vm416_vm0, %v186_v31  ;;  %702 = vmatprep.mubr.f32.mxu0 %v303_v32 }
  0xa9   : > { %1411 = vmatprep.mubr.msk.f32.mxu1 %vm416_vm0, %v191_v33 }
  0xab   : > { %703 = vmatmul.mubr.f32.gmra.mrb[50].mxu0 %v302_v44 }
  0xac   : > { %1412 = vmatmul.mubr.msk.f32.gmra.mrb[50].mxu1 %vm416_vm0, %v196_v35  ;;  %707 = vmatprep.mubr.f32.mxu0 %v308_v37 }
  0xad   : > { %1414 = vmatprep.mubr.msk.f32.mxu1 %vm416_vm0, %v201_v38 }
  0xaf   : > { %708 = vmatmul.mubr.f32.gmra.mrb[52].mxu0 %v307_v50 }
  0xb0   : > { %1415 = vmatmul.mubr.msk.f32.gmra.mrb[52].mxu1 %vm416_vm0, %v206_v39  ;;  %712 = vmatprep.mubr.f32.mxu0 %v313_v40 }
  0xb1   : > { %1417 = vmatprep.mubr.msk.f32.mxu1 %vm416_vm0, %v211_v41 }
  0xb3   : > { %713 = vmatmul.mubr.f32.gmra.mrb[54].mxu0 %v312_v56 }
  0xb4   : > { %1418 = vmatmul.mubr.msk.f32.gmra.mrb[54].mxu1 %vm416_vm0, %v216_v42  ;;  %717 = vmatprep.mubr.f32.mxu0 %v318_v45  ;;  %v2250_v45 = vld [vmem:[%s2429_s2] ss:$0 sm:$0xff] }
  0xb5   : > { %1420 = vmatprep.mubr.msk.f32.mxu1 %vm416_vm0, %v221_v46 }
  0xb7   : > { %718 = vmatmul.mubr.f32.gmra.mrb[56].mxu0 %v317_v62 }
  0xb8   : > { %1421 = vmatmul.mubr.msk.f32.gmra.mrb[56].mxu1 %vm416_vm0, %v226_v47  ;;  %722 = vmatprep.mubr.f32.mxu0 %v323_v48 }
  0xb9   : > { %1423 = vmatprep.mubr.msk.f32.mxu1 %vm416_vm0, %v231_v49 }
  0xbb   : > { %723 = vmatmul.mubr.f32.gmra.mrb[58].mxu0 %v322_v5 }
  0xbc   : > { %1424 = vmatmul.mubr.msk.f32.gmra.mrb[58].mxu1 %vm416_vm0, %v236_v51  ;;  %727 = vmatprep.mubr.f32.mxu0 %v328_v52 }
  0xbd   : > { %1426 = vmatprep.mubr.msk.f32.mxu1 %vm416_vm0, %v241_v53 }
  0xbf   : > { %728 = vmatmul.mubr.f32.gmra.mrb[60].mxu0 %v327_v13 }
  0xc0   : > { %1427 = vmatmul.mubr.msk.f32.gmra.mrb[60].mxu1 %vm416_vm0, %v246_v54  ;;  %732 = vmatprep.mubr.f32.mxu0 %v333_v55 }
  0xc1   : > { %1429 = vmatprep.mubr.msk.f32.mxu1 %vm416_vm0, %v251_v57 }
  0xc3   : > { %733 = vmatmul.mubr.f32.gmra.mrb[62].mxu0 %v332_v20 }
  0xc4   : > { %1430 = vmatmul.mubr.msk.f32.gmra.mrb[62].mxu1 %vm416_vm0, %v256_v58  ;;  %802 = vmatprep.mubr.f32.mxu0 %v180_v59 }
  0xc5   : > { %1432 = vmatprep.mubr.msk.f32.mxu1 %vm416_vm0, %v261_v60 }
  0xc7   : > { %803 = vmatmul.mubr.f32.vlgmr.msra.gmra.mrb[0].mxu0 %v179_v27 }
  0xc8   : > { %1433 = vmatmul.mubr.msk.f32.gmra.mrb[64].mxu1 %vm416_vm0, %v266_v8  ;;  %807 = vmatprep.mubr.f32.mxu0 %v185_v61 }
  0xc9   : > { %1435 = vmatprep.mubr.msk.f32.mxu1 %vm416_vm0, %v271_v63 }
  0xcb   : > { %808 = vmatmul.mubr.f32.gmra.mrb[2].mxu0 %v184_v3 }
  0xcc   : > { %1436 = vmatmul.mubr.msk.f32.gmra.mrb[66].mxu1 %vm416_vm0, %v276_v34  ;;  %812 = vmatprep.mubr.f32.mxu0 %v190_v0 }
  0xcd   : > { %1438 = vmatprep.mubr.msk.f32.mxu1 %vm416_vm0, %v281_v1 }
  0xcf   : > { %813 = vmatmul.mubr.f32.gmra.mrb[4].mxu0 %v189_v2 }
  0xd0   : > { %1439 = vmatmul.mubr.msk.f32.gmra.mrb[68].mxu1 %vm416_vm0, %v286_v43  ;;  %817 = vmatprep.mubr.f32.mxu0 %v195_v4 }
  0xd1   : > { %1441 = vmatprep.mubr.msk.f32.mxu1 %vm416_vm0, %v291_v6 }
  0xd3   : > { %818 = vmatmul.mubr.f32.gmra.mrb[6].mxu0 %v194_v7 }
  0xd4   : > { %1442 = vmatmul.mubr.msk.f32.gmra.mrb[70].mxu1 %vm416_vm0, %v296_v9  ;;  %822 = vmatprep.mubr.f32.mxu0 %v200_v10 }
  0xd5   : > { %1444 = vmatprep.mubr.msk.f32.mxu1 %vm416_vm0, %v301_v12 }
  0xd7   : > { %823 = vmatmul.mubr.f32.gmra.mrb[8].mxu0 %v199_v11 }
  0xd8   : > { %1445 = vmatmul.mubr.msk.f32.gmra.mrb[72].mxu1 %vm416_vm0, %v306_v14  ;;  %827 = vmatprep.mubr.f32.mxu0 %v205_v15 }
  0xd9   : > { %1447 = vmatprep.mubr.msk.f32.mxu1 %vm416_vm0, %v311_v16 }
  0xdb   : > { %828 = vmatmul.mubr.f32.gmra.mrb[10].mxu0 %v204_v18 }
  0xdc   : > { %1448 = vmatmul.mubr.msk.f32.gmra.mrb[74].mxu1 %vm416_vm0, %v316_v17  ;;  %832 = vmatprep.mubr.f32.mxu0 %v210_v19 }
  0xdd   : > { %1450 = vmatprep.mubr.msk.f32.mxu1 %vm416_vm0, %v321_v21 }
  0xdf   : > { %833 = vmatmul.mubr.f32.gmra.mrb[12].mxu0 %v209_v24 }
  0xe0   : > { %1451 = vmatmul.mubr.msk.f32.gmra.mrb[76].mxu1 %vm416_vm0, %v326_v22  ;;  %837 = vmatprep.mubr.f32.mxu0 %v215_v23 }
  0xe1   : > { %1453 = vmatprep.mubr.msk.f32.mxu1 %vm416_vm0, %v331_v25 }
  0xe3   : > { %838 = vmatmul.mubr.f32.gmra.mrb[14].mxu0 %v214_v30 }
  0xe4   : > { %1454 = vmatmul.mubr.msk.f32.gmra.mrb[78].mxu1 %vm416_vm0, %v336_v26 }
 0x11b   : > { %v844_v28 = vpop.f32.mrb[0].mxu1 }
 0x11c   : > { %v846_v29 = vpop.f32.mrb[1].mxu1 }
 0x11f   : > { %v849_v36 = vpop.f32.mrb[2].mxu1 }
 0x120   : > { %v851_v31 = vpop.f32.mrb[3].mxu1 }
 0x123   : > { %v854_v32 = vpop.f32.mrb[4].mxu1 }
 0x124   : > { %v856_v33 = vpop.f32.mrb[5].mxu1 }
 0x127   : > { %v859_v44 = vpop.f32.mrb[6].mxu1 }
 0x128   : > { %v861_v35 = vpop.f32.mrb[7].mxu1 }
 0x12b   : > { %v864_v37 = vpop.f32.mrb[8].mxu1 }
 0x12c   : > { %v866_v38 = vpop.f32.mrb[9].mxu1 }
 0x12f   : > { %v869_v50 = vpop.f32.mrb[10].mxu1 }
 0x130   : > { %v871_v39 = vpop.f32.mrb[11].mxu1 }
 0x133   : > { %v874_v40 = vpop.f32.mrb[12].mxu1 }
 0x134   : > { %v876_v41 = vpop.f32.mrb[13].mxu1 }
 0x137   : > { %v879_v56 = vpop.f32.mrb[14].mxu1 }
 0x138   : > { %v881_v42 = vpop.f32.mrb[15].mxu1 }
 0x13a   : > { %v619_v46 = vpop.f32.mrb[16].mxu0 }
 0x13b   : > { %v620_v62 = vadd.f32 %v2250_v45, %v619_v46  ;;  %v621_v47 = vpop.f32.mrb[17].mxu0  ;;  %v884_v48 = vpop.f32.mrb[16].mxu1 }
 0x13c   : > { %v886_v49 = vpop.f32.mrb[17].mxu1 }
 0x13d   : > { %v2253_v5 = vadd.f32 %v844_v28, %v620_v62 }
 0x13e   : > { %v624_v51 = vpop.f32.mrb[18].mxu0 }
 0x13f   : > { %v625_v52 = vadd.f32 %v2250_v45, %v624_v51  ;;  %v626_v53 = vpop.f32.mrb[19].mxu0  ;;  %v889_v13 = vpop.f32.mrb[18].mxu1 }
 0x140   : > { %v891_v54 = vpop.f32.mrb[19].mxu1 }
 0x141   : > { %v2256_v55 = vadd.f32 %v849_v36, %v625_v52 }
 0x142   : > { %v629_v57 = vpop.f32.mrb[20].mxu0 }
 0x143   : > { %v630_v20 = vadd.f32 %v2250_v45, %v629_v57  ;;  %v631_v58 = vpop.f32.mrb[21].mxu0  ;;  %v894_v59 = vpop.f32.mrb[20].mxu1 }
 0x144   : > { %v896_v60 = vpop.f32.mrb[21].mxu1 }
 0x145   : > { %v2259_v27 = vadd.f32 %v854_v32, %v630_v20 }
 0x146   : > { %v634_v8 = vpop.f32.mrb[22].mxu0 }
 0x147   : > { %v635_v61 = vadd.f32 %v2250_v45, %v634_v8  ;;  %v636_v63 = vpop.f32.mrb[23].mxu0  ;;  %v899_v3 = vpop.f32.mrb[22].mxu1 }
 0x148   : > { %v901_v34 = vpop.f32.mrb[23].mxu1 }
 0x149   : > { %v2262_v0 = vadd.f32 %v859_v44, %v635_v61 }
 0x14a   : > { %v639_v1 = vpop.f32.mrb[24].mxu0 }
 0x14b   : > { %v640_v2 = vadd.f32 %v2250_v45, %v639_v1  ;;  %v641_v43 = vpop.f32.mrb[25].mxu0  ;;  %v904_v4 = vpop.f32.mrb[24].mxu1 }
 0x14c   : > { %v906_v6 = vpop.f32.mrb[25].mxu1 }
 0x14d   : > { %v2265_v7 = vadd.f32 %v864_v37, %v640_v2 }
 0x14e   : > { %v644_v9 = vpop.f32.mrb[26].mxu0 }
 0x14f   : > { %v645_v10 = vadd.f32 %v2250_v45, %v644_v9  ;;  %v646_v12 = vpop.f32.mrb[27].mxu0  ;;  %v909_v11 = vpop.f32.mrb[26].mxu1 }
 0x150   : > { %v911_v14 = vpop.f32.mrb[27].mxu1 }
 0x151   : > { %v2268_v15 = vadd.f32 %v869_v50, %v645_v10 }
 0x152   : > { %v649_v16 = vpop.f32.mrb[28].mxu0 }
 0x153   : > { %v650_v18 = vadd.f32 %v2250_v45, %v649_v16  ;;  %v651_v17 = vpop.f32.mrb[29].mxu0  ;;  %v914_v19 = vpop.f32.mrb[28].mxu1 }
 0x154   : > { %v916_v21 = vpop.f32.mrb[29].mxu1 }
 0x155   : > { %v2271_v24 = vadd.f32 %v874_v40, %v650_v18 }
 0x156   : > { %v654_v22 = vpop.f32.mrb[30].mxu0 }
 0x157   : > { %v655_v23 = vadd.f32 %v2250_v45, %v654_v22  ;;  %v656_v25 = vpop.f32.mrb[31].mxu0  ;;  %v919_v30 = vpop.f32.mrb[30].mxu1 }
 0x158   : > { %v921_v26 = vpop.f32.mrb[31].mxu1 }
 0x159   : > { %v2274_v28 = vadd.f32 %v879_v56, %v655_v23 }
 0x15a   : > { %v659_v29 = vpop.f32.mrb[32].mxu0 }
 0x15b   : > { %v660_v36 = vadd.f32 %v2250_v45, %v659_v29  ;;  %v661_v31 = vpop.f32.mrb[33].mxu0  ;;  %v924_v32 = vpop.f32.mrb[32].mxu1 }
 0x15c   : > { %v926_v33 = vpop.f32.mrb[33].mxu1 }
 0x15d   : > { %v2277_v44 = vadd.f32 %v884_v48, %v660_v36 }
 0x15e   : > { %v664_v35 = vpop.f32.mrb[34].mxu0 }
 0x15f   : > { %v665_v37 = vadd.f32 %v2250_v45, %v664_v35  ;;  %v666_v38 = vpop.f32.mrb[35].mxu0  ;;  %v929_v50 = vpop.f32.mrb[34].mxu1 }
 0x160   : > { %v931_v39 = vpop.f32.mrb[35].mxu1 }
 0x161   : > { %v2280_v40 = vadd.f32 %v889_v13, %v665_v37 }
 0x162   : > { %v669_v41 = vpop.f32.mrb[36].mxu0 }
 0x163   : > { %v670_v56 = vadd.f32 %v2250_v45, %v669_v41  ;;  %v671_v42 = vpop.f32.mrb[37].mxu0  ;;  %v934_v46 = vpop.f32.mrb[36].mxu1 }
 0x164   : > { %v936_v62 = vpop.f32.mrb[37].mxu1 }
 0x165   : > { %v2283_v47 = vadd.f32 %v894_v59, %v670_v56 }
 0x166   : > { %v674_v49 = vpop.f32.mrb[38].mxu0 }
 0x167   : > { %v675_v48 = vadd.f32 %v2250_v45, %v674_v49  ;;  %v676_v51 = vpop.f32.mrb[39].mxu0  ;;  %v939_v52 = vpop.f32.mrb[38].mxu1 }
 0x168   : > { %v941_v53 = vpop.f32.mrb[39].mxu1 }
 0x169   : > { %v2286_v54 = vadd.f32 %v899_v3, %v675_v48 }
 0x16a   : > { %v679_v57 = vpop.f32.mrb[40].mxu0 }
 0x16b   : > { %v680_v13 = vadd.f32 %v2250_v45, %v679_v57  ;;  %v681_v20 = vpop.f32.mrb[41].mxu0  ;;  %v944_v58 = vpop.f32.mrb[40].mxu1 }
 0x16c   : > { %v946_v60 = vpop.f32.mrb[41].mxu1 }
 0x16d   : > { %v2289_v8 = vadd.f32 %v904_v4, %v680_v13 }
 0x16e   : > { %v684_v61 = vpop.f32.mrb[42].mxu0 }
 0x16f   : > { %v685_v59 = vadd.f32 %v2250_v45, %v684_v61  ;;  %v686_v63 = vpop.f32.mrb[43].mxu0  ;;  %v949_v34 = vpop.f32.mrb[42].mxu1 }
 0x170   : > { %v951_v1 = vpop.f32.mrb[43].mxu1 }
 0x171   : > { %v2292_v2 = vadd.f32 %v909_v11, %v685_v59 }
 0x172   : > { %v689_v43 = vpop.f32.mrb[44].mxu0 }
 0x173   : > { %v690_v3 = vadd.f32 %v2250_v45, %v689_v43  ;;  %v691_v6 = vpop.f32.mrb[45].mxu0  ;;  %v2295_v9 = vpop.f32.mrb[44].mxu1 }
 0x174   : > { %v956_v10 = vpop.f32.mrb[45].mxu1 }
 0x175   : > { %v2297_v12 = vadd.f32 %v914_v19, %v690_v3 }
 0x176   : > { %v694_v14 = vpop.f32.mrb[46].mxu0 }
 0x177   : > { %v695_v4 = vadd.f32 %v2250_v45, %v694_v14  ;;  %v696_v16 = vpop.f32.mrb[47].mxu0  ;;  %v2300_v18 = vpop.f32.mrb[46].mxu1 }
 0x178   : > { %v961_v17 = vpop.f32.mrb[47].mxu1 }
 0x179   : > { %v2302_v21 = vadd.f32 %v919_v30, %v695_v4 }
 0x17a   : > { %v699_v11 = vpop.f32.mrb[48].mxu0 }
 0x17b   : > { %v700_v22 = vadd.f32 %v2250_v45, %v699_v11  ;;  %v701_v23 = vpop.f32.mrb[49].mxu0  ;;  %v2305_v25 = vpop.f32.mrb[48].mxu1 }
 0x17c   : > { %v2307_v26 = vpop.f32.mrb[49].mxu1 }
 0x17d   : > { %v2309_v29 = vadd.f32 %v924_v32, %v700_v22 }
 0x17e   : > { %v704_v19 = vpop.f32.mrb[50].mxu0 }
 0x17f   : > { %v705_v36 = vadd.f32 %v2250_v45, %v704_v19  ;;  %v706_v31 = vpop.f32.mrb[51].mxu0  ;;  %v2312_v33 = vpop.f32.mrb[50].mxu1 }
 0x180   : > { %v2314_v35 = vpop.f32.mrb[51].mxu1 }
 0x181   : > { %v2316_v30 = vadd.f32 %v929_v50, %v705_v36 }
 0x182   : > { %v709_v37 = vpop.f32.mrb[52].mxu0 }
 0x183   : > { %v710_v38 = vadd.f32 %v2250_v45, %v709_v37  ;;  %v711_v39 = vpop.f32.mrb[53].mxu0  ;;  %v2319_v41 = vpop.f32.mrb[52].mxu1 }
 0x184   : > { %v2321_v56 = vpop.f32.mrb[53].mxu1 }
 0x185   : > { %v2323_v32 = vadd.f32 %v934_v46, %v710_v38 }
 0x186   : > { %v714_v42 = vpop.f32.mrb[54].mxu0 }
 0x187   : > { %v715_v62 = vadd.f32 %v2250_v45, %v714_v42  ;;  %v716_v49 = vpop.f32.mrb[55].mxu0  ;;  %v2326_v48 = vpop.f32.mrb[54].mxu1 }
 0x188   : > { %v2328_v51 = vpop.f32.mrb[55].mxu1 }
 0x189   : > { %v2330_v50 = vadd.f32 %v939_v52, %v715_v62 }
 0x18a   : > { %v719_v53 = vpop.f32.mrb[56].mxu0 }
 0x18b   : > { %v720_v57 = vadd.f32 %v2250_v45, %v719_v53  ;;  %v1422_v13 = vpop.f32.mrb[56].mxu1  ;;  %v721_v20 = vpop.f32.mrb[57].mxu0 }
 0x18c   : > { %v1075_v60 = vadd.f32 %v1422_v13, %v2256_v55  ;;  %v1069_v46 = vpop.f32.mrb[57].mxu1 }
 0x18d   : > { %v1070_v61 = vadd.f32 %v1069_v46, %v2253_v5  ;;  %v2341_v52 = vadd.f32 %v944_v58, %v720_v57 }
 0x18e   : > { %v1197_v59 = vmax.f32 %v1075_v60, 0.0  ;;  %v724_v63 = vpop.f32.mrb[58].mxu0 }
 0x18f   : > { %v1196_v1 = vmax.f32 %v1070_v61, 0.0  ;;  %v725_v43 = vadd.f32 %v2250_v45, %v724_v63  ;;  %v1425_v3 = vpop.f32.mrb[58].mxu1  ;;  %v726_v55 = vpop.f32.mrb[59].mxu0 }
 0x190   : > { %1229 = vst [vmem:[%s2338_s20 + $0x48] sm:$0xff] %v1197_v59  ;;  %v1085_v6 = vadd.f32 %v1425_v3, %v2262_v0  ;;  %v1079_v10 = vpop.f32.mrb[59].mxu1 }
 0x191   : > { %1228 = vst [vmem:[%s2338_s20 + $0x40] sm:$0xff] %v1196_v1  ;;  %v1080_v14 = vadd.f32 %v1079_v10, %v2259_v27  ;;  %v2348_v4 = vadd.f32 %v949_v34, %v725_v43 }
 0x192   : > { %v1199_v5 = vmax.f32 %v1085_v6, 0.0  ;;  %v729_v58 = vpop.f32.mrb[60].mxu0 }
 0x193   : > { %v1198_v16 = vmax.f32 %v1080_v14, 0.0  ;;  %v730_v17 = vadd.f32 %v2250_v45, %v729_v58  ;;  %v1428_v11 = vpop.f32.mrb[60].mxu1  ;;  %v731_v22 = vpop.f32.mrb[61].mxu0 }
 0x194   : > { %1231 = vst [vmem:[%s2338_s20 + $0x58] sm:$0xff] %v1199_v5  ;;  %v1095_v23 = vadd.f32 %v1428_v11, %v2268_v15  ;;  %v1089_v19 = vpop.f32.mrb[61].mxu1 }
 0x195   : > { %1230 = vst [vmem:[%s2338_s20 + $0x50] sm:$0xff] %v1198_v16  ;;  %v1090_v0 = vadd.f32 %v1089_v19, %v2265_v7  ;;  %v2356_v27 = vadd.f32 %v2295_v9, %v730_v17 }
 0x196   : > { %v1201_v34 = vmax.f32 %v1095_v23, 0.0  ;;  %v734_v36 = vpop.f32.mrb[62].mxu0 }
 0x197   : > { %v1200_v31 = vmax.f32 %v1090_v0, 0.0  ;;  %v735_v37 = vadd.f32 %v2250_v45, %v734_v36  ;;  %v1431_v38 = vpop.f32.mrb[62].mxu1  ;;  %v736_v39 = vpop.f32.mrb[63].mxu0 }
 0x198   : > { %1233 = vst [vmem:[%s2338_s20 + $0x68] sm:$0xff] %v1201_v34  ;;  %v1105_v42 = vadd.f32 %v1431_v38, %v2274_v28  ;;  %v1099_v15 = vpop.f32.mrb[63].mxu1 }
 0x199   : > { %1232 = vst [vmem:[%s2338_s20 + $0x60] sm:$0xff] %v1200_v31  ;;  %v1100_v62 = vadd.f32 %v1099_v15, %v2271_v24  ;;  %v2364_v7 = vadd.f32 %v2300_v18, %v735_v37 }
 0x19a   : > { %v1203_v9 = vmax.f32 %v1105_v42, 0.0  ;;  %v804_v49 = vpop.f32.mrb[0].mxu0 }
 0x19b   : > { %v1202_v53 = vmax.f32 %v1100_v62, 0.0  ;;  %v1600_v57 = vadd.f32 %v2250_v45, %v804_v49  ;;  %v1434_v13 = vpop.f32.mrb[64].mxu1  ;;  %v806_v20 = vpop.f32.mrb[1].mxu0 }
 0x19c   : > { %1235 = vst [vmem:[%s2338_s20 + $0x78] sm:$0xff] %v1203_v9  ;;  %v1115_v60 = vadd.f32 %v1434_v13, %v2280_v40  ;;  %v1109_v28 = vpop.f32.mrb[65].mxu1 }
 0x19d   : > { %1234 = vst [vmem:[%s2338_s20 + $0x70] sm:$0xff] %v1202_v53  ;;  %v1030_v24 = vadd.f32 %v1600_v57, %v2307_v26  ;;  %v1110_v18 = vadd.f32 %v1109_v28, %v2277_v44 }
 0x19e   : > { %v1205_v46 = vmax.f32 %v1115_v60, 0.0  ;;  %v809_v61 = vpop.f32.mrb[2].mxu0 }
 0x19f   : > { %v1188_v59 = vmax.f32 %v1030_v24, 0.0  ;;  %v1204_v63 = vmax.f32 %v1110_v18, 0.0  ;;  %v1601_v1 = vadd.f32 %v2250_v45, %v809_v61  ;;  %v1437_v43 = vpop.f32.mrb[66].mxu1  ;;  %v811_v3 = vpop.f32.mrb[3].mxu0 }
 0x1a0   : > { %1237 = vst [vmem:[%s2338_s20 + $0x88] sm:$0xff] %v1205_v46  ;;  %v1125_v55 = vadd.f32 %v1437_v43, %v2286_v54  ;;  %v1119_v40 = vpop.f32.mrb[67].mxu1 }
 0x1a1   : > { %1220 = vst [vmem:[%s2338_s20] sm:$0xff] %v1188_v59  ;;  %1236 = vst [vmem:[%s2338_s20 + $0x80] sm:$0xff] %v1204_v63  ;;  %v1035_v26 = vadd.f32 %v1601_v1, %v2305_v25  ;;  %v1120_v44 = vadd.f32 %v1119_v40, %v2283_v47 }
 0x1a2   : > { %v1207_v6 = vmax.f32 %v1125_v55, 0.0  ;;  %v814_v10 = vpop.f32.mrb[4].mxu0 }
 0x1a3   : > { %v1189_v14 = vmax.f32 %v1035_v26, 0.0  ;;  %v1206_v5 = vmax.f32 %v1120_v44, 0.0  ;;  %v1602_v58 = vadd.f32 %v2250_v45, %v814_v10  ;;  %v1440_v16 = vpop.f32.mrb[68].mxu1  ;;  %v816_v17 = vpop.f32.mrb[5].mxu0 }
 0x1a4   : > { %1239 = vst [vmem:[%s2338_s20 + $0x98] sm:$0xff] %v1207_v6  ;;  %v1135_v54 = vadd.f32 %v1440_v16, %v2292_v2  ;;  %v1129_v11 = vpop.f32.mrb[69].mxu1 }
 0x1a5   : > { %1221 = vst [vmem:[%s2338_s20 + $0x8] sm:$0xff] %v1189_v14  ;;  %1238 = vst [vmem:[%s2338_s20 + $0x90] sm:$0xff] %v1206_v5  ;;  %v1040_v25 = vadd.f32 %v1602_v58, %v2314_v35  ;;  %v1130_v47 = vadd.f32 %v1129_v11, %v2289_v8 }
 0x1a6   : > { %v1209_v22 = vmax.f32 %v1135_v54, 0.0  ;;  %v819_v23 = vpop.f32.mrb[6].mxu0 }
 0x1a7   : > { %v1190_v19 = vmax.f32 %v1040_v25, 0.0  ;;  %v1208_v0 = vmax.f32 %v1130_v47, 0.0  ;;  %v1603_v34 = vadd.f32 %v2250_v45, %v819_v23  ;;  %v1443_v36 = vpop.f32.mrb[70].mxu1  ;;  %v821_v31 = vpop.f32.mrb[7].mxu0 }
 0x1a8   : > { %1241 = vst [vmem:[%s2338_s20 + $0xa8] sm:$0xff] %v1209_v22  ;;  %v1145_v2 = vadd.f32 %v1443_v36, %v2302_v21  ;;  %v1139_v37 = vpop.f32.mrb[71].mxu1 }
 0x1a9   : > { %1222 = vst [vmem:[%s2338_s20 + $0x10] sm:$0xff] %v1190_v19  ;;  %1240 = vst [vmem:[%s2338_s20 + $0xa0] sm:$0xff] %v1208_v0  ;;  %v1045_v35 = vadd.f32 %v1603_v34, %v2312_v33  ;;  %v1140_v8 = vadd.f32 %v1139_v37, %v2297_v12 }
 0x1aa   : > { %v1211_v38 = vmax.f32 %v1145_v2, 0.0  ;;  %v824_v39 = vpop.f32.mrb[8].mxu0 }
 0x1ab   : > { %v1191_v42 = vmax.f32 %v1045_v35, 0.0  ;;  %v1210_v15 = vmax.f32 %v1140_v8, 0.0  ;;  %v1604_v62 = vadd.f32 %v2250_v45, %v824_v39  ;;  %v1446_v9 = vpop.f32.mrb[72].mxu1  ;;  %v826_v49 = vpop.f32.mrb[9].mxu0 }
 0x1ac   : > { %1243 = vst [vmem:[%s2338_s20 + $0xb8] sm:$0xff] %v1211_v38  ;;  %v1155_v21 = vadd.f32 %v1446_v9, %v2316_v30  ;;  %v1149_v53 = vpop.f32.mrb[73].mxu1 }
 0x1ad   : > { %1223 = vst [vmem:[%s2338_s20 + $0x18] sm:$0xff] %v1191_v42  ;;  %1242 = vst [vmem:[%s2338_s20 + $0xb0] sm:$0xff] %v1210_v15  ;;  %v1050_v33 = vadd.f32 %v1604_v62, %v2321_v56  ;;  %v1150_v12 = vadd.f32 %v1149_v53, %v2309_v29 }
 0x1ae   : > { %v1213_v57 = vmax.f32 %v1155_v21, 0.0  ;;  %v829_v13 = vpop.f32.mrb[10].mxu0 }
 0x1af   : > { %v1192_v20 = vmax.f32 %v1050_v33, 0.0  ;;  %v1212_v60 = vmax.f32 %v1150_v12, 0.0  ;;  %v1605_v28 = vadd.f32 %v2250_v45, %v829_v13  ;;  %v1449_v24 = vpop.f32.mrb[74].mxu1  ;;  %v831_v18 = vpop.f32.mrb[11].mxu0 }
 0x1b0   : > { %1245 = vst [vmem:[%s2338_s20 + $0xc8] sm:$0xff] %v1213_v57  ;;  %v1165_v30 = vadd.f32 %v1449_v24, %v2330_v50  ;;  %v1159_v46 = vpop.f32.mrb[75].mxu1 }
 0x1b1   : > { %1224 = vst [vmem:[%s2338_s20 + $0x20] sm:$0xff] %v1192_v20  ;;  %1244 = vst [vmem:[%s2338_s20 + $0xc0] sm:$0xff] %v1212_v60  ;;  %v1055_v56 = vadd.f32 %v1605_v28, %v2319_v41  ;;  %v1160_v29 = vadd.f32 %v1159_v46, %v2323_v32 }
 0x1b2   : > { %v1215_v61 = vmax.f32 %v1165_v30, 0.0  ;;  %v834_v59 = vpop.f32.mrb[12].mxu0 }
 0x1b3   : > { %v1193_v63 = vmax.f32 %v1055_v56, 0.0  ;;  %v1214_v1 = vmax.f32 %v1160_v29, 0.0  ;;  %v1606_v43 = vadd.f32 %v2250_v45, %v834_v59  ;;  %v1452_v3 = vpop.f32.mrb[76].mxu1  ;;  %v836_v55 = vpop.f32.mrb[13].mxu0 }
 0x1b4   : > { %1247 = vst [vmem:[%s2338_s20 + $0xd8] sm:$0xff] %v1215_v61  ;;  %v1175_v50 = vadd.f32 %v1452_v3, %v2348_v4  ;;  %v1169_v40 = vpop.f32.mrb[77].mxu1 }
 0x1b5   : > { %1225 = vst [vmem:[%s2338_s20 + $0x28] sm:$0xff] %v1193_v63  ;;  %1246 = vst [vmem:[%s2338_s20 + $0xd0] sm:$0xff] %v1214_v1  ;;  %v1060_v41 = vadd.f32 %v1606_v43, %v2328_v51  ;;  %v1170_v32 = vadd.f32 %v1169_v40, %v2341_v52 }
 0x1b6   : > { %v1217_v26 = vmax.f32 %v1175_v50, 0.0  ;;  %v839_v44 = vpop.f32.mrb[14].mxu0 }
 0x1b7   : > { %v1194_v6 = vmax.f32 %v1060_v41, 0.0  ;;  %v1216_v10 = vmax.f32 %v1170_v32, 0.0  ;;  %v1607_v14 = vadd.f32 %v2250_v45, %v839_v44  ;;  %v1455_v5 = vpop.f32.mrb[78].mxu1  ;;  %v841_v4 = vpop.f32.mrb[15].mxu0 }
 0x1b8   : > { %1249 = vst [vmem:[%s2338_s20 + $0xe8] sm:$0xff] %v1217_v26  ;;  %v1185_v58 = vadd.f32 %v1455_v5, %v2364_v7  ;;  %v1179_v16 = vpop.f32.mrb[79].mxu1 }
 0x1b9   : > { %1226 = vst [vmem:[%s2338_s20 + $0x30] sm:$0xff] %v1194_v6  ;;  %1248 = vst [vmem:[%s2338_s20 + $0xe0] sm:$0xff] %v1216_v10  ;;  %v1065_v51 = vadd.f32 %v1607_v14, %v2326_v48  ;;  %v1180_v52 = vadd.f32 %v1179_v16, %v2356_v27 }
 0x1ba   : > { %v1219_v17 = vmax.f32 %v1185_v58, 0.0 }
 0x1bb   : > { %v1195_v54 = vmax.f32 %v1065_v51, 0.0  ;;  %v1218_v11 = vmax.f32 %v1180_v52, 0.0 }
 0x1bc   : > { %1251 = vst [vmem:[%s2338_s20 + $0xf8] sm:$0xff] %v1219_v17 }
 0x1bd   : > { %1227 = vst [vmem:[%s2338_s20 + $0x38] sm:$0xff] %v1195_v54  ;;  %1250 = vst [vmem:[%s2338_s20 + $0xf0] sm:$0xff] %v1218_v11 }
 0x1be PF: > { %s13_s12 = sadd.s32 1, %s1688_s12  }
 0x1bf   : > { %p10_p4 = scmp.ge.s32.totalorder %s13_s12, 4  }
 0x1c1   :  { %12 = sbr.rel (!%p10_p4) target bundleno = 1 (0x1), region = 62 }

// kernel: decoder_forward.9
= control target key start
LH: loop header
LB: loop body
LE: loop exit
PB: predicated region body
PF: predicated region fallthrough
CT: control target
= control target key end

     0   :  { %s3183_s12 = smov 0   ;;  %s4426_s0 = inlined_call_operand.vmem [shape: f32[2048,288], index: 0, kind: input, shape index: {}]   ;;  %s4427_s1 = inlined_call_operand.vmem [shape: f32[288,128], index: 1, kind: input, shape index: {}]   ;;  %s4428_s2 = inlined_call_operand.vmem [shape: f32[1,128], index: 2, kind: input, shape index: {}]   ;;  %s4429_s3 = inlined_call_operand.vmem [shape: f32[2048,128], index: 3, kind: output, shape index: {}]  }
   0x1 LB: > { %s2583_s13 = sadd.s32 4294967295, %s3160_s12   ;;  %p2587_p0 = scmp.ge.s32.totalorder %s3160_s12, 1  ;;  %s3160_s12 = sphi %s3183_s12, %s13_s12  }
   0x2   : > { %p139_p1 = scmp.lt.s32.totalorder %s3160_s12, 3 }
   0x4   : > { %p140_p2 = pnand %p2587_p0, %p139_p1 }
   0x6   : > { %143 = sbr.rel (%p140_p2) target bundleno = 676 (0x2a4), region = 32 }
   0xd   : > { %v561_v0 = vld [vmem:[%s4427_s1] sm:$0xff]  ;;  %v562_v1 = vld [vmem:[%s4427_s1 + $0x8] sm:$0xff]  ;;  %v563_v2 = vld [vmem:[%s4427_s1 + $0x10] sm:$0xff]  ;;  %s2588_s20 = sshll.u32 %s2583_s13, 7  ;;  %v3162_v3 = vmov 0.0|0.0   ;;  %vm604_vm0 = vcmask 261120  }
   0xe   : > { %3055 = vmatprep.subr.bf16.mxu0 %v3162_v3  ;;  %3111 = vmatprep.subr.bf16.mxu1 %v3162_v3  ;;  %v3056_v4 = vpack.c.bf16 %v562_v1, %v561_v0  ;;  %v564_v5 = vld [vmem:[%s4427_s1 + $0x18] sm:$0xff]  ;;  %p165_p3 = scmp.lt.s32.totalorder %s2588_s20, 255  ;;  %v565_v7 = vld [vmem:[%s4427_s1 + $0x20] sm:$0xff]  ;;  %v566_v8 = vld [vmem:[%s4427_s1 + $0x28] sm:$0xff] }
   0xf   : > { %v3059_v6 = vpack.c.bf16 %v564_v5, %v563_v2  ;;  %v3062_v9 = vpack.c.bf16 %v566_v8, %v565_v7  ;;  %v567_v10 = vld [vmem:[%s4427_s1 + $0x30] sm:$0xff]  ;;  %v568_v11 = vld [vmem:[%s4427_s1 + $0x38] sm:$0xff]  ;;  %v569_v15 = vld [vmem:[%s4427_s1 + $0x40] sm:$0xff] }
  0x10   : > { %3057 = vmatpush1.bf16.msra.mxu0 %v3056_v4  ;;  %3127 = vmatpush1.bf16.msra.mxu1 %v3056_v4  ;;  %s4463_s20 = smov (!%p165_p3, %s2588_s20), 255  ;;  %v3065_v13 = vpack.c.bf16 %v568_v11, %v567_v10  ;;  %v570_v16 = vld [vmem:[%s4427_s1 + $0x48] sm:$0xff]  ;;  %v571_v18 = vld [vmem:[%s4427_s1 + $0x50] sm:$0xff]  ;;  %v572_v19 = vld [vmem:[%s4427_s1 + $0x58] sm:$0xff] }
  0x11   : > { %3058 = vmatprep.subr.bf16.mxu0 %v3162_v3  ;;  %3112 = vmatprep.subr.bf16.mxu1 %v3162_v3  ;;  %s3143_s27 = smul.u32 24, %s4463_s20  ;;  %v3068_v17 = vpack.c.bf16 %v570_v16, %v569_v15  ;;  %v3071_v20 = vpack.c.bf16 %v572_v19, %v571_v18  ;;  %v573_v21 = vld [vmem:[%s4427_s1 + $0x60] sm:$0xff]  ;;  %v574_v22 = vld [vmem:[%s4427_s1 + $0x68] sm:$0xff]  ;;  %v575_v24 = vld [vmem:[%s4427_s1 + $0x70] sm:$0xff]  ;;  %s2591_s19 = sshll.u32 %s4463_s20, 3 }
  0x12   : > { %v3074_v23 = vpack.c.bf16 %v574_v22, %v573_v21  ;;  %v576_v25 = vld [vmem:[%s4427_s1 + $0x78] sm:$0xff]  ;;  %v577_v27 = vld [vmem:[%s4427_s1 + $0x80] sm:$0xff]  ;;  %v578_v28 = vld [vmem:[%s4427_s1 + $0x88] sm:$0xff]  ;;  %s3935_s22 = scalar_lea.vmem %s4429_s3, %s2591_s19 }
  0x13   : > { %s3219_s30 = scalar_lea.vmem %s4426_s0, %s3143_s27  ;;  %v3077_v26 = vpack.c.bf16 %v576_v25, %v575_v24  ;;  %v3080_v29 = vpack.c.bf16 %v578_v28, %v577_v27  ;;  %v579_v30 = vld [vmem:[%s4427_s1 + $0x90] sm:$0xff]  ;;  %v580_v31 = vld [vmem:[%s4427_s1 + $0x98] sm:$0xff]  ;;  %v581_v33 = vld [vmem:[%s4427_s1 + $0xa0] sm:$0xff] }
  0x14   : > { %3060 = vmatpush1.bf16.msra.mxu0 %v3059_v6  ;;  %3128 = vmatpush1.bf16.msra.mxu1 %v3059_v6  ;;  %v178_v12 = vld [vmem:[%s3219_s30 + $0x8] sm:$0xff]  ;;  %v3083_v32 = vpack.c.bf16 %v580_v31, %v579_v30  ;;  %v583_v36 = vld [vmem:[%s4427_s1 + $0xb0] sm:$0xff]  ;;  %v584_v37 = vld [vmem:[%s4427_s1 + $0xb8] sm:$0xff] }
  0x15   : > { %3061 = vmatprep.subr.bf16.mxu0 %v3162_v3  ;;  %3113 = vmatprep.subr.bf16.mxu1 %v3162_v3  ;;  %v466_v14 = vld [vmem:[%s3219_s30 + $0x908] sm:$0xff]  ;;  %v3089_v38 = vpack.c.bf16 %v584_v37, %v583_v36  ;;  %v585_v39 = vld [vmem:[%s4427_s1 + $0xc0] sm:$0xff]  ;;  %v587_v42 = vld [vmem:[%s4427_s1 + $0xd0] sm:$0xff] }
  0x16   : > { %1053 = vmatprep.mubr.f32.mxu0 %v178_v12  ;;  %1533 = vmatprep.mubr.f32.mxu1 %v466_v14  ;;  %v582_v34 = vld [vmem:[%s4427_s1 + $0xa8] sm:$0xff]  ;;  %v588_v43 = vld [vmem:[%s4427_s1 + $0xd8] sm:$0xff]  ;;  %v589_v45 = vld [vmem:[%s4427_s1 + $0xe0] sm:$0xff] }
  0x17   : > { %v3086_v35 = vpack.c.bf16 %v582_v34, %v581_v33  ;;  %v586_v40 = vld [vmem:[%s4427_s1 + $0xc8] sm:$0xff]  ;;  %v3095_v44 = vpack.c.bf16 %v588_v43, %v587_v42  ;;  %v591_v48 = vld [vmem:[%s4427_s1 + $0xf0] sm:$0xff]  ;;  %v592_v49 = vld [vmem:[%s4427_s1 + $0xf8] sm:$0xff] }
  0x18   : > { %3063 = vmatpush1.bf16.msra.mxu0 %v3062_v9  ;;  %3129 = vmatpush1.bf16.msra.mxu1 %v3062_v9  ;;  %v3092_v41 = vpack.c.bf16 %v586_v40, %v585_v39  ;;  %v590_v46 = vld [vmem:[%s4427_s1 + $0xe8] sm:$0xff]  ;;  %v593_v50 = vld [vmem:[%s4427_s1 + $0x100] sm:$0xff]  ;;  %v3101_v52 = vpack.c.bf16 %v592_v49, %v591_v48  ;;  %v595_v54 = vld [vmem:[%s4427_s1 + $0x110] sm:$0xff] }
  0x19   : > { %3064 = vmatprep.subr.bf16.mxu0 %v3162_v3  ;;  %3114 = vmatprep.subr.bf16.mxu1 %v3162_v3  ;;  %v3098_v47 = vpack.c.bf16 %v590_v46, %v589_v45  ;;  %v594_v51 = vld [vmem:[%s4427_s1 + $0x108] sm:$0xff]  ;;  %v596_v55 = vld [vmem:[%s4427_s1 + $0x118] sm:$0xff]  ;;  %v177_v56 = vld [vmem:[%s3219_s30] sm:$0xff] }
  0x1a   : > { %v3103_v53 = vpack.c.bf16 %v594_v51, %v593_v50  ;;  %v465_v57 = vld [vmem:[%s3219_s30 + $0x900] sm:$0xff]  ;;  %v3107_v59 = vpack.c.bf16 %v596_v55, %v595_v54  ;;  %v180_v61 = vld [vmem:[%s3219_s30 + $0x18] sm:$0xff]  ;;  %v183_v1 = vld [vmem:[%s3219_s30 + $0x30] sm:$0xff] }
  0x1b   : > { %v181_v58 = vld [vmem:[%s3219_s30 + $0x20] sm:$0xff]  ;;  %v468_v62 = vld [vmem:[%s3219_s30 + $0x918] sm:$0xff]  ;;  %v471_v2 = vld [vmem:[%s3219_s30 + $0x930] sm:$0xff] }
  0x1c   : > { %3066 = vmatpush1.bf16.msra.mxu0 %v3065_v13  ;;  %3130 = vmatpush1.bf16.msra.mxu1 %v3065_v13  ;;  %v469_v60 = vld [vmem:[%s3219_s30 + $0x920] sm:$0xff]  ;;  %v184_v63 = vld [vmem:[%s3219_s30 + $0x38] sm:$0xff]  ;;  %v475_v4 = vld [vmem:[%s3219_s30 + $0x950] sm:$0xff] }
  0x1d   : > { %3067 = vmatprep.subr.bf16.mxu0 %v3162_v3  ;;  %3115 = vmatprep.subr.bf16.mxu1 %v3162_v3  ;;  %v472_v0 = vld [vmem:[%s3219_s30 + $0x938] sm:$0xff]  ;;  %v186_v5 = vld [vmem:[%s3219_s30 + $0x48] sm:$0xff]  ;;  %v189_v9 = vld [vmem:[%s3219_s30 + $0x60] sm:$0xff] }
  0x1e   : > { %v474_v6 = vld [vmem:[%s3219_s30 + $0x948] sm:$0xff]  ;;  %v477_v10 = vld [vmem:[%s3219_s30 + $0x960] sm:$0xff]  ;;  %v192_v13 = vld [vmem:[%s3219_s30 + $0x78] sm:$0xff] }
  0x1f   : > { %v190_v7 = vld [vmem:[%s3219_s30 + $0x68] sm:$0xff]  ;;  %v193_v11 = vld [vmem:[%s3219_s30 + $0x80] sm:$0xff]  ;;  %v480_v14 = vld [vmem:[%s3219_s30 + $0x978] sm:$0xff] }
  0x20   : > { %3069 = vmatpush1.bf16.msra.mxu0 %v3068_v17  ;;  %3131 = vmatpush1.bf16.msra.mxu1 %v3068_v17  ;;  %v478_v8 = vld [vmem:[%s3219_s30 + $0x968] sm:$0xff]  ;;  %v481_v12 = vld [vmem:[%s3219_s30 + $0x980] sm:$0xff]  ;;  %v196_v15 = vld [vmem:[%s3219_s30 + $0x98] sm:$0xff] }
  0x21   : > { %3070 = vmatprep.subr.bf16.mxu0 %v3162_v3  ;;  %3116 = vmatprep.subr.bf16.mxu1 %v3162_v3  ;;  %v484_v16 = vld [vmem:[%s3219_s30 + $0x998] sm:$0xff]  ;;  %v195_v17 = vld [vmem:[%s3219_s30 + $0x90] sm:$0xff]  ;;  %v198_v21 = vld [vmem:[%s3219_s30 + $0xa8] sm:$0xff] }
  0x22   : > { %v483_v18 = vld [vmem:[%s3219_s30 + $0x990] sm:$0xff]  ;;  %v486_v22 = vld [vmem:[%s3219_s30 + $0x9a8] sm:$0xff]  ;;  %v201_v25 = vld [vmem:[%s3219_s30 + $0xc0] sm:$0xff] }
  0x23   : > { %v199_v19 = vld [vmem:[%s3219_s30 + $0xb0] sm:$0xff]  ;;  %v490_v24 = vld [vmem:[%s3219_s30 + $0x9c8] sm:$0xff]  ;;  %v205_v27 = vld [vmem:[%s3219_s30 + $0xe0] sm:$0xff] }
  0x24   : > { %3072 = vmatpush1.bf16.msra.mxu0 %v3071_v20  ;;  %3132 = vmatpush1.bf16.msra.mxu1 %v3071_v20  ;;  %v487_v20 = vld [vmem:[%s3219_s30 + $0x9b0] sm:$0xff]  ;;  %v493_v28 = vld [vmem:[%s3219_s30 + $0x9e0] sm:$0xff]  ;;  %v492_v30 = vld [vmem:[%s3219_s30 + $0x9d8] sm:$0xff] }
  0x25   : > { %3073 = vmatprep.subr.bf16.mxu0 %v3162_v3  ;;  %3117 = vmatprep.subr.bf16.mxu1 %v3162_v3  ;;  %v208_v31 = vld [vmem:[%s3219_s30 + $0xf8] sm:$0xff]  ;;  %v207_v33 = vld [vmem:[%s3219_s30 + $0xf0] sm:$0xff]  ;;  %v210_v37 = vld [vmem:[%s3219_s30 + $0x108] sm:$0xff] }
  0x26   : > { %v495_v34 = vld [vmem:[%s3219_s30 + $0x9f0] sm:$0xff]  ;;  %v214_v39 = vld [vmem:[%s3219_s30 + $0x128] sm:$0xff]  ;;  %v501_v42 = vld [vmem:[%s3219_s30 + $0xa20] sm:$0xff] }
  0x27   : > { %v499_v36 = vld [vmem:[%s3219_s30 + $0xa10] sm:$0xff]  ;;  %v502_v40 = vld [vmem:[%s3219_s30 + $0xa28] sm:$0xff]  ;;  %v217_v43 = vld [vmem:[%s3219_s30 + $0x140] sm:$0xff] }
  0x28   : > { %3075 = vmatpush1.bf16.msra.mxu0 %v3074_v23  ;;  %3133 = vmatpush1.bf16.msra.mxu1 %v3074_v23  ;;  %v202_v23 = vld [vmem:[%s3219_s30 + $0xc8] sm:$0xff]  ;;  %v216_v45 = vld [vmem:[%s3219_s30 + $0x138] sm:$0xff]  ;;  %v219_v49 = vld [vmem:[%s3219_s30 + $0x150] sm:$0xff] }
  0x29   : > { %3076 = vmatprep.subr.bf16.mxu0 %v3162_v3  ;;  %3118 = vmatprep.subr.bf16.mxu1 %v3162_v3  ;;  %v504_v46 = vld [vmem:[%s3219_s30 + $0xa38] sm:$0xff]  ;;  %v507_v50 = vld [vmem:[%s3219_s30 + $0xa50] sm:$0xff]  ;;  %v510_v54 = vld [vmem:[%s3219_s30 + $0xa68] sm:$0xff] }
  0x2a   : > { %v508_v48 = vld [vmem:[%s3219_s30 + $0xa58] sm:$0xff]  ;;  %v223_v51 = vld [vmem:[%s3219_s30 + $0x170] sm:$0xff]  ;;  %v226_v55 = vld [vmem:[%s3219_s30 + $0x188] sm:$0xff] }
  0x2c   : > { %3078 = vmatpush1.bf16.msra.mxu0 %v3077_v26  ;;  %3134 = vmatpush1.bf16.msra.mxu1 %v3077_v26  ;;  %v489_v26 = vld [vmem:[%s3219_s30 + $0x9c0] sm:$0xff] }
  0x2d   : > { %3079 = vmatprep.subr.bf16.mxu0 %v3162_v3  ;;  %3119 = vmatprep.subr.bf16.mxu1 %v3162_v3 }
  0x30   : > { %3081 = vmatpush1.bf16.msra.mxu0 %v3080_v29  ;;  %3135 = vmatpush1.bf16.msra.mxu1 %v3080_v29  ;;  %v204_v29 = vld [vmem:[%s3219_s30 + $0xd8] sm:$0xff] }
  0x31   : > { %3082 = vmatprep.subr.bf16.mxu0 %v3162_v3  ;;  %3120 = vmatprep.subr.bf16.mxu1 %v3162_v3 }
  0x34   : > { %3084 = vmatpush1.bf16.msra.mxu0 %v3083_v32  ;;  %3136 = vmatpush1.bf16.msra.mxu1 %v3083_v32  ;;  %v496_v32 = vld [vmem:[%s3219_s30 + $0x9f8] sm:$0xff] }
  0x35   : > { %3085 = vmatprep.subr.bf16.mxu0 %v3162_v3  ;;  %3121 = vmatprep.subr.bf16.mxu1 %v3162_v3 }
  0x38   : > { %3087 = vmatpush1.bf16.msra.mxu0 %v3086_v35  ;;  %3137 = vmatpush1.bf16.msra.mxu1 %v3086_v35  ;;  %v211_v35 = vld [vmem:[%s3219_s30 + $0x110] sm:$0xff] }
  0x39   : > { %3088 = vmatprep.subr.bf16.mxu0 %v3162_v3  ;;  %3122 = vmatprep.subr.bf16.mxu1 %v3162_v3 }
  0x3c   : > { %3090 = vmatpush1.bf16.msra.mxu0 %v3089_v38  ;;  %3138 = vmatpush1.bf16.msra.mxu1 %v3089_v38  ;;  %v498_v38 = vld [vmem:[%s3219_s30 + $0xa08] sm:$0xff] }
  0x3d   : > { %3091 = vmatprep.subr.bf16.mxu0 %v3162_v3  ;;  %3123 = vmatprep.subr.bf16.mxu1 %v3162_v3 }
  0x40   : > { %3093 = vmatpush1.bf16.msra.mxu0 %v3092_v41  ;;  %3139 = vmatpush1.bf16.msra.mxu1 %v3092_v41  ;;  %v213_v41 = vld [vmem:[%s3219_s30 + $0x120] sm:$0xff] }
  0x41   : > { %3094 = vmatprep.subr.bf16.mxu0 %v3162_v3  ;;  %3124 = vmatprep.subr.bf16.mxu1 %v3162_v3 }
  0x44   : > { %3096 = vmatpush1.bf16.msra.mxu0 %v3095_v44  ;;  %3140 = vmatpush1.bf16.msra.mxu1 %v3095_v44  ;;  %v505_v44 = vld [vmem:[%s3219_s30 + $0xa40] sm:$0xff] }
  0x45   : > { %3097 = vmatprep.subr.bf16.mxu0 %v3162_v3  ;;  %3125 = vmatprep.subr.bf16.mxu1 %v3162_v3 }
  0x48   : > { %3099 = vmatpush1.bf16.msra.mxu0 %v3098_v47  ;;  %3141 = vmatpush1.bf16.msra.mxu1 %v3098_v47  ;;  %v220_v47 = vld [vmem:[%s3219_s30 + $0x158] sm:$0xff] }
  0x49   : > { %3100 = vmatprep.subr.bf16.mxu0 %v3162_v3  ;;  %3126 = vmatprep.subr.bf16.mxu1 %v3162_v3  ;;  %v187_v3 = vld [vmem:[%s3219_s30 + $0x50] sm:$0xff] }
  0x4c   : > { %3102 = vmatpush1.bf16.msra.mxu0 %v3101_v52  ;;  %3142 = vmatpush1.bf16.msra.mxu1 %v3101_v52  ;;  %v511_v52 = vld [vmem:[%s3219_s30 + $0xa70] sm:$0xff] }
  0x4d   : > { %3104 = vmatprep.subr.bf16.mxu1 %v3103_v53 }
  0x4f   : > { %1054 = vmatmul.mubr.f32.vlgmr.msra.gmra.mrb[0].mxu0 %v177_v56  ;;  %1534 = vmatmul.mubr.f32.vlgmr.msra.gmra.mrb[0].mxu1 %v465_v57  ;;  %v514_v56 = vld [vmem:[%s3219_s30 + $0xa88] sm:$0xff]  ;;  %v225_v57 = vld [vmem:[%s3219_s30 + $0x180] sm:$0xff] }
  0x50   : > { %3106 = vmatpush3.bf16.msra.mxu1 %v3103_v53  ;;  %1058 = vmatprep.mubr.f32.mxu0 %v181_v58  ;;  %v222_v53 = vld [vmem:[%s3219_s30 + $0x168] sm:$0xff]  ;;  %v513_v58 = vld [vmem:[%s3219_s30 + $0xa80] sm:$0xff] }
  0x51   : > { %1538 = vmatprep.mubr.f32.mxu1 %v469_v60  ;;  %3108 = vmatprep.subr.bf16.mxu1 %v3107_v59  ;;  %v517_v60 = vld [vmem:[%s3219_s30 + $0xaa0] sm:$0xff] }
  0x53   : > { %1059 = vmatmul.mubr.f32.gmra.mrb[2].mxu0 %v180_v61  ;;  %1539 = vmatmul.mubr.f32.gmra.mrb[2].mxu1 %v468_v62  ;;  %v228_v61 = vld [vmem:[%s3219_s30 + $0x198] sm:$0xff] }
  0x54   : > { %1063 = vmatprep.mubr.f32.mxu0 %v184_v63  ;;  %1543 = vmatprep.mubr.f32.mxu1 %v472_v0  ;;  %v516_v62 = vld [vmem:[%s3219_s30 + $0xa98] sm:$0xff] }
  0x55   : > { %3110 = vmatpush3.bf16.msra.mxu1 %v3107_v59  ;;  %v229_v59 = vld [vmem:[%s3219_s30 + $0x1a0] sm:$0xff]  ;;  %v232_v63 = vld [vmem:[%s3219_s30 + $0x1b8] sm:$0xff] }
  0x56   : > { %v520_v0 = vld [vmem:[%s3219_s30 + $0xab8] sm:$0xff] }
  0x57   : > { %1064 = vmatmul.mubr.f32.gmra.mrb[4].mxu0 %v183_v1  ;;  %1544 = vmatmul.mubr.f32.gmra.mrb[4].mxu1 %v471_v2  ;;  %v231_v1 = vld [vmem:[%s3219_s30 + $0x1b0] sm:$0xff] }
  0x58   : > { %1068 = vmatprep.mubr.f32.mxu0 %v187_v3  ;;  %1548 = vmatprep.mubr.f32.mxu1 %v475_v4  ;;  %v519_v2 = vld [vmem:[%s3219_s30 + $0xab0] sm:$0xff] }
  0x59   : > { %v235_v3 = vld [vmem:[%s3219_s30 + $0x1d0] sm:$0xff] }
  0x5a   : > { %v523_v4 = vld [vmem:[%s3219_s30 + $0xad0] sm:$0xff] }
  0x5b   : > { %1069 = vmatmul.mubr.f32.gmra.mrb[6].mxu0 %v186_v5  ;;  %1549 = vmatmul.mubr.f32.gmra.mrb[6].mxu1 %v474_v6  ;;  %v234_v5 = vld [vmem:[%s3219_s30 + $0x1c8] sm:$0xff] }
  0x5c   : > { %1073 = vmatprep.mubr.f32.mxu0 %v190_v7  ;;  %1553 = vmatprep.mubr.f32.mxu1 %v478_v8  ;;  %v522_v6 = vld [vmem:[%s3219_s30 + $0xac8] sm:$0xff] }
  0x5d   : > { %v238_v7 = vld [vmem:[%s3219_s30 + $0x1e8] sm:$0xff] }
  0x5e   : > { %v526_v8 = vld [vmem:[%s3219_s30 + $0xae8] sm:$0xff] }
  0x5f   : > { %1074 = vmatmul.mubr.f32.gmra.mrb[8].mxu0 %v189_v9  ;;  %1554 = vmatmul.mubr.f32.gmra.mrb[8].mxu1 %v477_v10  ;;  %v237_v9 = vld [vmem:[%s3219_s30 + $0x1e0] sm:$0xff] }
  0x60   : > { %1078 = vmatprep.mubr.f32.mxu0 %v193_v11  ;;  %1558 = vmatprep.mubr.f32.mxu1 %v481_v12  ;;  %v525_v10 = vld [vmem:[%s3219_s30 + $0xae0] sm:$0xff] }
  0x61   : > { %v241_v11 = vld [vmem:[%s3219_s30 + $0x200] sm:$0xff] }
  0x62   : > { %v529_v12 = vld [vmem:[%s3219_s30 + $0xb00] sm:$0xff] }
  0x63   : > { %1079 = vmatmul.mubr.f32.gmra.mrb[10].mxu0 %v192_v13  ;;  %1559 = vmatmul.mubr.f32.gmra.mrb[10].mxu1 %v480_v14  ;;  %v240_v13 = vld [vmem:[%s3219_s30 + $0x1f8] sm:$0xff] }
  0x64   : > { %1083 = vmatprep.mubr.f32.mxu0 %v196_v15  ;;  %1563 = vmatprep.mubr.f32.mxu1 %v484_v16  ;;  %v528_v14 = vld [vmem:[%s3219_s30 + $0xaf8] sm:$0xff] }
  0x65   : > { %v244_v15 = vld [vmem:[%s3219_s30 + $0x218] sm:$0xff] }
  0x66   : > { %v532_v16 = vld [vmem:[%s3219_s30 + $0xb18] sm:$0xff] }
  0x67   : > { %1084 = vmatmul.mubr.f32.gmra.mrb[12].mxu0 %v195_v17  ;;  %1564 = vmatmul.mubr.f32.gmra.mrb[12].mxu1 %v483_v18  ;;  %v243_v17 = vld [vmem:[%s3219_s30 + $0x210] sm:$0xff] }
  0x68   : > { %1088 = vmatprep.mubr.f32.mxu0 %v199_v19  ;;  %1568 = vmatprep.mubr.f32.mxu1 %v487_v20  ;;  %v531_v18 = vld [vmem:[%s3219_s30 + $0xb10] sm:$0xff] }
  0x69   : > { %v247_v19 = vld [vmem:[%s3219_s30 + $0x230] sm:$0xff] }
  0x6a   : > { %v535_v20 = vld [vmem:[%s3219_s30 + $0xb30] sm:$0xff] }
  0x6b   : > { %1089 = vmatmul.mubr.f32.gmra.mrb[14].mxu0 %v198_v21  ;;  %1569 = vmatmul.mubr.f32.gmra.mrb[14].mxu1 %v486_v22  ;;  %v246_v21 = vld [vmem:[%s3219_s30 + $0x228] sm:$0xff] }
  0x6c   : > { %1093 = vmatprep.mubr.f32.mxu0 %v202_v23  ;;  %1573 = vmatprep.mubr.f32.mxu1 %v490_v24  ;;  %v534_v22 = vld [vmem:[%s3219_s30 + $0xb28] sm:$0xff] }
  0x6d   : > { %v250_v23 = vld [vmem:[%s3219_s30 + $0x248] sm:$0xff] }
  0x6e   : > { %v538_v24 = vld [vmem:[%s3219_s30 + $0xb48] sm:$0xff] }
  0x6f   : > { %1094 = vmatmul.mubr.f32.gmra.mrb[16].mxu0 %v201_v25  ;;  %1574 = vmatmul.mubr.f32.gmra.mrb[16].mxu1 %v489_v26  ;;  %v249_v25 = vld [vmem:[%s3219_s30 + $0x240] sm:$0xff] }
  0x70   : > { %1098 = vmatprep.mubr.f32.mxu0 %v205_v27  ;;  %1578 = vmatprep.mubr.f32.mxu1 %v493_v28  ;;  %v537_v26 = vld [vmem:[%s3219_s30 + $0xb40] sm:$0xff] }
  0x71   : > { %v253_v27 = vld [vmem:[%s3219_s30 + $0x260] sm:$0xff] }
  0x72   : > { %v541_v28 = vld [vmem:[%s3219_s30 + $0xb60] sm:$0xff] }
  0x73   : > { %1099 = vmatmul.mubr.f32.gmra.mrb[18].mxu0 %v204_v29  ;;  %1579 = vmatmul.mubr.f32.gmra.mrb[18].mxu1 %v492_v30  ;;  %v252_v29 = vld [vmem:[%s3219_s30 + $0x258] sm:$0xff] }
  0x74   : > { %1103 = vmatprep.mubr.f32.mxu0 %v208_v31  ;;  %1583 = vmatprep.mubr.f32.mxu1 %v496_v32  ;;  %v540_v30 = vld [vmem:[%s3219_s30 + $0xb58] sm:$0xff] }
  0x75   : > { %v256_v31 = vld [vmem:[%s3219_s30 + $0x278] sm:$0xff] }
  0x76   : > { %v544_v32 = vld [vmem:[%s3219_s30 + $0xb78] sm:$0xff] }
  0x77   : > { %1104 = vmatmul.mubr.f32.gmra.mrb[20].mxu0 %v207_v33  ;;  %1584 = vmatmul.mubr.f32.gmra.mrb[20].mxu1 %v495_v34  ;;  %v255_v33 = vld [vmem:[%s3219_s30 + $0x270] sm:$0xff] }
  0x78   : > { %1108 = vmatprep.mubr.f32.mxu0 %v211_v35  ;;  %1588 = vmatprep.mubr.f32.mxu1 %v499_v36  ;;  %v543_v34 = vld [vmem:[%s3219_s30 + $0xb70] sm:$0xff] }
  0x79   : > { %v259_v35 = vld [vmem:[%s3219_s30 + $0x290] sm:$0xff] }
  0x7a   : > { %v547_v36 = vld [vmem:[%s3219_s30 + $0xb90] sm:$0xff] }
  0x7b   : > { %1109 = vmatmul.mubr.f32.gmra.mrb[22].mxu0 %v210_v37  ;;  %1589 = vmatmul.mubr.f32.gmra.mrb[22].mxu1 %v498_v38  ;;  %v258_v37 = vld [vmem:[%s3219_s30 + $0x288] sm:$0xff] }
  0x7c   : > { %1113 = vmatprep.mubr.f32.mxu0 %v214_v39  ;;  %1593 = vmatprep.mubr.f32.mxu1 %v502_v40  ;;  %v546_v38 = vld [vmem:[%s3219_s30 + $0xb88] sm:$0xff] }
  0x7d   : > { %v262_v39 = vld [vmem:[%s3219_s30 + $0x2a8] sm:$0xff] }
  0x7e   : > { %v550_v40 = vld [vmem:[%s3219_s30 + $0xba8] sm:$0xff] }
  0x7f   : > { %1114 = vmatmul.mubr.f32.gmra.mrb[24].mxu0 %v213_v41  ;;  %1594 = vmatmul.mubr.f32.gmra.mrb[24].mxu1 %v501_v42  ;;  %v261_v41 = vld [vmem:[%s3219_s30 + $0x2a0] sm:$0xff] }
  0x80   : > { %1118 = vmatprep.mubr.f32.mxu0 %v217_v43  ;;  %1598 = vmatprep.mubr.f32.mxu1 %v505_v44  ;;  %v549_v42 = vld [vmem:[%s3219_s30 + $0xba0] sm:$0xff] }
  0x81   : > { %v265_v43 = vld [vmem:[%s3219_s30 + $0x2c0] sm:$0xff] }
  0x82   : > { %v553_v44 = vld [vmem:[%s3219_s30 + $0xbc0] sm:$0xff] }
  0x83   : > { %1119 = vmatmul.mubr.f32.gmra.mrb[26].mxu0 %v216_v45  ;;  %1599 = vmatmul.mubr.f32.gmra.mrb[26].mxu1 %v504_v46  ;;  %v264_v45 = vld [vmem:[%s3219_s30 + $0x2b8] sm:$0xff] }
  0x84   : > { %1123 = vmatprep.mubr.f32.mxu0 %v220_v47  ;;  %1603 = vmatprep.mubr.f32.mxu1 %v508_v48  ;;  %v552_v46 = vld [vmem:[%s3219_s30 + $0xbb8] sm:$0xff] }
  0x85   : > { %v268_v47 = vld [vmem:[%s3219_s30 + $0x2d8] sm:$0xff] }
  0x86   : > { %v556_v48 = vld [vmem:[%s3219_s30 + $0xbd8] sm:$0xff] }
  0x87   : > { %1124 = vmatmul.mubr.f32.gmra.mrb[28].mxu0 %v219_v49  ;;  %1604 = vmatmul.mubr.f32.gmra.mrb[28].mxu1 %v507_v50  ;;  %v267_v49 = vld [vmem:[%s3219_s30 + $0x2d0] sm:$0xff] }
  0x88   : > { %1128 = vmatprep.mubr.f32.mxu0 %v223_v51  ;;  %1608 = vmatprep.mubr.f32.mxu1 %v511_v52  ;;  %v555_v50 = vld [vmem:[%s3219_s30 + $0xbd0] sm:$0xff] }
  0x89   : > { %v271_v51 = vld [vmem:[%s3219_s30 + $0x2f0] sm:$0xff] }
  0x8a   : > { %v559_v52 = vld [vmem:[%s3219_s30 + $0xbf0] sm:$0xff] }
  0x8b   : > { %1129 = vmatmul.mubr.f32.gmra.mrb[30].mxu0 %v222_v53  ;;  %1609 = vmatmul.mubr.f32.gmra.mrb[30].mxu1 %v510_v54  ;;  %v270_v53 = vld [vmem:[%s3219_s30 + $0x2e8] sm:$0xff] }
  0x8c   : > { %1133 = vmatprep.mubr.f32.mxu0 %v226_v55  ;;  %1613 = vmatprep.mubr.f32.mxu1 %v514_v56  ;;  %v558_v54 = vld [vmem:[%s3219_s30 + $0xbe8] sm:$0xff]  ;;  %v179_v56 = vld [vmem:[%s3219_s30 + $0x10] sm:$0xff] }
  0x8d   : > { %v274_v55 = vld [vmem:[%s3219_s30 + $0x308] sm:$0xff] }
  0x8f   : > { %1134 = vmatmul.mubr.f32.gmra.mrb[32].mxu0 %v225_v57  ;;  %1614 = vmatmul.mubr.f32.gmra.mrb[32].mxu1 %v513_v58  ;;  %v273_v57 = vld [vmem:[%s3219_s30 + $0x300] sm:$0xff]  ;;  %v182_v58 = vld [vmem:[%s3219_s30 + $0x28] sm:$0xff] }
  0x90   : > { %1138 = vmatprep.mubr.f32.mxu0 %v229_v59  ;;  %1618 = vmatprep.mubr.f32.mxu1 %v517_v60  ;;  %v277_v59 = vld [vmem:[%s3219_s30 + $0x320] sm:$0xff] }
  0x91   : > { %v185_v60 = vld [vmem:[%s3219_s30 + $0x40] sm:$0xff] }
  0x93   : > { %1139 = vmatmul.mubr.f32.gmra.mrb[34].mxu0 %v228_v61  ;;  %1619 = vmatmul.mubr.f32.gmra.mrb[34].mxu1 %v516_v62  ;;  %v276_v61 = vld [vmem:[%s3219_s30 + $0x318] sm:$0xff] }
  0x94   : > { %1143 = vmatprep.mubr.f32.mxu0 %v232_v63  ;;  %1623 = vmatprep.mubr.f32.mxu1 %v520_v0  ;;  %v188_v62 = vld [vmem:[%s3219_s30 + $0x58] sm:$0xff]  ;;  %v191_v0 = vld [vmem:[%s3219_s30 + $0x70] sm:$0xff] }
  0x95   : > { %v280_v63 = vld [vmem:[%s3219_s30 + $0x338] sm:$0xff] }
  0x97   : > { %1144 = vmatmul.mubr.f32.gmra.mrb[36].mxu0 %v231_v1  ;;  %1624 = vmatmul.mubr.f32.gmra.mrb[36].mxu1 %v519_v2  ;;  %v279_v1 = vld [vmem:[%s3219_s30 + $0x330] sm:$0xff]  ;;  %v194_v2 = vld [vmem:[%s3219_s30 + $0x88] sm:$0xff] }
  0x98   : > { %1148 = vmatprep.mubr.f32.mxu0 %v235_v3  ;;  %1628 = vmatprep.mubr.f32.mxu1 %v523_v4  ;;  %v283_v3 = vld [vmem:[%s3219_s30 + $0x350] sm:$0xff]  ;;  %v197_v4 = vld [vmem:[%s3219_s30 + $0xa0] sm:$0xff] }
  0x9b   : > { %1149 = vmatmul.mubr.f32.gmra.mrb[38].mxu0 %v234_v5  ;;  %1629 = vmatmul.mubr.f32.gmra.mrb[38].mxu1 %v522_v6  ;;  %v282_v5 = vld [vmem:[%s3219_s30 + $0x348] sm:$0xff]  ;;  %v200_v6 = vld [vmem:[%s3219_s30 + $0xb8] sm:$0xff] }
  0x9c   : > { %1153 = vmatprep.mubr.f32.mxu0 %v238_v7  ;;  %1633 = vmatprep.mubr.f32.mxu1 %v526_v8  ;;  %v286_v7 = vld [vmem:[%s3219_s30 + $0x368] sm:$0xff]  ;;  %v203_v8 = vld [vmem:[%s3219_s30 + $0xd0] sm:$0xff] }
  0x9f   : > { %1154 = vmatmul.mubr.f32.gmra.mrb[40].mxu0 %v237_v9  ;;  %1634 = vmatmul.mubr.f32.gmra.mrb[40].mxu1 %v525_v10  ;;  %v285_v9 = vld [vmem:[%s3219_s30 + $0x360] sm:$0xff]  ;;  %v206_v10 = vld [vmem:[%s3219_s30 + $0xe8] sm:$0xff] }
  0xa0   : > { %1158 = vmatprep.mubr.f32.mxu0 %v241_v11  ;;  %1638 = vmatprep.mubr.f32.mxu1 %v529_v12  ;;  %v289_v11 = vld [vmem:[%s3219_s30 + $0x380] sm:$0xff] }
  0xa1   : > { %v209_v12 = vld [vmem:[%s3219_s30 + $0x100] sm:$0xff] }
  0xa3   : > { %1159 = vmatmul.mubr.f32.gmra.mrb[42].mxu0 %v240_v13  ;;  %1639 = vmatmul.mubr.f32.gmra.mrb[42].mxu1 %v528_v14  ;;  %v288_v13 = vld [vmem:[%s3219_s30 + $0x378] sm:$0xff] }
  0xa4   : > { %1163 = vmatprep.mubr.f32.mxu0 %v244_v15  ;;  %1643 = vmatprep.mubr.f32.mxu1 %v532_v16  ;;  %v212_v14 = vld [vmem:[%s3219_s30 + $0x118] sm:$0xff]  ;;  %v215_v16 = vld [vmem:[%s3219_s30 + $0x130] sm:$0xff] }
  0xa5   : > { %v292_v15 = vld [vmem:[%s3219_s30 + $0x398] sm:$0xff] }
  0xa7   : > { %1164 = vmatmul.mubr.f32.gmra.mrb[44].mxu0 %v243_v17  ;;  %1644 = vmatmul.mubr.f32.gmra.mrb[44].mxu1 %v531_v18  ;;  %v291_v17 = vld [vmem:[%s3219_s30 + $0x390] sm:$0xff]  ;;  %v218_v18 = vld [vmem:[%s3219_s30 + $0x148] sm:$0xff] }
  0xa8   : > { %1168 = vmatprep.mubr.f32.mxu0 %v247_v19  ;;  %1648 = vmatprep.mubr.f32.mxu1 %v535_v20  ;;  %v295_v19 = vld [vmem:[%s3219_s30 + $0x3b0] sm:$0xff]  ;;  %v221_v20 = vld [vmem:[%s3219_s30 + $0x160] sm:$0xff] }
  0xab   : > { %1169 = vmatmul.mubr.f32.gmra.mrb[46].mxu0 %v246_v21  ;;  %1649 = vmatmul.mubr.f32.gmra.mrb[46].mxu1 %v534_v22  ;;  %v294_v21 = vld [vmem:[%s3219_s30 + $0x3a8] sm:$0xff]  ;;  %v224_v22 = vld [vmem:[%s3219_s30 + $0x178] sm:$0xff] }
  0xac   : > { %1173 = vmatprep.mubr.f32.mxu0 %v250_v23  ;;  %1653 = vmatprep.mubr.f32.mxu1 %v538_v24  ;;  %v298_v23 = vld [vmem:[%s3219_s30 + $0x3c8] sm:$0xff]  ;;  %v227_v24 = vld [vmem:[%s3219_s30 + $0x190] sm:$0xff] }
  0xaf   : > { %1174 = vmatmul.mubr.f32.gmra.mrb[48].mxu0 %v249_v25  ;;  %1654 = vmatmul.mubr.f32.gmra.mrb[48].mxu1 %v537_v26  ;;  %v297_v25 = vld [vmem:[%s3219_s30 + $0x3c0] sm:$0xff]  ;;  %v230_v26 = vld [vmem:[%s3219_s30 + $0x1a8] sm:$0xff] }
  0xb0   : > { %1178 = vmatprep.mubr.f32.mxu0 %v253_v27  ;;  %1658 = vmatprep.mubr.f32.mxu1 %v541_v28  ;;  %v301_v27 = vld [vmem:[%s3219_s30 + $0x3e0] sm:$0xff] }
  0xb1   : > { %v233_v28 = vld [vmem:[%s3219_s30 + $0x1c0] sm:$0xff] }
  0xb3   : > { %1179 = vmatmul.mubr.f32.gmra.mrb[50].mxu0 %v252_v29  ;;  %1659 = vmatmul.mubr.f32.gmra.mrb[50].mxu1 %v540_v30  ;;  %v300_v29 = vld [vmem:[%s3219_s30 + $0x3d8] sm:$0xff] }
  0xb4   : > { %1183 = vmatprep.mubr.f32.mxu0 %v256_v31  ;;  %1663 = vmatprep.mubr.f32.mxu1 %v544_v32  ;;  %v236_v30 = vld [vmem:[%s3219_s30 + $0x1d8] sm:$0xff]  ;;  %v239_v32 = vld [vmem:[%s3219_s30 + $0x1f0] sm:$0xff] }
  0xb5   : > { %v304_v31 = vld [vmem:[%s3219_s30 + $0x3f8] sm:$0xff] }
  0xb7   : > { %1184 = vmatmul.mubr.f32.gmra.mrb[52].mxu0 %v255_v33  ;;  %1664 = vmatmul.mubr.f32.gmra.mrb[52].mxu1 %v543_v34  ;;  %v303_v33 = vld [vmem:[%s3219_s30 + $0x3f0] sm:$0xff]  ;;  %v242_v34 = vld [vmem:[%s3219_s30 + $0x208] sm:$0xff] }
  0xb8   : > { %1188 = vmatprep.mubr.f32.mxu0 %v259_v35  ;;  %1668 = vmatprep.mubr.f32.mxu1 %v547_v36  ;;  %v307_v35 = vld [vmem:[%s3219_s30 + $0x410] sm:$0xff]  ;;  %v245_v36 = vld [vmem:[%s3219_s30 + $0x220] sm:$0xff] }
  0xbb   : > { %1189 = vmatmul.mubr.f32.gmra.mrb[54].mxu0 %v258_v37  ;;  %1669 = vmatmul.mubr.f32.gmra.mrb[54].mxu1 %v546_v38  ;;  %v306_v37 = vld [vmem:[%s3219_s30 + $0x408] sm:$0xff]  ;;  %v248_v38 = vld [vmem:[%s3219_s30 + $0x238] sm:$0xff] }
  0xbc   : > { %1193 = vmatprep.mubr.f32.mxu0 %v262_v39  ;;  %1673 = vmatprep.mubr.f32.mxu1 %v550_v40  ;;  %v310_v39 = vld [vmem:[%s3219_s30 + $0x428] sm:$0xff]  ;;  %v251_v40 = vld [vmem:[%s3219_s30 + $0x250] sm:$0xff] }
  0xbf   : > { %1194 = vmatmul.mubr.f32.gmra.mrb[56].mxu0 %v261_v41  ;;  %1674 = vmatmul.mubr.f32.gmra.mrb[56].mxu1 %v549_v42  ;;  %v309_v41 = vld [vmem:[%s3219_s30 + $0x420] sm:$0xff]  ;;  %v254_v42 = vld [vmem:[%s3219_s30 + $0x268] sm:$0xff] }
  0xc0   : > { %1198 = vmatprep.mubr.f32.mxu0 %v265_v43  ;;  %1678 = vmatprep.mubr.f32.mxu1 %v553_v44  ;;  %v313_v43 = vld [vmem:[%s3219_s30 + $0x440] sm:$0xff] }
  0xc1   : > { %v257_v44 = vld [vmem:[%s3219_s30 + $0x280] sm:$0xff] }
  0xc3   : > { %1199 = vmatmul.mubr.f32.gmra.mrb[58].mxu0 %v264_v45  ;;  %1679 = vmatmul.mubr.f32.gmra.mrb[58].mxu1 %v552_v46  ;;  %v312_v45 = vld [vmem:[%s3219_s30 + $0x438] sm:$0xff] }
  0xc4   : > { %1203 = vmatprep.mubr.f32.mxu0 %v268_v47  ;;  %1683 = vmatprep.mubr.f32.mxu1 %v556_v48  ;;  %v260_v46 = vld [vmem:[%s3219_s30 + $0x298] sm:$0xff]  ;;  %v263_v48 = vld [vmem:[%s3219_s30 + $0x2b0] sm:$0xff] }
  0xc5   : > { %v316_v47 = vld [vmem:[%s3219_s30 + $0x458] sm:$0xff] }
  0xc7   : > { %1204 = vmatmul.mubr.f32.gmra.mrb[60].mxu0 %v267_v49  ;;  %1684 = vmatmul.mubr.f32.gmra.mrb[60].mxu1 %v555_v50  ;;  %v315_v49 = vld [vmem:[%s3219_s30 + $0x450] sm:$0xff]  ;;  %v266_v50 = vld [vmem:[%s3219_s30 + $0x2c8] sm:$0xff] }
  0xc8   : > { %1208 = vmatprep.mubr.f32.mxu0 %v271_v51  ;;  %1688 = vmatprep.mubr.f32.mxu1 %v559_v52  ;;  %v319_v51 = vld [vmem:[%s3219_s30 + $0x470] sm:$0xff]  ;;  %v269_v52 = vld [vmem:[%s3219_s30 + $0x2e0] sm:$0xff] }
  0xcb   : > { %1209 = vmatmul.mubr.f32.gmra.mrb[62].mxu0 %v270_v53  ;;  %1689 = vmatmul.mubr.f32.gmra.mrb[62].mxu1 %v558_v54  ;;  %v318_v53 = vld [vmem:[%s3219_s30 + $0x468] sm:$0xff]  ;;  %v272_v54 = vld [vmem:[%s3219_s30 + $0x2f8] sm:$0xff] }
  0xcc   : > { %1213 = vmatprep.mubr.f32.mxu0 %v274_v55  ;;  %2863 = vmatprep.mubr.msk.f32.mxu1 %vm604_vm0, %v179_v56  ;;  %v322_v55 = vld [vmem:[%s3219_s30 + $0x488] sm:$0xff]  ;;  %v275_v56 = vld [vmem:[%s3219_s30 + $0x310] sm:$0xff] }
  0xcf   : > { %1214 = vmatmul.mubr.f32.gmra.mrb[64].mxu0 %v273_v57  ;;  %2864 = vmatmul.mubr.msk.f32.vlgmr.msra.gmra.mrb[64].mxu1 %vm604_vm0, %v182_v58  ;;  %v321_v57 = vld [vmem:[%s3219_s30 + $0x480] sm:$0xff]  ;;  %v278_v58 = vld [vmem:[%s3219_s30 + $0x328] sm:$0xff] }
  0xd0   : > { %1218 = vmatprep.mubr.f32.mxu0 %v277_v59  ;;  %2866 = vmatprep.mubr.msk.f32.mxu1 %vm604_vm0, %v185_v60  ;;  %v325_v59 = vld [vmem:[%s3219_s30 + $0x4a0] sm:$0xff] }
  0xd1   : > { %v281_v60 = vld [vmem:[%s3219_s30 + $0x340] sm:$0xff] }
  0xd3   : > { %1219 = vmatmul.mubr.f32.gmra.mrb[66].mxu0 %v276_v61  ;;  %2867 = vmatmul.mubr.msk.f32.gmra.mrb[66].mxu1 %vm604_vm0, %v188_v62  ;;  %v324_v61 = vld [vmem:[%s3219_s30 + $0x498] sm:$0xff] }
  0xd4   : > { %1223 = vmatprep.mubr.f32.mxu0 %v280_v63  ;;  %2869 = vmatprep.mubr.msk.f32.mxu1 %vm604_vm0, %v191_v0  ;;  %v284_v62 = vld [vmem:[%s3219_s30 + $0x358] sm:$0xff]  ;;  %v287_v0 = vld [vmem:[%s3219_s30 + $0x370] sm:$0xff] }
  0xd5   : > { %v328_v63 = vld [vmem:[%s3219_s30 + $0x4b8] sm:$0xff] }
  0xd7   : > { %1224 = vmatmul.mubr.f32.gmra.mrb[68].mxu0 %v279_v1  ;;  %2870 = vmatmul.mubr.msk.f32.gmra.mrb[68].mxu1 %vm604_vm0, %v194_v2  ;;  %v327_v1 = vld [vmem:[%s3219_s30 + $0x4b0] sm:$0xff]  ;;  %v290_v2 = vld [vmem:[%s3219_s30 + $0x388] sm:$0xff] }
  0xd8   : > { %1228 = vmatprep.mubr.f32.mxu0 %v283_v3  ;;  %2872 = vmatprep.mubr.msk.f32.mxu1 %vm604_vm0, %v197_v4  ;;  %v331_v3 = vld [vmem:[%s3219_s30 + $0x4d0] sm:$0xff]  ;;  %v293_v4 = vld [vmem:[%s3219_s30 + $0x3a0] sm:$0xff] }
  0xdb   : > { %1229 = vmatmul.mubr.f32.gmra.mrb[70].mxu0 %v282_v5  ;;  %2873 = vmatmul.mubr.msk.f32.gmra.mrb[70].mxu1 %vm604_vm0, %v200_v6  ;;  %v330_v5 = vld [vmem:[%s3219_s30 + $0x4c8] sm:$0xff]  ;;  %v296_v6 = vld [vmem:[%s3219_s30 + $0x3b8] sm:$0xff] }
  0xdc   : > { %1233 = vmatprep.mubr.f32.mxu0 %v286_v7  ;;  %2875 = vmatprep.mubr.msk.f32.mxu1 %vm604_vm0, %v203_v8  ;;  %v334_v7 = vld [vmem:[%s3219_s30 + $0x4e8] sm:$0xff]  ;;  %v299_v8 = vld [vmem:[%s3219_s30 + $0x3d0] sm:$0xff] }
  0xdf   : > { %1234 = vmatmul.mubr.f32.gmra.mrb[72].mxu0 %v285_v9  ;;  %2876 = vmatmul.mubr.msk.f32.gmra.mrb[72].mxu1 %vm604_vm0, %v206_v10  ;;  %v333_v9 = vld [vmem:[%s3219_s30 + $0x4e0] sm:$0xff]  ;;  %v302_v10 = vld [vmem:[%s3219_s30 + $0x3e8] sm:$0xff] }
  0xe0   : > { %1238 = vmatprep.mubr.f32.mxu0 %v289_v11  ;;  %2878 = vmatprep.mubr.msk.f32.mxu1 %vm604_vm0, %v209_v12  ;;  %v337_v11 = vld [vmem:[%s3219_s30 + $0x500] sm:$0xff] }
  0xe1   : > { %v305_v12 = vld [vmem:[%s3219_s30 + $0x400] sm:$0xff] }
  0xe3   : > { %1239 = vmatmul.mubr.f32.gmra.mrb[74].mxu0 %v288_v13  ;;  %2879 = vmatmul.mubr.msk.f32.gmra.mrb[74].mxu1 %vm604_vm0, %v212_v14  ;;  %v336_v13 = vld [vmem:[%s3219_s30 + $0x4f8] sm:$0xff] }
  0xe4   : > { %1243 = vmatprep.mubr.f32.mxu0 %v292_v15  ;;  %2881 = vmatprep.mubr.msk.f32.mxu1 %vm604_vm0, %v215_v16  ;;  %v308_v14 = vld [vmem:[%s3219_s30 + $0x418] sm:$0xff]  ;;  %v311_v16 = vld [vmem:[%s3219_s30 + $0x430] sm:$0xff] }
  0xe5   : > { %v340_v15 = vld [vmem:[%s3219_s30 + $0x518] sm:$0xff] }
  0xe7   : > { %1244 = vmatmul.mubr.f32.gmra.mrb[76].mxu0 %v291_v17  ;;  %2882 = vmatmul.mubr.msk.f32.gmra.mrb[76].mxu1 %vm604_vm0, %v218_v18 }
  0xe8   : > { %1248 = vmatprep.mubr.f32.mxu0 %v295_v19  ;;  %2884 = vmatprep.mubr.msk.f32.mxu1 %vm604_vm0, %v221_v20 }
  0xeb   : > { %1249 = vmatmul.mubr.f32.gmra.mrb[78].mxu0 %v294_v21  ;;  %2885 = vmatmul.mubr.msk.f32.gmra.mrb[78].mxu1 %vm604_vm0, %v224_v22  ;;  %v339_v21 = vld [vmem:[%s3219_s30 + $0x510] sm:$0xff]  ;;  %v314_v22 = vld [vmem:[%s3219_s30 + $0x448] sm:$0xff] }
  0xec   : > { %1253 = vmatprep.mubr.f32.mxu0 %v298_v23  ;;  %2887 = vmatprep.mubr.msk.f32.mxu1 %vm604_vm0, %v227_v24  ;;  %v343_v23 = vld [vmem:[%s3219_s30 + $0x530] sm:$0xff]  ;;  %v317_v24 = vld [vmem:[%s3219_s30 + $0x460] sm:$0xff] }
  0xef   : > { %1254 = vmatmul.mubr.f32.gmra.mrb[80].mxu0 %v297_v25  ;;  %2888 = vmatmul.mubr.msk.f32.gmra.mrb[80].mxu1 %vm604_vm0, %v230_v26 }
  0xf0   : > { %1258 = vmatprep.mubr.f32.mxu0 %v301_v27  ;;  %2890 = vmatprep.mubr.msk.f32.mxu1 %vm604_vm0, %v233_v28 }
  0xf3   : > { %1259 = vmatmul.mubr.f32.gmra.mrb[82].mxu0 %v300_v29  ;;  %2891 = vmatmul.mubr.msk.f32.gmra.mrb[82].mxu1 %vm604_vm0, %v236_v30  ;;  %v342_v29 = vld [vmem:[%s3219_s30 + $0x528] sm:$0xff]  ;;  %v320_v30 = vld [vmem:[%s3219_s30 + $0x478] sm:$0xff] }
  0xf4   : > { %1263 = vmatprep.mubr.f32.mxu0 %v304_v31  ;;  %2893 = vmatprep.mubr.msk.f32.mxu1 %vm604_vm0, %v239_v32  ;;  %v346_v31 = vld [vmem:[%s3219_s30 + $0x548] sm:$0xff]  ;;  %v323_v32 = vld [vmem:[%s3219_s30 + $0x490] sm:$0xff] }
  0xf7   : > { %1264 = vmatmul.mubr.f32.gmra.mrb[84].mxu0 %v303_v33  ;;  %2894 = vmatmul.mubr.msk.f32.gmra.mrb[84].mxu1 %vm604_vm0, %v242_v34 }
  0xf8   : > { %1268 = vmatprep.mubr.f32.mxu0 %v307_v35  ;;  %2896 = vmatprep.mubr.msk.f32.mxu1 %vm604_vm0, %v245_v36 }
  0xfb   : > { %1269 = vmatmul.mubr.f32.gmra.mrb[86].mxu0 %v306_v37  ;;  %2897 = vmatmul.mubr.msk.f32.gmra.mrb[86].mxu1 %vm604_vm0, %v248_v38  ;;  %v345_v37 = vld [vmem:[%s3219_s30 + $0x540] sm:$0xff]  ;;  %v326_v38 = vld [vmem:[%s3219_s30 + $0x4a8] sm:$0xff] }
  0xfc   : > { %1273 = vmatprep.mubr.f32.mxu0 %v310_v39  ;;  %2899 = vmatprep.mubr.msk.f32.mxu1 %vm604_vm0, %v251_v40  ;;  %v349_v39 = vld [vmem:[%s3219_s30 + $0x560] sm:$0xff] }
  0xfd   : > { %v329_v40 = vld [vmem:[%s3219_s30 + $0x4c0] sm:$0xff] }
  0xff   : > { %1274 = vmatmul.mubr.f32.gmra.mrb[88].mxu0 %v309_v41  ;;  %2900 = vmatmul.mubr.msk.f32.gmra.mrb[88].mxu1 %vm604_vm0, %v254_v42 }
 0x100   : > { %1278 = vmatprep.mubr.f32.mxu0 %v313_v43  ;;  %2902 = vmatprep.mubr.msk.f32.mxu1 %vm604_vm0, %v257_v44 }
 0x103   : > { %1279 = vmatmul.mubr.f32.gmra.mrb[90].mxu0 %v312_v45  ;;  %2903 = vmatmul.mubr.msk.f32.gmra.mrb[90].mxu1 %vm604_vm0, %v260_v46  ;;  %v348_v45 = vld [vmem:[%s3219_s30 + $0x558] sm:$0xff] }
 0x104   : > { %1283 = vmatprep.mubr.f32.mxu0 %v316_v47  ;;  %2905 = vmatprep.mubr.msk.f32.mxu1 %vm604_vm0, %v263_v48  ;;  %v332_v46 = vld [vmem:[%s3219_s30 + $0x4d8] sm:$0xff]  ;;  %v335_v48 = vld [vmem:[%s3219_s30 + $0x4f0] sm:$0xff] }
 0x105   : > { %v352_v47 = vld [vmem:[%s3219_s30 + $0x578] sm:$0xff] }
 0x107   : > { %1284 = vmatmul.mubr.f32.gmra.mrb[92].mxu0 %v315_v49  ;;  %2906 = vmatmul.mubr.msk.f32.gmra.mrb[92].mxu1 %vm604_vm0, %v266_v50 }
 0x108   : > { %1288 = vmatprep.mubr.f32.mxu0 %v319_v51  ;;  %2908 = vmatprep.mubr.msk.f32.mxu1 %vm604_vm0, %v269_v52 }
 0x10b   : > { %1289 = vmatmul.mubr.f32.gmra.mrb[94].mxu0 %v318_v53  ;;  %2909 = vmatmul.mubr.msk.f32.gmra.mrb[94].mxu1 %vm604_vm0, %v272_v54  ;;  %v351_v53 = vld [vmem:[%s3219_s30 + $0x570] sm:$0xff]  ;;  %v338_v54 = vld [vmem:[%s3219_s30 + $0x508] sm:$0xff] }
 0x10c   : > { %1293 = vmatprep.mubr.f32.mxu0 %v322_v55  ;;  %2911 = vmatprep.mubr.msk.f32.mxu1 %vm604_vm0, %v275_v56  ;;  %v355_v55 = vld [vmem:[%s3219_s30 + $0x590] sm:$0xff]  ;;  %v341_v56 = vld [vmem:[%s3219_s30 + $0x520] sm:$0xff] }
 0x10f   : > { %1294 = vmatmul.mubr.f32.gmra.mrb[96].mxu0 %v321_v57  ;;  %2912 = vmatmul.mubr.msk.f32.gmra.mrb[96].mxu1 %vm604_vm0, %v278_v58 }
 0x110   : > { %1298 = vmatprep.mubr.f32.mxu0 %v325_v59  ;;  %2914 = vmatprep.mubr.msk.f32.mxu1 %vm604_vm0, %v281_v60 }
 0x113   : > { %1299 = vmatmul.mubr.f32.gmra.mrb[98].mxu0 %v324_v61  ;;  %2915 = vmatmul.mubr.msk.f32.gmra.mrb[98].mxu1 %vm604_vm0, %v284_v62  ;;  %v354_v61 = vld [vmem:[%s3219_s30 + $0x588] sm:$0xff]  ;;  %v344_v62 = vld [vmem:[%s3219_s30 + $0x538] sm:$0xff] }
 0x114   : > { %1303 = vmatprep.mubr.f32.mxu0 %v328_v63  ;;  %2917 = vmatprep.mubr.msk.f32.mxu1 %vm604_vm0, %v287_v0  ;;  %v358_v63 = vld [vmem:[%s3219_s30 + $0x5a8] sm:$0xff]  ;;  %v347_v0 = vld [vmem:[%s3219_s30 + $0x550] sm:$0xff] }
 0x117   : > { %1304 = vmatmul.mubr.f32.gmra.mrb[100].mxu0 %v327_v1  ;;  %2918 = vmatmul.mubr.msk.f32.gmra.mrb[100].mxu1 %vm604_vm0, %v290_v2 }
 0x118   : > { %1308 = vmatprep.mubr.f32.mxu0 %v331_v3  ;;  %2920 = vmatprep.mubr.msk.f32.mxu1 %vm604_vm0, %v293_v4 }
 0x11b   : > { %1309 = vmatmul.mubr.f32.gmra.mrb[102].mxu0 %v330_v5  ;;  %2921 = vmatmul.mubr.msk.f32.gmra.mrb[102].mxu1 %vm604_vm0, %v296_v6  ;;  %v357_v5 = vld [vmem:[%s3219_s30 + $0x5a0] sm:$0xff]  ;;  %v350_v6 = vld [vmem:[%s3219_s30 + $0x568] sm:$0xff] }
 0x11c   : > { %1313 = vmatprep.mubr.f32.mxu0 %v334_v7  ;;  %2923 = vmatprep.mubr.msk.f32.mxu1 %vm604_vm0, %v299_v8  ;;  %v361_v7 = vld [vmem:[%s3219_s30 + $0x5c0] sm:$0xff] }
 0x11d   : > { %v353_v8 = vld [vmem:[%s3219_s30 + $0x580] sm:$0xff] }
 0x11f   : > { %1314 = vmatmul.mubr.f32.gmra.mrb[104].mxu0 %v333_v9  ;;  %2924 = vmatmul.mubr.msk.f32.gmra.mrb[104].mxu1 %vm604_vm0, %v302_v10 }
 0x120   : > { %1318 = vmatprep.mubr.f32.mxu0 %v337_v11  ;;  %2926 = vmatprep.mubr.msk.f32.mxu1 %vm604_vm0, %v305_v12 }
 0x122   : > { %v3600_v17 = vpop.f32.mrb[0].mxu0  ;;  %v3602_v18 = vpop.f32.mrb[0].mxu1 }
 0x123   : > { %v1057_v19 = vpop.f32.mrb[1].mxu0  ;;  %1319 = vmatmul.mubr.f32.gmra.mrb[106].mxu0 %v336_v13  ;;  %v1537_v20 = vpop.f32.mrb[1].mxu1  ;;  %2927 = vmatmul.mubr.msk.f32.gmra.mrb[106].mxu1 %vm604_vm0, %v308_v14  ;;  %v360_v13 = vld [vmem:[%s3219_s30 + $0x5b8] sm:$0xff] }
 0x124   : > { %1323 = vmatprep.mubr.f32.mxu0 %v340_v15  ;;  %2929 = vmatprep.mubr.msk.f32.mxu1 %vm604_vm0, %v311_v16  ;;  %v356_v14 = vld [vmem:[%s3219_s30 + $0x598] sm:$0xff]  ;;  %v359_v16 = vld [vmem:[%s3219_s30 + $0x5b0] sm:$0xff] }
 0x125   : > { %v364_v15 = vld [vmem:[%s3219_s30 + $0x5d8] sm:$0xff] }
 0x126   : > { %v3610_v25 = vpop.f32.mrb[2].mxu0  ;;  %v3612_v26 = vpop.f32.mrb[2].mxu1 }
 0x127   : > { %v1062_v27 = vpop.f32.mrb[3].mxu0  ;;  %1324 = vmatmul.mubr.f32.gmra.mrb[108].mxu0 %v339_v21  ;;  %v1542_v28 = vpop.f32.mrb[3].mxu1  ;;  %2930 = vmatmul.mubr.msk.f32.gmra.mrb[108].mxu1 %vm604_vm0, %v314_v22 }
 0x128   : > { %1328 = vmatprep.mubr.f32.mxu0 %v343_v23  ;;  %2932 = vmatprep.mubr.msk.f32.mxu1 %vm604_vm0, %v317_v24  ;;  %v363_v23 = vld [vmem:[%s3219_s30 + $0x5d0] sm:$0xff]  ;;  %v362_v24 = vld [vmem:[%s3219_s30 + $0x5c8] sm:$0xff]  ;;  %v365_v28 = vld [vmem:[%s3219_s30 + $0x5e0] sm:$0xff] }
 0x129   : > { %v367_v27 = vld [vmem:[%s3219_s30 + $0x5f0] sm:$0xff] }
 0x12a   : > { %v3620_v33 = vpop.f32.mrb[4].mxu0  ;;  %v3622_v34 = vpop.f32.mrb[4].mxu1 }
 0x12b   : > { %v1067_v35 = vpop.f32.mrb[5].mxu0  ;;  %1329 = vmatmul.mubr.f32.gmra.mrb[110].mxu0 %v342_v29  ;;  %v1547_v36 = vpop.f32.mrb[5].mxu1  ;;  %2933 = vmatmul.mubr.msk.f32.gmra.mrb[110].mxu1 %vm604_vm0, %v320_v30 }
 0x12c   : > { %1333 = vmatprep.mubr.f32.mxu0 %v346_v31  ;;  %2935 = vmatprep.mubr.msk.f32.mxu1 %vm604_vm0, %v323_v32  ;;  %v366_v35 = vld [vmem:[%s3219_s30 + $0x5e8] sm:$0xff]  ;;  %v368_v36 = vld [vmem:[%s3219_s30 + $0x5f8] sm:$0xff] }
 0x12e   : > { %v3630_v41 = vpop.f32.mrb[6].mxu0  ;;  %v3632_v42 = vpop.f32.mrb[6].mxu1 }
 0x12f   : > { %v1072_v43 = vpop.f32.mrb[7].mxu0  ;;  %1334 = vmatmul.mubr.f32.gmra.mrb[112].mxu0 %v345_v37  ;;  %v1552_v44 = vpop.f32.mrb[7].mxu1  ;;  %2936 = vmatmul.mubr.msk.f32.gmra.mrb[112].mxu1 %vm604_vm0, %v326_v38  ;;  %v370_v37 = vld [vmem:[%s3219_s30 + $0x608] sm:$0xff]  ;;  %v371_v38 = vld [vmem:[%s3219_s30 + $0x610] sm:$0xff] }
 0x130   : > { %1338 = vmatprep.mubr.f32.mxu0 %v349_v39  ;;  %2938 = vmatprep.mubr.msk.f32.mxu1 %vm604_vm0, %v329_v40 }
 0x132   : > { %v3640_v49 = vpop.f32.mrb[8].mxu0  ;;  %v3642_v50 = vpop.f32.mrb[8].mxu1 }
 0x133   : > { %v1077_v51 = vpop.f32.mrb[9].mxu0  ;;  %1339 = vmatmul.mubr.f32.gmra.mrb[114].mxu0 %v348_v45  ;;  %v1557_v52 = vpop.f32.mrb[9].mxu1  ;;  %2939 = vmatmul.mubr.msk.f32.gmra.mrb[114].mxu1 %vm604_vm0, %v332_v46  ;;  %v369_v45 = vld [vmem:[%s3219_s30 + $0x600] sm:$0xff]  ;;  %v374_v46 = vld [vmem:[%s3219_s30 + $0x628] sm:$0xff] }
 0x134   : > { %1343 = vmatprep.mubr.f32.mxu0 %v352_v47  ;;  %2941 = vmatprep.mubr.msk.f32.mxu1 %vm604_vm0, %v335_v48  ;;  %v373_v47 = vld [vmem:[%s3219_s30 + $0x620] sm:$0xff] }
 0x135   : > { %v377_v48 = vld [vmem:[%s3219_s30 + $0x640] sm:$0xff] }
 0x136   : > { %v3650_v57 = vpop.f32.mrb[10].mxu0  ;;  %v3652_v58 = vpop.f32.mrb[10].mxu1 }
 0x137   : > { %v1082_v59 = vpop.f32.mrb[11].mxu0  ;;  %1344 = vmatmul.mubr.f32.gmra.mrb[116].mxu0 %v351_v53  ;;  %v1562_v60 = vpop.f32.mrb[11].mxu1  ;;  %2942 = vmatmul.mubr.msk.f32.gmra.mrb[116].mxu1 %vm604_vm0, %v338_v54 }
 0x138   : > { %1348 = vmatprep.mubr.f32.mxu0 %v355_v55  ;;  %2944 = vmatprep.mubr.msk.f32.mxu1 %vm604_vm0, %v341_v56  ;;  %v372_v55 = vld [vmem:[%s3219_s30 + $0x618] sm:$0xff]  ;;  %v383_v60 = vld [vmem:[%s3219_s30 + $0x670] sm:$0xff] }
 0x139   : > { %v380_v56 = vld [vmem:[%s3219_s30 + $0x658] sm:$0xff] }
 0x13a   : > { %v3660_v1 = vpop.f32.mrb[12].mxu0  ;;  %v3662_v2 = vpop.f32.mrb[12].mxu1  ;;  %v376_v59 = vld [vmem:[%s3219_s30 + $0x638] sm:$0xff] }
 0x13b   : > { %v1087_v3 = vpop.f32.mrb[13].mxu0  ;;  %1349 = vmatmul.mubr.f32.gmra.mrb[118].mxu0 %v354_v61  ;;  %v1567_v4 = vpop.f32.mrb[13].mxu1  ;;  %2945 = vmatmul.mubr.msk.f32.gmra.mrb[118].mxu1 %vm604_vm0, %v344_v62 }
 0x13c   : > { %1353 = vmatprep.mubr.f32.mxu0 %v358_v63  ;;  %2947 = vmatprep.mubr.msk.f32.mxu1 %vm604_vm0, %v347_v0  ;;  %v375_v3 = vld [vmem:[%s3219_s30 + $0x630] sm:$0xff]  ;;  %v386_v4 = vld [vmem:[%s3219_s30 + $0x688] sm:$0xff] }
 0x13e   : > { %v3670_v9 = vpop.f32.mrb[14].mxu0  ;;  %v3672_v10 = vpop.f32.mrb[14].mxu1 }
 0x13f   : > { %v1092_v11 = vpop.f32.mrb[15].mxu0  ;;  %1354 = vmatmul.mubr.f32.gmra.mrb[120].mxu0 %v357_v5  ;;  %v1572_v12 = vpop.f32.mrb[15].mxu1  ;;  %2948 = vmatmul.mubr.msk.f32.gmra.mrb[120].mxu1 %vm604_vm0, %v350_v6  ;;  %v379_v5 = vld [vmem:[%s3219_s30 + $0x650] sm:$0xff]  ;;  %v389_v6 = vld [vmem:[%s3219_s30 + $0x6a0] sm:$0xff] }
 0x140   : > { %1358 = vmatprep.mubr.f32.mxu0 %v361_v7  ;;  %2950 = vmatprep.mubr.msk.f32.mxu1 %vm604_vm0, %v353_v8 }
 0x142   : > { %v3680_v19 = vpop.f32.mrb[16].mxu0  ;;  %v3682_v20 = vpop.f32.mrb[16].mxu1 }
 0x143   : > { %v1097_v21 = vpop.f32.mrb[17].mxu0  ;;  %1359 = vmatmul.mubr.f32.gmra.mrb[122].mxu0 %v360_v13  ;;  %v1577_v22 = vpop.f32.mrb[17].mxu1  ;;  %2951 = vmatmul.mubr.msk.f32.gmra.mrb[122].mxu1 %vm604_vm0, %v356_v14  ;;  %v378_v13 = vld [vmem:[%s3219_s30 + $0x648] sm:$0xff]  ;;  %v392_v14 = vld [vmem:[%s3219_s30 + $0x6b8] sm:$0xff] }
 0x144   : > { %1363 = vmatprep.mubr.f32.mxu0 %v364_v15  ;;  %2953 = vmatprep.mubr.msk.f32.mxu1 %vm604_vm0, %v359_v16  ;;  %v382_v15 = vld [vmem:[%s3219_s30 + $0x668] sm:$0xff]  ;;  %v395_v16 = vld [vmem:[%s3219_s30 + $0x6d0] sm:$0xff] }
 0x146   : > { %v3690_v29 = vpop.f32.mrb[18].mxu0  ;;  %v3692_v30 = vpop.f32.mrb[18].mxu1 }
 0x147   : > { %v1102_v31 = vpop.f32.mrb[19].mxu0  ;;  %1364 = vmatmul.mubr.f32.gmra.mrb[124].mxu0 %v363_v23  ;;  %v1582_v32 = vpop.f32.mrb[19].mxu1  ;;  %2954 = vmatmul.mubr.msk.f32.gmra.mrb[124].mxu1 %vm604_vm0, %v362_v24 }
 0x148   : > { %1368 = vmatprep.mubr.f32.mxu0 %v367_v27  ;;  %2956 = vmatprep.mubr.msk.f32.mxu1 %vm604_vm0, %v365_v28  ;;  %v381_v27 = vld [vmem:[%s3219_s30 + $0x660] sm:$0xff]  ;;  %v398_v28 = vld [vmem:[%s3219_s30 + $0x6e8] sm:$0xff] }
 0x149   : > { %v385_v31 = vld [vmem:[%s3219_s30 + $0x680] sm:$0xff] }
 0x14a   : > { %v3700_v39 = vpop.f32.mrb[20].mxu0  ;;  %v3702_v40 = vpop.f32.mrb[20].mxu1  ;;  %v401_v32 = vld [vmem:[%s3219_s30 + $0x700] sm:$0xff] }
 0x14b   : > { %v1107_v43 = vpop.f32.mrb[21].mxu0  ;;  %1369 = vmatmul.mubr.f32.gmra.mrb[126].mxu0 %v366_v35  ;;  %v1587_v44 = vpop.f32.mrb[21].mxu1  ;;  %2957 = vmatmul.mubr.msk.f32.gmra.mrb[126].mxu1 %vm604_vm0, %v368_v36 }
 0x14c   : > { %1373 = vmatprep.mubr.f32.mxu0 %v370_v37  ;;  %2959 = vmatprep.mubr.msk.f32.mxu1 %vm604_vm0, %v371_v38  ;;  %v384_v43 = vld [vmem:[%s3219_s30 + $0x678] sm:$0xff] }
 0x14d   : > { %v404_v44 = vld [vmem:[%s3219_s30 + $0x718] sm:$0xff] }
 0x14e   : > { %v3710_v51 = vpop.f32.mrb[22].mxu0  ;;  %v3712_v52 = vpop.f32.mrb[22].mxu1 }
 0x14f   : > { %v1112_v53 = vpop.f32.mrb[23].mxu0  ;;  %1374 = vmatmul.mubr.f32.gmra.mrb[128].mxu0 %v369_v45  ;;  %v1592_v54 = vpop.f32.mrb[23].mxu1  ;;  %2960 = vmatmul.mubr.msk.f32.gmra.mrb[128].mxu1 %vm604_vm0, %v374_v46  ;;  %v388_v45 = vld [vmem:[%s3219_s30 + $0x698] sm:$0xff]  ;;  %v407_v46 = vld [vmem:[%s3219_s30 + $0x730] sm:$0xff] }
 0x150   : > { %1378 = vmatprep.mubr.f32.mxu0 %v373_v47  ;;  %2962 = vmatprep.mubr.msk.f32.mxu1 %vm604_vm0, %v377_v48 }
 0x152   : > { %v3720_v61 = vpop.f32.mrb[24].mxu0  ;;  %v3722_v62 = vpop.f32.mrb[24].mxu1 }
 0x153   : > { %v1117_v63 = vpop.f32.mrb[25].mxu0  ;;  %1379 = vmatmul.mubr.f32.gmra.mrb[130].mxu0 %v372_v55  ;;  %v1597_v0 = vpop.f32.mrb[25].mxu1  ;;  %2963 = vmatmul.mubr.msk.f32.gmra.mrb[130].mxu1 %vm604_vm0, %v380_v56  ;;  %v387_v55 = vld [vmem:[%s3219_s30 + $0x690] sm:$0xff]  ;;  %v410_v56 = vld [vmem:[%s3219_s30 + $0x748] sm:$0xff] }
 0x154   : > { %1383 = vmatprep.mubr.f32.mxu0 %v376_v59  ;;  %2965 = vmatprep.mubr.msk.f32.mxu1 %vm604_vm0, %v383_v60  ;;  %v391_v59 = vld [vmem:[%s3219_s30 + $0x6b0] sm:$0xff]  ;;  %v413_v60 = vld [vmem:[%s3219_s30 + $0x760] sm:$0xff] }
 0x156   : > { %v3730_v7 = vpop.f32.mrb[26].mxu0  ;;  %v3732_v8 = vpop.f32.mrb[26].mxu1 }
 0x157   : > { %v1122_v11 = vpop.f32.mrb[27].mxu0  ;;  %1384 = vmatmul.mubr.f32.gmra.mrb[132].mxu0 %v375_v3  ;;  %v1602_v12 = vpop.f32.mrb[27].mxu1  ;;  %2966 = vmatmul.mubr.msk.f32.gmra.mrb[132].mxu1 %vm604_vm0, %v386_v4 }
 0x158   : > { %1388 = vmatprep.mubr.f32.mxu0 %v379_v5  ;;  %2968 = vmatprep.mubr.msk.f32.mxu1 %vm604_vm0, %v389_v6  ;;  %v390_v5 = vld [vmem:[%s3219_s30 + $0x6a8] sm:$0xff]  ;;  %v416_v6 = vld [vmem:[%s3219_s30 + $0x778] sm:$0xff]  ;;  %v419_v12 = vld [vmem:[%s3219_s30 + $0x790] sm:$0xff] }
 0x159   : > { %v394_v11 = vld [vmem:[%s3219_s30 + $0x6c8] sm:$0xff] }
 0x15a   : > { %v3740_v21 = vpop.f32.mrb[28].mxu0  ;;  %v3742_v22 = vpop.f32.mrb[28].mxu1 }
 0x15b   : > { %v1127_v23 = vpop.f32.mrb[29].mxu0  ;;  %1389 = vmatmul.mubr.f32.gmra.mrb[134].mxu0 %v378_v13  ;;  %v1607_v24 = vpop.f32.mrb[29].mxu1  ;;  %2969 = vmatmul.mubr.msk.f32.gmra.mrb[134].mxu1 %vm604_vm0, %v392_v14 }
 0x15c   : > { %1393 = vmatprep.mubr.f32.mxu0 %v382_v15  ;;  %2971 = vmatprep.mubr.msk.f32.mxu1 %vm604_vm0, %v395_v16  ;;  %v393_v23 = vld [vmem:[%s3219_s30 + $0x6c0] sm:$0xff]  ;;  %v422_v24 = vld [vmem:[%s3219_s30 + $0x7a8] sm:$0xff] }
 0x15e   : > { %v3750_v35 = vpop.f32.mrb[30].mxu0  ;;  %v3752_v36 = vpop.f32.mrb[30].mxu1 }
 0x15f   : > { %v1132_v37 = vpop.f32.mrb[31].mxu0  ;;  %1394 = vmatmul.mubr.f32.gmra.mrb[136].mxu0 %v381_v27  ;;  %v1612_v38 = vpop.f32.mrb[31].mxu1  ;;  %2972 = vmatmul.mubr.msk.f32.gmra.mrb[136].mxu1 %vm604_vm0, %v398_v28  ;;  %v397_v27 = vld [vmem:[%s3219_s30 + $0x6e0] sm:$0xff] }
 0x160   : > { %1398 = vmatprep.mubr.f32.mxu0 %v385_v31  ;;  %2974 = vmatprep.mubr.msk.f32.mxu1 %vm604_vm0, %v401_v32  ;;  %v425_v28 = vld [vmem:[%s3219_s30 + $0x7c0] sm:$0xff] }
 0x162   : > { %v3760_v47 = vpop.f32.mrb[32].mxu0  ;;  %v3762_v48 = vpop.f32.mrb[32].mxu1 }
 0x163   : > { %4430 = vst [vmem:[#allocation2_spill] sm:$0xff] %v3762_v48  ;;  %v1137_v53 = vpop.f32.mrb[33].mxu0  ;;  %1399 = vmatmul.mubr.f32.gmra.mrb[138].mxu0 %v384_v43  ;;  %v1617_v54 = vpop.f32.mrb[33].mxu1  ;;  %2975 = vmatmul.mubr.msk.f32.gmra.mrb[138].mxu1 %vm604_vm0, %v404_v44  ;;  %v396_v43 = vld [vmem:[%s3219_s30 + $0x6d8] sm:$0xff]  ;;  %v439_v48 = vld [vmem:[%s3219_s30 + $0x830] sm:$0xff] }
 0x164   : > { %1403 = vmatprep.mubr.f32.mxu0 %v388_v45  ;;  %2977 = vmatprep.mubr.msk.f32.mxu1 %vm604_vm0, %v407_v46  ;;  %v428_v44 = vld [vmem:[%s3219_s30 + $0x7d8] sm:$0xff]  ;;  %v431_v46 = vld [vmem:[%s3219_s30 + $0x7f0] sm:$0xff] }
 0x165   : > { %v400_v45 = vld [vmem:[%s3219_s30 + $0x6f8] sm:$0xff] }
 0x166   : > { %v3770_v63 = vpop.f32.mrb[34].mxu0  ;;  %v3772_v0 = vpop.f32.mrb[34].mxu1 }
 0x167   : > { %4431 = vst [vmem:[#allocation3_spill] sm:$0xff] %v3772_v0  ;;  %v1142_v3 = vpop.f32.mrb[35].mxu0  ;;  %1404 = vmatmul.mubr.f32.gmra.mrb[140].mxu0 %v387_v55  ;;  %v1622_v4 = vpop.f32.mrb[35].mxu1  ;;  %2978 = vmatmul.mubr.msk.f32.gmra.mrb[140].mxu1 %vm604_vm0, %v410_v56  ;;  %v509_v0 = vld [vmem:[%s3219_s30 + $0xa60] sm:$0xff] }
 0x168   : > { %1408 = vmatprep.mubr.f32.mxu0 %v391_v59  ;;  %2980 = vmatprep.mubr.msk.f32.mxu1 %vm604_vm0, %v413_v60  ;;  %v399_v59 = vld [vmem:[%s3219_s30 + $0x6f0] sm:$0xff]  ;;  %v434_v60 = vld [vmem:[%s3219_s30 + $0x808] sm:$0xff]  ;;  %v437_v4 = vld [vmem:[%s3219_s30 + $0x820] sm:$0xff] }
 0x169   : > { %v403_v3 = vld [vmem:[%s3219_s30 + $0x710] sm:$0xff] }
 0x16a   : > { %v3780_v13 = vpop.f32.mrb[36].mxu0  ;;  %v3782_v14 = vpop.f32.mrb[36].mxu1 }
 0x16b   : > { %4432 = vst [vmem:[#allocation4_spill] sm:$0xff] %v3782_v14  ;;  %v1147_v15 = vpop.f32.mrb[37].mxu0  ;;  %1409 = vmatmul.mubr.f32.gmra.mrb[142].mxu0 %v390_v5  ;;  %v1627_v16 = vpop.f32.mrb[37].mxu1  ;;  %2981 = vmatmul.mubr.msk.f32.gmra.mrb[142].mxu1 %vm604_vm0, %v416_v6  ;;  %v506_v14 = vld [vmem:[%s3219_s30 + $0xa48] sm:$0xff] }
 0x16c   : > { %1413 = vmatprep.mubr.f32.mxu0 %v394_v11  ;;  %2983 = vmatprep.mubr.msk.f32.mxu1 %vm604_vm0, %v419_v12  ;;  %v402_v15 = vld [vmem:[%s3219_s30 + $0x708] sm:$0xff]  ;;  %v440_v16 = vld [vmem:[%s3219_s30 + $0x838] sm:$0xff] }
 0x16e   : > { %v3790_v31 = vpop.f32.mrb[38].mxu0  ;;  %v3792_v32 = vpop.f32.mrb[38].mxu1 }
 0x16f   : > { %4433 = vst [vmem:[#allocation5_spill] sm:$0xff] %v3792_v32  ;;  %v1152_v37 = vpop.f32.mrb[39].mxu0  ;;  %1414 = vmatmul.mubr.f32.gmra.mrb[144].mxu0 %v393_v23  ;;  %v1632_v38 = vpop.f32.mrb[39].mxu1  ;;  %2984 = vmatmul.mubr.msk.f32.gmra.mrb[144].mxu1 %vm604_vm0, %v422_v24  ;;  %v406_v23 = vld [vmem:[%s3219_s30 + $0x728] sm:$0xff]  ;;  %v443_v24 = vld [vmem:[%s3219_s30 + $0x850] sm:$0xff] }
 0x170   : > { %1418 = vmatprep.mubr.f32.mxu0 %v397_v27  ;;  %2986 = vmatprep.mubr.msk.f32.mxu1 %vm604_vm0, %v425_v28 }
 0x172   : > { %v3800_v53 = vpop.f32.mrb[40].mxu0  ;;  %v3802_v54 = vpop.f32.mrb[40].mxu1 }
 0x173   : > { %4434 = vst [vmem:[#allocation6_spill] sm:$0xff] %v3802_v54  ;;  %v1157_v55 = vpop.f32.mrb[41].mxu0  ;;  %1419 = vmatmul.mubr.f32.gmra.mrb[146].mxu0 %v396_v43  ;;  %v1637_v56 = vpop.f32.mrb[41].mxu1  ;;  %2987 = vmatmul.mubr.msk.f32.gmra.mrb[146].mxu1 %vm604_vm0, %v428_v44  ;;  %v405_v43 = vld [vmem:[%s3219_s30 + $0x720] sm:$0xff]  ;;  %v446_v44 = vld [vmem:[%s3219_s30 + $0x868] sm:$0xff] }
 0x174   : > { %1423 = vmatprep.mubr.f32.mxu0 %v400_v45  ;;  %2989 = vmatprep.mubr.msk.f32.mxu1 %vm604_vm0, %v431_v46  ;;  %v409_v45 = vld [vmem:[%s3219_s30 + $0x740] sm:$0xff] }
 0x175   : > { %v449_v46 = vld [vmem:[%s3219_s30 + $0x880] sm:$0xff] }
 0x176   : > { %v3810_v5 = vpop.f32.mrb[42].mxu0  ;;  %v3812_v6 = vpop.f32.mrb[42].mxu1 }
 0x177   : > { %4435 = vst [vmem:[#allocation7_spill] sm:$0xff] %v3812_v6  ;;  %v1162_v11 = vpop.f32.mrb[43].mxu0  ;;  %1424 = vmatmul.mubr.f32.gmra.mrb[148].mxu0 %v399_v59  ;;  %v1642_v12 = vpop.f32.mrb[43].mxu1  ;;  %2990 = vmatmul.mubr.msk.f32.gmra.mrb[148].mxu1 %vm604_vm0, %v434_v60  ;;  %v503_v6 = vld [vmem:[%s3219_s30 + $0xa30] sm:$0xff] }
 0x178   : > { %1428 = vmatprep.mubr.f32.mxu0 %v403_v3  ;;  %2992 = vmatprep.mubr.msk.f32.mxu1 %vm604_vm0, %v437_v4  ;;  %v408_v3 = vld [vmem:[%s3219_s30 + $0x738] sm:$0xff]  ;;  %v455_v12 = vld [vmem:[%s3219_s30 + $0x8b0] sm:$0xff] }
 0x179   : > { %v452_v4 = vld [vmem:[%s3219_s30 + $0x898] sm:$0xff] }
 0x17a   : > { %v3820_v27 = vpop.f32.mrb[44].mxu0  ;;  %v3822_v28 = vpop.f32.mrb[44].mxu1  ;;  %v412_v11 = vld [vmem:[%s3219_s30 + $0x758] sm:$0xff] }
 0x17b   : > { %4436 = vst [vmem:[#allocation8_spill] sm:$0xff] %v3822_v28  ;;  %v1167_v37 = vpop.f32.mrb[45].mxu0  ;;  %1429 = vmatmul.mubr.f32.gmra.mrb[150].mxu0 %v402_v15  ;;  %v1647_v38 = vpop.f32.mrb[45].mxu1  ;;  %2993 = vmatmul.mubr.msk.f32.gmra.mrb[150].mxu1 %vm604_vm0, %v440_v16 }
 0x17c   : > { %1433 = vmatprep.mubr.f32.mxu0 %v406_v23  ;;  %2995 = vmatprep.mubr.msk.f32.mxu1 %vm604_vm0, %v443_v24  ;;  %v411_v37 = vld [vmem:[%s3219_s30 + $0x750] sm:$0xff]  ;;  %v458_v38 = vld [vmem:[%s3219_s30 + $0x8c8] sm:$0xff] }
 0x17e   : > { %v3830_v55 = vpop.f32.mrb[46].mxu0  ;;  %v3832_v56 = vpop.f32.mrb[46].mxu1 }
 0x17f   : > { %4437 = vst [vmem:[#allocation9_spill] sm:$0xff] %v3832_v56  ;;  %v1172_v59 = vpop.f32.mrb[47].mxu0  ;;  %1434 = vmatmul.mubr.f32.gmra.mrb[152].mxu0 %v405_v43  ;;  %v1652_v60 = vpop.f32.mrb[47].mxu1  ;;  %2996 = vmatmul.mubr.msk.f32.gmra.mrb[152].mxu1 %vm604_vm0, %v446_v44  ;;  %v415_v43 = vld [vmem:[%s3219_s30 + $0x770] sm:$0xff]  ;;  %v461_v44 = vld [vmem:[%s3219_s30 + $0x8e0] sm:$0xff] }
 0x180   : > { %1438 = vmatprep.mubr.f32.mxu0 %v409_v45  ;;  %2998 = vmatprep.mubr.msk.f32.mxu1 %vm604_vm0, %v449_v46 }
 0x182   : > { %v3840_v15 = vpop.f32.mrb[48].mxu0  ;;  %v3842_v16 = vpop.f32.mrb[48].mxu1 }
 0x183   : > { %4438 = vst [vmem:[#allocation10_spill] sm:$0xff] %v3842_v16  ;;  %v1177_v23 = vpop.f32.mrb[49].mxu0  ;;  %1439 = vmatmul.mubr.f32.gmra.mrb[154].mxu0 %v408_v3  ;;  %v1657_v24 = vpop.f32.mrb[49].mxu1  ;;  %2999 = vmatmul.mubr.msk.f32.gmra.mrb[154].mxu1 %vm604_vm0, %v452_v4  ;;  %v414_v3 = vld [vmem:[%s3219_s30 + $0x768] sm:$0xff]  ;;  %v464_v4 = vld [vmem:[%s3219_s30 + $0x8f8] sm:$0xff] }
 0x184   : > { %1443 = vmatprep.mubr.f32.mxu0 %v412_v11  ;;  %3001 = vmatprep.mubr.msk.f32.mxu1 %vm604_vm0, %v455_v12  ;;  %v418_v11 = vld [vmem:[%s3219_s30 + $0x788] sm:$0xff]  ;;  %v467_v12 = vld [vmem:[%s3219_s30 + $0x910] sm:$0xff] }
 0x186   : > { %v3850_v45 = vpop.f32.mrb[50].mxu0  ;;  %v3852_v46 = vpop.f32.mrb[50].mxu1 }
 0x187   : > { %4439 = vst [vmem:[#allocation11_spill] sm:$0xff] %v3852_v46  ;;  %v1182_v59 = vpop.f32.mrb[51].mxu0  ;;  %1444 = vmatmul.mubr.f32.gmra.mrb[156].mxu0 %v411_v37  ;;  %v1662_v60 = vpop.f32.mrb[51].mxu1  ;;  %3002 = vmatmul.mubr.msk.f32.gmra.mrb[156].mxu1 %vm604_vm0, %v458_v38  ;;  %v417_v38 = vld [vmem:[%s3219_s30 + $0x780] sm:$0xff] }
 0x188   : > { %1448 = vmatprep.mubr.f32.mxu0 %v415_v43  ;;  %3004 = vmatprep.mubr.msk.f32.mxu1 %vm604_vm0, %v461_v44  ;;  %v470_v43 = vld [vmem:[%s3219_s30 + $0x928] sm:$0xff]  ;;  %v421_v44 = vld [vmem:[%s3219_s30 + $0x7a0] sm:$0xff] }
 0x189   : > { %v473_v60 = vld [vmem:[%s3219_s30 + $0x940] sm:$0xff] }
 0x18a   : > { %v3860_v23 = vpop.f32.mrb[52].mxu0  ;;  %v3862_v24 = vpop.f32.mrb[52].mxu1 }
 0x18b   : > { %4440 = vst [vmem:[#allocation12_spill] sm:$0xff] %v3862_v24  ;;  %v1187_v59 = vpop.f32.mrb[53].mxu0  ;;  %1449 = vmatmul.mubr.f32.gmra.mrb[158].mxu0 %v414_v3  ;;  %v1667_v37 = vpop.f32.mrb[53].mxu1  ;;  %3005 = vmatmul.mubr.msk.f32.gmra.mrb[158].mxu1 %vm604_vm0, %v464_v4  ;;  %v420_v4 = vld [vmem:[%s3219_s30 + $0x798] sm:$0xff] }
 0x18c   : > { %1453 = vmatprep.mubr.f32.mxu0 %v418_v11  ;;  %3007 = vmatprep.mubr.msk.f32.mxu1 %vm604_vm0, %v467_v12  ;;  %v476_v11 = vld [vmem:[%s3219_s30 + $0x958] sm:$0xff]  ;;  %v479_v37 = vld [vmem:[%s3219_s30 + $0x970] sm:$0xff] }
 0x18d   : > { %v424_v12 = vld [vmem:[%s3219_s30 + $0x7b8] sm:$0xff] }
 0x18e   : > { %v3870_v16 = vpop.f32.mrb[54].mxu0  ;;  %v3872_v46 = vpop.f32.mrb[54].mxu1 }
 0x18f   : > { %4441 = vst [vmem:[#allocation13_spill] sm:$0xff] %v3872_v46  ;;  %v1192_v59 = vpop.f32.mrb[55].mxu0  ;;  %1454 = vmatmul.mubr.f32.gmra.mrb[160].mxu0 %v417_v38  ;;  %v1672_v3 = vpop.f32.mrb[55].mxu1  ;;  %3008 = vmatmul.mubr.msk.f32.gmra.mrb[160].mxu1 %vm604_vm0, %v470_v43  ;;  %v423_v43 = vld [vmem:[%s3219_s30 + $0x7b0] sm:$0xff] }
 0x190   : > { %1458 = vmatprep.mubr.f32.mxu0 %v421_v44  ;;  %3010 = vmatprep.mubr.msk.f32.mxu1 %vm604_vm0, %v473_v60  ;;  %v482_v44 = vld [vmem:[%s3219_s30 + $0x988] sm:$0xff]  ;;  %v427_v60 = vld [vmem:[%s3219_s30 + $0x7d0] sm:$0xff]  ;;  %v485_v3 = vld [vmem:[%s3219_s30 + $0x9a0] sm:$0xff] }
 0x192   : > { %v3880_v24 = vpop.f32.mrb[56].mxu0  ;;  %v3882_v28 = vpop.f32.mrb[56].mxu1 }
 0x193   : > { %4442 = vst [vmem:[#allocation14_spill] sm:$0xff] %v3882_v28  ;;  %v1197_v59 = vpop.f32.mrb[57].mxu0  ;;  %1459 = vmatmul.mubr.f32.gmra.mrb[162].mxu0 %v420_v4  ;;  %v1677_v38 = vpop.f32.mrb[57].mxu1  ;;  %3011 = vmatmul.mubr.msk.f32.gmra.mrb[162].mxu1 %vm604_vm0, %v476_v11  ;;  %v426_v11 = vld [vmem:[%s3219_s30 + $0x7c8] sm:$0xff] }
 0x194   : > { %1463 = vmatprep.mubr.f32.mxu0 %v424_v12  ;;  %3013 = vmatprep.mubr.msk.f32.mxu1 %vm604_vm0, %v479_v37  ;;  %v488_v12 = vld [vmem:[%s3219_s30 + $0x9b8] sm:$0xff]  ;;  %v430_v37 = vld [vmem:[%s3219_s30 + $0x7e8] sm:$0xff]  ;;  %v491_v38 = vld [vmem:[%s3219_s30 + $0x9d0] sm:$0xff] }
 0x196   : > { %v3890_v46 = vpop.f32.mrb[58].mxu0  ;;  %v3892_v56 = vpop.f32.mrb[58].mxu1 }
 0x197   : > { %4443 = vst [vmem:[#allocation15_spill] sm:$0xff] %v3892_v56  ;;  %v1202_v59 = vpop.f32.mrb[59].mxu0  ;;  %1464 = vmatmul.mubr.f32.gmra.mrb[164].mxu0 %v423_v43  ;;  %v1682_v4 = vpop.f32.mrb[59].mxu1  ;;  %3014 = vmatmul.mubr.msk.f32.gmra.mrb[164].mxu1 %vm604_vm0, %v482_v44  ;;  %v429_v44 = vld [vmem:[%s3219_s30 + $0x7e0] sm:$0xff] }
 0x198   : > { %1468 = vmatprep.mubr.f32.mxu0 %v427_v60  ;;  %3016 = vmatprep.mubr.msk.f32.mxu1 %vm604_vm0, %v485_v3  ;;  %v494_v60 = vld [vmem:[%s3219_s30 + $0x9e8] sm:$0xff]  ;;  %v433_v3 = vld [vmem:[%s3219_s30 + $0x800] sm:$0xff] }
 0x199   : > { %v497_v4 = vld [vmem:[%s3219_s30 + $0xa00] sm:$0xff] }
 0x19a   : > { %v3900_v28 = vpop.f32.mrb[60].mxu0  ;;  %v3902_v54 = vpop.f32.mrb[60].mxu1 }
 0x19b   : > { %4444 = vst [vmem:[#allocation16_spill] sm:$0xff] %v3902_v54  ;;  %v1207_v59 = vpop.f32.mrb[61].mxu0  ;;  %1469 = vmatmul.mubr.f32.gmra.mrb[166].mxu0 %v426_v11  ;;  %v1687_v43 = vpop.f32.mrb[61].mxu1  ;;  %3017 = vmatmul.mubr.msk.f32.gmra.mrb[166].mxu1 %vm604_vm0, %v488_v12  ;;  %v3917_v11 = vld [vmem:[%s4428_s2] ss:$0 sm:$0xff] }
 0x19c   : > { %1473 = vmatprep.mubr.f32.mxu0 %v430_v37  ;;  %3019 = vmatprep.mubr.msk.f32.mxu1 %vm604_vm0, %v491_v38  ;;  %v432_v38 = vld [vmem:[%s3219_s30 + $0x7f8] sm:$0xff]  ;;  %v1061_v43 = vadd.f32 %v3917_v11, %v3610_v25  ;;  %v1071_v32 = vadd.f32 %v3917_v11, %v3630_v41 }
 0x19d   : > { %v500_v59 = vld [vmem:[%s3219_s30 + $0xa18] sm:$0xff] }
 0x19e   : > { %v3910_v56 = vpop.f32.mrb[62].mxu0  ;;  %v3912_v54 = vpop.f32.mrb[62].mxu1 }
 0x19f   : > { %4445 = vst [vmem:[#allocation17_spill] sm:$0xff] %v3912_v54  ;;  %v1212_v12 = vpop.f32.mrb[63].mxu0  ;;  %1474 = vmatmul.mubr.f32.gmra.mrb[168].mxu0 %v429_v44  ;;  %v1692_v37 = vpop.f32.mrb[63].mxu1  ;;  %3020 = vmatmul.mubr.msk.f32.gmra.mrb[168].mxu1 %vm604_vm0, %v494_v60  ;;  %v436_v54 = vld [vmem:[%s3219_s30 + $0x818] sm:$0xff] }
 0x1a0   : > { %1478 = vmatprep.mubr.f32.mxu0 %v433_v3  ;;  %3022 = vmatprep.mubr.msk.f32.mxu1 %vm604_vm0, %v497_v4  ;;  %v1056_v12 = vadd.f32 %v3917_v11, %v3600_v17  ;;  %v435_v17 = vld [vmem:[%s3219_s30 + $0x810] sm:$0xff] }
 0x1a2   : > { %v3930_v44 = vpop.f32.mrb[64].mxu0  ;;  %v2865_v60 = vpop.f32.mrb[64].mxu1 }
 0x1a3   : > { %v1766_v3 = vadd.f32 %v2865_v60, %v1061_v43  ;;  %v1217_v25 = vpop.f32.mrb[65].mxu0  ;;  %1479 = vmatmul.mubr.f32.gmra.mrb[170].mxu0 %v432_v38  ;;  %v1760_v4 = vpop.f32.mrb[65].mxu1  ;;  %3023 = vmatmul.mubr.msk.f32.gmra.mrb[170].mxu1 %vm604_vm0, %v500_v59  ;;  %v1066_v38 = vadd.f32 %v3917_v11, %v3620_v33  ;;  %v438_v60 = vld [vmem:[%s3219_s30 + $0x828] sm:$0xff]  ;;  %v1081_v33 = vadd.f32 %v3917_v11, %v3650_v57 }
 0x1a4   : > { %v1761_v37 = vadd.f32 %v1760_v4, %v1056_v12  ;;  %1483 = vmatprep.mubr.f32.mxu0 %v436_v54  ;;  %3025 = vmatprep.mubr.msk.f32.mxu1 %vm604_vm0, %v503_v6  ;;  %v442_v25 = vld [vmem:[%s3219_s30 + $0x848] sm:$0xff]  ;;  %v515_v4 = vld [vmem:[%s3219_s30 + $0xa90] sm:$0xff] }
 0x1a5   : > { %2400 = vst [vmem:[%s3935_s22 + $0x8] sm:$0xff] %v1766_v3  ;;  %v512_v3 = vld [vmem:[%s3219_s30 + $0xa78] sm:$0xff] }
 0x1a6   : > { %2399 = vst [vmem:[%s3935_s22] sm:$0xff] %v1761_v37  ;;  %v3949_v54 = vpop.f32.mrb[66].mxu0  ;;  %v2868_v6 = vpop.f32.mrb[66].mxu1 }
 0x1a7   : > { %v1776_v59 = vadd.f32 %v2868_v6, %v1071_v32  ;;  %v1222_v43 = vpop.f32.mrb[67].mxu0  ;;  %1484 = vmatmul.mubr.f32.gmra.mrb[172].mxu0 %v435_v17  ;;  %v1770_v41 = vpop.f32.mrb[67].mxu1  ;;  %3026 = vmatmul.mubr.msk.f32.gmra.mrb[172].mxu1 %vm604_vm0, %v506_v14  ;;  %v1076_v32 = vadd.f32 %v3917_v11, %v3640_v49  ;;  %v518_v6 = vld [vmem:[%s3219_s30 + $0xaa8] sm:$0xff]  ;;  %v1091_v49 = vadd.f32 %v3917_v11, %v3670_v9 }
 0x1a8   : > { %v1771_v12 = vadd.f32 %v1770_v41, %v1066_v38  ;;  %1488 = vmatprep.mubr.f32.mxu0 %v439_v48  ;;  %3028 = vmatprep.mubr.msk.f32.mxu1 %vm604_vm0, %v509_v0  ;;  %v441_v38 = vld [vmem:[%s3219_s30 + $0x840] sm:$0xff]  ;;  %v1086_v41 = vadd.f32 %v3917_v11, %v3660_v1  ;;  %v1101_v1 = vadd.f32 %v3917_v11, %v3690_v29 }
 0x1a9   : > { %2402 = vst [vmem:[%s3935_s22 + $0x18] sm:$0xff] %v1776_v59  ;;  %v445_v59 = vld [vmem:[%s3219_s30 + $0x860] sm:$0xff] }
 0x1aa   : > { %2401 = vst [vmem:[%s3935_s22 + $0x10] sm:$0xff] %v1771_v12  ;;  %v3963_v48 = vpop.f32.mrb[68].mxu0  ;;  %v2871_v0 = vpop.f32.mrb[68].mxu1  ;;  %v521_v43 = vld [vmem:[%s3219_s30 + $0xac0] sm:$0xff] }
 0x1ab   : > { %v1786_v14 = vadd.f32 %v2871_v0, %v1081_v33  ;;  %v1227_v37 = vpop.f32.mrb[69].mxu0  ;;  %1489 = vmatmul.mubr.f32.gmra.mrb[174].mxu0 %v438_v60  ;;  %v1780_v57 = vpop.f32.mrb[69].mxu1  ;;  %3029 = vmatmul.mubr.msk.f32.gmra.mrb[174].mxu1 %vm604_vm0, %v512_v3  ;;  %v448_v0 = vld [vmem:[%s3219_s30 + $0x878] sm:$0xff] }
 0x1ac   : > { %v1781_v17 = vadd.f32 %v1780_v57, %v1076_v32  ;;  %1493 = vmatprep.mubr.f32.mxu0 %v442_v25  ;;  %3031 = vmatprep.mubr.msk.f32.mxu1 %vm604_vm0, %v515_v4  ;;  %v444_v4 = vld [vmem:[%s3219_s30 + $0x858] sm:$0xff]  ;;  %v1096_v37 = vadd.f32 %v3917_v11, %v3680_v19  ;;  %v1111_v19 = vadd.f32 %v3917_v11, %v3710_v51 }
 0x1ad   : > { %2404 = vst [vmem:[%s3935_s22 + $0x28] sm:$0xff] %v1786_v14  ;;  %v524_v32 = vld [vmem:[%s3219_s30 + $0xad8] sm:$0xff]  ;;  %v527_v14 = vld [vmem:[%s3219_s30 + $0xaf0] sm:$0xff] }
 0x1ae   : > { %2403 = vst [vmem:[%s3935_s22 + $0x20] sm:$0xff] %v1781_v17  ;;  %v3977_v12 = vpop.f32.mrb[70].mxu0  ;;  %v2874_v60 = vpop.f32.mrb[70].mxu1 }
 0x1af   : > { %v1796_v3 = vadd.f32 %v2874_v60, %v1091_v49  ;;  %v1232_v33 = vpop.f32.mrb[71].mxu0  ;;  %1494 = vmatmul.mubr.f32.gmra.mrb[176].mxu0 %v441_v38  ;;  %v1790_v9 = vpop.f32.mrb[71].mxu1  ;;  %3032 = vmatmul.mubr.msk.f32.gmra.mrb[176].mxu1 %vm604_vm0, %v518_v6  ;;  %v533_v60 = vld [vmem:[%s3219_s30 + $0xb20] sm:$0xff] }
 0x1b0   : > { %v1791_v25 = vadd.f32 %v1790_v9, %v1086_v41  ;;  %1498 = vmatprep.mubr.f32.mxu0 %v445_v59  ;;  %3034 = vmatprep.mubr.msk.f32.mxu1 %vm604_vm0, %v521_v43  ;;  %v447_v59 = vld [vmem:[%s3219_s30 + $0x870] sm:$0xff]  ;;  %v530_v43 = vld [vmem:[%s3219_s30 + $0xb08] sm:$0xff] }
 0x1b1   : > { %2406 = vst [vmem:[%s3935_s22 + $0x38] sm:$0xff] %v1796_v3  ;;  %v451_v41 = vld [vmem:[%s3219_s30 + $0x890] sm:$0xff]  ;;  %v1106_v3 = vadd.f32 %v3917_v11, %v3700_v39  ;;  %v1121_v39 = vadd.f32 %v3917_v11, %v3730_v7 }
 0x1b2   : > { %2405 = vst [vmem:[%s3935_s22 + $0x30] sm:$0xff] %v1791_v25  ;;  %v3991_v57 = vpop.f32.mrb[72].mxu0  ;;  %v2877_v17 = vpop.f32.mrb[72].mxu1 }
 0x1b3   : > { %v1806_v38 = vadd.f32 %v2877_v17, %v1101_v1  ;;  %v1237_v6 = vpop.f32.mrb[73].mxu0  ;;  %1499 = vmatmul.mubr.f32.gmra.mrb[178].mxu0 %v444_v4  ;;  %v1800_v29 = vpop.f32.mrb[73].mxu1  ;;  %3035 = vmatmul.mubr.msk.f32.gmra.mrb[178].mxu1 %vm604_vm0, %v524_v32  ;;  %v450_v1 = vld [vmem:[%s3219_s30 + $0x888] sm:$0xff]  ;;  %v1116_v17 = vadd.f32 %v3917_v11, %v3720_v61  ;;  %v1131_v61 = vadd.f32 %v3917_v11, %v3750_v35 }
 0x1b4   : > { %v1801_v49 = vadd.f32 %v1800_v29, %v1096_v37  ;;  %1503 = vmatprep.mubr.f32.mxu0 %v448_v0  ;;  %3037 = vmatprep.mubr.msk.f32.mxu1 %vm604_vm0, %v527_v14  ;;  %v536_v0 = vld [vmem:[%s3219_s30 + $0xb38] sm:$0xff]  ;;  %v454_v14 = vld [vmem:[%s3219_s30 + $0x8a8] sm:$0xff]  ;;  %v539_v37 = vld [vmem:[%s3219_s30 + $0xb50] sm:$0xff] }
 0x1b5   : > { %2408 = vst [vmem:[%s3935_s22 + $0x48] sm:$0xff] %v1806_v38 }
 0x1b6   : > { %2407 = vst [vmem:[%s3935_s22 + $0x40] sm:$0xff] %v1801_v49  ;;  %v4005_v33 = vpop.f32.mrb[74].mxu0  ;;  %v2880_v9 = vpop.f32.mrb[74].mxu1 }
 0x1b7   : > { %v1816_v25 = vadd.f32 %v2880_v9, %v1111_v19  ;;  %v1242_v4 = vpop.f32.mrb[75].mxu0  ;;  %1504 = vmatmul.mubr.f32.gmra.mrb[180].mxu0 %v447_v59  ;;  %v1810_v51 = vpop.f32.mrb[75].mxu1  ;;  %3038 = vmatmul.mubr.msk.f32.gmra.mrb[180].mxu1 %vm604_vm0, %v530_v43  ;;  %v453_v43 = vld [vmem:[%s3219_s30 + $0x8a0] sm:$0xff]  ;;  %v542_v19 = vld [vmem:[%s3219_s30 + $0xb68] sm:$0xff] }
 0x1b8   : > { %v1811_v32 = vadd.f32 %v1810_v51, %v1106_v3  ;;  %1508 = vmatprep.mubr.f32.mxu0 %v451_v41  ;;  %3040 = vmatprep.mubr.msk.f32.mxu1 %vm604_vm0, %v533_v60  ;;  %v457_v41 = vld [vmem:[%s3219_s30 + $0x8c0] sm:$0xff]  ;;  %v1126_v3 = vadd.f32 %v3917_v11, %v3740_v21  ;;  %v1141_v21 = vadd.f32 %v3917_v11, %v3770_v63 }
 0x1b9   : > { %2410 = vst [vmem:[%s3935_s22 + $0x58] sm:$0xff] %v1816_v25  ;;  %v545_v60 = vld [vmem:[%s3219_s30 + $0xb80] sm:$0xff] }
 0x1ba   : > { %2409 = vst [vmem:[%s3935_s22 + $0x50] sm:$0xff] %v1811_v32  ;;  %v4019_v38 = vpop.f32.mrb[76].mxu0  ;;  %v2883_v6 = vpop.f32.mrb[76].mxu1 }
 0x1bb   : > { %v1826_v29 = vadd.f32 %v2883_v6, %v1121_v39  ;;  %v1247_v49 = vpop.f32.mrb[77].mxu0  ;;  %1509 = vmatmul.mubr.f32.gmra.mrb[182].mxu0 %v450_v1  ;;  %v1820_v7 = vpop.f32.mrb[77].mxu1  ;;  %3041 = vmatmul.mubr.msk.f32.gmra.mrb[182].mxu1 %vm604_vm0, %v536_v0  ;;  %v456_v1 = vld [vmem:[%s3219_s30 + $0x8b8] sm:$0xff] }
 0x1bc   : > { %v1821_v59 = vadd.f32 %v1820_v7, %v1116_v17  ;;  %1513 = vmatprep.mubr.f32.mxu0 %v454_v14  ;;  %3043 = vmatprep.mubr.msk.f32.mxu1 %vm604_vm0, %v539_v37  ;;  %v548_v0 = vld [vmem:[%s3219_s30 + $0xb98] sm:$0xff]  ;;  %v551_v14 = vld [vmem:[%s3219_s30 + $0xbb0] sm:$0xff]  ;;  %v1136_v37 = vadd.f32 %v3917_v11, %v3760_v47  ;;  %v1151_v47 = vadd.f32 %v3917_v11, %v3790_v31 }
 0x1bd   : > { %2412 = vst [vmem:[%s3935_s22 + $0x68] sm:$0xff] %v1826_v29  ;;  %v460_v39 = vld [vmem:[%s3219_s30 + $0x8d8] sm:$0xff] }
 0x1be   : > { %2411 = vst [vmem:[%s3935_s22 + $0x60] sm:$0xff] %v1821_v59  ;;  %v4033_v9 = vpop.f32.mrb[78].mxu0  ;;  %v2886_v25 = vpop.f32.mrb[78].mxu1  ;;  %v459_v59 = vld [vmem:[%s3219_s30 + $0x8d0] sm:$0xff] }
 0x1bf   : > { %v1836_v4 = vadd.f32 %v2886_v25, %v1131_v61  ;;  %v1252_v51 = vpop.f32.mrb[79].mxu0  ;;  %1514 = vmatmul.mubr.f32.gmra.mrb[184].mxu0 %v453_v43  ;;  %v1830_v35 = vpop.f32.mrb[79].mxu1  ;;  %3044 = vmatmul.mubr.msk.f32.gmra.mrb[184].mxu1 %vm604_vm0, %v542_v19  ;;  %v554_v43 = vld [vmem:[%s3219_s30 + $0xbc8] sm:$0xff]  ;;  %v463_v19 = vld [vmem:[%s3219_s30 + $0x8f0] sm:$0xff]  ;;  %v557_v61 = vld [vmem:[%s3219_s30 + $0xbe0] sm:$0xff] }
 0x1c0   : > { %v1831_v32 = vadd.f32 %v1830_v35, %v1126_v3  ;;  %1518 = vmatprep.mubr.f32.mxu0 %v457_v41  ;;  %3046 = vmatprep.mubr.msk.f32.mxu1 %vm604_vm0, %v545_v60  ;;  %v1146_v41 = vadd.f32 %v3917_v11, %v3780_v13  ;;  %v462_v35 = vld [vmem:[%s3219_s30 + $0x8e8] sm:$0xff]  ;;  %v1161_v13 = vadd.f32 %v3917_v11, %v3810_v5 }
 0x1c1   : > { %2414 = vst [vmem:[%s3935_s22 + $0x78] sm:$0xff] %v1836_v4  ;;  %v1171_v5 = vadd.f32 %v3917_v11, %v3830_v55  ;;  %v1176_v55 = vadd.f32 %v3917_v11, %v3840_v15 }
 0x1c2   : > { %2413 = vst [vmem:[%s3935_s22 + $0x70] sm:$0xff] %v1831_v32  ;;  %v4047_v17 = vpop.f32.mrb[80].mxu0  ;;  %v2889_v6 = vpop.f32.mrb[80].mxu1  ;;  %v560_v32 = vld [vmem:[%s3219_s30 + $0xbf8] sm:$0xff] }
 0x1c3   : > { %v1846_v29 = vadd.f32 %v2889_v6, %v1141_v21  ;;  %v1257_v49 = vpop.f32.mrb[81].mxu0  ;;  %1519 = vmatmul.mubr.f32.gmra.mrb[186].mxu0 %v456_v1  ;;  %v1840_v63 = vpop.f32.mrb[81].mxu1  ;;  %3047 = vmatmul.mubr.msk.f32.gmra.mrb[186].mxu1 %vm604_vm0, %v548_v0  ;;  %v1156_v1 = vadd.f32 %v3917_v11, %v3800_v53  ;;  %v1166_v53 = vadd.f32 %v3917_v11, %v3820_v27 }
 0x1c4   : > { %v1841_v7 = vadd.f32 %v1840_v63, %v1136_v37  ;;  %1523 = vmatprep.mubr.f32.mxu0 %v460_v39  ;;  %3049 = vmatprep.mubr.msk.f32.mxu1 %vm604_vm0, %v551_v14 }
 0x1c5   : > { %2416 = vst [vmem:[%s3935_s22 + $0x88] sm:$0xff] %v1846_v29 }
 0x1c6   : > { %2415 = vst [vmem:[%s3935_s22 + $0x80] sm:$0xff] %v1841_v7  ;;  %v4061_v60 = vpop.f32.mrb[82].mxu0  ;;  %v2892_v3 = vpop.f32.mrb[82].mxu1 }
 0x1c7   : > { %v1856_v25 = vadd.f32 %v2892_v3, %v1151_v47  ;;  %v1262_v4 = vpop.f32.mrb[83].mxu0  ;;  %1524 = vmatmul.mubr.f32.gmra.mrb[188].mxu0 %v459_v59  ;;  %v1850_v51 = vpop.f32.mrb[83].mxu1  ;;  %3050 = vmatmul.mubr.msk.f32.gmra.mrb[188].mxu1 %vm604_vm0, %v554_v43  ;;  %v1181_v47 = vadd.f32 %v3917_v11, %v3850_v45  ;;  %v1186_v45 = vadd.f32 %v3917_v11, %v3860_v23 }
 0x1c8   : > { %v1851_v31 = vadd.f32 %v1850_v51, %v1146_v41  ;;  %1528 = vmatprep.mubr.f32.mxu0 %v463_v19  ;;  %3052 = vmatprep.mubr.msk.f32.mxu1 %vm604_vm0, %v557_v61  ;;  %v1191_v4 = vadd.f32 %v3917_v11, %v3870_v16  ;;  %v1196_v16 = vadd.f32 %v3917_v11, %v3880_v24 }
 0x1c9   : > { %2418 = vst [vmem:[%s3935_s22 + $0x98] sm:$0xff] %v1856_v25 }
 0x1ca   : > { %2417 = vst [vmem:[%s3935_s22 + $0x90] sm:$0xff] %v1851_v31  ;;  %v4073_v0 = vpop.f32.mrb[84].mxu0  ;;  %v2895_v21 = vpop.f32.mrb[84].mxu1 }
 0x1cb   : > { %v1866_v39 = vadd.f32 %v2895_v21, %v1161_v13  ;;  %v1267_v14 = vpop.f32.mrb[85].mxu0  ;;  %1529 = vmatmul.mubr.f32.gmra.mrb[190].mxu0 %v462_v35  ;;  %v1860_v37 = vpop.f32.mrb[85].mxu1  ;;  %3053 = vmatmul.mubr.msk.f32.gmra.mrb[190].mxu1 %vm604_vm0, %v560_v32 }
 0x1cc   : > { %v1861_v6 = vadd.f32 %v1860_v37, %v1156_v1  ;;  %v1201_v1 = vadd.f32 %v3917_v11, %v3890_v46  ;;  %v1206_v46 = vadd.f32 %v3917_v11, %v3900_v28 }
 0x1cd   : > { %2420 = vst [vmem:[%s3935_s22 + $0xa8] sm:$0xff] %v1866_v39 }
 0x1ce   : > { %2419 = vst [vmem:[%s3935_s22 + $0xa0] sm:$0xff] %v1861_v6  ;;  %v4082_v29 = vpop.f32.mrb[86].mxu0  ;;  %v2898_v49 = vpop.f32.mrb[86].mxu1 }
 0x1cf   : > { %v1876_v63 = vadd.f32 %v2898_v49, %v1171_v5  ;;  %v1272_v7 = vpop.f32.mrb[87].mxu0  ;;  %v1870_v59 = vpop.f32.mrb[87].mxu1  ;;  %v1211_v5 = vadd.f32 %v3917_v11, %v3910_v56  ;;  %v1216_v56 = vadd.f32 %v3917_v11, %v3930_v44 }
 0x1d0   : > { %v1871_v43 = vadd.f32 %v1870_v59, %v1166_v53 }
 0x1d1   : > { %2422 = vst [vmem:[%s3935_s22 + $0xb8] sm:$0xff] %v1876_v63 }
 0x1d2   : > { %2421 = vst [vmem:[%s3935_s22 + $0xb0] sm:$0xff] %v1871_v43  ;;  %v4090_v19 = vpop.f32.mrb[88].mxu0  ;;  %v2901_v27 = vpop.f32.mrb[88].mxu1  ;;  %v1221_v43 = vadd.f32 %v3917_v11, %v3949_v54  ;;  %v1226_v54 = vadd.f32 %v3917_v11, %v3963_v48 }
 0x1d3   : > { %v1886_v61 = vadd.f32 %v2901_v27, %v1181_v47  ;;  %v1277_v41 = vpop.f32.mrb[89].mxu0  ;;  %v1880_v3 = vpop.f32.mrb[89].mxu1 }
 0x1d4   : > { %v1881_v25 = vadd.f32 %v1880_v3, %v1176_v55  ;;  %v1231_v3 = vadd.f32 %v3917_v11, %v3977_v12  ;;  %v1236_v12 = vadd.f32 %v3917_v11, %v3991_v57 }
 0x1d5   : > { %2424 = vst [vmem:[%s3935_s22 + $0xc8] sm:$0xff] %v1886_v61 }
 0x1d6   : > { %2423 = vst [vmem:[%s3935_s22 + $0xc0] sm:$0xff] %v1881_v25  ;;  %v4098_v51 = vpop.f32.mrb[90].mxu0  ;;  %v2904_v15 = vpop.f32.mrb[90].mxu1 }
 0x1d7   : > { %v1896_v31 = vadd.f32 %v2904_v15, %v1191_v4  ;;  %v1282_v35 = vpop.f32.mrb[91].mxu0  ;;  %v1890_v32 = vpop.f32.mrb[91].mxu1 }
 0x1d8   : > { %v1891_v13 = vadd.f32 %v1890_v32, %v1186_v45  ;;  %v1241_v35 = vadd.f32 %v3917_v11, %v4005_v33  ;;  %v1246_v33 = vadd.f32 %v3917_v11, %v4019_v38 }
 0x1d9   : > { %2426 = vst [vmem:[%s3935_s22 + $0xd8] sm:$0xff] %v1896_v31 }
 0x1da   : > { %2425 = vst [vmem:[%s3935_s22 + $0xd0] sm:$0xff] %v1891_v13  ;;  %v4106_v21 = vpop.f32.mrb[92].mxu0  ;;  %v2907_v23 = vpop.f32.mrb[92].mxu1 }
 0x1db   : > { %v1906_v39 = vadd.f32 %v2907_v23, %v1201_v1  ;;  %v1287_v14 = vpop.f32.mrb[93].mxu0  ;;  %v1900_v37 = vpop.f32.mrb[93].mxu1 }
 0x1dc   : > { %v1901_v6 = vadd.f32 %v1900_v37, %v1196_v16 }
 0x1dd   : > { %2428 = vst [vmem:[%s3935_s22 + $0xe8] sm:$0xff] %v1906_v39  ;;  %v1251_v39 = vadd.f32 %v3917_v11, %v4033_v9  ;;  %v1256_v9 = vadd.f32 %v3917_v11, %v4047_v17 }
 0x1de   : > { %2427 = vst [vmem:[%s3935_s22 + $0xe0] sm:$0xff] %v1901_v6  ;;  %v4114_v53 = vpop.f32.mrb[94].mxu0  ;;  %v2910_v24 = vpop.f32.mrb[94].mxu1 }
 0x1df   : > { %v1916_v49 = vadd.f32 %v2910_v24, %v1211_v5  ;;  %v1292_v63 = vpop.f32.mrb[95].mxu0  ;;  %v1910_v7 = vpop.f32.mrb[95].mxu1  ;;  %v1261_v24 = vadd.f32 %v3917_v11, %v4061_v60  ;;  %v1266_v60 = vadd.f32 %v3917_v11, %v4073_v0 }
 0x1e0   : > { %v1911_v59 = vadd.f32 %v1910_v7, %v1206_v46 }
 0x1e1   : > { %2430 = vst [vmem:[%s3935_s22 + $0xf8] sm:$0xff] %v1916_v49 }
 0x1e2   : > { %2429 = vst [vmem:[%s3935_s22 + $0xf0] sm:$0xff] %v1911_v59  ;;  %v4122_v47 = vpop.f32.mrb[96].mxu0  ;;  %v2913_v28 = vpop.f32.mrb[96].mxu1 }
 0x1e3   : > { %v1926_v55 = vadd.f32 %v2913_v28, %v1221_v43  ;;  %v1297_v27 = vpop.f32.mrb[97].mxu0  ;;  %v1920_v61 = vpop.f32.mrb[97].mxu1 }
 0x1e4   : > { %v1921_v41 = vadd.f32 %v1920_v61, %v1216_v56  ;;  %v1271_v56 = vadd.f32 %v3917_v11, %v4082_v29  ;;  %v1276_v29 = vadd.f32 %v3917_v11, %v4090_v19 }
 0x1e5   : > { %2432 = vst [vmem:[%s3935_s22 + $0x108] sm:$0xff] %v1926_v55 }
 0x1e6   : > { %2431 = vst [vmem:[%s3935_s22 + $0x100] sm:$0xff] %v1921_v41  ;;  %v4130_v25 = vpop.f32.mrb[98].mxu0  ;;  %v2916_v44 = vpop.f32.mrb[98].mxu1 }
 0x1e7   : > { %v1936_v4 = vadd.f32 %v2916_v44, %v1231_v3  ;;  %v1302_v45 = vpop.f32.mrb[99].mxu0  ;;  %v1930_v15 = vpop.f32.mrb[99].mxu1  ;;  %v1281_v3 = vadd.f32 %v3917_v11, %v4098_v51  ;;  %v1286_v51 = vadd.f32 %v3917_v11, %v4106_v21 }
 0x1e8   : > { %v1931_v31 = vadd.f32 %v1930_v15, %v1226_v54 }
 0x1e9   : > { %2434 = vst [vmem:[%s3935_s22 + $0x118] sm:$0xff] %v1936_v4 }
 0x1ea   : > { %2433 = vst [vmem:[%s3935_s22 + $0x110] sm:$0xff] %v1931_v31  ;;  %v4138_v32 = vpop.f32.mrb[100].mxu0  ;;  %v2919_v48 = vpop.f32.mrb[100].mxu1  ;;  %v1291_v31 = vadd.f32 %v3917_v11, %v4114_v53  ;;  %v1296_v53 = vadd.f32 %v3917_v11, %v4122_v47 }
 0x1eb   : > { %v1946_v13 = vadd.f32 %v2919_v48, %v1241_v35  ;;  %v1307_v1 = vpop.f32.mrb[101].mxu0  ;;  %v1940_v16 = vpop.f32.mrb[101].mxu1 }
 0x1ec   : > { %v1941_v23 = vadd.f32 %v1940_v16, %v1236_v12  ;;  %v1301_v16 = vadd.f32 %v3917_v11, %v4130_v25 }
 0x1ed   : > { %2436 = vst [vmem:[%s3935_s22 + $0x128] sm:$0xff] %v1946_v13 }
 0x1ee   : > { %2435 = vst [vmem:[%s3935_s22 + $0x120] sm:$0xff] %v1941_v23  ;;  %v1310_v14 = vpop.f32.mrb[102].mxu0  ;;  %v2922_v57 = vpop.f32.mrb[102].mxu1 }
 0x1ef   : > { %v1956_v37 = vadd.f32 %v2922_v57, %v1251_v39  ;;  %v1312_v6 = vpop.f32.mrb[103].mxu0  ;;  %v1950_v5 = vpop.f32.mrb[103].mxu1 }
 0x1f0   : > { %v1951_v46 = vadd.f32 %v1950_v5, %v1246_v33  ;;  %v1311_v6 = vadd.f32 %v3917_v11, %v1310_v14  ;;  %v1306_v5 = vadd.f32 %v3917_v11, %v4138_v32 }
 0x1f1   : > { %2438 = vst [vmem:[%s3935_s22 + $0x138] sm:$0xff] %v1956_v37 }
 0x1f2   : > { %2437 = vst [vmem:[%s3935_s22 + $0x130] sm:$0xff] %v1951_v46  ;;  %v1315_v49 = vpop.f32.mrb[104].mxu0  ;;  %v2925_v63 = vpop.f32.mrb[104].mxu1 }
 0x1f3   : > { %v1966_v38 = vadd.f32 %v2925_v63, %v1261_v24  ;;  %v1317_v7 = vpop.f32.mrb[105].mxu0  ;;  %v1960_v59 = vpop.f32.mrb[105].mxu1 }
 0x1f4   : > { %v1961_v43 = vadd.f32 %v1960_v59, %v1256_v9  ;;  %v1316_v7 = vadd.f32 %v3917_v11, %v1315_v49 }
 0x1f5   : > { %2440 = vst [vmem:[%s3935_s22 + $0x148] sm:$0xff] %v1966_v38 }
 0x1f6   : > { %2439 = vst [vmem:[%s3935_s22 + $0x140] sm:$0xff] %v1961_v43  ;;  %v1320_v28 = vpop.f32.mrb[106].mxu0  ;;  %v2928_v55 = vpop.f32.mrb[106].mxu1 }
 0x1f7   : > { %v1976_v17 = vadd.f32 %v2928_v55, %v1271_v56  ;;  %v1322_v27 = vpop.f32.mrb[107].mxu0  ;;  %v1970_v61 = vpop.f32.mrb[107].mxu1  ;;  %v1321_v38 = vadd.f32 %v3917_v11, %v1320_v28 }
 0x1f8   : > { %v1971_v41 = vadd.f32 %v1970_v61, %v1266_v60 }
 0x1f9   : > { %2442 = vst [vmem:[%s3935_s22 + $0x158] sm:$0xff] %v1976_v17 }
 0x1fa   : > { %2441 = vst [vmem:[%s3935_s22 + $0x150] sm:$0xff] %v1971_v41  ;;  %v1325_v54 = vpop.f32.mrb[108].mxu0  ;;  %v2931_v44 = vpop.f32.mrb[108].mxu1 }
 0x1fb   : > { %v1986_v0 = vadd.f32 %v2931_v44, %v1281_v3  ;;  %v1327_v4 = vpop.f32.mrb[109].mxu0  ;;  %v1980_v45 = vpop.f32.mrb[109].mxu1  ;;  %v1326_v17 = vadd.f32 %v3917_v11, %v1325_v54 }
 0x1fc   : > { %v1981_v15 = vadd.f32 %v1980_v45, %v1276_v29 }
 0x1fd   : > { %2444 = vst [vmem:[%s3935_s22 + $0x168] sm:$0xff] %v1986_v0 }
 0x1fe   : > { %2443 = vst [vmem:[%s3935_s22 + $0x160] sm:$0xff] %v1981_v15  ;;  %v1330_v35 = vpop.f32.mrb[110].mxu0  ;;  %v2934_v12 = vpop.f32.mrb[110].mxu1 }
 0x1ff   : > { %v1996_v19 = vadd.f32 %v2934_v12, %v1291_v31  ;;  %v1332_v48 = vpop.f32.mrb[111].mxu0  ;;  %v1990_v13 = vpop.f32.mrb[111].mxu1  ;;  %v1331_v55 = vadd.f32 %v3917_v11, %v1330_v35 }
 0x200   : > { %v1991_v1 = vadd.f32 %v1990_v13, %v1286_v51 }
 0x201   : > { %2446 = vst [vmem:[%s3935_s22 + $0x178] sm:$0xff] %v1996_v19 }
 0x202   : > { %2445 = vst [vmem:[%s3935_s22 + $0x170] sm:$0xff] %v1991_v1  ;;  %v1335_v23 = vpop.f32.mrb[112].mxu0  ;;  %v2937_v39 = vpop.f32.mrb[112].mxu1 }
 0x203   : > { %v2006_v21 = vadd.f32 %v2937_v39, %v1301_v16  ;;  %v1337_v33 = vpop.f32.mrb[113].mxu0  ;;  %v2000_v57 = vpop.f32.mrb[113].mxu1  ;;  %v1336_v44 = vadd.f32 %v3917_v11, %v1335_v23 }
 0x204   : > { %v2001_v37 = vadd.f32 %v2000_v57, %v1296_v53 }
 0x205   : > { %2448 = vst [vmem:[%s3935_s22 + $0x188] sm:$0xff] %v2006_v21 }
 0x206   : > { %2447 = vst [vmem:[%s3935_s22 + $0x180] sm:$0xff] %v2001_v37  ;;  %v1340_v25 = vpop.f32.mrb[114].mxu0  ;;  %v2940_v46 = vpop.f32.mrb[114].mxu1 }
 0x207   : > { %v2016_v47 = vadd.f32 %v2940_v46, %v1311_v6  ;;  %v1342_v24 = vpop.f32.mrb[115].mxu0  ;;  %v2010_v9 = vpop.f32.mrb[115].mxu1  ;;  %v1341_v29 = vadd.f32 %v3917_v11, %v1340_v25 }
 0x208   : > { %v2011_v63 = vadd.f32 %v2010_v9, %v1306_v5 }
 0x209   : > { %2450 = vst [vmem:[%s3935_s22 + $0x198] sm:$0xff] %v2016_v47 }
 0x20a   : > { %2449 = vst [vmem:[%s3935_s22 + $0x190] sm:$0xff] %v2011_v63  ;;  %v1345_v14 = vpop.f32.mrb[116].mxu0  ;;  %v2943_v59 = vpop.f32.mrb[116].mxu1 }
 0x20b   : > { %v2026_v43 = vadd.f32 %v2943_v59, %v1321_v38  ;;  %v1347_v32 = vpop.f32.mrb[117].mxu0  ;;  %v2020_v56 = vpop.f32.mrb[117].mxu1  ;;  %v1346_v35 = vadd.f32 %v3917_v11, %v1345_v14 }
 0x20c   : > { %v2021_v60 = vadd.f32 %v2020_v56, %v1316_v7 }
 0x20d   : > { %2452 = vst [vmem:[%s3935_s22 + $0x1a8] sm:$0xff] %v2026_v43 }
 0x20e   : > { %2451 = vst [vmem:[%s3935_s22 + $0x1a0] sm:$0xff] %v2021_v60  ;;  %v1350_v27 = vpop.f32.mrb[118].mxu0  ;;  %v2946_v28 = vpop.f32.mrb[118].mxu1 }
 0x20f   : > { %v2036_v61 = vadd.f32 %v2946_v28, %v1331_v55  ;;  %v1352_v49 = vpop.f32.mrb[119].mxu0  ;;  %v2030_v41 = vpop.f32.mrb[119].mxu1  ;;  %v1351_v51 = vadd.f32 %v3917_v11, %v1350_v27 }
 0x210   : > { %v2031_v3 = vadd.f32 %v2030_v41, %v1326_v17 }
 0x211   : > { %2454 = vst [vmem:[%s3935_s22 + $0x1b8] sm:$0xff] %v2036_v61 }
 0x212   : > { %2453 = vst [vmem:[%s3935_s22 + $0x1b0] sm:$0xff] %v2031_v3  ;;  %v1355_v0 = vpop.f32.mrb[120].mxu0  ;;  %v2949_v4 = vpop.f32.mrb[120].mxu1 }
 0x213   : > { %v2046_v45 = vadd.f32 %v2949_v4, %v1341_v29  ;;  %v1357_v54 = vpop.f32.mrb[121].mxu0  ;;  %v2040_v15 = vpop.f32.mrb[121].mxu1  ;;  %v1356_v23 = vadd.f32 %v3917_v11, %v1355_v0 }
 0x214   : > { %v2041_v31 = vadd.f32 %v2040_v15, %v1336_v44 }
 0x215   : > { %2456 = vst [vmem:[%s3935_s22 + $0x1c8] sm:$0xff] %v2046_v45 }
 0x216   : > { %2455 = vst [vmem:[%s3935_s22 + $0x1c0] sm:$0xff] %v2041_v31  ;;  %v1360_v12 = vpop.f32.mrb[122].mxu0  ;;  %v2952_v19 = vpop.f32.mrb[122].mxu1 }
 0x217   : > { %v2056_v48 = vadd.f32 %v2952_v19, %v1351_v51  ;;  %v1362_v13 = vpop.f32.mrb[123].mxu0  ;;  %v2050_v1 = vpop.f32.mrb[123].mxu1  ;;  %v1361_v53 = vadd.f32 %v3917_v11, %v1360_v12 }
 0x218   : > { %v2051_v16 = vadd.f32 %v2050_v1, %v1346_v35 }
 0x219   : > { %2458 = vst [vmem:[%s3935_s22 + $0x1d8] sm:$0xff] %v2056_v48 }
 0x21a   : > { %2457 = vst [vmem:[%s3935_s22 + $0x1d0] sm:$0xff] %v2051_v16  ;;  %v1365_v39 = vpop.f32.mrb[124].mxu0  ;;  %v2955_v21 = vpop.f32.mrb[124].mxu1 }
 0x21b   : > { %v2066_v33 = vadd.f32 %v2955_v21, %v1361_v53  ;;  %v1367_v57 = vpop.f32.mrb[125].mxu0  ;;  %v2060_v37 = vpop.f32.mrb[125].mxu1  ;;  %v1366_v5 = vadd.f32 %v3917_v11, %v1365_v39 }
 0x21c   : > { %v2061_v6 = vadd.f32 %v2060_v37, %v1356_v23 }
 0x21d   : > { %2460 = vst [vmem:[%s3935_s22 + $0x1e8] sm:$0xff] %v2066_v33 }
 0x21e   : > { %2459 = vst [vmem:[%s3935_s22 + $0x1e0] sm:$0xff] %v2061_v6  ;;  %v1370_v25 = vpop.f32.mrb[126].mxu0  ;;  %v2958_v46 = vpop.f32.mrb[126].mxu1 }
 0x21f   : > { %v1371_v47 = vadd.f32 %v3917_v11, %v1370_v25  ;;  %v1372_v24 = vpop.f32.mrb[127].mxu0  ;;  %v2070_v9 = vpop.f32.mrb[127].mxu1 }
 0x220   : > { %v2071_v63 = vadd.f32 %v2070_v9, %v1366_v5 }
 0x221   : > { %v2076_v38 = vadd.f32 %v2958_v46, %v1371_v47 }
 0x222   : > { %2461 = vst [vmem:[%s3935_s22 + $0x1f0] sm:$0xff] %v2071_v63  ;;  %v1375_v7 = vpop.f32.mrb[128].mxu0  ;;  %v2961_v14 = vpop.f32.mrb[128].mxu1 }
 0x223   : > { %2462 = vst [vmem:[%s3935_s22 + $0x1f8] sm:$0xff] %v2076_v38  ;;  %v1376_v59 = vadd.f32 %v3917_v11, %v1375_v7  ;;  %v1377_v43 = vpop.f32.mrb[129].mxu0  ;;  %v2080_v32 = vpop.f32.mrb[129].mxu1 }
 0x225   : > { %v2081_v56 = vadd.f32 %v2080_v32, %v1376_v59 }
 0x226   : > { %v1380_v60 = vpop.f32.mrb[130].mxu0  ;;  %v2964_v55 = vpop.f32.mrb[130].mxu1 }
 0x227   : > { %2463 = vst [vmem:[%s3935_s22 + $0x200] sm:$0xff] %v2081_v56  ;;  %v1381_v17 = vadd.f32 %v3917_v11, %v1380_v60  ;;  %v1382_v27 = vpop.f32.mrb[131].mxu0  ;;  %v2090_v28 = vpop.f32.mrb[131].mxu1 }
 0x229   : > { %v2086_v61 = vadd.f32 %v2961_v14, %v1381_v17 }
 0x22a   : > { %v1385_v49 = vpop.f32.mrb[132].mxu0  ;;  %v2967_v41 = vpop.f32.mrb[132].mxu1 }
 0x22b   : > { %2464 = vst [vmem:[%s3935_s22 + $0x208] sm:$0xff] %v2086_v61  ;;  %v1386_v3 = vadd.f32 %v3917_v11, %v1385_v49  ;;  %v1387_v29 = vpop.f32.mrb[133].mxu0  ;;  %v2100_v44 = vpop.f32.mrb[133].mxu1 }
 0x22d   : > { %v2091_v0 = vadd.f32 %v2090_v28, %v1386_v3 }
 0x22e   : > { %v1390_v4 = vpop.f32.mrb[134].mxu0  ;;  %v2970_v45 = vpop.f32.mrb[134].mxu1 }
 0x22f   : > { %2465 = vst [vmem:[%s3935_s22 + $0x210] sm:$0xff] %v2091_v0  ;;  %v1391_v54 = vadd.f32 %v3917_v11, %v1390_v4  ;;  %v1392_v15 = vpop.f32.mrb[135].mxu0  ;;  %v2110_v31 = vpop.f32.mrb[135].mxu1 }
 0x231   : > { %v2096_v51 = vadd.f32 %v2964_v55, %v1391_v54 }
 0x232   : > { %v1395_v35 = vpop.f32.mrb[136].mxu0  ;;  %v2973_v12 = vpop.f32.mrb[136].mxu1 }
 0x233   : > { %2466 = vst [vmem:[%s3935_s22 + $0x218] sm:$0xff] %v2096_v51  ;;  %v1396_v19 = vadd.f32 %v3917_v11, %v1395_v35  ;;  %v1397_v48 = vpop.f32.mrb[137].mxu0  ;;  %v2120_v13 = vpop.f32.mrb[137].mxu1 }
 0x235   : > { %v2101_v1 = vadd.f32 %v2100_v44, %v1396_v19 }
 0x236   : > { %v1400_v16 = vpop.f32.mrb[138].mxu0  ;;  %v2976_v53 = vpop.f32.mrb[138].mxu1 }
 0x237   : > { %2467 = vst [vmem:[%s3935_s22 + $0x220] sm:$0xff] %v2101_v1  ;;  %v1401_v23 = vadd.f32 %v3917_v11, %v1400_v16  ;;  %v1402_v39 = vpop.f32.mrb[139].mxu0  ;;  %v2130_v21 = vpop.f32.mrb[139].mxu1 }
 0x239   : > { %v2106_v33 = vadd.f32 %v2967_v41, %v1401_v23 }
 0x23a   : > { %v1405_v57 = vpop.f32.mrb[140].mxu0  ;;  %v2979_v37 = vpop.f32.mrb[140].mxu1 }
 0x23b   : > { %2468 = vst [vmem:[%s3935_s22 + $0x228] sm:$0xff] %v2106_v33  ;;  %v1406_v6 = vadd.f32 %v3917_v11, %v1405_v57  ;;  %v1407_v5 = vpop.f32.mrb[141].mxu0  ;;  %v2140_v25 = vpop.f32.mrb[141].mxu1 }
 0x23d   : > { %v2111_v46 = vadd.f32 %v2110_v31, %v1406_v6 }
 0x23e   : > { %v1410_v47 = vpop.f32.mrb[142].mxu0  ;;  %v4220_v24 = vpop.f32.mrb[142].mxu1 }
 0x23f   : > { %2469 = vst [vmem:[%s3935_s22 + $0x230] sm:$0xff] %v2111_v46  ;;  %v1411_v9 = vadd.f32 %v3917_v11, %v1410_v47  ;;  %v1412_v63 = vpop.f32.mrb[143].mxu0  ;;  %v2150_v38 = vpop.f32.mrb[143].mxu1  ;;  %v4266_v46 = vld [vmem:[%s4428_s2] ss:$0 sm:$0xff] }
 0x241   : > { %v2116_v7 = vadd.f32 %v2970_v45, %v1411_v9 }
 0x242   : > { %v1415_v14 = vpop.f32.mrb[144].mxu0  ;;  %v4224_v59 = vpop.f32.mrb[144].mxu1 }
 0x243   : > { %2470 = vst [vmem:[%s3935_s22 + $0x238] sm:$0xff] %v2116_v7  ;;  %v1416_v43 = vadd.f32 %v3917_v11, %v1415_v14  ;;  %v1417_v32 = vpop.f32.mrb[145].mxu0  ;;  %v4228_v56 = vpop.f32.mrb[145].mxu1 }
 0x244   : > { %v1541_v32 = vadd.f32 %v4266_v46, %v3612_v26 }
 0x245   : > { %v2121_v60 = vadd.f32 %v2120_v13, %v1416_v43 }
 0x246   : > { %v1420_v55 = vpop.f32.mrb[146].mxu0  ;;  %v4230_v17 = vpop.f32.mrb[146].mxu1 }
 0x247   : > { %2471 = vst [vmem:[%s3935_s22 + $0x240] sm:$0xff] %v2121_v60  ;;  %v1421_v27 = vadd.f32 %v3917_v11, %v1420_v55  ;;  %v1422_v28 = vpop.f32.mrb[147].mxu0  ;;  %v4234_v61 = vpop.f32.mrb[147].mxu1  ;;  %v1536_v55 = vadd.f32 %v4266_v46, %v3602_v18  ;;  %v1546_v18 = vadd.f32 %v4266_v46, %v3622_v34  ;;  %v1556_v34 = vadd.f32 %v4266_v46, %v3642_v50 }
 0x248   : > { %v1566_v50 = vadd.f32 %v4266_v46, %v3662_v2  ;;  %v1576_v2 = vadd.f32 %v4266_v46, %v3682_v20  ;;  %v1586_v20 = vadd.f32 %v4266_v46, %v3702_v40  ;;  %v1596_v40 = vadd.f32 %v4266_v46, %v3722_v62 }
 0x249   : > { %v2126_v49 = vadd.f32 %v2973_v12, %v1421_v27  ;;  %v1606_v62 = vadd.f32 %v4266_v46, %v3742_v22  ;;  %v4447_v22 = vld [vmem:[#allocation2_spill] sm:$0xff] }
 0x24a   : > { %v1425_v41 = vpop.f32.mrb[148].mxu0  ;;  %v4236_v3 = vpop.f32.mrb[148].mxu1 }
 0x24b   : > { %2472 = vst [vmem:[%s3935_s22 + $0x248] sm:$0xff] %v2126_v49  ;;  %v1426_v29 = vadd.f32 %v3917_v11, %v1425_v41  ;;  %v1427_v44 = vpop.f32.mrb[149].mxu0  ;;  %v4240_v0 = vpop.f32.mrb[149].mxu1 }
 0x24d   : > { %v2131_v4 = vadd.f32 %v2130_v21, %v1426_v29 }
 0x24e   : > { %v1430_v45 = vpop.f32.mrb[150].mxu0  ;;  %v4242_v54 = vpop.f32.mrb[150].mxu1 }
 0x24f   : > { %2473 = vst [vmem:[%s3935_s22 + $0x250] sm:$0xff] %v2131_v4  ;;  %v1431_v15 = vadd.f32 %v3917_v11, %v1430_v45  ;;  %v1432_v31 = vpop.f32.mrb[151].mxu0  ;;  %v4246_v51 = vpop.f32.mrb[151].mxu1  ;;  %v1551_v4 = vadd.f32 %v4266_v46, %v3632_v42  ;;  %v1561_v42 = vadd.f32 %v4266_v46, %v3652_v58  ;;  %v1571_v58 = vadd.f32 %v4266_v46, %v3672_v10 }
 0x250   : > { %v1581_v10 = vadd.f32 %v4266_v46, %v3692_v30  ;;  %v1591_v30 = vadd.f32 %v4266_v46, %v3712_v52  ;;  %v1601_v52 = vadd.f32 %v4266_v46, %v3732_v8  ;;  %v1611_v8 = vadd.f32 %v4266_v46, %v3752_v36 }
 0x251   : > { %v2136_v35 = vadd.f32 %v2976_v53, %v1431_v15 }
 0x252   : > { %v1435_v12 = vpop.f32.mrb[152].mxu0  ;;  %v4248_v19 = vpop.f32.mrb[152].mxu1 }
 0x253   : > { %2474 = vst [vmem:[%s3935_s22 + $0x258] sm:$0xff] %v2136_v35  ;;  %v1436_v48 = vadd.f32 %v3917_v11, %v1435_v12  ;;  %v1437_v13 = vpop.f32.mrb[153].mxu0  ;;  %v4252_v1 = vpop.f32.mrb[153].mxu1 }
 0x255   : > { %v2141_v16 = vadd.f32 %v2140_v25, %v1436_v48 }
 0x256   : > { %v1440_v23 = vpop.f32.mrb[154].mxu0  ;;  %v4254_v39 = vpop.f32.mrb[154].mxu1 }
 0x257   : > { %2475 = vst [vmem:[%s3935_s22 + $0x260] sm:$0xff] %v2141_v16  ;;  %v1441_v21 = vadd.f32 %v3917_v11, %v1440_v23  ;;  %v1442_v33 = vpop.f32.mrb[155].mxu0  ;;  %v4258_v53 = vpop.f32.mrb[155].mxu1 }
 0x259   : > { %v2146_v57 = vadd.f32 %v2979_v37, %v1441_v21 }
 0x25a   : > { %v1445_v6 = vpop.f32.mrb[156].mxu0  ;;  %v4260_v5 = vpop.f32.mrb[156].mxu1 }
 0x25b   : > { %2476 = vst [vmem:[%s3935_s22 + $0x268] sm:$0xff] %v2146_v57  ;;  %v1446_v25 = vadd.f32 %v4266_v46, %v1445_v6  ;;  %v1447_v47 = vpop.f32.mrb[157].mxu0  ;;  %v4269_v9 = vpop.f32.mrb[157].mxu1 }
 0x25d   : > { %v2151_v11 = vadd.f32 %v2150_v38, %v1446_v25 }
 0x25e   : > { %v1450_v63 = vpop.f32.mrb[158].mxu0  ;;  %v4271_v7 = vpop.f32.mrb[158].mxu1 }
 0x25f   : > { %2477 = vst [vmem:[%s3935_s22 + $0x270] sm:$0xff] %v2151_v11  ;;  %v1451_v37 = vadd.f32 %v4266_v46, %v1450_v63  ;;  %v1452_v14 = vpop.f32.mrb[159].mxu0  ;;  %v4275_v43 = vpop.f32.mrb[159].mxu1 }
 0x261   : > { %v2156_v60 = vadd.f32 %v4220_v24, %v1451_v37 }
 0x262   : > { %v1455_v38 = vpop.f32.mrb[160].mxu0  ;;  %v3009_v27 = vpop.f32.mrb[160].mxu1 }
 0x263   : > { %2478 = vst [vmem:[%s3935_s22 + $0x278] sm:$0xff] %v2156_v60  ;;  %v1456_v28 = vadd.f32 %v4266_v46, %v1455_v38  ;;  %v2246_v49 = vadd.f32 %v3009_v27, %v1541_v32  ;;  %v1457_v41 = vpop.f32.mrb[161].mxu0  ;;  %v2240_v29 = vpop.f32.mrb[161].mxu1 }
 0x264   : > { %v2241_v44 = vadd.f32 %v2240_v29, %v1536_v55 }
 0x265   : > { %v2161_v26 = vadd.f32 %v4228_v56, %v1456_v28  ;;  %2496 = vst [vmem:[%s3935_s22 + $0x308] sm:$0xff] %v2246_v49 }
 0x266   : > { %2495 = vst [vmem:[%s3935_s22 + $0x300] sm:$0xff] %v2241_v44  ;;  %v1460_v24 = vpop.f32.mrb[162].mxu0  ;;  %v3012_v45 = vpop.f32.mrb[162].mxu1 }
 0x267   : > { %2479 = vst [vmem:[%s3935_s22 + $0x280] sm:$0xff] %v2161_v26  ;;  %v1461_v15 = vadd.f32 %v4266_v46, %v1460_v24  ;;  %v2256_v31 = vadd.f32 %v3012_v45, %v1551_v4  ;;  %v1462_v35 = vpop.f32.mrb[163].mxu0  ;;  %v2250_v12 = vpop.f32.mrb[163].mxu1 }
 0x268   : > { %v2251_v48 = vadd.f32 %v2250_v12, %v1546_v18 }
 0x269   : > { %v2166_v56 = vadd.f32 %v4224_v59, %v1461_v15  ;;  %2498 = vst [vmem:[%s3935_s22 + $0x318] sm:$0xff] %v2256_v31 }
 0x26a   : > { %2497 = vst [vmem:[%s3935_s22 + $0x310] sm:$0xff] %v2251_v48  ;;  %v1465_v13 = vpop.f32.mrb[164].mxu0  ;;  %v3015_v16 = vpop.f32.mrb[164].mxu1 }
 0x26b   : > { %2480 = vst [vmem:[%s3935_s22 + $0x288] sm:$0xff] %v2166_v56  ;;  %v1466_v23 = vadd.f32 %v4266_v46, %v1465_v13  ;;  %v2266_v21 = vadd.f32 %v3015_v16, %v1561_v42  ;;  %v1467_v33 = vpop.f32.mrb[165].mxu0  ;;  %v2260_v57 = vpop.f32.mrb[165].mxu1 }
 0x26c   : > { %v2261_v6 = vadd.f32 %v2260_v57, %v1556_v34 }
 0x26d   : > { %v2171_v59 = vadd.f32 %v4234_v61, %v1466_v23  ;;  %2500 = vst [vmem:[%s3935_s22 + $0x328] sm:$0xff] %v2266_v21 }
 0x26e   : > { %2499 = vst [vmem:[%s3935_s22 + $0x320] sm:$0xff] %v2261_v6  ;;  %v1470_v25 = vpop.f32.mrb[166].mxu0  ;;  %v3018_v47 = vpop.f32.mrb[166].mxu1  ;;  %v4446_v6 = vld [vmem:[#allocation3_spill] sm:$0xff] }
 0x26f   : > { %2481 = vst [vmem:[%s3935_s22 + $0x290] sm:$0xff] %v2171_v59  ;;  %v1471_v11 = vadd.f32 %v4266_v46, %v1470_v25  ;;  %v2276_v63 = vadd.f32 %v3018_v47, %v1571_v58  ;;  %v1472_v37 = vpop.f32.mrb[167].mxu0  ;;  %v2270_v14 = vpop.f32.mrb[167].mxu1  ;;  %v1621_v36 = vadd.f32 %v4266_v46, %v4446_v6  ;;  %v1616_v58 = vadd.f32 %v4266_v46, %v4447_v22 }
 0x270   : > { %v2271_v32 = vadd.f32 %v2270_v14, %v1566_v50  ;;  %v4448_v14 = vld [vmem:[#allocation5_spill] sm:$0xff] }
 0x271   : > { %v2176_v61 = vadd.f32 %v4230_v17, %v1471_v11  ;;  %2502 = vst [vmem:[%s3935_s22 + $0x338] sm:$0xff] %v2276_v63 }
 0x272   : > { %2501 = vst [vmem:[%s3935_s22 + $0x330] sm:$0xff] %v2271_v32  ;;  %v1475_v60 = vpop.f32.mrb[168].mxu0  ;;  %v3021_v55 = vpop.f32.mrb[168].mxu1 }
 0x273   : > { %2482 = vst [vmem:[%s3935_s22 + $0x298] sm:$0xff] %v2176_v61  ;;  %v1476_v38 = vadd.f32 %v4266_v46, %v1475_v60  ;;  %v2286_v27 = vadd.f32 %v3021_v55, %v1581_v10  ;;  %v1477_v28 = vpop.f32.mrb[169].mxu0  ;;  %v2280_v49 = vpop.f32.mrb[169].mxu1  ;;  %v4449_v10 = vld [vmem:[#allocation4_spill] sm:$0xff] }
 0x274   : > { %v2281_v41 = vadd.f32 %v2280_v49, %v1576_v2  ;;  %v1626_v61 = vadd.f32 %v4266_v46, %v4449_v10  ;;  %v4459_v10 = vld [vmem:[#allocation14_spill] sm:$0xff] }
 0x275   : > { %v2181_v17 = vadd.f32 %v4240_v0, %v1476_v38  ;;  %2504 = vst [vmem:[%s3935_s22 + $0x348] sm:$0xff] %v2286_v27 }
 0x276   : > { %2503 = vst [vmem:[%s3935_s22 + $0x340] sm:$0xff] %v2281_v41  ;;  %v1480_v29 = vpop.f32.mrb[170].mxu0  ;;  %v3024_v44 = vpop.f32.mrb[170].mxu1  ;;  %v4450_v41 = vld [vmem:[#allocation7_spill] sm:$0xff] }
 0x277   : > { %2483 = vst [vmem:[%s3935_s22 + $0x2a0] sm:$0xff] %v2181_v17  ;;  %v1481_v4 = vadd.f32 %v4266_v46, %v1480_v29  ;;  %v2296_v26 = vadd.f32 %v3024_v44, %v1591_v30  ;;  %v1482_v18 = vpop.f32.mrb[171].mxu0  ;;  %v2290_v24 = vpop.f32.mrb[171].mxu1  ;;  %v4451_v17 = vld [vmem:[#allocation6_spill] sm:$0xff] }
 0x278   : > { %v2291_v45 = vadd.f32 %v2290_v24, %v1586_v20  ;;  %v1636_v20 = vadd.f32 %v4266_v46, %v4451_v17 }
 0x279   : > { %v2186_v0 = vadd.f32 %v4236_v3, %v1481_v4  ;;  %2506 = vst [vmem:[%s3935_s22 + $0x358] sm:$0xff] %v2296_v26 }
 0x27a   : > { %2505 = vst [vmem:[%s3935_s22 + $0x350] sm:$0xff] %v2291_v45  ;;  %v1485_v15 = vpop.f32.mrb[172].mxu0  ;;  %v3027_v31 = vpop.f32.mrb[172].mxu1 }
 0x27b   : > { %2484 = vst [vmem:[%s3935_s22 + $0x2a8] sm:$0xff] %v2186_v0  ;;  %v1486_v35 = vadd.f32 %v4266_v46, %v1485_v15  ;;  %v2306_v12 = vadd.f32 %v3027_v31, %v1601_v52  ;;  %v1487_v48 = vpop.f32.mrb[173].mxu0  ;;  %v2300_v42 = vpop.f32.mrb[173].mxu1  ;;  %v4452_v52 = vld [vmem:[#allocation9_spill] sm:$0xff] }
 0x27c   : > { %v2301_v56 = vadd.f32 %v2300_v42, %v1596_v40  ;;  %v4453_v40 = vld [vmem:[#allocation8_spill] sm:$0xff] }
 0x27d   : > { %v2191_v3 = vadd.f32 %v4246_v51, %v1486_v35  ;;  %2508 = vst [vmem:[%s3935_s22 + $0x368] sm:$0xff] %v2306_v12  ;;  %v1646_v15 = vadd.f32 %v4266_v46, %v4453_v40 }
 0x27e   : > { %2507 = vst [vmem:[%s3935_s22 + $0x360] sm:$0xff] %v2301_v56  ;;  %v1490_v34 = vpop.f32.mrb[174].mxu0  ;;  %v3030_v13 = vpop.f32.mrb[174].mxu1 }
 0x27f   : > { %2485 = vst [vmem:[%s3935_s22 + $0x2b0] sm:$0xff] %v2191_v3  ;;  %v1491_v16 = vadd.f32 %v4266_v46, %v1490_v34  ;;  %v2316_v23 = vadd.f32 %v3030_v13, %v1611_v8  ;;  %v1492_v21 = vpop.f32.mrb[175].mxu0  ;;  %v2310_v33 = vpop.f32.mrb[175].mxu1  ;;  %v4454_v3 = vld [vmem:[#allocation11_spill] sm:$0xff]  ;;  %v4455_v34 = vld [vmem:[#allocation10_spill] sm:$0xff] }
 0x280   : > { %v2311_v57 = vadd.f32 %v2310_v33, %v1606_v62  ;;  %v1656_v13 = vadd.f32 %v4266_v46, %v4455_v34 }
 0x281   : > { %v2196_v51 = vadd.f32 %v4242_v54, %v1491_v16  ;;  %2510 = vst [vmem:[%s3935_s22 + $0x378] sm:$0xff] %v2316_v23  ;;  %v1631_v54 = vadd.f32 %v4266_v46, %v4448_v14 }
 0x282   : > { %2509 = vst [vmem:[%s3935_s22 + $0x370] sm:$0xff] %v2311_v57  ;;  %v1495_v59 = vpop.f32.mrb[176].mxu0  ;;  %v3033_v50 = vpop.f32.mrb[176].mxu1 }
 0x283   : > { %2486 = vst [vmem:[%s3935_s22 + $0x2b8] sm:$0xff] %v2196_v51  ;;  %v1496_v25 = vadd.f32 %v4266_v46, %v1495_v59  ;;  %v2326_v47 = vadd.f32 %v3033_v50, %v1621_v36  ;;  %v1497_v11 = vpop.f32.mrb[177].mxu0  ;;  %v2320_v63 = vpop.f32.mrb[177].mxu1  ;;  %v4456_v51 = vld [vmem:[#allocation13_spill] sm:$0xff] }
 0x284   : > { %v2321_v37 = vadd.f32 %v2320_v63, %v1616_v58  ;;  %v4457_v58 = vld [vmem:[#allocation12_spill] sm:$0xff] }
 0x285   : > { %v2201_v32 = vadd.f32 %v4252_v1, %v1496_v25  ;;  %2512 = vst [vmem:[%s3935_s22 + $0x388] sm:$0xff] %v2326_v47  ;;  %v1641_v1 = vadd.f32 %v4266_v46, %v4450_v41  ;;  %v1666_v59 = vadd.f32 %v4266_v46, %v4457_v58  ;;  %v4460_v41 = vld [vmem:[#allocation17_spill] sm:$0xff] }
 0x286   : > { %2511 = vst [vmem:[%s3935_s22 + $0x380] sm:$0xff] %v2321_v37  ;;  %v1500_v2 = vpop.f32.mrb[178].mxu0  ;;  %v3036_v60 = vpop.f32.mrb[178].mxu1 }
 0x287   : > { %2487 = vst [vmem:[%s3935_s22 + $0x2c0] sm:$0xff] %v2201_v32  ;;  %v1501_v55 = vadd.f32 %v4266_v46, %v1500_v2  ;;  %v2336_v38 = vadd.f32 %v3036_v60, %v1631_v54  ;;  %v1502_v27 = vpop.f32.mrb[179].mxu0  ;;  %v2330_v28 = vpop.f32.mrb[179].mxu1  ;;  %v4458_v54 = vld [vmem:[#allocation15_spill] sm:$0xff] }
 0x288   : > { %v2331_v49 = vadd.f32 %v2330_v28, %v1626_v61  ;;  %v1676_v61 = vadd.f32 %v4266_v46, %v4459_v10 }
 0x289   : > { %v2206_v30 = vadd.f32 %v4248_v19, %v1501_v55  ;;  %2514 = vst [vmem:[%s3935_s22 + $0x398] sm:$0xff] %v2336_v38  ;;  %v1651_v19 = vadd.f32 %v4266_v46, %v4452_v52 }
 0x28a   : > { %2513 = vst [vmem:[%s3935_s22 + $0x390] sm:$0xff] %v2331_v49  ;;  %v1505_v29 = vpop.f32.mrb[180].mxu0  ;;  %v3039_v44 = vpop.f32.mrb[180].mxu1 }
 0x28b   : > { %2488 = vst [vmem:[%s3935_s22 + $0x2c8] sm:$0xff] %v2206_v30  ;;  %v1506_v4 = vadd.f32 %v4266_v46, %v1505_v29  ;;  %v2346_v26 = vadd.f32 %v3039_v44, %v1641_v1  ;;  %v1507_v18 = vpop.f32.mrb[181].mxu0  ;;  %v2340_v24 = vpop.f32.mrb[181].mxu1  ;;  %v4461_v30 = vld [vmem:[#allocation16_spill] sm:$0xff] }
 0x28c   : > { %v2341_v45 = vadd.f32 %v2340_v24, %v1636_v20  ;;  %v1686_v17 = vadd.f32 %v4266_v46, %v4461_v30 }
 0x28d   : > { %v2211_v0 = vadd.f32 %v4258_v53, %v1506_v4  ;;  %2516 = vst [vmem:[%s3935_s22 + $0x3a8] sm:$0xff] %v2346_v26  ;;  %v1661_v53 = vadd.f32 %v4266_v46, %v4454_v3 }
 0x28e   : > { %2515 = vst [vmem:[%s3935_s22 + $0x3a0] sm:$0xff] %v2341_v45  ;;  %v1510_v31 = vpop.f32.mrb[182].mxu0  ;;  %v3042_v35 = vpop.f32.mrb[182].mxu1 }
 0x28f   : > { %2489 = vst [vmem:[%s3935_s22 + $0x2d0] sm:$0xff] %v2211_v0  ;;  %v1511_v12 = vadd.f32 %v4266_v46, %v1510_v31  ;;  %v2356_v48 = vadd.f32 %v3042_v35, %v1651_v19  ;;  %v1512_v42 = vpop.f32.mrb[183].mxu0  ;;  %v2350_v56 = vpop.f32.mrb[183].mxu1 }
 0x290   : > { %v2351_v8 = vadd.f32 %v2350_v56, %v1646_v15 }
 0x291   : > { %v2216_v62 = vadd.f32 %v4254_v39, %v1511_v12  ;;  %2518 = vst [vmem:[%s3935_s22 + $0x3b8] sm:$0xff] %v2356_v48  ;;  %v1671_v39 = vadd.f32 %v4266_v46, %v4456_v51 }
 0x292   : > { %2517 = vst [vmem:[%s3935_s22 + $0x3b0] sm:$0xff] %v2351_v8  ;;  %v1515_v16 = vpop.f32.mrb[184].mxu0  ;;  %v3045_v23 = vpop.f32.mrb[184].mxu1 }
 0x293   : > { %2490 = vst [vmem:[%s3935_s22 + $0x2d8] sm:$0xff] %v2216_v62  ;;  %v1516_v21 = vadd.f32 %v4266_v46, %v1515_v16  ;;  %v2366_v33 = vadd.f32 %v3045_v23, %v1661_v53  ;;  %v1517_v57 = vpop.f32.mrb[185].mxu0  ;;  %v2360_v6 = vpop.f32.mrb[185].mxu1 }
 0x294   : > { %v2361_v36 = vadd.f32 %v2360_v6, %v1656_v13 }
 0x295   : > { %v2221_v22 = vadd.f32 %v4269_v9, %v1516_v21  ;;  %2520 = vst [vmem:[%s3935_s22 + $0x3c8] sm:$0xff] %v2366_v33  ;;  %v1681_v9 = vadd.f32 %v4266_v46, %v4458_v54 }
 0x296   : > { %2519 = vst [vmem:[%s3935_s22 + $0x3c0] sm:$0xff] %v2361_v36  ;;  %v1520_v50 = vpop.f32.mrb[186].mxu0  ;;  %v3048_v25 = vpop.f32.mrb[186].mxu1 }
 0x297   : > { %2491 = vst [vmem:[%s3935_s22 + $0x2e0] sm:$0xff] %v2221_v22  ;;  %v1521_v47 = vadd.f32 %v4266_v46, %v1520_v50  ;;  %v2376_v11 = vadd.f32 %v3048_v25, %v1671_v39  ;;  %v1522_v63 = vpop.f32.mrb[187].mxu0  ;;  %v2370_v37 = vpop.f32.mrb[187].mxu1 }
 0x298   : > { %v2371_v14 = vadd.f32 %v2370_v37, %v1666_v59 }
 0x299   : > { %v2226_v32 = vadd.f32 %v4260_v5, %v1521_v47  ;;  %2522 = vst [vmem:[%s3935_s22 + $0x3d8] sm:$0xff] %v2376_v11  ;;  %v1691_v5 = vadd.f32 %v4266_v46, %v4460_v41 }
 0x29a   : > { %2521 = vst [vmem:[%s3935_s22 + $0x3d0] sm:$0xff] %v2371_v14  ;;  %v1525_v2 = vpop.f32.mrb[188].mxu0  ;;  %v3051_v60 = vpop.f32.mrb[188].mxu1 }
 0x29b   : > { %2492 = vst [vmem:[%s3935_s22 + $0x2e8] sm:$0xff] %v2226_v32  ;;  %v1526_v55 = vadd.f32 %v4266_v46, %v1525_v2  ;;  %v2386_v38 = vadd.f32 %v3051_v60, %v1681_v9  ;;  %v1527_v27 = vpop.f32.mrb[189].mxu0  ;;  %v2380_v28 = vpop.f32.mrb[189].mxu1 }
 0x29c   : > { %v2381_v49 = vadd.f32 %v2380_v28, %v1676_v61 }
 0x29d   : > { %v2231_v1 = vadd.f32 %v4275_v43, %v1526_v55  ;;  %2524 = vst [vmem:[%s3935_s22 + $0x3e8] sm:$0xff] %v2386_v38 }
 0x29e   : > { %2523 = vst [vmem:[%s3935_s22 + $0x3e0] sm:$0xff] %v2381_v49  ;;  %v1530_v20 = vpop.f32.mrb[190].mxu0  ;;  %v3054_v29 = vpop.f32.mrb[190].mxu1 }
 0x29f   : > { %2493 = vst [vmem:[%s3935_s22 + $0x2f0] sm:$0xff] %v2231_v1  ;;  %v1531_v44 = vadd.f32 %v4266_v46, %v1530_v20  ;;  %v2396_v4 = vadd.f32 %v3054_v29, %v1691_v5  ;;  %v1532_v26 = vpop.f32.mrb[191].mxu0  ;;  %v2390_v18 = vpop.f32.mrb[191].mxu1 }
 0x2a0   : > { %v2391_v24 = vadd.f32 %v2390_v18, %v1686_v17 }
 0x2a1   : > { %v2236_v45 = vadd.f32 %v4271_v7, %v1531_v44  ;;  %2526 = vst [vmem:[%s3935_s22 + $0x3f8] sm:$0xff] %v2396_v4 }
 0x2a2   : > { %2525 = vst [vmem:[%s3935_s22 + $0x3f0] sm:$0xff] %v2391_v24 }
 0x2a3   : > { %2494 = vst [vmem:[%s3935_s22 + $0x2f8] sm:$0xff] %v2236_v45 }
 0x2a4 PF: > { %s13_s12 = sadd.s32 1, %s3160_s12  }
 0x2a5   : > { %p10_p4 = scmp.ge.s32.totalorder %s13_s12, 4  }
 0x2a7   :  { %12 = sbr.rel (!%p10_p4) target bundleno = 1 (0x1), region = 62 }

</bundles_post_ra>
